<compile_context>
chip_gen: v7x
topology: tpu7x:2x2x1
jax: 0.10.0
libtpu: 0.0.40
codegen_flags: <defaults>
</compile_context>

<pallas_src>
import jax
import jax.numpy as jnp
from jax.experimental import pallas as pl
from jax.experimental.pallas import tpu as pltpu

F32 = jnp.float32
HO = WO = 10          # pooled spatial size of a 19x19 input under MaxPool(3,2,1)
HI = WI = 19          # module hardcodes UpsamplingBilinear2d(size=(19, 19))


# ----------------------------- Pallas kernels -------------------------------

def _pool_double_bottleneck_kernel(ee_ref, eo_ref, oe_ref, oo_ref, wmask_ref,
                                   w1_ref, s1_ref, b1_ref,
                                   w2_ref, s2_ref, b2_ref,
                                   w3_ref, s3_ref, b3_ref,
                                   m_ref, pooled_ref, hpad_ref):
    """Per-batch: maxpool(3,2,1) -> Bottleneck -> Bottleneck, all VMEM-resident."""
    # ---- MaxPool 3x3 / stride 2 / pad 1 ------------------------------------
    # ee/eo/oe/oo are the even/odd row/col slabs of the padded input, so every
    # pooling tap is a unit-stride slice.  Result is written row-by-row into a
    # flat (100, C) scratch (row index = h*10 + w).
    def row_max_even(i):          # padded row 2*i
        a = ee_ref[0, i, 0:WO, :]
        b = eo_ref[0, i, 0:WO, :]
        c = ee_ref[0, i, 1:WO + 1, :]
        return jnp.maximum(jnp.maximum(a, b), c)

    def row_max_odd(i):           # padded row 2*i + 1
        a = oe_ref[0, i, 0:WO, :]
        b = oo_ref[0, i, 0:WO, :]
        c = oe_ref[0, i, 1:WO + 1, :]
        return jnp.maximum(jnp.maximum(a, b), c)

    re_rows = [row_max_even(i) for i in range(HO + 1)]
    for h in range(HO):
        prow = jnp.maximum(jnp.maximum(re_rows[h], row_max_odd(h)), re_rows[h + 1])
        pooled_ref[h * WO:(h + 1) * WO, :] = prow

    # ---- two Bottlenecks ----------------------------------------------------
    P = hpad_ref.shape[1]
    M = HO * WO
    hpad_ref[...] = jnp.zeros_like(hpad_ref)   # zero halo once; core rows rewritten
    cur = pooled_ref[...]                      # (100, C)
    for i in range(2):
        x2 = cur
        # conv1x1 -> BN -> ReLU
        h = jnp.dot(x2, w1_ref[i, :, :], preferred_element_type=jnp.float32)
        h = jnp.maximum(h * s1_ref[i, :, :] + b1_ref[i, :, :], 0.0)       # (100, P)
        # conv3x3 (pad=1): 9 shifted-slice matmuls from a zero-padded scratch
        hpad_ref[11:11 + M, :] = h
        acc = jnp.zeros((M, P), jnp.float32)
        for dy in range(3):
            for dx in range(3):
                off = (dy - 1) * WO + (dx - 1)
                tap = hpad_ref[11 + off:11 + off + M, :]
                if dx != 1:                      # column-validity mask
                    tap = tap * wmask_ref[dx]
                acc = acc + jnp.dot(tap, w2_ref[i, dy * 3 + dx, :, :],
                                    preferred_element_type=jnp.float32)
        h2 = jnp.maximum(acc * s2_ref[i, :, :] + b2_ref[i, :, :], 0.0)    # (100, P)
        # conv1x1 -> BN -> add residual -> ReLU
        y = jnp.dot(h2, w3_ref[i, :, :], preferred_element_type=jnp.float32)
        cur = jnp.maximum(y * s3_ref[i, :, :] + b3_ref[i, :, :] + x2, 0.0)
    m_ref[0, :, :] = cur


def _upsample_tail_kernel(u_ref, m_ref, x_ref, sa_ref, ba_ref, wa_ref,
                          sb_ref, bb_ref, wb_ref, out_ref, mask_ref):
    """Per-batch: bilinear upsample (one matmul) + softmax2_blocks + (1+mask)*x."""
    mb = m_ref[0, :, :]                                                  # (100, C)
    up = jnp.dot(u_ref[...], mb, preferred_element_type=jnp.float32)     # (361, C)
    s = up + x_ref[0, :, :]
    t = jnp.maximum(s * sa_ref[...] + ba_ref[...], 0.0)
    h = jnp.dot(t, wa_ref[...], preferred_element_type=jnp.float32)      # (361, C)
    t2 = jnp.maximum(h * sb_ref[...] + bb_ref[...], 0.0)
    z = jnp.dot(t2, wb_ref[...], preferred_element_type=jnp.float32)     # (361, 1)
    mask = pl.reciprocal(1.0 + jnp.exp(-z), approx=True)                 # sigmoid
    mask_ref[0, :, :] = mask
    out_ref[0, :, :] = (1.0 + mask) * x_ref[0, :, :]


# ----------------------------- pallas_call glue ------------------------------

def _batch_spec(a):
    shp = (1,) + a.shape[1:]
    return pl.BlockSpec(shp, lambda b, _n=len(shp) - 1: (b,) + (0,) * _n)


def _const_spec(a):
    return pl.BlockSpec(a.shape, lambda b, _n=a.ndim: (0,) * _n)


def fused_pool_bottlenecks(ee, eo, oe, oo, wmask, wpack):
    N = ee.shape[0]
    C = ee.shape[-1]
    P = wpack['w1'].shape[-1]
    weights = [wpack[k] for k in ('w1', 's1', 'b1', 'w2', 's2', 'b2', 'w3', 's3', 'b3')]
    return pl.pallas_call(
        _pool_double_bottleneck_kernel,
        out_shape=jax.ShapeDtypeStruct((N, HO * WO, C), F32),
        grid_spec=pltpu.PrefetchScalarGridSpec(
            num_scalar_prefetch=0,
            grid=(N,),
            in_specs=[_batch_spec(ee), _batch_spec(eo), _batch_spec(oe),
                      _batch_spec(oo), _const_spec(wmask)]
                     + [_const_spec(w) for w in weights],
            out_specs=pl.BlockSpec((1, HO * WO, C), lambda b: (b, 0, 0)),
            scratch_shapes=[pltpu.VMEM((HO * WO, C), F32),   # pooled / flat acts
                            pltpu.VMEM((128, P), F32)]),     # zero-padded conv halo
        compiler_params=pltpu.CompilerParams(dimension_semantics=("parallel",)),
    )(ee, eo, oe, oo, wmask, *weights)


def fused_upsample_tail(U, m, x_flat, params):
    N, M2, C = x_flat.shape
    return pl.pallas_call(
        _upsample_tail_kernel,
        out_shape=(jax.ShapeDtypeStruct((N, M2, C), F32),
                   jax.ShapeDtypeStruct((N, M2, 1), F32)),
        grid_spec=pltpu.PrefetchScalarGridSpec(
            num_scalar_prefetch=0,
            grid=(N,),
            in_specs=[_const_spec(U), _batch_spec(m), _batch_spec(x_flat),
                      _const_spec(params['sa']), _const_spec(params['ba']),
                      _const_spec(params['wa']), _const_spec(params['sb']),
                      _const_spec(params['bb']), _const_spec(params['wb'])],
            out_specs=(pl.BlockSpec((1, M2, C), lambda b: (b, 0, 0)),
                       pl.BlockSpec((1, M2, 1), lambda b: (b, 0, 0)))),
        compiler_params=pltpu.CompilerParams(dimension_semantics=("parallel",)),
    )(U, m, x_flat, params['sa'], params['ba'], params['wa'],
      params['sb'], params['bb'], params['wb'])


# ----------------------------- forward wrapper --------------------------------

def _interp_matrix(out_size, in_size):
    # bilinear, align_corners=True  (nn.UpsamplingBilinear2d)
    i = jnp.arange(out_size, dtype=F32)
    pos = i * (in_size - 1) / (out_size - 1)
    lo = jnp.clip(jnp.floor(pos), 0, in_size - 2).astype(jnp.int32)
    frac = pos - lo.astype(F32)
    rows = jnp.arange(out_size)
    U = jnp.zeros((out_size, in_size), F32)
    U = U.at[rows, lo].add(1.0 - frac)
    U = U.at[rows, lo + 1].add(frac)
    return U


def bottom_up_top_down_attention(x, params):
    # x: (N, 19, 19, C) NHWC
    N, H, W, C = x.shape
    assert H == HI and W == WI, "module hardcodes UpsamplingBilinear2d(size=(19,19))"

    # even/odd row/col slabs of the (-inf padded) input: together they hold the
    # padded input exactly once (no 9x maxpool-tap duplication in HBM).
    xp = jnp.pad(x, ((0, 0), (1, 1), (1, 1), (0, 0)), constant_values=-jnp.inf)
    ee = xp[:, 0::2, 0::2, :]   # (N, 11, 11, C)
    eo = xp[:, 0::2, 1::2, :]   # (N, 11, 10, C)
    oe = xp[:, 1::2, 0::2, :]   # (N, 10, 11, C)
    oo = xp[:, 1::2, 1::2, :]   # (N, 10, 10, C)

    # conv3x3 column-validity masks for tap offsets dx in {0, 1, 2}
    wcol = jnp.arange(HO * WO, dtype=jnp.int32) % WO
    wmask = jnp.stack([wcol >= 1, jnp.ones_like(wcol, dtype=bool), wcol <= WO - 2], 0)
    wmask = wmask.astype(F32)[:, :, None]                        # (3, 100, 1)

    # stack the two Bottlenecks' folded weights along a leading dim of 2
    wpack = {k: jnp.stack([params['bneck1'][k], params['bneck2'][k]], 0)
             for k in ('w1', 's1', 'b1', 'w2', 's2', 'b2', 'w3', 's3', 'b3')}

    m = fused_pool_bottlenecks(ee, eo, oe, oo, wmask, wpack)     # (N, 100, C)

    # single bilinear-interpolation matrix: row = p*19+q, col = h*10+w
    U = jnp.kron(_interp_matrix(HI, HO), _interp_matrix(WI, WO))  # (361, 100)

    x_flat = x.reshape(N, H * W, C)
    out, mask = fused_upsample_tail(U, m, x_flat, params)
    return out.reshape(N, H, W, C), mask.reshape(N, H, W, 1)


# ----------------------------- parameters ------------------------------------

def _fold_bn(gamma, beta, mean, var, eps=1e-5):
    scale = gamma / jnp.sqrt(var + eps)
    bias = beta - mean * scale
    return scale.reshape(1, -1), bias.reshape(1, -1)


def init_params(key, in_channels, out_channels=1):
    assert out_channels == 1, "final mask broadcast assumes out_channels == 1"
    C = in_channels
    P = C // 4
    keys = iter(jax.random.split(key, 64))

    def conv_w(cout, cin, k):
        fan_in = cin * k * k
        return jax.random.normal(next(keys), (cout, cin, k, k), F32) / jnp.sqrt(fan_in)

    def bn_p(c):
        gamma = 1.0 + 0.1 * jax.random.normal(next(keys), (c,), F32)
        beta = 0.1 * jax.random.normal(next(keys), (c,), F32)
        mean = 0.1 * jax.random.normal(next(keys), (c,), F32)
        var = 0.5 + 0.5 * jnp.abs(jax.random.normal(next(keys), (c,), F32))
        return _fold_bn(gamma, beta, mean, var)

    def bneck():
        w1 = conv_w(P, C, 1)[:, :, 0, 0].T                               # (C, P)
        s1, b1 = bn_p(P)
        w2 = conv_w(P, P, 3).transpose(2, 3, 1, 0).reshape(9, P, P)      # (9, Pin, Pout)
        s2, b2 = bn_p(P)
        w3 = conv_w(C, P, 1)[:, :, 0, 0].T                               # (P, C)
        s3, b3 = bn_p(C)
        return dict(w1=w1, s1=s1, b1=b1, w2=w2, s2=s2, b2=b2, w3=w3, s3=s3, b3=b3)

    b1 = bneck()
    b2 = bneck()
    sa, ba = bn_p(C)
    wa = conv_w(C, C, 1)[:, :, 0, 0].T                                    # (C, C)
    sb, bb = bn_p(C)
    wb = conv_w(out_channels, C, 1)[:, :, 0, 0].T                         # (C, 1)
    return dict(bneck1=b1, bneck2=b2, sa=sa, ba=ba, wa=wa, sb=sb, bb=bb, wb=wb)


# ----------------------------- pure-JAX reference ----------------------------

def _im2col_3x3(x):
    # x: (N, H, W, P) -> (N, H, W, 9*P) patches, ordered (ky, kx, cin)
    N, H, W, _ = x.shape
    xp = jnp.pad(x, ((0, 0), (1, 1), (1, 1), (0, 0)))
    cols = [xp[:, dy:dy + H, dx:dx + W, :] for dy in range(3) for dx in range(3)]
    return jnp.concatenate(cols, axis=-1)


def reference_forward(x, params):
    N, H, W, C = x.shape
    P = C // 4
    xp = jnp.pad(x, ((0, 0), (1, 1), (1, 1), (0, 0)), constant_values=-jnp.inf)
    Ho = (H - 1) // 2 + 1
    Wo = (W - 1) // 2 + 1
    taps = [xp[:, dy:dy + 2 * Ho:2, dx:dx + 2 * Wo:2, :]
            for dy in range(3) for dx in range(3)]
    m = jnp.max(jnp.stack(taps, 0), axis=0)

    def bneck(xx, p):
        n, h, w, c = xx.shape
        x2 = xx.reshape(-1, c)
        t = jnp.maximum(x2 @ p['w1'] * p['s1'] + p['b1'], 0.0)
        patches = _im2col_3x3(t.reshape(n, h, w, P)).reshape(-1, 9 * P)
        t = jnp.maximum(patches @ p['w2'].reshape(9 * P, P) * p['s2'] + p['b2'], 0.0)
        t = jnp.maximum(t @ p['w3'] * p['s3'] + p['b3'] + x2, 0.0)
        return t.reshape(n, h, w, c)

    m = bneck(m, params['bneck1'])
    m = bneck(m, params['bneck2'])
    Uh = _interp_matrix(H, m.shape[1])
    Uw = _interp_matrix(W, m.shape[2])
    up = jnp.einsum('ph,qw,nhwc->npqc', Uh, Uw, m)
    s = (up + x).reshape(-1, C)
    t = jnp.maximum(s * params['sa'] + params['ba'], 0.0) @ params['wa']
    t = jnp.maximum(t * params['sb'] + params['bb'], 0.0)
    z = t @ params['wb']
    mask = 1.0 / (1.0 + jnp.exp(-z))
    out = (1.0 + mask) * x.reshape(-1, C)
    return out.reshape(N, H, W, C), mask.reshape(N, H, W, 1)


# ----------------------------- main -------------------------------------------

if __name__ == "__main__":
    N, C, H, W = 2, 32, 19, 19          # small stand-in for (N, 728, 19, 19)
    key = jax.random.PRNGKey(0)
    kx, kp = jax.random.split(key)
    x_nchw = jax.random.normal(kx, (N, C, H, W), F32)   # PyTorch-style NCHW input
    x = jnp.transpose(x_nchw, (0, 2, 3, 1))             # kernel layout: NHWC
    params = init_params(kp, C, out_channels=1)

    fwd = jax.jit(bottom_up_top_down_attention)
    out, mask = fwd(x, params)
    jax.block_until_ready((out, mask))

    ref_out, ref_mask = reference_forward(x, params)
    assert out.shape == (N, H, W, C) and mask.shape == (N, H, W, 1)
    assert jnp.allclose(out, ref_out, atol=5e-3, rtol=5e-3), \
        float(jnp.max(jnp.abs(out - ref_out)))
    assert jnp.allclose(mask, ref_mask, atol=5e-3, rtol=5e-3), \
        float(jnp.max(jnp.abs(mask - ref_mask)))
    print("KERNEL_OK")
</pallas_src>

<mosaic_0001>
module attributes {stable_mosaic.version = 11 : i64} {
  func.func @_upsample_tail_kernel(%arg0: i32, %arg1: memref<361x100xf32, #tpu.memory_space<vmem>>, %arg2: memref<1x100x32xf32, #tpu.memory_space<vmem>>, %arg3: memref<1x361x32xf32, #tpu.memory_space<vmem>>, %arg4: memref<1x32xf32, #tpu.memory_space<vmem>>, %arg5: memref<1x32xf32, #tpu.memory_space<vmem>>, %arg6: memref<32x32xf32, #tpu.memory_space<vmem>>, %arg7: memref<1x32xf32, #tpu.memory_space<vmem>>, %arg8: memref<1x32xf32, #tpu.memory_space<vmem>>, %arg9: memref<32x1xf32, #tpu.memory_space<vmem>>, %arg10: memref<1x361x32xf32, #tpu.memory_space<vmem>>, %arg11: memref<1x361x1xf32, #tpu.memory_space<vmem>>) attributes {dimension_semantics = [#tpu.dimension_semantics<parallel>], iteration_bounds = array<i64: 2>, scalar_prefetch = 0 : i64, scratch_operands = 0 : i64, tpu.core_type = #tpu.core_type<tc>, window_params = [{pipeline_mode = #tpu.pipeline_mode<synchronous>, transform_indices = @transform_0, window_bounds = array<i64: 361, 100>}, {transform_indices = @transform_1, window_bounds = array<i64: 1, 100, 32>}, {transform_indices = @transform_2, window_bounds = array<i64: 1, 361, 32>}, {pipeline_mode = #tpu.pipeline_mode<synchronous>, transform_indices = @transform_3, window_bounds = array<i64: 1, 32>}, {pipeline_mode = #tpu.pipeline_mode<synchronous>, transform_indices = @transform_4, window_bounds = array<i64: 1, 32>}, {pipeline_mode = #tpu.pipeline_mode<synchronous>, transform_indices = @transform_5, window_bounds = array<i64: 32, 32>}, {pipeline_mode = #tpu.pipeline_mode<synchronous>, transform_indices = @transform_6, window_bounds = array<i64: 1, 32>}, {pipeline_mode = #tpu.pipeline_mode<synchronous>, transform_indices = @transform_7, window_bounds = array<i64: 1, 32>}, {pipeline_mode = #tpu.pipeline_mode<synchronous>, transform_indices = @transform_8, window_bounds = array<i64: 32, 1>}, {transform_indices = @transform_9, window_bounds = array<i64: 1, 361, 32>}, {transform_indices = @transform_10, window_bounds = array<i64: 1, 361, 1>}]} {
    %c0 = arith.constant 0 : index
    %c0_0 = arith.constant 0 : index
    %c0_1 = arith.constant 0 : index
    %0 = vector.load %arg2[%c0, %c0_0, %c0_1] : memref<1x100x32xf32, #tpu.memory_space<vmem>>, vector<1x100x32xf32>
    %1 = vector.shape_cast %0 : vector<1x100x32xf32> to vector<100x32xf32>
    %c0_2 = arith.constant 0 : index
    %c0_3 = arith.constant 0 : index
    %2 = vector.load %arg1[%c0_2, %c0_3] : memref<361x100xf32, #tpu.memory_space<vmem>>, vector<361x100xf32>
    %cst = arith.constant dense<0.000000e+00> : vector<361x32xf32>
    %3 = tpu.matmul %2, %1, %cst {dimension_numbers = #tpu.dot_dimension_numbers<[1], [0], [0], [1], [0, 0, 1, 1], [], []>} : vector<361x100xf32>, vector<100x32xf32>, vector<361x32xf32> -> vector<361x32xf32>
    %c0_4 = arith.constant 0 : index
    %c0_5 = arith.constant 0 : index
    %c0_6 = arith.constant 0 : index
    %4 = vector.load %arg3[%c0_4, %c0_5, %c0_6] : memref<1x361x32xf32, #tpu.memory_space<vmem>>, vector<1x361x32xf32>
    %5 = vector.shape_cast %4 : vector<1x361x32xf32> to vector<361x32xf32>
    %6 = arith.addf %3, %5 : vector<361x32xf32>
    %c0_7 = arith.constant 0 : index
    %c0_8 = arith.constant 0 : index
    %7 = vector.load %arg4[%c0_7, %c0_8] : memref<1x32xf32, #tpu.memory_space<vmem>>, vector<1x32xf32>
    %8 = vector.broadcast %7 : vector<1x32xf32> to vector<361x32xf32>
    %9 = arith.mulf %6, %8 : vector<361x32xf32>
    %c0_9 = arith.constant 0 : index
    %c0_10 = arith.constant 0 : index
    %10 = vector.load %arg5[%c0_9, %c0_10] : memref<1x32xf32, #tpu.memory_space<vmem>>, vector<1x32xf32>
    %11 = vector.broadcast %10 : vector<1x32xf32> to vector<361x32xf32>
    %12 = arith.addf %9, %11 : vector<361x32xf32>
    %cst_11 = arith.constant 0.000000e+00 : f32
    %13 = vector.broadcast %cst_11 : f32 to vector<361x32xf32>
    %14 = arith.maximumf %12, %13 : vector<361x32xf32>
    %c0_12 = arith.constant 0 : index
    %c0_13 = arith.constant 0 : index
    %15 = vector.load %arg6[%c0_12, %c0_13] : memref<32x32xf32, #tpu.memory_space<vmem>>, vector<32x32xf32>
    %cst_14 = arith.constant dense<0.000000e+00> : vector<361x32xf32>
    %16 = tpu.matmul %14, %15, %cst_14 {dimension_numbers = #tpu.dot_dimension_numbers<[1], [0], [0], [1], [0, 0, 1, 1], [], []>} : vector<361x32xf32>, vector<32x32xf32>, vector<361x32xf32> -> vector<361x32xf32>
    %c0_15 = arith.constant 0 : index
    %c0_16 = arith.constant 0 : index
    %17 = vector.load %arg7[%c0_15, %c0_16] : memref<1x32xf32, #tpu.memory_space<vmem>>, vector<1x32xf32>
    %18 = vector.broadcast %17 : vector<1x32xf32> to vector<361x32xf32>
    %19 = arith.mulf %16, %18 : vector<361x32xf32>
    %c0_17 = arith.constant 0 : index
    %c0_18 = arith.constant 0 : index
    %20 = vector.load %arg8[%c0_17, %c0_18] : memref<1x32xf32, #tpu.memory_space<vmem>>, vector<1x32xf32>
    %21 = vector.broadcast %20 : vector<1x32xf32> to vector<361x32xf32>
    %22 = arith.addf %19, %21 : vector<361x32xf32>
    %cst_19 = arith.constant 0.000000e+00 : f32
    %23 = vector.broadcast %cst_19 : f32 to vector<361x32xf32>
    %24 = arith.maximumf %22, %23 : vector<361x32xf32>
    %c0_20 = arith.constant 0 : index
    %c0_21 = arith.constant 0 : index
    %25 = vector.load %arg9[%c0_20, %c0_21] : memref<32x1xf32, #tpu.memory_space<vmem>>, vector<32x1xf32>
    %cst_22 = arith.constant dense<0.000000e+00> : vector<361x1xf32>
    %26 = tpu.matmul %24, %25, %cst_22 {dimension_numbers = #tpu.dot_dimension_numbers<[1], [0], [0], [1], [0, 0, 1, 1], [], []>} : vector<361x32xf32>, vector<32x1xf32>, vector<361x1xf32> -> vector<361x1xf32>
    %cst_23 = arith.constant 0.000000e+00 : f32
    %27 = vector.broadcast %cst_23 : f32 to vector<361x1xf32>
    %28 = arith.subf %27, %26 : vector<361x1xf32>
    %29 = math.exp %28 : vector<361x1xf32>
    %cst_24 = arith.constant 1.000000e+00 : f32
    %30 = vector.broadcast %cst_24 : f32 to vector<361x1xf32>
    %31 = arith.addf %30, %29 : vector<361x1xf32>
    %32 = tpu.reciprocal %31 {approx = true} : vector<361x1xf32> -> vector<361x1xf32>
    %c0_25 = arith.constant 0 : index
    %c0_26 = arith.constant 0 : index
    %c0_27 = arith.constant 0 : index
    %33 = vector.load %arg11[%c0_25, %c0_26, %c0_27] : memref<1x361x1xf32, #tpu.memory_space<vmem>>, vector<1x361x1xf32>
    %34 = vector.shape_cast %33 : vector<1x361x1xf32> to vector<361x1xf32>
    %35 = vector.shape_cast %32 : vector<361x1xf32> to vector<1x361x1xf32>
    tpu.vector_store %arg11[%c0_25, %c0_26, %c0_27], %35 {strides = array<i32>} : memref<1x361x1xf32, #tpu.memory_space<vmem>>, vector<1x361x1xf32>,
    %cst_28 = arith.constant 1.000000e+00 : f32
    %36 = vector.broadcast %cst_28 : f32 to vector<361x1xf32>
    %37 = arith.addf %36, %32 : vector<361x1xf32>
    %c0_29 = arith.constant 0 : index
    %c0_30 = arith.constant 0 : index
    %c0_31 = arith.constant 0 : index
    %38 = vector.load %arg3[%c0_29, %c0_30, %c0_31] : memref<1x361x32xf32, #tpu.memory_space<vmem>>, vector<1x361x32xf32>
    %39 = vector.shape_cast %38 : vector<1x361x32xf32> to vector<361x32xf32>
    %40 = vector.broadcast %37 : vector<361x1xf32> to vector<361x32xf32>
    %41 = arith.mulf %40, %39 : vector<361x32xf32>
    %c0_32 = arith.constant 0 : index
    %c0_33 = arith.constant 0 : index
    %c0_34 = arith.constant 0 : index
    %42 = vector.load %arg10[%c0_32, %c0_33, %c0_34] : memref<1x361x32xf32, #tpu.memory_space<vmem>>, vector<1x361x32xf32>
    %43 = vector.shape_cast %42 : vector<1x361x32xf32> to vector<361x32xf32>
    %44 = vector.shape_cast %41 : vector<361x32xf32> to vector<1x361x32xf32>
    tpu.vector_store %arg10[%c0_32, %c0_33, %c0_34], %44 {strides = array<i32>} : memref<1x361x32xf32, #tpu.memory_space<vmem>>, vector<1x361x32xf32>,
    return
  }
  func.func @transform_0(%arg0: i32) -> (i32, i32) {
    %c0_i32 = arith.constant 0 : i32
    %c0_i32_0 = arith.constant 0 : i32
    %c0_i32_1 = arith.constant 0 : i32
    return %c0_i32, %c0_i32_0 : i32, i32
  }
  func.func @transform_1(%arg0: i32) -> (i32, i32, i32) {
    %c0_i32 = arith.constant 0 : i32
    %c0_i32_0 = arith.constant 0 : i32
    %c0_i32_1 = arith.constant 0 : i32
    return %arg0, %c0_i32, %c0_i32_0 : i32, i32, i32
  }
  func.func @transform_2(%arg0: i32) -> (i32, i32, i32) {
    %c0_i32 = arith.constant 0 : i32
    %c0_i32_0 = arith.constant 0 : i32
    %c0_i32_1 = arith.constant 0 : i32
    return %arg0, %c0_i32, %c0_i32_0 : i32, i32, i32
  }
  func.func @transform_3(%arg0: i32) -> (i32, i32) {
    %c0_i32 = arith.constant 0 : i32
    %c0_i32_0 = arith.constant 0 : i32
    %c0_i32_1 = arith.constant 0 : i32
    return %c0_i32, %c0_i32_0 : i32, i32
  }
  func.func @transform_4(%arg0: i32) -> (i32, i32) {
    %c0_i32 = arith.constant 0 : i32
    %c0_i32_0 = arith.constant 0 : i32
    %c0_i32_1 = arith.constant 0 : i32
    return %c0_i32, %c0_i32_0 : i32, i32
  }
  func.func @transform_5(%arg0: i32) -> (i32, i32) {
    %c0_i32 = arith.constant 0 : i32
    %c0_i32_0 = arith.constant 0 : i32
    %c0_i32_1 = arith.constant 0 : i32
    return %c0_i32, %c0_i32_0 : i32, i32
  }
  func.func @transform_6(%arg0: i32) -> (i32, i32) {
    %c0_i32 = arith.constant 0 : i32
    %c0_i32_0 = arith.constant 0 : i32
    %c0_i32_1 = arith.constant 0 : i32
    return %c0_i32, %c0_i32_0 : i32, i32
  }
  func.func @transform_7(%arg0: i32) -> (i32, i32) {
    %c0_i32 = arith.constant 0 : i32
    %c0_i32_0 = arith.constant 0 : i32
    %c0_i32_1 = arith.constant 0 : i32
    return %c0_i32, %c0_i32_0 : i32, i32
  }
  func.func @transform_8(%arg0: i32) -> (i32, i32) {
    %c0_i32 = arith.constant 0 : i32
    %c0_i32_0 = arith.constant 0 : i32
    %c0_i32_1 = arith.constant 0 : i32
    return %c0_i32, %c0_i32_0 : i32, i32
  }
  func.func @transform_9(%arg0: i32) -> (i32, i32, i32) {
    %c0_i32 = arith.constant 0 : i32
    %c0_i32_0 = arith.constant 0 : i32
    %c0_i32_1 = arith.constant 0 : i32
    return %arg0, %c0_i32, %c0_i32_0 : i32, i32, i32
  }
  func.func @transform_10(%arg0: i32) -> (i32, i32, i32) {
    %c0_i32 = arith.constant 0 : i32
    %c0_i32_0 = arith.constant 0 : i32
    %c0_i32_1 = arith.constant 0 : i32
    return %arg0, %c0_i32, %c0_i32_0 : i32, i32, i32
  }
}

module attributes {stable_mosaic.version = 11 : i64} {
  func.func @_pool_double_bottleneck_kernel(%arg0: i32, %arg1: memref<1x11x11x32xf32, #tpu.memory_space<vmem>>, %arg2: memref<1x11x10x32xf32, #tpu.memory_space<vmem>>, %arg3: memref<1x10x11x32xf32, #tpu.memory_space<vmem>>, %arg4: memref<1x10x10x32xf32, #tpu.memory_space<vmem>>, %arg5: memref<3x100x1xf32, #tpu.memory_space<vmem>>, %arg6: memref<2x32x8xf32, #tpu.memory_space<vmem>>, %arg7: memref<2x1x8xf32, #tpu.memory_space<vmem>>, %arg8: memref<2x1x8xf32, #tpu.memory_space<vmem>>, %arg9: memref<2x9x8x8xf32, #tpu.memory_space<vmem>>, %arg10: memref<2x1x8xf32, #tpu.memory_space<vmem>>, %arg11: memref<2x1x8xf32, #tpu.memory_space<vmem>>, %arg12: memref<2x8x32xf32, #tpu.memory_space<vmem>>, %arg13: memref<2x1x32xf32, #tpu.memory_space<vmem>>, %arg14: memref<2x1x32xf32, #tpu.memory_space<vmem>>, %arg15: memref<1x100x32xf32, #tpu.memory_space<vmem>>, %arg16: memref<100x32xf32, #tpu.memory_space<vmem>>, %arg17: memref<128x8xf32, #tpu.memory_space<vmem>>) attributes {dimension_semantics = [#tpu.dimension_semantics<parallel>], iteration_bounds = array<i64: 2>, scalar_prefetch = 0 : i64, scratch_operands = 2 : i64, tpu.core_type = #tpu.core_type<tc>, window_params = [{transform_indices = @transform_0, window_bounds = array<i64: 1, 11, 11, 32>}, {transform_indices = @transform_1, window_bounds = array<i64: 1, 11, 10, 32>}, {transform_indices = @transform_2, window_bounds = array<i64: 1, 10, 11, 32>}, {transform_indices = @transform_3, window_bounds = array<i64: 1, 10, 10, 32>}, {pipeline_mode = #tpu.pipeline_mode<synchronous>, transform_indices = @transform_4, window_bounds = array<i64: 3, 100, 1>}, {pipeline_mode = #tpu.pipeline_mode<synchronous>, transform_indices = @transform_5, window_bounds = array<i64: 2, 32, 8>}, {pipeline_mode = #tpu.pipeline_mode<synchronous>, transform_indices = @transform_6, window_bounds = array<i64: 2, 1, 8>}, {pipeline_mode = #tpu.pipeline_mode<synchronous>, transform_indices = @transform_7, window_bounds = array<i64: 2, 1, 8>}, {pipeline_mode = #tpu.pipeline_mode<synchronous>, transform_indices = @transform_8, window_bounds = array<i64: 2, 9, 8, 8>}, {pipeline_mode = #tpu.pipeline_mode<synchronous>, transform_indices = @transform_9, window_bounds = array<i64: 2, 1, 8>}, {pipeline_mode = #tpu.pipeline_mode<synchronous>, transform_indices = @transform_10, window_bounds = array<i64: 2, 1, 8>}, {pipeline_mode = #tpu.pipeline_mode<synchronous>, transform_indices = @transform_11, window_bounds = array<i64: 2, 8, 32>}, {pipeline_mode = #tpu.pipeline_mode<synchronous>, transform_indices = @transform_12, window_bounds = array<i64: 2, 1, 32>}, {pipeline_mode = #tpu.pipeline_mode<synchronous>, transform_indices = @transform_13, window_bounds = array<i64: 2, 1, 32>}, {transform_indices = @transform_14, window_bounds = array<i64: 1, 100, 32>}]} {
    %c0 = arith.constant 0 : index
    %c0_0 = arith.constant 0 : index
    %c0_1 = arith.constant 0 : index
    %c0_2 = arith.constant 0 : index
    %0 = vector.load %arg1[%c0, %c0_0, %c0_1, %c0_2] : memref<1x11x11x32xf32, #tpu.memory_space<vmem>>, vector<1x1x10x32xf32>
    %1 = vector.shape_cast %0 : vector<1x1x10x32xf32> to vector<10x32xf32>
    %c0_3 = arith.constant 0 : index
    %c0_4 = arith.constant 0 : index
    %c0_5 = arith.constant 0 : index
    %c0_6 = arith.constant 0 : index
    %2 = vector.load %arg2[%c0_3, %c0_4, %c0_5, %c0_6] : memref<1x11x10x32xf32, #tpu.memory_space<vmem>>, vector<1x1x10x32xf32>
    %3 = vector.shape_cast %2 : vector<1x1x10x32xf32> to vector<10x32xf32>
    %c0_7 = arith.constant 0 : index
    %c0_8 = arith.constant 0 : index
    %c1 = arith.constant 1 : index
    %c0_9 = arith.constant 0 : index
    %4 = vector.load %arg1[%c0_7, %c0_8, %c1, %c0_9] : memref<1x11x11x32xf32, #tpu.memory_space<vmem>>, vector<1x1x10x32xf32>
    %5 = vector.shape_cast %4 : vector<1x1x10x32xf32> to vector<10x32xf32>
    %6 = arith.maximumf %1, %3 : vector<10x32xf32>
    %7 = arith.maximumf %6, %5 : vector<10x32xf32>
    %c0_10 = arith.constant 0 : index
    %c1_11 = arith.constant 1 : index
    %c0_12 = arith.constant 0 : index
    %c0_13 = arith.constant 0 : index
    %8 = vector.load %arg1[%c0_10, %c1_11, %c0_12, %c0_13] : memref<1x11x11x32xf32, #tpu.memory_space<vmem>>, vector<1x1x10x32xf32>
    %9 = vector.shape_cast %8 : vector<1x1x10x32xf32> to vector<10x32xf32>
    %c0_14 = arith.constant 0 : index
    %c1_15 = arith.constant 1 : index
    %c0_16 = arith.constant 0 : index
    %c0_17 = arith.constant 0 : index
    %10 = vector.load %arg2[%c0_14, %c1_15, %c0_16, %c0_17] : memref<1x11x10x32xf32, #tpu.memory_space<vmem>>, vector<1x1x10x32xf32>
    %11 = vector.shape_cast %10 : vector<1x1x10x32xf32> to vector<10x32xf32>
    %c0_18 = arith.constant 0 : index
    %c1_19 = arith.constant 1 : index
    %c1_20 = arith.constant 1 : index
    %c0_21 = arith.constant 0 : index
    %12 = vector.load %arg1[%c0_18, %c1_19, %c1_20, %c0_21] : memref<1x11x11x32xf32, #tpu.memory_space<vmem>>, vector<1x1x10x32xf32>
    %13 = vector.shape_cast %12 : vector<1x1x10x32xf32> to vector<10x32xf32>
    %14 = arith.maximumf %9, %11 : vector<10x32xf32>
    %15 = arith.maximumf %14, %13 : vector<10x32xf32>
    %c0_22 = arith.constant 0 : index
    %c2 = arith.constant 2 : index
    %c0_23 = arith.constant 0 : index
    %c0_24 = arith.constant 0 : index
    %16 = vector.load %arg1[%c0_22, %c2, %c0_23, %c0_24] : memref<1x11x11x32xf32, #tpu.memory_space<vmem>>, vector<1x1x10x32xf32>
    %17 = vector.shape_cast %16 : vector<1x1x10x32xf32> to vector<10x32xf32>
    %c0_25 = arith.constant 0 : index
    %c2_26 = arith.constant 2 : index
    %c0_27 = arith.constant 0 : index
    %c0_28 = arith.constant 0 : index
    %18 = vector.load %arg2[%c0_25, %c2_26, %c0_27, %c0_28] : memref<1x11x10x32xf32, #tpu.memory_space<vmem>>, vector<1x1x10x32xf32>
    %19 = vector.shape_cast %18 : vector<1x1x10x32xf32> to vector<10x32xf32>
    %c0_29 = arith.constant 0 : index
    %c2_30 = arith.constant 2 : index
    %c1_31 = arith.constant 1 : index
    %c0_32 = arith.constant 0 : index
    %20 = vector.load %arg1[%c0_29, %c2_30, %c1_31, %c0_32] : memref<1x11x11x32xf32, #tpu.memory_space<vmem>>, vector<1x1x10x32xf32>
    %21 = vector.shape_cast %20 : vector<1x1x10x32xf32> to vector<10x32xf32>
    %22 = arith.maximumf %17, %19 : vector<10x32xf32>
    %23 = arith.maximumf %22, %21 : vector<10x32xf32>
    %c0_33 = arith.constant 0 : index
    %c3 = arith.constant 3 : index
    %c0_34 = arith.constant 0 : index
    %c0_35 = arith.constant 0 : index
    %24 = vector.load %arg1[%c0_33, %c3, %c0_34, %c0_35] : memref<1x11x11x32xf32, #tpu.memory_space<vmem>>, vector<1x1x10x32xf32>
    %25 = vector.shape_cast %24 : vector<1x1x10x32xf32> to vector<10x32xf32>
    %c0_36 = arith.constant 0 : index
    %c3_37 = arith.constant 3 : index
    %c0_38 = arith.constant 0 : index
    %c0_39 = arith.constant 0 : index
    %26 = vector.load %arg2[%c0_36, %c3_37, %c0_38, %c0_39] : memref<1x11x10x32xf32, #tpu.memory_space<vmem>>, vector<1x1x10x32xf32>
    %27 = vector.shape_cast %26 : vector<1x1x10x32xf32> to vector<10x32xf32>
    %c0_40 = arith.constant 0 : index
    %c3_41 = arith.constant 3 : index
    %c1_42 = arith.constant 1 : index
    %c0_43 = arith.constant 0 : index
    %28 = vector.load %arg1[%c0_40, %c3_41, %c1_42, %c0_43] : memref<1x11x11x32xf32, #tpu.memory_space<vmem>>, vector<1x1x10x32xf32>
    %29 = vector.shape_cast %28 : vector<1x1x10x32xf32> to vector<10x32xf32>
    %30 = arith.maximumf %25, %27 : vector<10x32xf32>
    %31 = arith.maximumf %30, %29 : vector<10x32xf32>
    %c0_44 = arith.constant 0 : index
    %c4 = arith.constant 4 : index
    %c0_45 = arith.constant 0 : index
    %c0_46 = arith.constant 0 : index
    %32 = vector.load %arg1[%c0_44, %c4, %c0_45, %c0_46] : memref<1x11x11x32xf32, #tpu.memory_space<vmem>>, vector<1x1x10x32xf32>
    %33 = vector.shape_cast %32 : vector<1x1x10x32xf32> to vector<10x32xf32>
    %c0_47 = arith.constant 0 : index
    %c4_48 = arith.constant 4 : index
    %c0_49 = arith.constant 0 : index
    %c0_50 = arith.constant 0 : index
    %34 = vector.load %arg2[%c0_47, %c4_48, %c0_49, %c0_50] : memref<1x11x10x32xf32, #tpu.memory_space<vmem>>, vector<1x1x10x32xf32>
    %35 = vector.shape_cast %34 : vector<1x1x10x32xf32> to vector<10x32xf32>
    %c0_51 = arith.constant 0 : index
    %c4_52 = arith.constant 4 : index
    %c1_53 = arith.constant 1 : index
    %c0_54 = arith.constant 0 : index
    %36 = vector.load %arg1[%c0_51, %c4_52, %c1_53, %c0_54] : memref<1x11x11x32xf32, #tpu.memory_space<vmem>>, vector<1x1x10x32xf32>
    %37 = vector.shape_cast %36 : vector<1x1x10x32xf32> to vector<10x32xf32>
    %38 = arith.maximumf %33, %35 : vector<10x32xf32>
    %39 = arith.maximumf %38, %37 : vector<10x32xf32>
    %c0_55 = arith.constant 0 : index
    %c5 = arith.constant 5 : index
    %c0_56 = arith.constant 0 : index
    %c0_57 = arith.constant 0 : index
    %40 = vector.load %arg1[%c0_55, %c5, %c0_56, %c0_57] : memref<1x11x11x32xf32, #tpu.memory_space<vmem>>, vector<1x1x10x32xf32>
    %41 = vector.shape_cast %40 : vector<1x1x10x32xf32> to vector<10x32xf32>
    %c0_58 = arith.constant 0 : index
    %c5_59 = arith.constant 5 : index
    %c0_60 = arith.constant 0 : index
    %c0_61 = arith.constant 0 : index
    %42 = vector.load %arg2[%c0_58, %c5_59, %c0_60, %c0_61] : memref<1x11x10x32xf32, #tpu.memory_space<vmem>>, vector<1x1x10x32xf32>
    %43 = vector.shape_cast %42 : vector<1x1x10x32xf32> to vector<10x32xf32>
    %c0_62 = arith.constant 0 : index
    %c5_63 = arith.constant 5 : index
    %c1_64 = arith.constant 1 : index
    %c0_65 = arith.constant 0 : index
    %44 = vector.load %arg1[%c0_62, %c5_63, %c1_64, %c0_65] : memref<1x11x11x32xf32, #tpu.memory_space<vmem>>, vector<1x1x10x32xf32>
    %45 = vector.shape_cast %44 : vector<1x1x10x32xf32> to vector<10x32xf32>
    %46 = arith.maximumf %41, %43 : vector<10x32xf32>
    %47 = arith.maximumf %46, %45 : vector<10x32xf32>
    %c0_66 = arith.constant 0 : index
    %c6 = arith.constant 6 : index
    %c0_67 = arith.constant 0 : index
    %c0_68 = arith.constant 0 : index
    %48 = vector.load %arg1[%c0_66, %c6, %c0_67, %c0_68] : memref<1x11x11x32xf32, #tpu.memory_space<vmem>>, vector<1x1x10x32xf32>
    %49 = vector.shape_cast %48 : vector<1x1x10x32xf32> to vector<10x32xf32>
    %c0_69 = arith.constant 0 : index
    %c6_70 = arith.constant 6 : index
    %c0_71 = arith.constant 0 : index
    %c0_72 = arith.constant 0 : index
    %50 = vector.load %arg2[%c0_69, %c6_70, %c0_71, %c0_72] : memref<1x11x10x32xf32, #tpu.memory_space<vmem>>, vector<1x1x10x32xf32>
    %51 = vector.shape_cast %50 : vector<1x1x10x32xf32> to vector<10x32xf32>
    %c0_73 = arith.constant 0 : index
    %c6_74 = arith.constant 6 : index
    %c1_75 = arith.constant 1 : index
    %c0_76 = arith.constant 0 : index
    %52 = vector.load %arg1[%c0_73, %c6_74, %c1_75, %c0_76] : memref<1x11x11x32xf32, #tpu.memory_space<vmem>>, vector<1x1x10x32xf32>
    %53 = vector.shape_cast %52 : vector<1x1x10x32xf32> to vector<10x32xf32>
    %54 = arith.maximumf %49, %51 : vector<10x32xf32>
    %55 = arith.maximumf %54, %53 : vector<10x32xf32>
    %c0_77 = arith.constant 0 : index
    %c7 = arith.constant 7 : index
    %c0_78 = arith.constant 0 : index
    %c0_79 = arith.constant 0 : index
    %56 = vector.load %arg1[%c0_77, %c7, %c0_78, %c0_79] : memref<1x11x11x32xf32, #tpu.memory_space<vmem>>, vector<1x1x10x32xf32>
    %57 = vector.shape_cast %56 : vector<1x1x10x32xf32> to vector<10x32xf32>
    %c0_80 = arith.constant 0 : index
    %c7_81 = arith.constant 7 : index
    %c0_82 = arith.constant 0 : index
    %c0_83 = arith.constant 0 : index
    %58 = vector.load %arg2[%c0_80, %c7_81, %c0_82, %c0_83] : memref<1x11x10x32xf32, #tpu.memory_space<vmem>>, vector<1x1x10x32xf32>
    %59 = vector.shape_cast %58 : vector<1x1x10x32xf32> to vector<10x32xf32>
    %c0_84 = arith.constant 0 : index
    %c7_85 = arith.constant 7 : index
    %c1_86 = arith.constant 1 : index
    %c0_87 = arith.constant 0 : index
    %60 = vector.load %arg1[%c0_84, %c7_85, %c1_86, %c0_87] : memref<1x11x11x32xf32, #tpu.memory_space<vmem>>, vector<1x1x10x32xf32>
    %61 = vector.shape_cast %60 : vector<1x1x10x32xf32> to vector<10x32xf32>
    %62 = arith.maximumf %57, %59 : vector<10x32xf32>
    %63 = arith.maximumf %62, %61 : vector<10x32xf32>
    %c0_88 = arith.constant 0 : index
    %c8 = arith.constant 8 : index
    %c0_89 = arith.constant 0 : index
    %c0_90 = arith.constant 0 : index
    %64 = vector.load %arg1[%c0_88, %c8, %c0_89, %c0_90] : memref<1x11x11x32xf32, #tpu.memory_space<vmem>>, vector<1x1x10x32xf32>
    %65 = vector.shape_cast %64 : vector<1x1x10x32xf32> to vector<10x32xf32>
    %c0_91 = arith.constant 0 : index
    %c8_92 = arith.constant 8 : index
    %c0_93 = arith.constant 0 : index
    %c0_94 = arith.constant 0 : index
    %66 = vector.load %arg2[%c0_91, %c8_92, %c0_93, %c0_94] : memref<1x11x10x32xf32, #tpu.memory_space<vmem>>, vector<1x1x10x32xf32>
    %67 = vector.shape_cast %66 : vector<1x1x10x32xf32> to vector<10x32xf32>
    %c0_95 = arith.constant 0 : index
    %c8_96 = arith.constant 8 : index
    %c1_97 = arith.constant 1 : index
    %c0_98 = arith.constant 0 : index
    %68 = vector.load %arg1[%c0_95, %c8_96, %c1_97, %c0_98] : memref<1x11x11x32xf32, #tpu.memory_space<vmem>>, vector<1x1x10x32xf32>
    %69 = vector.shape_cast %68 : vector<1x1x10x32xf32> to vector<10x32xf32>
    %70 = arith.maximumf %65, %67 : vector<10x32xf32>
    %71 = arith.maximumf %70, %69 : vector<10x32xf32>
    %c0_99 = arith.constant 0 : index
    %c9 = arith.constant 9 : index
    %c0_100 = arith.constant 0 : index
    %c0_101 = arith.constant 0 : index
    %72 = vector.load %arg1[%c0_99, %c9, %c0_100, %c0_101] : memref<1x11x11x32xf32, #tpu.memory_space<vmem>>, vector<1x1x10x32xf32>
    %73 = vector.shape_cast %72 : vector<1x1x10x32xf32> to vector<10x32xf32>
    %c0_102 = arith.constant 0 : index
    %c9_103 = arith.constant 9 : index
    %c0_104 = arith.constant 0 : index
    %c0_105 = arith.constant 0 : index
    %74 = vector.load %arg2[%c0_102, %c9_103, %c0_104, %c0_105] : memref<1x11x10x32xf32, #tpu.memory_space<vmem>>, vector<1x1x10x32xf32>
    %75 = vector.shape_cast %74 : vector<1x1x10x32xf32> to vector<10x32xf32>
    %c0_106 = arith.constant 0 : index
    %c9_107 = arith.constant 9 : index
    %c1_108 = arith.constant 1 : index
    %c0_109 = arith.constant 0 : index
    %76 = vector.load %arg1[%c0_106, %c9_107, %c1_108, %c0_109] : memref<1x11x11x32xf32, #tpu.memory_space<vmem>>, vector<1x1x10x32xf32>
    %77 = vector.shape_cast %76 : vector<1x1x10x32xf32> to vector<10x32xf32>
    %78 = arith.maximumf %73, %75 : vector<10x32xf32>
    %79 = arith.maximumf %78, %77 : vector<10x32xf32>
    %c0_110 = arith.constant 0 : index
    %c10 = arith.constant 10 : index
    %c0_111 = arith.constant 0 : index
    %c0_112 = arith.constant 0 : index
    %80 = vector.load %arg1[%c0_110, %c10, %c0_111, %c0_112] : memref<1x11x11x32xf32, #tpu.memory_space<vmem>>, vector<1x1x10x32xf32>
    %81 = vector.shape_cast %80 : vector<1x1x10x32xf32> to vector<10x32xf32>
    %c0_113 = arith.constant 0 : index
    %c10_114 = arith.constant 10 : index
    %c0_115 = arith.constant 0 : index
    %c0_116 = arith.constant 0 : index
    %82 = vector.load %arg2[%c0_113, %c10_114, %c0_115, %c0_116] : memref<1x11x10x32xf32, #tpu.memory_space<vmem>>, vector<1x1x10x32xf32>
    %83 = vector.shape_cast %82 : vector<1x1x10x32xf32> to vector<10x32xf32>
    %c0_117 = arith.constant 0 : index
    %c10_118 = arith.constant 10 : index
    %c1_119 = arith.constant 1 : index
    %c0_120 = arith.constant 0 : index
    %84 = vector.load %arg1[%c0_117, %c10_118, %c1_119, %c0_120] : memref<1x11x11x32xf32, #tpu.memory_space<vmem>>, vector<1x1x10x32xf32>
    %85 = vector.shape_cast %84 : vector<1x1x10x32xf32> to vector<10x32xf32>
    %86 = arith.maximumf %81, %83 : vector<10x32xf32>
    %87 = arith.maximumf %86, %85 : vector<10x32xf32>
    %c0_121 = arith.constant 0 : index
    %c0_122 = arith.constant 0 : index
    %c0_123 = arith.constant 0 : index
    %c0_124 = arith.constant 0 : index
    %88 = vector.load %arg3[%c0_121, %c0_122, %c0_123, %c0_124] : memref<1x10x11x32xf32, #tpu.memory_space<vmem>>, vector<1x1x10x32xf32>
    %89 = vector.shape_cast %88 : vector<1x1x10x32xf32> to vector<10x32xf32>
    %c0_125 = arith.constant 0 : index
    %c0_126 = arith.constant 0 : index
    %c0_127 = arith.constant 0 : index
    %c0_128 = arith.constant 0 : index
    %90 = vector.load %arg4[%c0_125, %c0_126, %c0_127, %c0_128] : memref<1x10x10x32xf32, #tpu.memory_space<vmem>>, vector<1x1x10x32xf32>
    %91 = vector.shape_cast %90 : vector<1x1x10x32xf32> to vector<10x32xf32>
    %c0_129 = arith.constant 0 : index
    %c0_130 = arith.constant 0 : index
    %c1_131 = arith.constant 1 : index
    %c0_132 = arith.constant 0 : index
    %92 = vector.load %arg3[%c0_129, %c0_130, %c1_131, %c0_132] : memref<1x10x11x32xf32, #tpu.memory_space<vmem>>, vector<1x1x10x32xf32>
    %93 = vector.shape_cast %92 : vector<1x1x10x32xf32> to vector<10x32xf32>
    %94 = arith.maximumf %89, %91 : vector<10x32xf32>
    %95 = arith.maximumf %94, %93 : vector<10x32xf32>
    %96 = arith.maximumf %7, %95 : vector<10x32xf32>
    %97 = arith.maximumf %96, %15 : vector<10x32xf32>
    %c0_133 = arith.constant 0 : index
    %c0_134 = arith.constant 0 : index
    %98 = vector.load %arg16[%c0_133, %c0_134] : memref<100x32xf32, #tpu.memory_space<vmem>>, vector<10x32xf32>
    tpu.vector_store %arg16[%c0_133, %c0_134], %97 {strides = array<i32>} : memref<100x32xf32, #tpu.memory_space<vmem>>, vector<10x32xf32>,
    %c0_135 = arith.constant 0 : index
    %c1_136 = arith.constant 1 : index
    %c0_137 = arith.constant 0 : index
    %c0_138 = arith.constant 0 : index
    %99 = vector.load %arg3[%c0_135, %c1_136, %c0_137, %c0_138] : memref<1x10x11x32xf32, #tpu.memory_space<vmem>>, vector<1x1x10x32xf32>
    %100 = vector.shape_cast %99 : vector<1x1x10x32xf32> to vector<10x32xf32>
    %c0_139 = arith.constant 0 : index
    %c1_140 = arith.constant 1 : index
    %c0_141 = arith.constant 0 : index
    %c0_142 = arith.constant 0 : index
    %101 = vector.load %arg4[%c0_139, %c1_140, %c0_141, %c0_142] : memref<1x10x10x32xf32, #tpu.memory_space<vmem>>, vector<1x1x10x32xf32>
    %102 = vector.shape_cast %101 : vector<1x1x10x32xf32> to vector<10x32xf32>
    %c0_143 = arith.constant 0 : index
    %c1_144 = arith.constant 1 : index
    %c1_145 = arith.constant 1 : index
    %c0_146 = arith.constant 0 : index
    %103 = vector.load %arg3[%c0_143, %c1_144, %c1_145, %c0_146] : memref<1x10x11x32xf32, #tpu.memory_space<vmem>>, vector<1x1x10x32xf32>
    %104 = vector.shape_cast %103 : vector<1x1x10x32xf32> to vector<10x32xf32>
    %105 = arith.maximumf %100, %102 : vector<10x32xf32>
    %106 = arith.maximumf %105, %104 : vector<10x32xf32>
    %107 = arith.maximumf %15, %106 : vector<10x32xf32>
    %108 = arith.maximumf %107, %23 : vector<10x32xf32>
    %c10_147 = arith.constant 10 : index
    %c0_148 = arith.constant 0 : index
    %109 = vector.load %arg16[%c10_147, %c0_148] : memref<100x32xf32, #tpu.memory_space<vmem>>, vector<10x32xf32>
    tpu.vector_store %arg16[%c10_147, %c0_148], %108 {strides = array<i32>} : memref<100x32xf32, #tpu.memory_space<vmem>>, vector<10x32xf32>,
    %c0_149 = arith.constant 0 : index
    %c2_150 = arith.constant 2 : index
    %c0_151 = arith.constant 0 : index
    %c0_152 = arith.constant 0 : index
    %110 = vector.load %arg3[%c0_149, %c2_150, %c0_151, %c0_152] : memref<1x10x11x32xf32, #tpu.memory_space<vmem>>, vector<1x1x10x32xf32>
    %111 = vector.shape_cast %110 : vector<1x1x10x32xf32> to vector<10x32xf32>
    %c0_153 = arith.constant 0 : index
    %c2_154 = arith.constant 2 : index
    %c0_155 = arith.constant 0 : index
    %c0_156 = arith.constant 0 : index
    %112 = vector.load %arg4[%c0_153, %c2_154, %c0_155, %c0_156] : memref<1x10x10x32xf32, #tpu.memory_space<vmem>>, vector<1x1x10x32xf32>
    %113 = vector.shape_cast %112 : vector<1x1x10x32xf32> to vector<10x32xf32>
    %c0_157 = arith.constant 0 : index
    %c2_158 = arith.constant 2 : index
    %c1_159 = arith.constant 1 : index
    %c0_160 = arith.constant 0 : index
    %114 = vector.load %arg3[%c0_157, %c2_158, %c1_159, %c0_160] : memref<1x10x11x32xf32, #tpu.memory_space<vmem>>, vector<1x1x10x32xf32>
    %115 = vector.shape_cast %114 : vector<1x1x10x32xf32> to vector<10x32xf32>
    %116 = arith.maximumf %111, %113 : vector<10x32xf32>
    %117 = arith.maximumf %116, %115 : vector<10x32xf32>
    %118 = arith.maximumf %23, %117 : vector<10x32xf32>
    %119 = arith.maximumf %118, %31 : vector<10x32xf32>
    %c20 = arith.constant 20 : index
    %c0_161 = arith.constant 0 : index
    %120 = vector.load %arg16[%c20, %c0_161] : memref<100x32xf32, #tpu.memory_space<vmem>>, vector<10x32xf32>
    tpu.vector_store %arg16[%c20, %c0_161], %119 {strides = array<i32>} : memref<100x32xf32, #tpu.memory_space<vmem>>, vector<10x32xf32>,
    %c0_162 = arith.constant 0 : index
    %c3_163 = arith.constant 3 : index
    %c0_164 = arith.constant 0 : index
    %c0_165 = arith.constant 0 : index
    %121 = vector.load %arg3[%c0_162, %c3_163, %c0_164, %c0_165] : memref<1x10x11x32xf32, #tpu.memory_space<vmem>>, vector<1x1x10x32xf32>
    %122 = vector.shape_cast %121 : vector<1x1x10x32xf32> to vector<10x32xf32>
    %c0_166 = arith.constant 0 : index
    %c3_167 = arith.constant 3 : index
    %c0_168 = arith.constant 0 : index
    %c0_169 = arith.constant 0 : index
    %123 = vector.load %arg4[%c0_166, %c3_167, %c0_168, %c0_169] : memref<1x10x10x32xf32, #tpu.memory_space<vmem>>, vector<1x1x10x32xf32>
    %124 = vector.shape_cast %123 : vector<1x1x10x32xf32> to vector<10x32xf32>
    %c0_170 = arith.constant 0 : index
    %c3_171 = arith.constant 3 : index
    %c1_172 = arith.constant 1 : index
    %c0_173 = arith.constant 0 : index
    %125 = vector.load %arg3[%c0_170, %c3_171, %c1_172, %c0_173] : memref<1x10x11x32xf32, #tpu.memory_space<vmem>>, vector<1x1x10x32xf32>
    %126 = vector.shape_cast %125 : vector<1x1x10x32xf32> to vector<10x32xf32>
    %127 = arith.maximumf %122, %124 : vector<10x32xf32>
    %128 = arith.maximumf %127, %126 : vector<10x32xf32>
    %129 = arith.maximumf %31, %128 : vector<10x32xf32>
    %130 = arith.maximumf %129, %39 : vector<10x32xf32>
    %c30 = arith.constant 30 : index
    %c0_174 = arith.constant 0 : index
    %131 = vector.load %arg16[%c30, %c0_174] : memref<100x32xf32, #tpu.memory_space<vmem>>, vector<10x32xf32>
    tpu.vector_store %arg16[%c30, %c0_174], %130 {strides = array<i32>} : memref<100x32xf32, #tpu.memory_space<vmem>>, vector<10x32xf32>,
    %c0_175 = arith.constant 0 : index
    %c4_176 = arith.constant 4 : index
    %c0_177 = arith.constant 0 : index
    %c0_178 = arith.constant 0 : index
    %132 = vector.load %arg3[%c0_175, %c4_176, %c0_177, %c0_178] : memref<1x10x11x32xf32, #tpu.memory_space<vmem>>, vector<1x1x10x32xf32>
    %133 = vector.shape_cast %132 : vector<1x1x10x32xf32> to vector<10x32xf32>
    %c0_179 = arith.constant 0 : index
    %c4_180 = arith.constant 4 : index
    %c0_181 = arith.constant 0 : index
    %c0_182 = arith.constant 0 : index
    %134 = vector.load %arg4[%c0_179, %c4_180, %c0_181, %c0_182] : memref<1x10x10x32xf32, #tpu.memory_space<vmem>>, vector<1x1x10x32xf32>
    %135 = vector.shape_cast %134 : vector<1x1x10x32xf32> to vector<10x32xf32>
    %c0_183 = arith.constant 0 : index
    %c4_184 = arith.constant 4 : index
    %c1_185 = arith.constant 1 : index
    %c0_186 = arith.constant 0 : index
    %136 = vector.load %arg3[%c0_183, %c4_184, %c1_185, %c0_186] : memref<1x10x11x32xf32, #tpu.memory_space<vmem>>, vector<1x1x10x32xf32>
    %137 = vector.shape_cast %136 : vector<1x1x10x32xf32> to vector<10x32xf32>
    %138 = arith.maximumf %133, %135 : vector<10x32xf32>
    %139 = arith.maximumf %138, %137 : vector<10x32xf32>
    %140 = arith.maximumf %39, %139 : vector<10x32xf32>
    %141 = arith.maximumf %140, %47 : vector<10x32xf32>
    %c40 = arith.constant 40 : index
    %c0_187 = arith.constant 0 : index
    %142 = vector.load %arg16[%c40, %c0_187] : memref<100x32xf32, #tpu.memory_space<vmem>>, vector<10x32xf32>
    tpu.vector_store %arg16[%c40, %c0_187], %141 {strides = array<i32>} : memref<100x32xf32, #tpu.memory_space<vmem>>, vector<10x32xf32>,
    %c0_188 = arith.constant 0 : index
    %c5_189 = arith.constant 5 : index
    %c0_190 = arith.constant 0 : index
    %c0_191 = arith.constant 0 : index
    %143 = vector.load %arg3[%c0_188, %c5_189, %c0_190, %c0_191] : memref<1x10x11x32xf32, #tpu.memory_space<vmem>>, vector<1x1x10x32xf32>
    %144 = vector.shape_cast %143 : vector<1x1x10x32xf32> to vector<10x32xf32>
    %c0_192 = arith.constant 0 : index
    %c5_193 = arith.constant 5 : index
    %c0_194 = arith.constant 0 : index
    %c0_195 = arith.constant 0 : index
    %145 = vector.load %arg4[%c0_192, %c5_193, %c0_194, %c0_195] : memref<1x10x10x32xf32, #tpu.memory_space<vmem>>, vector<1x1x10x32xf32>
    %146 = vector.shape_cast %145 : vector<1x1x10x32xf32> to vector<10x32xf32>
    %c0_196 = arith.constant 0 : index
    %c5_197 = arith.constant 5 : index
    %c1_198 = arith.constant 1 : index
    %c0_199 = arith.constant 0 : index
    %147 = vector.load %arg3[%c0_196, %c5_197, %c1_198, %c0_199] : memref<1x10x11x32xf32, #tpu.memory_space<vmem>>, vector<1x1x10x32xf32>
    %148 = vector.shape_cast %147 : vector<1x1x10x32xf32> to vector<10x32xf32>
    %149 = arith.maximumf %144, %146 : vector<10x32xf32>
    %150 = arith.maximumf %149, %148 : vector<10x32xf32>
    %151 = arith.maximumf %47, %150 : vector<10x32xf32>
    %152 = arith.maximumf %151, %55 : vector<10x32xf32>
    %c50 = arith.constant 50 : index
    %c0_200 = arith.constant 0 : index
    %153 = vector.load %arg16[%c50, %c0_200] : memref<100x32xf32, #tpu.memory_space<vmem>>, vector<10x32xf32>
    tpu.vector_store %arg16[%c50, %c0_200], %152 {strides = array<i32>} : memref<100x32xf32, #tpu.memory_space<vmem>>, vector<10x32xf32>,
    %c0_201 = arith.constant 0 : index
    %c6_202 = arith.constant 6 : index
    %c0_203 = arith.constant 0 : index
    %c0_204 = arith.constant 0 : index
    %154 = vector.load %arg3[%c0_201, %c6_202, %c0_203, %c0_204] : memref<1x10x11x32xf32, #tpu.memory_space<vmem>>, vector<1x1x10x32xf32>
    %155 = vector.shape_cast %154 : vector<1x1x10x32xf32> to vector<10x32xf32>
    %c0_205 = arith.constant 0 : index
    %c6_206 = arith.constant 6 : index
    %c0_207 = arith.constant 0 : index
    %c0_208 = arith.constant 0 : index
    %156 = vector.load %arg4[%c0_205, %c6_206, %c0_207, %c0_208] : memref<1x10x10x32xf32, #tpu.memory_space<vmem>>, vector<1x1x10x32xf32>
    %157 = vector.shape_cast %156 : vector<1x1x10x32xf32> to vector<10x32xf32>
    %c0_209 = arith.constant 0 : index
    %c6_210 = arith.constant 6 : index
    %c1_211 = arith.constant 1 : index
    %c0_212 = arith.constant 0 : index
    %158 = vector.load %arg3[%c0_209, %c6_210, %c1_211, %c0_212] : memref<1x10x11x32xf32, #tpu.memory_space<vmem>>, vector<1x1x10x32xf32>
    %159 = vector.shape_cast %158 : vector<1x1x10x32xf32> to vector<10x32xf32>
    %160 = arith.maximumf %155, %157 : vector<10x32xf32>
    %161 = arith.maximumf %160, %159 : vector<10x32xf32>
    %162 = arith.maximumf %55, %161 : vector<10x32xf32>
    %163 = arith.maximumf %162, %63 : vector<10x32xf32>
    %c60 = arith.constant 60 : index
    %c0_213 = arith.constant 0 : index
    %164 = vector.load %arg16[%c60, %c0_213] : memref<100x32xf32, #tpu.memory_space<vmem>>, vector<10x32xf32>
    tpu.vector_store %arg16[%c60, %c0_213], %163 {strides = array<i32>} : memref<100x32xf32, #tpu.memory_space<vmem>>, vector<10x32xf32>,
    %c0_214 = arith.constant 0 : index
    %c7_215 = arith.constant 7 : index
    %c0_216 = arith.constant 0 : index
    %c0_217 = arith.constant 0 : index
    %165 = vector.load %arg3[%c0_214, %c7_215, %c0_216, %c0_217] : memref<1x10x11x32xf32, #tpu.memory_space<vmem>>, vector<1x1x10x32xf32>
    %166 = vector.shape_cast %165 : vector<1x1x10x32xf32> to vector<10x32xf32>
    %c0_218 = arith.constant 0 : index
    %c7_219 = arith.constant 7 : index
    %c0_220 = arith.constant 0 : index
    %c0_221 = arith.constant 0 : index
    %167 = vector.load %arg4[%c0_218, %c7_219, %c0_220, %c0_221] : memref<1x10x10x32xf32, #tpu.memory_space<vmem>>, vector<1x1x10x32xf32>
    %168 = vector.shape_cast %167 : vector<1x1x10x32xf32> to vector<10x32xf32>
    %c0_222 = arith.constant 0 : index
    %c7_223 = arith.constant 7 : index
    %c1_224 = arith.constant 1 : index
    %c0_225 = arith.constant 0 : index
    %169 = vector.load %arg3[%c0_222, %c7_223, %c1_224, %c0_225] : memref<1x10x11x32xf32, #tpu.memory_space<vmem>>, vector<1x1x10x32xf32>
    %170 = vector.shape_cast %169 : vector<1x1x10x32xf32> to vector<10x32xf32>
    %171 = arith.maximumf %166, %168 : vector<10x32xf32>
    %172 = arith.maximumf %171, %170 : vector<10x32xf32>
    %173 = arith.maximumf %63, %172 : vector<10x32xf32>
    %174 = arith.maximumf %173, %71 : vector<10x32xf32>
    %c70 = arith.constant 70 : index
    %c0_226 = arith.constant 0 : index
    %175 = vector.load %arg16[%c70, %c0_226] : memref<100x32xf32, #tpu.memory_space<vmem>>, vector<10x32xf32>
    tpu.vector_store %arg16[%c70, %c0_226], %174 {strides = array<i32>} : memref<100x32xf32, #tpu.memory_space<vmem>>, vector<10x32xf32>,
    %c0_227 = arith.constant 0 : index
    %c8_228 = arith.constant 8 : index
    %c0_229 = arith.constant 0 : index
    %c0_230 = arith.constant 0 : index
    %176 = vector.load %arg3[%c0_227, %c8_228, %c0_229, %c0_230] : memref<1x10x11x32xf32, #tpu.memory_space<vmem>>, vector<1x1x10x32xf32>
    %177 = vector.shape_cast %176 : vector<1x1x10x32xf32> to vector<10x32xf32>
    %c0_231 = arith.constant 0 : index
    %c8_232 = arith.constant 8 : index
    %c0_233 = arith.constant 0 : index
    %c0_234 = arith.constant 0 : index
    %178 = vector.load %arg4[%c0_231, %c8_232, %c0_233, %c0_234] : memref<1x10x10x32xf32, #tpu.memory_space<vmem>>, vector<1x1x10x32xf32>
    %179 = vector.shape_cast %178 : vector<1x1x10x32xf32> to vector<10x32xf32>
    %c0_235 = arith.constant 0 : index
    %c8_236 = arith.constant 8 : index
    %c1_237 = arith.constant 1 : index
    %c0_238 = arith.constant 0 : index
    %180 = vector.load %arg3[%c0_235, %c8_236, %c1_237, %c0_238] : memref<1x10x11x32xf32, #tpu.memory_space<vmem>>, vector<1x1x10x32xf32>
    %181 = vector.shape_cast %180 : vector<1x1x10x32xf32> to vector<10x32xf32>
    %182 = arith.maximumf %177, %179 : vector<10x32xf32>
    %183 = arith.maximumf %182, %181 : vector<10x32xf32>
    %184 = arith.maximumf %71, %183 : vector<10x32xf32>
    %185 = arith.maximumf %184, %79 : vector<10x32xf32>
    %c80 = arith.constant 80 : index
    %c0_239 = arith.constant 0 : index
    %186 = vector.load %arg16[%c80, %c0_239] : memref<100x32xf32, #tpu.memory_space<vmem>>, vector<10x32xf32>
    tpu.vector_store %arg16[%c80, %c0_239], %185 {strides = array<i32>} : memref<100x32xf32, #tpu.memory_space<vmem>>, vector<10x32xf32>,
    %c0_240 = arith.constant 0 : index
    %c9_241 = arith.constant 9 : index
    %c0_242 = arith.constant 0 : index
    %c0_243 = arith.constant 0 : index
    %187 = vector.load %arg3[%c0_240, %c9_241, %c0_242, %c0_243] : memref<1x10x11x32xf32, #tpu.memory_space<vmem>>, vector<1x1x10x32xf32>
    %188 = vector.shape_cast %187 : vector<1x1x10x32xf32> to vector<10x32xf32>
    %c0_244 = arith.constant 0 : index
    %c9_245 = arith.constant 9 : index
    %c0_246 = arith.constant 0 : index
    %c0_247 = arith.constant 0 : index
    %189 = vector.load %arg4[%c0_244, %c9_245, %c0_246, %c0_247] : memref<1x10x10x32xf32, #tpu.memory_space<vmem>>, vector<1x1x10x32xf32>
    %190 = vector.shape_cast %189 : vector<1x1x10x32xf32> to vector<10x32xf32>
    %c0_248 = arith.constant 0 : index
    %c9_249 = arith.constant 9 : index
    %c1_250 = arith.constant 1 : index
    %c0_251 = arith.constant 0 : index
    %191 = vector.load %arg3[%c0_248, %c9_249, %c1_250, %c0_251] : memref<1x10x11x32xf32, #tpu.memory_space<vmem>>, vector<1x1x10x32xf32>
    %192 = vector.shape_cast %191 : vector<1x1x10x32xf32> to vector<10x32xf32>
    %193 = arith.maximumf %188, %190 : vector<10x32xf32>
    %194 = arith.maximumf %193, %192 : vector<10x32xf32>
    %195 = arith.maximumf %79, %194 : vector<10x32xf32>
    %196 = arith.maximumf %195, %87 : vector<10x32xf32>
    %c90 = arith.constant 90 : index
    %c0_252 = arith.constant 0 : index
    %197 = vector.load %arg16[%c90, %c0_252] : memref<100x32xf32, #tpu.memory_space<vmem>>, vector<10x32xf32>
    tpu.vector_store %arg16[%c90, %c0_252], %196 {strides = array<i32>} : memref<100x32xf32, #tpu.memory_space<vmem>>, vector<10x32xf32>,
    %cst = arith.constant 0.000000e+00 : f32
    %198 = vector.broadcast %cst : f32 to vector<128x8xf32>
    %c0_253 = arith.constant 0 : index
    %c0_254 = arith.constant 0 : index
    %199 = vector.load %arg17[%c0_253, %c0_254] : memref<128x8xf32, #tpu.memory_space<vmem>>, vector<128x8xf32>
    tpu.vector_store %arg17[%c0_253, %c0_254], %198 {strides = array<i32>} : memref<128x8xf32, #tpu.memory_space<vmem>>, vector<128x8xf32>,
    %c0_255 = arith.constant 0 : index
    %c0_256 = arith.constant 0 : index
    %200 = vector.load %arg16[%c0_255, %c0_256] : memref<100x32xf32, #tpu.memory_space<vmem>>, vector<100x32xf32>
    %c0_257 = arith.constant 0 : index
    %c0_258 = arith.constant 0 : index
    %c0_259 = arith.constant 0 : index
    %201 = vector.load %arg6[%c0_257, %c0_258, %c0_259] : memref<2x32x8xf32, #tpu.memory_space<vmem>>, vector<1x32x8xf32>
    %202 = vector.shape_cast %201 : vector<1x32x8xf32> to vector<32x8xf32>
    %cst_260 = arith.constant dense<0.000000e+00> : vector<100x8xf32>
    %203 = tpu.matmul %200, %202, %cst_260 {dimension_numbers = #tpu.dot_dimension_numbers<[1], [0], [0], [1], [0, 0, 1, 1], [], []>} : vector<100x32xf32>, vector<32x8xf32>, vector<100x8xf32> -> vector<100x8xf32>
    %c0_261 = arith.constant 0 : index
    %c0_262 = arith.constant 0 : index
    %c0_263 = arith.constant 0 : index
    %204 = vector.load %arg7[%c0_261, %c0_262, %c0_263] : memref<2x1x8xf32, #tpu.memory_space<vmem>>, vector<1x1x8xf32>
    %205 = vector.shape_cast %204 : vector<1x1x8xf32> to vector<1x8xf32>
    %206 = vector.broadcast %205 : vector<1x8xf32> to vector<100x8xf32>
    %207 = arith.mulf %203, %206 : vector<100x8xf32>
    %c0_264 = arith.constant 0 : index
    %c0_265 = arith.constant 0 : index
    %c0_266 = arith.constant 0 : index
    %208 = vector.load %arg8[%c0_264, %c0_265, %c0_266] : memref<2x1x8xf32, #tpu.memory_space<vmem>>, vector<1x1x8xf32>
    %209 = vector.shape_cast %208 : vector<1x1x8xf32> to vector<1x8xf32>
    %210 = vector.broadcast %209 : vector<1x8xf32> to vector<100x8xf32>
    %211 = arith.addf %207, %210 : vector<100x8xf32>
    %cst_267 = arith.constant 0.000000e+00 : f32
    %212 = vector.broadcast %cst_267 : f32 to vector<100x8xf32>
    %213 = arith.maximumf %211, %212 : vector<100x8xf32>
    %c11 = arith.constant 11 : index
    %c0_268 = arith.constant 0 : index
    %214 = vector.load %arg17[%c11, %c0_268] : memref<128x8xf32, #tpu.memory_space<vmem>>, vector<100x8xf32>
    tpu.vector_store %arg17[%c11, %c0_268], %213 {strides = array<i32>} : memref<128x8xf32, #tpu.memory_space<vmem>>, vector<100x8xf32>,
    %cst_269 = arith.constant 0.000000e+00 : f32
    %215 = vector.broadcast %cst_269 : f32 to vector<100x8xf32>
    %c0_270 = arith.constant 0 : index
    %c0_271 = arith.constant 0 : index
    %216 = vector.load %arg17[%c0_270, %c0_271] : memref<128x8xf32, #tpu.memory_space<vmem>>, vector<100x8xf32>
    %c0_272 = arith.constant 0 : index
    %c0_273 = arith.constant 0 : index
    %c0_274 = arith.constant 0 : index
    %217 = vector.load %arg5[%c0_272, %c0_273, %c0_274] : memref<3x100x1xf32, #tpu.memory_space<vmem>>, vector<1x100x1xf32>
    %218 = vector.shape_cast %217 : vector<1x100x1xf32> to vector<100x1xf32>
    %219 = vector.broadcast %218 : vector<100x1xf32> to vector<100x8xf32>
    %220 = arith.mulf %216, %219 : vector<100x8xf32>
    %c0_275 = arith.constant 0 : index
    %c0_276 = arith.constant 0 : index
    %c0_277 = arith.constant 0 : index
    %c0_278 = arith.constant 0 : index
    %221 = vector.load %arg9[%c0_275, %c0_276, %c0_277, %c0_278] : memref<2x9x8x8xf32, #tpu.memory_space<vmem>>, vector<1x1x8x8xf32>
    %222 = vector.shape_cast %221 : vector<1x1x8x8xf32> to vector<8x8xf32>
    %cst_279 = arith.constant dense<0.000000e+00> : vector<100x8xf32>
    %223 = tpu.matmul %220, %222, %cst_279 {dimension_numbers = #tpu.dot_dimension_numbers<[1], [0], [0], [1], [0, 0, 1, 1], [], []>} : vector<100x8xf32>, vector<8x8xf32>, vector<100x8xf32> -> vector<100x8xf32>
    %224 = arith.addf %215, %223 : vector<100x8xf32>
    %c1_280 = arith.constant 1 : index
    %c0_281 = arith.constant 0 : index
    %225 = vector.load %arg17[%c1_280, %c0_281] : memref<128x8xf32, #tpu.memory_space<vmem>>, vector<100x8xf32>
    %c0_282 = arith.constant 0 : index
    %c1_283 = arith.constant 1 : index
    %c0_284 = arith.constant 0 : index
    %c0_285 = arith.constant 0 : index
    %226 = vector.load %arg9[%c0_282, %c1_283, %c0_284, %c0_285] : memref<2x9x8x8xf32, #tpu.memory_space<vmem>>, vector<1x1x8x8xf32>
    %227 = vector.shape_cast %226 : vector<1x1x8x8xf32> to vector<8x8xf32>
    %cst_286 = arith.constant dense<0.000000e+00> : vector<100x8xf32>
    %228 = tpu.matmul %225, %227, %cst_286 {dimension_numbers = #tpu.dot_dimension_numbers<[1], [0], [0], [1], [0, 0, 1, 1], [], []>} : vector<100x8xf32>, vector<8x8xf32>, vector<100x8xf32> -> vector<100x8xf32>
    %229 = arith.addf %224, %228 : vector<100x8xf32>
    %c2_287 = arith.constant 2 : index
    %c0_288 = arith.constant 0 : index
    %230 = vector.load %arg17[%c2_287, %c0_288] : memref<128x8xf32, #tpu.memory_space<vmem>>, vector<100x8xf32>
    %c2_289 = arith.constant 2 : index
    %c0_290 = arith.constant 0 : index
    %c0_291 = arith.constant 0 : index
    %231 = vector.load %arg5[%c2_289, %c0_290, %c0_291] : memref<3x100x1xf32, #tpu.memory_space<vmem>>, vector<1x100x1xf32>
    %232 = vector.shape_cast %231 : vector<1x100x1xf32> to vector<100x1xf32>
    %233 = vector.broadcast %232 : vector<100x1xf32> to vector<100x8xf32>
    %234 = arith.mulf %230, %233 : vector<100x8xf32>
    %c0_292 = arith.constant 0 : index
    %c2_293 = arith.constant 2 : index
    %c0_294 = arith.constant 0 : index
    %c0_295 = arith.constant 0 : index
    %235 = vector.load %arg9[%c0_292, %c2_293, %c0_294, %c0_295] : memref<2x9x8x8xf32, #tpu.memory_space<vmem>>, vector<1x1x8x8xf32>
    %236 = vector.shape_cast %235 : vector<1x1x8x8xf32> to vector<8x8xf32>
    %cst_296 = arith.constant dense<0.000000e+00> : vector<100x8xf32>
    %237 = tpu.matmul %234, %236, %cst_296 {dimension_numbers = #tpu.dot_dimension_numbers<[1], [0], [0], [1], [0, 0, 1, 1], [], []>} : vector<100x8xf32>, vector<8x8xf32>, vector<100x8xf32> -> vector<100x8xf32>
    %238 = arith.addf %229, %237 : vector<100x8xf32>
    %c10_297 = arith.constant 10 : index
    %c0_298 = arith.constant 0 : index
    %239 = vector.load %arg17[%c10_297, %c0_298] : memref<128x8xf32, #tpu.memory_space<vmem>>, vector<100x8xf32>
    %c0_299 = arith.constant 0 : index
    %c0_300 = arith.constant 0 : index
    %c0_301 = arith.constant 0 : index
    %240 = vector.load %arg5[%c0_299, %c0_300, %c0_301] : memref<3x100x1xf32, #tpu.memory_space<vmem>>, vector<1x100x1xf32>
    %241 = vector.shape_cast %240 : vector<1x100x1xf32> to vector<100x1xf32>
    %242 = vector.broadcast %241 : vector<100x1xf32> to vector<100x8xf32>
    %243 = arith.mulf %239, %242 : vector<100x8xf32>
    %c0_302 = arith.constant 0 : index
    %c3_303 = arith.constant 3 : index
    %c0_304 = arith.constant 0 : index
    %c0_305 = arith.constant 0 : index
    %244 = vector.load %arg9[%c0_302, %c3_303, %c0_304, %c0_305] : memref<2x9x8x8xf32, #tpu.memory_space<vmem>>, vector<1x1x8x8xf32>
    %245 = vector.shape_cast %244 : vector<1x1x8x8xf32> to vector<8x8xf32>
    %cst_306 = arith.constant dense<0.000000e+00> : vector<100x8xf32>
    %246 = tpu.matmul %243, %245, %cst_306 {dimension_numbers = #tpu.dot_dimension_numbers<[1], [0], [0], [1], [0, 0, 1, 1], [], []>} : vector<100x8xf32>, vector<8x8xf32>, vector<100x8xf32> -> vector<100x8xf32>
    %247 = arith.addf %238, %246 : vector<100x8xf32>
    %c11_307 = arith.constant 11 : index
    %c0_308 = arith.constant 0 : index
    %248 = vector.load %arg17[%c11_307, %c0_308] : memref<128x8xf32, #tpu.memory_space<vmem>>, vector<100x8xf32>
    %c0_309 = arith.constant 0 : index
    %c4_310 = arith.constant 4 : index
    %c0_311 = arith.constant 0 : index
    %c0_312 = arith.constant 0 : index
    %249 = vector.load %arg9[%c0_309, %c4_310, %c0_311, %c0_312] : memref<2x9x8x8xf32, #tpu.memory_space<vmem>>, vector<1x1x8x8xf32>
    %250 = vector.shape_cast %249 : vector<1x1x8x8xf32> to vector<8x8xf32>
    %cst_313 = arith.constant dense<0.000000e+00> : vector<100x8xf32>
    %251 = tpu.matmul %248, %250, %cst_313 {dimension_numbers = #tpu.dot_dimension_numbers<[1], [0], [0], [1], [0, 0, 1, 1], [], []>} : vector<100x8xf32>, vector<8x8xf32>, vector<100x8xf32> -> vector<100x8xf32>
    %252 = arith.addf %247, %251 : vector<100x8xf32>
    %c12 = arith.constant 12 : index
    %c0_314 = arith.constant 0 : index
    %253 = vector.load %arg17[%c12, %c0_314] : memref<128x8xf32, #tpu.memory_space<vmem>>, vector<100x8xf32>
    %c2_315 = arith.constant 2 : index
    %c0_316 = arith.constant 0 : index
    %c0_317 = arith.constant 0 : index
    %254 = vector.load %arg5[%c2_315, %c0_316, %c0_317] : memref<3x100x1xf32, #tpu.memory_space<vmem>>, vector<1x100x1xf32>
    %255 = vector.shape_cast %254 : vector<1x100x1xf32> to vector<100x1xf32>
    %256 = vector.broadcast %255 : vector<100x1xf32> to vector<100x8xf32>
    %257 = arith.mulf %253, %256 : vector<100x8xf32>
    %c0_318 = arith.constant 0 : index
    %c5_319 = arith.constant 5 : index
    %c0_320 = arith.constant 0 : index
    %c0_321 = arith.constant 0 : index
    %258 = vector.load %arg9[%c0_318, %c5_319, %c0_320, %c0_321] : memref<2x9x8x8xf32, #tpu.memory_space<vmem>>, vector<1x1x8x8xf32>
    %259 = vector.shape_cast %258 : vector<1x1x8x8xf32> to vector<8x8xf32>
    %cst_322 = arith.constant dense<0.000000e+00> : vector<100x8xf32>
    %260 = tpu.matmul %257, %259, %cst_322 {dimension_numbers = #tpu.dot_dimension_numbers<[1], [0], [0], [1], [0, 0, 1, 1], [], []>} : vector<100x8xf32>, vector<8x8xf32>, vector<100x8xf32> -> vector<100x8xf32>
    %261 = arith.addf %252, %260 : vector<100x8xf32>
    %c20_323 = arith.constant 20 : index
    %c0_324 = arith.constant 0 : index
    %262 = vector.load %arg17[%c20_323, %c0_324] : memref<128x8xf32, #tpu.memory_space<vmem>>, vector<100x8xf32>
    %c0_325 = arith.constant 0 : index
    %c0_326 = arith.constant 0 : index
    %c0_327 = arith.constant 0 : index
    %263 = vector.load %arg5[%c0_325, %c0_326, %c0_327] : memref<3x100x1xf32, #tpu.memory_space<vmem>>, vector<1x100x1xf32>
    %264 = vector.shape_cast %263 : vector<1x100x1xf32> to vector<100x1xf32>
    %265 = vector.broadcast %264 : vector<100x1xf32> to vector<100x8xf32>
    %266 = arith.mulf %262, %265 : vector<100x8xf32>
    %c0_328 = arith.constant 0 : index
    %c6_329 = arith.constant 6 : index
    %c0_330 = arith.constant 0 : index
    %c0_331 = arith.constant 0 : index
    %267 = vector.load %arg9[%c0_328, %c6_329, %c0_330, %c0_331] : memref<2x9x8x8xf32, #tpu.memory_space<vmem>>, vector<1x1x8x8xf32>
    %268 = vector.shape_cast %267 : vector<1x1x8x8xf32> to vector<8x8xf32>
    %cst_332 = arith.constant dense<0.000000e+00> : vector<100x8xf32>
    %269 = tpu.matmul %266, %268, %cst_332 {dimension_numbers = #tpu.dot_dimension_numbers<[1], [0], [0], [1], [0, 0, 1, 1], [], []>} : vector<100x8xf32>, vector<8x8xf32>, vector<100x8xf32> -> vector<100x8xf32>
    %270 = arith.addf %261, %269 : vector<100x8xf32>
    %c21 = arith.constant 21 : index
    %c0_333 = arith.constant 0 : index
    %271 = vector.load %arg17[%c21, %c0_333] : memref<128x8xf32, #tpu.memory_space<vmem>>, vector<100x8xf32>
    %c0_334 = arith.constant 0 : index
    %c7_335 = arith.constant 7 : index
    %c0_336 = arith.constant 0 : index
    %c0_337 = arith.constant 0 : index
    %272 = vector.load %arg9[%c0_334, %c7_335, %c0_336, %c0_337] : memref<2x9x8x8xf32, #tpu.memory_space<vmem>>, vector<1x1x8x8xf32>
    %273 = vector.shape_cast %272 : vector<1x1x8x8xf32> to vector<8x8xf32>
    %cst_338 = arith.constant dense<0.000000e+00> : vector<100x8xf32>
    %274 = tpu.matmul %271, %273, %cst_338 {dimension_numbers = #tpu.dot_dimension_numbers<[1], [0], [0], [1], [0, 0, 1, 1], [], []>} : vector<100x8xf32>, vector<8x8xf32>, vector<100x8xf32> -> vector<100x8xf32>
    %275 = arith.addf %270, %274 : vector<100x8xf32>
    %c22 = arith.constant 22 : index
    %c0_339 = arith.constant 0 : index
    %276 = vector.load %arg17[%c22, %c0_339] : memref<128x8xf32, #tpu.memory_space<vmem>>, vector<100x8xf32>
    %c2_340 = arith.constant 2 : index
    %c0_341 = arith.constant 0 : index
    %c0_342 = arith.constant 0 : index
    %277 = vector.load %arg5[%c2_340, %c0_341, %c0_342] : memref<3x100x1xf32, #tpu.memory_space<vmem>>, vector<1x100x1xf32>
    %278 = vector.shape_cast %277 : vector<1x100x1xf32> to vector<100x1xf32>
    %279 = vector.broadcast %278 : vector<100x1xf32> to vector<100x8xf32>
    %280 = arith.mulf %276, %279 : vector<100x8xf32>
    %c0_343 = arith.constant 0 : index
    %c8_344 = arith.constant 8 : index
    %c0_345 = arith.constant 0 : index
    %c0_346 = arith.constant 0 : index
    %281 = vector.load %arg9[%c0_343, %c8_344, %c0_345, %c0_346] : memref<2x9x8x8xf32, #tpu.memory_space<vmem>>, vector<1x1x8x8xf32>
    %282 = vector.shape_cast %281 : vector<1x1x8x8xf32> to vector<8x8xf32>
    %cst_347 = arith.constant dense<0.000000e+00> : vector<100x8xf32>
    %283 = tpu.matmul %280, %282, %cst_347 {dimension_numbers = #tpu.dot_dimension_numbers<[1], [0], [0], [1], [0, 0, 1, 1], [], []>} : vector<100x8xf32>, vector<8x8xf32>, vector<100x8xf32> -> vector<100x8xf32>
    %284 = arith.addf %275, %283 : vector<100x8xf32>
    %c0_348 = arith.constant 0 : index
    %c0_349 = arith.constant 0 : index
    %c0_350 = arith.constant 0 : index
    %285 = vector.load %arg10[%c0_348, %c0_349, %c0_350] : memref<2x1x8xf32, #tpu.memory_space<vmem>>, vector<1x1x8xf32>
    %286 = vector.shape_cast %285 : vector<1x1x8xf32> to vector<1x8xf32>
    %287 = vector.broadcast %286 : vector<1x8xf32> to vector<100x8xf32>
    %288 = arith.mulf %284, %287 : vector<100x8xf32>
    %c0_351 = arith.constant 0 : index
    %c0_352 = arith.constant 0 : index
    %c0_353 = arith.constant 0 : index
    %289 = vector.load %arg11[%c0_351, %c0_352, %c0_353] : memref<2x1x8xf32, #tpu.memory_space<vmem>>, vector<1x1x8xf32>
    %290 = vector.shape_cast %289 : vector<1x1x8xf32> to vector<1x8xf32>
    %291 = vector.broadcast %290 : vector<1x8xf32> to vector<100x8xf32>
    %292 = arith.addf %288, %291 : vector<100x8xf32>
    %cst_354 = arith.constant 0.000000e+00 : f32
    %293 = vector.broadcast %cst_354 : f32 to vector<100x8xf32>
    %294 = arith.maximumf %292, %293 : vector<100x8xf32>
    %c0_355 = arith.constant 0 : index
    %c0_356 = arith.constant 0 : index
    %c0_357 = arith.constant 0 : index
    %295 = vector.load %arg12[%c0_355, %c0_356, %c0_357] : memref<2x8x32xf32, #tpu.memory_space<vmem>>, vector<1x8x32xf32>
    %296 = vector.shape_cast %295 : vector<1x8x32xf32> to vector<8x32xf32>
    %cst_358 = arith.constant dense<0.000000e+00> : vector<100x32xf32>
    %297 = tpu.matmul %294, %296, %cst_358 {dimension_numbers = #tpu.dot_dimension_numbers<[1], [0], [0], [1], [0, 0, 1, 1], [], []>} : vector<100x8xf32>, vector<8x32xf32>, vector<100x32xf32> -> vector<100x32xf32>
    %c0_359 = arith.constant 0 : index
    %c0_360 = arith.constant 0 : index
    %c0_361 = arith.constant 0 : index
    %298 = vector.load %arg13[%c0_359, %c0_360, %c0_361] : memref<2x1x32xf32, #tpu.memory_space<vmem>>, vector<1x1x32xf32>
    %299 = vector.shape_cast %298 : vector<1x1x32xf32> to vector<1x32xf32>
    %300 = vector.broadcast %299 : vector<1x32xf32> to vector<100x32xf32>
    %301 = arith.mulf %297, %300 : vector<100x32xf32>
    %c0_362 = arith.constant 0 : index
    %c0_363 = arith.constant 0 : index
    %c0_364 = arith.constant 0 : index
    %302 = vector.load %arg14[%c0_362, %c0_363, %c0_364] : memref<2x1x32xf32, #tpu.memory_space<vmem>>, vector<1x1x32xf32>
    %303 = vector.shape_cast %302 : vector<1x1x32xf32> to vector<1x32xf32>
    %304 = vector.broadcast %303 : vector<1x32xf32> to vector<100x32xf32>
    %305 = arith.addf %301, %304 : vector<100x32xf32>
    %306 = arith.addf %305, %200 : vector<100x32xf32>
    %cst_365 = arith.constant 0.000000e+00 : f32
    %307 = vector.broadcast %cst_365 : f32 to vector<100x32xf32>
    %308 = arith.maximumf %306, %307 : vector<100x32xf32>
    %c1_366 = arith.constant 1 : index
    %c0_367 = arith.constant 0 : index
    %c0_368 = arith.constant 0 : index
    %309 = vector.load %arg6[%c1_366, %c0_367, %c0_368] : memref<2x32x8xf32, #tpu.memory_space<vmem>>, vector<1x32x8xf32>
    %310 = vector.shape_cast %309 : vector<1x32x8xf32> to vector<32x8xf32>
    %cst_369 = arith.constant dense<0.000000e+00> : vector<100x8xf32>
    %311 = tpu.matmul %308, %310, %cst_369 {dimension_numbers = #tpu.dot_dimension_numbers<[1], [0], [0], [1], [0, 0, 1, 1], [], []>} : vector<100x32xf32>, vector<32x8xf32>, vector<100x8xf32> -> vector<100x8xf32>
    %c1_370 = arith.constant 1 : index
    %c0_371 = arith.constant 0 : index
    %c0_372 = arith.constant 0 : index
    %312 = vector.load %arg7[%c1_370, %c0_371, %c0_372] : memref<2x1x8xf32, #tpu.memory_space<vmem>>, vector<1x1x8xf32>
    %313 = vector.shape_cast %312 : vector<1x1x8xf32> to vector<1x8xf32>
    %314 = vector.broadcast %313 : vector<1x8xf32> to vector<100x8xf32>
    %315 = arith.mulf %311, %314 : vector<100x8xf32>
    %c1_373 = arith.constant 1 : index
    %c0_374 = arith.constant 0 : index
    %c0_375 = arith.constant 0 : index
    %316 = vector.load %arg8[%c1_373, %c0_374, %c0_375] : memref<2x1x8xf32, #tpu.memory_space<vmem>>, vector<1x1x8xf32>
    %317 = vector.shape_cast %316 : vector<1x1x8xf32> to vector<1x8xf32>
    %318 = vector.broadcast %317 : vector<1x8xf32> to vector<100x8xf32>
    %319 = arith.addf %315, %318 : vector<100x8xf32>
    %cst_376 = arith.constant 0.000000e+00 : f32
    %320 = vector.broadcast %cst_376 : f32 to vector<100x8xf32>
    %321 = arith.maximumf %319, %320 : vector<100x8xf32>
    %c11_377 = arith.constant 11 : index
    %c0_378 = arith.constant 0 : index
    %322 = vector.load %arg17[%c11_377, %c0_378] : memref<128x8xf32, #tpu.memory_space<vmem>>, vector<100x8xf32>
    tpu.vector_store %arg17[%c11_377, %c0_378], %321 {strides = array<i32>} : memref<128x8xf32, #tpu.memory_space<vmem>>, vector<100x8xf32>,
    %cst_379 = arith.constant 0.000000e+00 : f32
    %323 = vector.broadcast %cst_379 : f32 to vector<100x8xf32>
    %c0_380 = arith.constant 0 : index
    %c0_381 = arith.constant 0 : index
    %324 = vector.load %arg17[%c0_380, %c0_381] : memref<128x8xf32, #tpu.memory_space<vmem>>, vector<100x8xf32>
    %c0_382 = arith.constant 0 : index
    %c0_383 = arith.constant 0 : index
    %c0_384 = arith.constant 0 : index
    %325 = vector.load %arg5[%c0_382, %c0_383, %c0_384] : memref<3x100x1xf32, #tpu.memory_space<vmem>>, vector<1x100x1xf32>
    %326 = vector.shape_cast %325 : vector<1x100x1xf32> to vector<100x1xf32>
    %327 = vector.broadcast %326 : vector<100x1xf32> to vector<100x8xf32>
    %328 = arith.mulf %324, %327 : vector<100x8xf32>
    %c1_385 = arith.constant 1 : index
    %c0_386 = arith.constant 0 : index
    %c0_387 = arith.constant 0 : index
    %c0_388 = arith.constant 0 : index
    %329 = vector.load %arg9[%c1_385, %c0_386, %c0_387, %c0_388] : memref<2x9x8x8xf32, #tpu.memory_space<vmem>>, vector<1x1x8x8xf32>
    %330 = vector.shape_cast %329 : vector<1x1x8x8xf32> to vector<8x8xf32>
    %cst_389 = arith.constant dense<0.000000e+00> : vector<100x8xf32>
    %331 = tpu.matmul %328, %330, %cst_389 {dimension_numbers = #tpu.dot_dimension_numbers<[1], [0], [0], [1], [0, 0, 1, 1], [], []>} : vector<100x8xf32>, vector<8x8xf32>, vector<100x8xf32> -> vector<100x8xf32>
    %332 = arith.addf %323, %331 : vector<100x8xf32>
    %c1_390 = arith.constant 1 : index
    %c0_391 = arith.constant 0 : index
    %333 = vector.load %arg17[%c1_390, %c0_391] : memref<128x8xf32, #tpu.memory_space<vmem>>, vector<100x8xf32>
    %c1_392 = arith.constant 1 : index
    %c1_393 = arith.constant 1 : index
    %c0_394 = arith.constant 0 : index
    %c0_395 = arith.constant 0 : index
    %334 = vector.load %arg9[%c1_392, %c1_393, %c0_394, %c0_395] : memref<2x9x8x8xf32, #tpu.memory_space<vmem>>, vector<1x1x8x8xf32>
    %335 = vector.shape_cast %334 : vector<1x1x8x8xf32> to vector<8x8xf32>
    %cst_396 = arith.constant dense<0.000000e+00> : vector<100x8xf32>
    %336 = tpu.matmul %333, %335, %cst_396 {dimension_numbers = #tpu.dot_dimension_numbers<[1], [0], [0], [1], [0, 0, 1, 1], [], []>} : vector<100x8xf32>, vector<8x8xf32>, vector<100x8xf32> -> vector<100x8xf32>
    %337 = arith.addf %332, %336 : vector<100x8xf32>
    %c2_397 = arith.constant 2 : index
    %c0_398 = arith.constant 0 : index
    %338 = vector.load %arg17[%c2_397, %c0_398] : memref<128x8xf32, #tpu.memory_space<vmem>>, vector<100x8xf32>
    %c2_399 = arith.constant 2 : index
    %c0_400 = arith.constant 0 : index
    %c0_401 = arith.constant 0 : index
    %339 = vector.load %arg5[%c2_399, %c0_400, %c0_401] : memref<3x100x1xf32, #tpu.memory_space<vmem>>, vector<1x100x1xf32>
    %340 = vector.shape_cast %339 : vector<1x100x1xf32> to vector<100x1xf32>
    %341 = vector.broadcast %340 : vector<100x1xf32> to vector<100x8xf32>
    %342 = arith.mulf %338, %341 : vector<100x8xf32>
    %c1_402 = arith.constant 1 : index
    %c2_403 = arith.constant 2 : index
    %c0_404 = arith.constant 0 : index
    %c0_405 = arith.constant 0 : index
    %343 = vector.load %arg9[%c1_402, %c2_403, %c0_404, %c0_405] : memref<2x9x8x8xf32, #tpu.memory_space<vmem>>, vector<1x1x8x8xf32>
    %344 = vector.shape_cast %343 : vector<1x1x8x8xf32> to vector<8x8xf32>
    %cst_406 = arith.constant dense<0.000000e+00> : vector<100x8xf32>
    %345 = tpu.matmul %342, %344, %cst_406 {dimension_numbers = #tpu.dot_dimension_numbers<[1], [0], [0], [1], [0, 0, 1, 1], [], []>} : vector<100x8xf32>, vector<8x8xf32>, vector<100x8xf32> -> vector<100x8xf32>
    %346 = arith.addf %337, %345 : vector<100x8xf32>
    %c10_407 = arith.constant 10 : index
    %c0_408 = arith.constant 0 : index
    %347 = vector.load %arg17[%c10_407, %c0_408] : memref<128x8xf32, #tpu.memory_space<vmem>>, vector<100x8xf32>
    %c0_409 = arith.constant 0 : index
    %c0_410 = arith.constant 0 : index
    %c0_411 = arith.constant 0 : index
    %348 = vector.load %arg5[%c0_409, %c0_410, %c0_411] : memref<3x100x1xf32, #tpu.memory_space<vmem>>, vector<1x100x1xf32>
    %349 = vector.shape_cast %348 : vector<1x100x1xf32> to vector<100x1xf32>
    %350 = vector.broadcast %349 : vector<100x1xf32> to vector<100x8xf32>
    %351 = arith.mulf %347, %350 : vector<100x8xf32>
    %c1_412 = arith.constant 1 : index
    %c3_413 = arith.constant 3 : index
    %c0_414 = arith.constant 0 : index
    %c0_415 = arith.constant 0 : index
    %352 = vector.load %arg9[%c1_412, %c3_413, %c0_414, %c0_415] : memref<2x9x8x8xf32, #tpu.memory_space<vmem>>, vector<1x1x8x8xf32>
    %353 = vector.shape_cast %352 : vector<1x1x8x8xf32> to vector<8x8xf32>
    %cst_416 = arith.constant dense<0.000000e+00> : vector<100x8xf32>
    %354 = tpu.matmul %351, %353, %cst_416 {dimension_numbers = #tpu.dot_dimension_numbers<[1], [0], [0], [1], [0, 0, 1, 1], [], []>} : vector<100x8xf32>, vector<8x8xf32>, vector<100x8xf32> -> vector<100x8xf32>
    %355 = arith.addf %346, %354 : vector<100x8xf32>
    %c11_417 = arith.constant 11 : index
    %c0_418 = arith.constant 0 : index
    %356 = vector.load %arg17[%c11_417, %c0_418] : memref<128x8xf32, #tpu.memory_space<vmem>>, vector<100x8xf32>
    %c1_419 = arith.constant 1 : index
    %c4_420 = arith.constant 4 : index
    %c0_421 = arith.constant 0 : index
    %c0_422 = arith.constant 0 : index
    %357 = vector.load %arg9[%c1_419, %c4_420, %c0_421, %c0_422] : memref<2x9x8x8xf32, #tpu.memory_space<vmem>>, vector<1x1x8x8xf32>
    %358 = vector.shape_cast %357 : vector<1x1x8x8xf32> to vector<8x8xf32>
    %cst_423 = arith.constant dense<0.000000e+00> : vector<100x8xf32>
    %359 = tpu.matmul %356, %358, %cst_423 {dimension_numbers = #tpu.dot_dimension_numbers<[1], [0], [0], [1], [0, 0, 1, 1], [], []>} : vector<100x8xf32>, vector<8x8xf32>, vector<100x8xf32> -> vector<100x8xf32>
    %360 = arith.addf %355, %359 : vector<100x8xf32>
    %c12_424 = arith.constant 12 : index
    %c0_425 = arith.constant 0 : index
    %361 = vector.load %arg17[%c12_424, %c0_425] : memref<128x8xf32, #tpu.memory_space<vmem>>, vector<100x8xf32>
    %c2_426 = arith.constant 2 : index
    %c0_427 = arith.constant 0 : index
    %c0_428 = arith.constant 0 : index
    %362 = vector.load %arg5[%c2_426, %c0_427, %c0_428] : memref<3x100x1xf32, #tpu.memory_space<vmem>>, vector<1x100x1xf32>
    %363 = vector.shape_cast %362 : vector<1x100x1xf32> to vector<100x1xf32>
    %364 = vector.broadcast %363 : vector<100x1xf32> to vector<100x8xf32>
    %365 = arith.mulf %361, %364 : vector<100x8xf32>
    %c1_429 = arith.constant 1 : index
    %c5_430 = arith.constant 5 : index
    %c0_431 = arith.constant 0 : index
    %c0_432 = arith.constant 0 : index
    %366 = vector.load %arg9[%c1_429, %c5_430, %c0_431, %c0_432] : memref<2x9x8x8xf32, #tpu.memory_space<vmem>>, vector<1x1x8x8xf32>
    %367 = vector.shape_cast %366 : vector<1x1x8x8xf32> to vector<8x8xf32>
    %cst_433 = arith.constant dense<0.000000e+00> : vector<100x8xf32>
    %368 = tpu.matmul %365, %367, %cst_433 {dimension_numbers = #tpu.dot_dimension_numbers<[1], [0], [0], [1], [0, 0, 1, 1], [], []>} : vector<100x8xf32>, vector<8x8xf32>, vector<100x8xf32> -> vector<100x8xf32>
    %369 = arith.addf %360, %368 : vector<100x8xf32>
    %c20_434 = arith.constant 20 : index
    %c0_435 = arith.constant 0 : index
    %370 = vector.load %arg17[%c20_434, %c0_435] : memref<128x8xf32, #tpu.memory_space<vmem>>, vector<100x8xf32>
    %c0_436 = arith.constant 0 : index
    %c0_437 = arith.constant 0 : index
    %c0_438 = arith.constant 0 : index
    %371 = vector.load %arg5[%c0_436, %c0_437, %c0_438] : memref<3x100x1xf32, #tpu.memory_space<vmem>>, vector<1x100x1xf32>
    %372 = vector.shape_cast %371 : vector<1x100x1xf32> to vector<100x1xf32>
    %373 = vector.broadcast %372 : vector<100x1xf32> to vector<100x8xf32>
    %374 = arith.mulf %370, %373 : vector<100x8xf32>
    %c1_439 = arith.constant 1 : index
    %c6_440 = arith.constant 6 : index
    %c0_441 = arith.constant 0 : index
    %c0_442 = arith.constant 0 : index
    %375 = vector.load %arg9[%c1_439, %c6_440, %c0_441, %c0_442] : memref<2x9x8x8xf32, #tpu.memory_space<vmem>>, vector<1x1x8x8xf32>
    %376 = vector.shape_cast %375 : vector<1x1x8x8xf32> to vector<8x8xf32>
    %cst_443 = arith.constant dense<0.000000e+00> : vector<100x8xf32>
    %377 = tpu.matmul %374, %376, %cst_443 {dimension_numbers = #tpu.dot_dimension_numbers<[1], [0], [0], [1], [0, 0, 1, 1], [], []>} : vector<100x8xf32>, vector<8x8xf32>, vector<100x8xf32> -> vector<100x8xf32>
    %378 = arith.addf %369, %377 : vector<100x8xf32>
    %c21_444 = arith.constant 21 : index
    %c0_445 = arith.constant 0 : index
    %379 = vector.load %arg17[%c21_444, %c0_445] : memref<128x8xf32, #tpu.memory_space<vmem>>, vector<100x8xf32>
    %c1_446 = arith.constant 1 : index
    %c7_447 = arith.constant 7 : index
    %c0_448 = arith.constant 0 : index
    %c0_449 = arith.constant 0 : index
    %380 = vector.load %arg9[%c1_446, %c7_447, %c0_448, %c0_449] : memref<2x9x8x8xf32, #tpu.memory_space<vmem>>, vector<1x1x8x8xf32>
    %381 = vector.shape_cast %380 : vector<1x1x8x8xf32> to vector<8x8xf32>
    %cst_450 = arith.constant dense<0.000000e+00> : vector<100x8xf32>
    %382 = tpu.matmul %379, %381, %cst_450 {dimension_numbers = #tpu.dot_dimension_numbers<[1], [0], [0], [1], [0, 0, 1, 1], [], []>} : vector<100x8xf32>, vector<8x8xf32>, vector<100x8xf32> -> vector<100x8xf32>
    %383 = arith.addf %378, %382 : vector<100x8xf32>
    %c22_451 = arith.constant 22 : index
    %c0_452 = arith.constant 0 : index
    %384 = vector.load %arg17[%c22_451, %c0_452] : memref<128x8xf32, #tpu.memory_space<vmem>>, vector<100x8xf32>
    %c2_453 = arith.constant 2 : index
    %c0_454 = arith.constant 0 : index
    %c0_455 = arith.constant 0 : index
    %385 = vector.load %arg5[%c2_453, %c0_454, %c0_455] : memref<3x100x1xf32, #tpu.memory_space<vmem>>, vector<1x100x1xf32>
    %386 = vector.shape_cast %385 : vector<1x100x1xf32> to vector<100x1xf32>
    %387 = vector.broadcast %386 : vector<100x1xf32> to vector<100x8xf32>
    %388 = arith.mulf %384, %387 : vector<100x8xf32>
    %c1_456 = arith.constant 1 : index
    %c8_457 = arith.constant 8 : index
    %c0_458 = arith.constant 0 : index
    %c0_459 = arith.constant 0 : index
    %389 = vector.load %arg9[%c1_456, %c8_457, %c0_458, %c0_459] : memref<2x9x8x8xf32, #tpu.memory_space<vmem>>, vector<1x1x8x8xf32>
    %390 = vector.shape_cast %389 : vector<1x1x8x8xf32> to vector<8x8xf32>
    %cst_460 = arith.constant dense<0.000000e+00> : vector<100x8xf32>
    %391 = tpu.matmul %388, %390, %cst_460 {dimension_numbers = #tpu.dot_dimension_numbers<[1], [0], [0], [1], [0, 0, 1, 1], [], []>} : vector<100x8xf32>, vector<8x8xf32>, vector<100x8xf32> -> vector<100x8xf32>
    %392 = arith.addf %383, %391 : vector<100x8xf32>
    %c1_461 = arith.constant 1 : index
    %c0_462 = arith.constant 0 : index
    %c0_463 = arith.constant 0 : index
    %393 = vector.load %arg10[%c1_461, %c0_462, %c0_463] : memref<2x1x8xf32, #tpu.memory_space<vmem>>, vector<1x1x8xf32>
    %394 = vector.shape_cast %393 : vector<1x1x8xf32> to vector<1x8xf32>
    %395 = vector.broadcast %394 : vector<1x8xf32> to vector<100x8xf32>
    %396 = arith.mulf %392, %395 : vector<100x8xf32>
    %c1_464 = arith.constant 1 : index
    %c0_465 = arith.constant 0 : index
    %c0_466 = arith.constant 0 : index
    %397 = vector.load %arg11[%c1_464, %c0_465, %c0_466] : memref<2x1x8xf32, #tpu.memory_space<vmem>>, vector<1x1x8xf32>
    %398 = vector.shape_cast %397 : vector<1x1x8xf32> to vector<1x8xf32>
    %399 = vector.broadcast %398 : vector<1x8xf32> to vector<100x8xf32>
    %400 = arith.addf %396, %399 : vector<100x8xf32>
    %cst_467 = arith.constant 0.000000e+00 : f32
    %401 = vector.broadcast %cst_467 : f32 to vector<100x8xf32>
    %402 = arith.maximumf %400, %401 : vector<100x8xf32>
    %c1_468 = arith.constant 1 : index
    %c0_469 = arith.constant 0 : index
    %c0_470 = arith.constant 0 : index
    %403 = vector.load %arg12[%c1_468, %c0_469, %c0_470] : memref<2x8x32xf32, #tpu.memory_space<vmem>>, vector<1x8x32xf32>
    %404 = vector.shape_cast %403 : vector<1x8x32xf32> to vector<8x32xf32>
    %cst_471 = arith.constant dense<0.000000e+00> : vector<100x32xf32>
    %405 = tpu.matmul %402, %404, %cst_471 {dimension_numbers = #tpu.dot_dimension_numbers<[1], [0], [0], [1], [0, 0, 1, 1], [], []>} : vector<100x8xf32>, vector<8x32xf32>, vector<100x32xf32> -> vector<100x32xf32>
    %c1_472 = arith.constant 1 : index
    %c0_473 = arith.constant 0 : index
    %c0_474 = arith.constant 0 : index
    %406 = vector.load %arg13[%c1_472, %c0_473, %c0_474] : memref<2x1x32xf32, #tpu.memory_space<vmem>>, vector<1x1x32xf32>
    %407 = vector.shape_cast %406 : vector<1x1x32xf32> to vector<1x32xf32>
    %408 = vector.broadcast %407 : vector<1x32xf32> to vector<100x32xf32>
    %409 = arith.mulf %405, %408 : vector<100x32xf32>
    %c1_475 = arith.constant 1 : index
    %c0_476 = arith.constant 0 : index
    %c0_477 = arith.constant 0 : index
    %410 = vector.load %arg14[%c1_475, %c0_476, %c0_477] : memref<2x1x32xf32, #tpu.memory_space<vmem>>, vector<1x1x32xf32>
    %411 = vector.shape_cast %410 : vector<1x1x32xf32> to vector<1x32xf32>
    %412 = vector.broadcast %411 : vector<1x32xf32> to vector<100x32xf32>
    %413 = arith.addf %409, %412 : vector<100x32xf32>
    %414 = arith.addf %413, %308 : vector<100x32xf32>
    %cst_478 = arith.constant 0.000000e+00 : f32
    %415 = vector.broadcast %cst_478 : f32 to vector<100x32xf32>
    %416 = arith.maximumf %414, %415 : vector<100x32xf32>
    %c0_479 = arith.constant 0 : index
    %c0_480 = arith.constant 0 : index
    %c0_481 = arith.constant 0 : index
    %417 = vector.load %arg15[%c0_479, %c0_480, %c0_481] : memref<1x100x32xf32, #tpu.memory_space<vmem>>, vector<1x100x32xf32>
    %418 = vector.shape_cast %417 : vector<1x100x32xf32> to vector<100x32xf32>
    %419 = vector.shape_cast %416 : vector<100x32xf32> to vector<1x100x32xf32>
    tpu.vector_store %arg15[%c0_479, %c0_480, %c0_481], %419 {strides = array<i32>} : memref<1x100x32xf32, #tpu.memory_space<vmem>>, vector<1x100x32xf32>,
    return
  }
  func.func @transform_0(%arg0: i32) -> (i32, i32, i32, i32) {
    %c0_i32 = arith.constant 0 : i32
    %c0_i32_0 = arith.constant 0 : i32
    %c0_i32_1 = arith.constant 0 : i32
    %c0_i32_2 = arith.constant 0 : i32
    return %arg0, %c0_i32, %c0_i32_0, %c0_i32_1 : i32, i32, i32, i32
  }
  func.func @transform_1(%arg0: i32) -> (i32, i32, i32, i32) {
    %c0_i32 = arith.constant 0 : i32
    %c0_i32_0 = arith.constant 0 : i32
    %c0_i32_1 = arith.constant 0 : i32
    %c0_i32_2 = arith.constant 0 : i32
    return %arg0, %c0_i32, %c0_i32_0, %c0_i32_1 : i32, i32, i32, i32
  }
  func.func @transform_2(%arg0: i32) -> (i32, i32, i32, i32) {
    %c0_i32 = arith.constant 0 : i32
    %c0_i32_0 = arith.constant 0 : i32
    %c0_i32_1 = arith.constant 0 : i32
    %c0_i32_2 = arith.constant 0 : i32
    return %arg0, %c0_i32, %c0_i32_0, %c0_i32_1 : i32, i32, i32, i32
  }
  func.func @transform_3(%arg0: i32) -> (i32, i32, i32, i32) {
    %c0_i32 = arith.constant 0 : i32
    %c0_i32_0 = arith.constant 0 : i32
    %c0_i32_1 = arith.constant 0 : i32
    %c0_i32_2 = arith.constant 0 : i32
    return %arg0, %c0_i32, %c0_i32_0, %c0_i32_1 : i32, i32, i32, i32
  }
  func.func @transform_4(%arg0: i32) -> (i32, i32, i32) {
    %c0_i32 = arith.constant 0 : i32
    %c0_i32_0 = arith.constant 0 : i32
    %c0_i32_1 = arith.constant 0 : i32
    %c0_i32_2 = arith.constant 0 : i32
    return %c0_i32, %c0_i32_0, %c0_i32_1 : i32, i32, i32
  }
  func.func @transform_5(%arg0: i32) -> (i32, i32, i32) {
    %c0_i32 = arith.constant 0 : i32
    %c0_i32_0 = arith.constant 0 : i32
    %c0_i32_1 = arith.constant 0 : i32
    %c0_i32_2 = arith.constant 0 : i32
    return %c0_i32, %c0_i32_0, %c0_i32_1 : i32, i32, i32
  }
  func.func @transform_6(%arg0: i32) -> (i32, i32, i32) {
    %c0_i32 = arith.constant 0 : i32
    %c0_i32_0 = arith.constant 0 : i32
    %c0_i32_1 = arith.constant 0 : i32
    %c0_i32_2 = arith.constant 0 : i32
    return %c0_i32, %c0_i32_0, %c0_i32_1 : i32, i32, i32
  }
  func.func @transform_7(%arg0: i32) -> (i32, i32, i32) {
    %c0_i32 = arith.constant 0 : i32
    %c0_i32_0 = arith.constant 0 : i32
    %c0_i32_1 = arith.constant 0 : i32
    %c0_i32_2 = arith.constant 0 : i32
    return %c0_i32, %c0_i32_0, %c0_i32_1 : i32, i32, i32
  }
  func.func @transform_8(%arg0: i32) -> (i32, i32, i32, i32) {
    %c0_i32 = arith.constant 0 : i32
    %c0_i32_0 = arith.constant 0 : i32
    %c0_i32_1 = arith.constant 0 : i32
    %c0_i32_2 = arith.constant 0 : i32
    %c0_i32_3 = arith.constant 0 : i32
    return %c0_i32, %c0_i32_0, %c0_i32_1, %c0_i32_2 : i32, i32, i32, i32
  }
  func.func @transform_9(%arg0: i32) -> (i32, i32, i32) {
    %c0_i32 = arith.constant 0 : i32
    %c0_i32_0 = arith.constant 0 : i32
    %c0_i32_1 = arith.constant 0 : i32
    %c0_i32_2 = arith.constant 0 : i32
    return %c0_i32, %c0_i32_0, %c0_i32_1 : i32, i32, i32
  }
  func.func @transform_10(%arg0: i32) -> (i32, i32, i32) {
    %c0_i32 = arith.constant 0 : i32
    %c0_i32_0 = arith.constant 0 : i32
    %c0_i32_1 = arith.constant 0 : i32
    %c0_i32_2 = arith.constant 0 : i32
    return %c0_i32, %c0_i32_0, %c0_i32_1 : i32, i32, i32
  }
  func.func @transform_11(%arg0: i32) -> (i32, i32, i32) {
    %c0_i32 = arith.constant 0 : i32
    %c0_i32_0 = arith.constant 0 : i32
    %c0_i32_1 = arith.constant 0 : i32
    %c0_i32_2 = arith.constant 0 : i32
    return %c0_i32, %c0_i32_0, %c0_i32_1 : i32, i32, i32
  }
  func.func @transform_12(%arg0: i32) -> (i32, i32, i32) {
    %c0_i32 = arith.constant 0 : i32
    %c0_i32_0 = arith.constant 0 : i32
    %c0_i32_1 = arith.constant 0 : i32
    %c0_i32_2 = arith.constant 0 : i32
    return %c0_i32, %c0_i32_0, %c0_i32_1 : i32, i32, i32
  }
  func.func @transform_13(%arg0: i32) -> (i32, i32, i32) {
    %c0_i32 = arith.constant 0 : i32
    %c0_i32_0 = arith.constant 0 : i32
    %c0_i32_1 = arith.constant 0 : i32
    %c0_i32_2 = arith.constant 0 : i32
    return %c0_i32, %c0_i32_0, %c0_i32_1 : i32, i32, i32
  }
  func.func @transform_14(%arg0: i32) -> (i32, i32, i32) {
    %c0_i32 = arith.constant 0 : i32
    %c0_i32_0 = arith.constant 0 : i32
    %c0_i32_1 = arith.constant 0 : i32
    return %arg0, %c0_i32, %c0_i32_0 : i32, i32, i32
  }
}

</mosaic_0001>

<bundles_post_ra>
// kernel: bottom_up_top_down_attention.3
= control target key start
LH: loop header
LB: loop body
LE: loop exit
PB: predicated region body
PF: predicated region fallthrough
CT: control target
= control target key end

     0   :  { %s3775_s13 = smov 0   ;;  %s4610_s0 = inlined_call_operand.vmem [shape: f32[361,100], index: 0, kind: input, shape index: {}]   ;;  %s4611_s1 = inlined_call_operand.vmem [shape: f32[2,100,32], index: 1, kind: input, shape index: {}]   ;;  %s4612_s2 = inlined_call_operand.vmem [shape: f32[2,361,32], index: 2, kind: input, shape index: {}]   ;;  %s4613_s3 = inlined_call_operand.vmem [shape: f32[1,32], index: 3, kind: input, shape index: {}]   ;;  %s4614_s4 = inlined_call_operand.vmem [shape: f32[1,32], index: 4, kind: input, shape index: {}]   ;;  %s4615_s5 = inlined_call_operand.vmem [shape: f32[32,32], index: 5, kind: input, shape index: {}]   ;;  %s4616_s6 = inlined_call_operand.vmem [shape: f32[1,32], index: 6, kind: input, shape index: {}]   ;;  %s4617_s7 = inlined_call_operand.vmem [shape: f32[1,32], index: 7, kind: input, shape index: {}]   ;;  %s4618_s8 = inlined_call_operand.vmem [shape: f32[32,1], index: 8, kind: input, shape index: {}]   ;;  %s4619_s9 = inlined_call_operand.vmem [shape: f32[2,361,32], index: 9, kind: output, shape index: {0}]   ;;  %s4620_s10 = inlined_call_operand.vmem [shape: f32[2,361,1], index: 10, kind: output, shape index: {1}]  }
   0x1 LB: > { %s2908_s14 = sadd.s32 4294967295, %s3717_s13   ;;  %p2912_p0 = scmp.ge.s32.totalorder %s3717_s13, 1  ;;  %s3717_s13 = sphi %s3775_s13, %s21_s13  }
   0x2   : > { %p325_p1 = scmp.lt.s32.totalorder %s3717_s13, 3 }
   0x4   : > { %p326_p2 = pnand %p2912_p0, %p325_p1 }
   0x5   : > { %p373_p3 = scmp.lt.s32.totalorder (!%p326_p2), %s2908_s14, 1  ;;  %v406_v0 = vld [vmem:[%s4610_s0] sm:$0xff] (!%p326_p2)  ;;  %vm498_vm0 = vcmask (!%p326_p2), 818176   ;;  %v1089_v17 = vld [vmem:[%s4615_s5 + $0x8] sm:$0xff] (!%p326_p2)  ;;  %v1090_v18 = vld [vmem:[%s4615_s5 + $0x10] sm:$0xff] (!%p326_p2)  ;;  %vm637_vm1 = vcmask (!%p326_p2), 1043456  }
   0x6   : > { %329 = sbr.rel (%p326_p2) target bundleno = 954 (0x3ba), region = 56  ;;  %3247 = vmatprep.mubr.msk.f32.mxu0 (!%p326_p2), %vm498_vm0, %v406_v0  ;;  %v1088_v15 = vld [vmem:[%s4615_s5] sm:$0xff] (!%p326_p2)  ;;  %v1091_v19 = vld [vmem:[%s4615_s5 + $0x18] sm:$0xff] (!%p326_p2)  ;;  %v407_v26 = vld [vmem:[%s4610_s0 + $0x8] sm:$0xff] (!%p326_p2)  ;;  %vm1092_vm2 = vcmask (!%p326_p2), 261120   ;;  %vm2345_vm3 = vcmask (!%p326_p2), 7168  }
   0x7   : > { %v3494_v22 = vpack.c.bf16 (!%p326_p2), %v1089_v17, %v1088_v15  ;;  %v3498_v23 = vpack.c.bf16 (!%p326_p2), %v1091_v19, %v1090_v18  ;;  %v408_v27 = vld [vmem:[%s4610_s0 + $0x10] sm:$0xff] (!%p326_p2)  ;;  %v409_v28 = vld [vmem:[%s4610_s0 + $0x18] sm:$0xff] (!%p326_p2)  ;;  %v410_v29 = vld [vmem:[%s4610_s0 + $0x20] sm:$0xff] (!%p326_p2)  ;;  %vm2391_vm4 = vcmask (!%p326_p2), 0   ;;  %vm2806_vm5 = vcmask (!%p326_p2), 253952  }
   0x8   : > { %v411_v30 = vld [vmem:[%s4610_s0 + $0x28] sm:$0xff] (!%p326_p2)  ;;  %v412_v31 = vld [vmem:[%s4610_s0 + $0x30] sm:$0xff] (!%p326_p2)  ;;  %v413_v32 = vld [vmem:[%s4610_s0 + $0x38] sm:$0xff] (!%p326_p2) }
   0x9   : > { %3510 = vmatprep.subr.bf16.mxu1 (!%p326_p2), %v3494_v22  ;;  %v414_v33 = vld [vmem:[%s4610_s0 + $0x40] sm:$0xff] (!%p326_p2)  ;;  %v415_v34 = vld [vmem:[%s4610_s0 + $0x48] sm:$0xff] (!%p326_p2)  ;;  %v416_v35 = vld [vmem:[%s4610_s0 + $0x50] sm:$0xff] (!%p326_p2) }
   0xa   : > { %3512 = vmatpush3.bf16.msra.mxu1 (!%p326_p2), %v3494_v22  ;;  %v417_v36 = vld [vmem:[%s4610_s0 + $0x58] sm:$0xff] (!%p326_p2)  ;;  %v418_v37 = vld [vmem:[%s4610_s0 + $0x60] sm:$0xff] (!%p326_p2)  ;;  %v419_v38 = vld [vmem:[%s4610_s0 + $0x68] sm:$0xff] (!%p326_p2) }
   0xb   : > { %3511 = vmatprep.subr.bf16.mxu1 (!%p326_p2), %v3498_v23  ;;  %v420_v39 = vld [vmem:[%s4610_s0 + $0x70] sm:$0xff] (!%p326_p2)  ;;  %v421_v40 = vld [vmem:[%s4610_s0 + $0x78] sm:$0xff] (!%p326_p2)  ;;  %v422_v41 = vld [vmem:[%s4610_s0 + $0x80] sm:$0xff] (!%p326_p2) }
   0xc   : > { %v423_v42 = vld [vmem:[%s4610_s0 + $0x88] sm:$0xff] (!%p326_p2)  ;;  %v424_v43 = vld [vmem:[%s4610_s0 + $0x90] sm:$0xff] (!%p326_p2)  ;;  %v425_v44 = vld [vmem:[%s4610_s0 + $0x98] sm:$0xff] (!%p326_p2) }
   0xd   : > { %s4622_s14 = smov (!%p373_p3, %s2908_s14), 1  ;;  %v426_v45 = vld [vmem:[%s4610_s0 + $0xa0] sm:$0xff]  ;;  %v427_v46 = vld [vmem:[%s4610_s0 + $0xa8] sm:$0xff]  ;;  %v428_v47 = vld [vmem:[%s4610_s0 + $0xb0] sm:$0xff] }
   0xe   : > { %s3514_s17 = smul.u32 104, %s4622_s14  ;;  %3513 = vmatpush3.bf16.msra.mxu1 %v3498_v23  ;;  %v429_v48 = vld [vmem:[%s4610_s0 + $0xb8] sm:$0xff]  ;;  %v430_v49 = vld [vmem:[%s4610_s0 + $0xc0] sm:$0xff]  ;;  %v431_v50 = vld [vmem:[%s4610_s0 + $0xc8] sm:$0xff] }
   0xf   : > { %v432_v51 = vld [vmem:[%s4610_s0 + $0xd0] sm:$0xff]  ;;  %v433_v52 = vld [vmem:[%s4610_s0 + $0xd8] sm:$0xff]  ;;  %v434_v53 = vld [vmem:[%s4610_s0 + $0xe0] sm:$0xff]  ;;  %s4010_s15 = smul.u32 368, %s4622_s14 }
  0x10   : > { %s3793_s20 = scalar_lea.vmem %s4611_s1, %s3514_s17  ;;  %v435_v54 = vld [vmem:[%s4610_s0 + $0xe8] sm:$0xff]  ;;  %v436_v55 = vld [vmem:[%s4610_s0 + $0xf0] sm:$0xff]  ;;  %v437_v56 = vld [vmem:[%s4610_s0 + $0xf8] sm:$0xff] }
  0x11   : > { %v393_v1 = vld [vmem:[%s3793_s20] sm:$0xff]  ;;  %v394_v2 = vld [vmem:[%s3793_s20 + $0x8] sm:$0xff]  ;;  %v395_v3 = vld [vmem:[%s3793_s20 + $0x10] sm:$0xff]  ;;  %s4016_s18 = scalar_lea.vmem %s4612_s2, %s4010_s15  ;;  %s4371_s12 = scalar_lea.vmem %s4620_s10, %s4010_s15 }
  0x12   : > { %v3470_v4 = vpack.c.bf16 %v394_v2, %v393_v1  ;;  %v396_v5 = vld [vmem:[%s3793_s20 + $0x18] sm:$0xff]  ;;  %v397_v7 = vld [vmem:[%s3793_s20 + $0x20] sm:$0xff]  ;;  %v398_v8 = vld [vmem:[%s3793_s20 + $0x28] sm:$0xff]  ;;  %s4469_s19 = scalar_lea.vmem %s4619_s9, %s4010_s15 }
  0x13   : > { %v3474_v6 = vpack.c.bf16 %v396_v5, %v395_v3  ;;  %v3478_v9 = vpack.c.bf16 %v398_v8, %v397_v7  ;;  %v399_v10 = vld [vmem:[%s3793_s20 + $0x30] sm:$0xff]  ;;  %v400_v11 = vld [vmem:[%s3793_s20 + $0x38] sm:$0xff]  ;;  %v401_v13 = vld [vmem:[%s3793_s20 + $0x40] sm:$0xff] }
  0x14   : > { %3471 = vmatprep.subr.bf16.mxu0 %v3470_v4  ;;  %v3482_v12 = vpack.c.bf16 %v400_v11, %v399_v10  ;;  %v402_v14 = vld [vmem:[%s3793_s20 + $0x48] sm:$0xff]  ;;  %v403_v20 = vld [vmem:[%s3793_s20 + $0x50] sm:$0xff]  ;;  %v404_v21 = vld [vmem:[%s3793_s20 + $0x58] sm:$0xff] }
  0x15   : > { %3473 = vmatpush3.bf16.msra.mxu0 %v3470_v4  ;;  %v3486_v16 = vpack.c.bf16 %v402_v14, %v401_v13  ;;  %v3490_v24 = vpack.c.bf16 %v404_v21, %v403_v20  ;;  %v405_v25 = vld [vmem:[%s3793_s20 + $0x60] sm:$0xf]  ;;  %v439_v58 = vld [vmem:[%s4610_s0 + $0x108] sm:$0xff]  ;;  %v440_v59 = vld [vmem:[%s4610_s0 + $0x110] sm:$0xff] }
  0x16   : > { %3475 = vmatprep.subr.bf16.mxu0 %v3474_v6  ;;  %v438_v57 = vld [vmem:[%s4610_s0 + $0x100] sm:$0xff]  ;;  %v441_v60 = vld [vmem:[%s4610_s0 + $0x118] sm:$0xff]  ;;  %v443_v62 = vld [vmem:[%s4610_s0 + $0x128] sm:$0xff] }
  0x17   : > { %v442_v61 = vld [vmem:[%s4610_s0 + $0x120] sm:$0xff]  ;;  %v444_v63 = vld [vmem:[%s4610_s0 + $0x130] sm:$0xff]  ;;  %v445_v0 = vld [vmem:[%s4610_s0 + $0x138] sm:$0xff] }
  0x18   : > { %v446_v1 = vld [vmem:[%s4610_s0 + $0x140] sm:$0xff]  ;;  %v447_v2 = vld [vmem:[%s4610_s0 + $0x148] sm:$0xff]  ;;  %v448_v3 = vld [vmem:[%s4610_s0 + $0x150] sm:$0xff] }
  0x19   : > { %3477 = vmatpush3.bf16.msra.mxu0 %v3474_v6  ;;  %v449_v4 = vld [vmem:[%s4610_s0 + $0x158] sm:$0xff]  ;;  %v450_v5 = vld [vmem:[%s4610_s0 + $0x160] sm:$0xff]  ;;  %v451_v6 = vld [vmem:[%s4610_s0 + $0x168] sm:$0x1] }
  0x1a   : > { %3479 = vmatprep.subr.bf16.mxu0 %v3478_v9  ;;  %v1678_v7 = vld [vmem:[%s4618_s8] sm:$0xff]  ;;  %v1679_v8 = vld [vmem:[%s4618_s8 + $0x8] sm:$0xff]  ;;  %v455_v18 = vld [vmem:[%s4016_s18 + $0x18] sm:$0xff] }
  0x1b   : > { %v453_v10 = vld [vmem:[%s4016_s18 + $0x8] sm:$0xff]  ;;  %v452_v11 = vld [vmem:[%s4016_s18] sm:$0xff]  ;;  %v454_v20 = vld [vmem:[%s4016_s18 + $0x10] sm:$0xff] }
  0x1c   : > { %v4023_v13 = vld [vmem:[%s4613_s3] ss:$0 sm:$0xff] }
  0x1d   : > { %3481 = vmatpush3.bf16.msra.mxu0 %v3478_v9  ;;  %v4006_v9 = vpack.c.bf16 %v1679_v8, %v1678_v7 }
  0x1e   : > { %3483 = vmatprep.subr.bf16.mxu0 %v3482_v12 }
  0x1f   : > { %3503 = vmatprep.subr.bf16.mxu1 %v4006_v9 }
  0x21   : > { %3485 = vmatpush3.bf16.msra.mxu0 %v3482_v12 }
  0x22   : > { %3487 = vmatprep.subr.bf16.mxu0 %v3486_v16 }
  0x25   : > { %3489 = vmatpush3.bf16.msra.mxu0 %v3486_v16  ;;  %v4028_v16 = vld [vmem:[%s4614_s4] ss:$0 sm:$0xff] }
  0x26   : > { %3491 = vmatprep.subr.bf16.mxu0 %v3490_v24 }
  0x29   : > { %3493 = vmatpush3.bf16.msra.mxu0 %v3490_v24 }
  0x2a   : > { %3245 = vmatprep.subr.msk.mxu0 %vm637_vm1, %v405_v25 }
  0x2d   : > { %3246 = vmatpush3.msk.msra.mxu0 %vm637_vm1, %v405_v25 }
  0x2e   : > { %3248 = vmatmul.mubr.msk.f32.vlgmr.msra.gmra.mrb[0].mxu0 %vm498_vm0, %v407_v26  ;;  %3495 = vmatprep.subr.bf16.mxu0 %v3494_v22 }
  0x2f   : > { %3250 = vmatprep.mubr.msk.f32.mxu0 %vm498_vm0, %v408_v27  ;;  %3497 = vmatpush3.bf16.msra.mxu0 %v3494_v22 }
  0x30   : > { %3499 = vmatprep.subr.bf16.mxu0 %v3498_v23 }
  0x32   : > { %3251 = vmatmul.mubr.msk.f32.gmra.mrb[2].mxu0 %vm498_vm0, %v409_v28  ;;  %v457_v28 = vld [vmem:[%s4016_s18 + $0x28] sm:$0xff] }
  0x33   : > { %3253 = vmatprep.mubr.msk.f32.mxu0 %vm498_vm0, %v410_v29  ;;  %3501 = vmatpush3.bf16.msra.mxu0 %v3498_v23 }
  0x36   : > { %3254 = vmatmul.mubr.msk.f32.gmra.mrb[4].mxu0 %vm498_vm0, %v411_v30  ;;  %v456_v30 = vld [vmem:[%s4016_s18 + $0x20] sm:$0xff] }
  0x37   : > { %3256 = vmatprep.mubr.msk.f32.mxu0 %vm498_vm0, %v412_v31 }
  0x3a   : > { %3257 = vmatmul.mubr.msk.f32.gmra.mrb[6].mxu0 %vm498_vm0, %v413_v32 }
  0x3b   : > { %3259 = vmatprep.mubr.msk.f32.mxu0 %vm498_vm0, %v414_v33 }
  0x3e   : > { %3260 = vmatmul.mubr.msk.f32.gmra.mrb[8].mxu0 %vm498_vm0, %v415_v34 }
  0x3f   : > { %3262 = vmatprep.mubr.msk.f32.mxu0 %vm498_vm0, %v416_v35 }
  0x42   : > { %3263 = vmatmul.mubr.msk.f32.gmra.mrb[10].mxu0 %vm498_vm0, %v417_v36 }
  0x43   : > { %3265 = vmatprep.mubr.msk.f32.mxu0 %vm498_vm0, %v418_v37 }
  0x46   : > { %3266 = vmatmul.mubr.msk.f32.gmra.mrb[12].mxu0 %vm498_vm0, %v419_v38 }
  0x47   : > { %3268 = vmatprep.mubr.msk.f32.mxu0 %vm498_vm0, %v420_v39 }
  0x4a   : > { %3269 = vmatmul.mubr.msk.f32.gmra.mrb[14].mxu0 %vm498_vm0, %v421_v40  ;;  %v459_v40 = vld [vmem:[%s4016_s18 + $0x38] sm:$0xff] }
  0x4b   : > { %3271 = vmatprep.mubr.msk.f32.mxu0 %vm498_vm0, %v422_v41 }
  0x4e   : > { %3272 = vmatmul.mubr.msk.f32.gmra.mrb[16].mxu0 %vm498_vm0, %v423_v42  ;;  %v458_v42 = vld [vmem:[%s4016_s18 + $0x30] sm:$0xff] }
  0x4f   : > { %3274 = vmatprep.mubr.msk.f32.mxu0 %vm498_vm0, %v424_v43 }
  0x52   : > { %3275 = vmatmul.mubr.msk.f32.gmra.mrb[18].mxu0 %vm498_vm0, %v425_v44 }
  0x53   : > { %3277 = vmatprep.mubr.msk.f32.mxu0 %vm498_vm0, %v426_v45 }
  0x56   : > { %3278 = vmatmul.mubr.msk.f32.gmra.mrb[20].mxu0 %vm498_vm0, %v427_v46 }
  0x57   : > { %3280 = vmatprep.mubr.msk.f32.mxu0 %vm498_vm0, %v428_v47 }
  0x5a   : > { %3281 = vmatmul.mubr.msk.f32.gmra.mrb[22].mxu0 %vm498_vm0, %v429_v48 }
  0x5b   : > { %3283 = vmatprep.mubr.msk.f32.mxu0 %vm498_vm0, %v430_v49 }
  0x5e   : > { %3284 = vmatmul.mubr.msk.f32.gmra.mrb[24].mxu0 %vm498_vm0, %v431_v50 }
  0x5f   : > { %3286 = vmatprep.mubr.msk.f32.mxu0 %vm498_vm0, %v432_v51 }
  0x62   : > { %3287 = vmatmul.mubr.msk.f32.gmra.mrb[26].mxu0 %vm498_vm0, %v433_v52  ;;  %v461_v52 = vld [vmem:[%s4016_s18 + $0x48] sm:$0xff] }
  0x63   : > { %3289 = vmatprep.mubr.msk.f32.mxu0 %vm498_vm0, %v434_v53 }
  0x66   : > { %3290 = vmatmul.mubr.msk.f32.gmra.mrb[28].mxu0 %vm498_vm0, %v435_v54 }
  0x67   : > { %3292 = vmatprep.mubr.msk.f32.mxu0 %vm498_vm0, %v436_v55  ;;  %v460_v55 = vld [vmem:[%s4016_s18 + $0x40] sm:$0xff] }
  0x6a   : > { %3293 = vmatmul.mubr.msk.f32.gmra.mrb[30].mxu0 %vm498_vm0, %v437_v56 }
  0x6b   : > { %3295 = vmatprep.mubr.msk.f32.mxu0 %vm498_vm0, %v438_v57 }
  0x6e   : > { %3296 = vmatmul.mubr.msk.f32.gmra.mrb[32].mxu0 %vm498_vm0, %v439_v58 }
  0x6f   : > { %3298 = vmatprep.mubr.msk.f32.mxu0 %vm498_vm0, %v440_v59 }
  0x72   : > { %3299 = vmatmul.mubr.msk.f32.gmra.mrb[34].mxu0 %vm498_vm0, %v441_v60 }
  0x73   : > { %3301 = vmatprep.mubr.msk.f32.mxu0 %vm498_vm0, %v442_v61 }
  0x76   : > { %3302 = vmatmul.mubr.msk.f32.gmra.mrb[36].mxu0 %vm498_vm0, %v443_v62 }
  0x77   : > { %3304 = vmatprep.mubr.msk.f32.mxu0 %vm498_vm0, %v444_v63 }
  0x7a   : > { %3305 = vmatmul.mubr.msk.f32.gmra.mrb[38].mxu0 %vm498_vm0, %v445_v0  ;;  %v463_v0 = vld [vmem:[%s4016_s18 + $0x58] sm:$0xff] }
  0x7b   : > { %3307 = vmatprep.mubr.msk.f32.mxu0 %vm498_vm0, %v446_v1 }
  0x7e   : > { %3308 = vmatmul.mubr.msk.f32.gmra.mrb[40].mxu0 %vm498_vm0, %v447_v2 }
  0x7f   : > { %3310 = vmatprep.mubr.msk.f32.mxu0 %vm498_vm0, %v448_v3  ;;  %v462_v3 = vld [vmem:[%s4016_s18 + $0x50] sm:$0xff] }
  0x82   : > { %3311 = vmatmul.mubr.msk.f32.gmra.mrb[42].mxu0 %vm498_vm0, %v449_v4 }
  0x83   : > { %3313 = vmatprep.mubr.msk.f32.mxu0 %vm498_vm0, %v450_v5 }
  0x86   : > { %3314 = vmatmul.mubr.msk.f32.gmra.mrb[44].mxu0 %vm498_vm0, %v451_v6 }
 0x101   : > { %v3249_v12 = vpop.f32.mrb[0].mxu0 }
 0x102   : > { %v713_v14 = vadd.f32 %v3249_v12, %v453_v10  ;;  %v707_v15 = vpop.f32.mrb[1].mxu0 }
 0x103   : > { %v708_v17 = vadd.f32 %v707_v15, %v452_v11 }
 0x104   : > { %v944_v19 = vmul.f32 %v4023_v13, %v713_v14  ;;  %v465_v14 = vld [vmem:[%s4016_s18 + $0x68] sm:$0xff] }
 0x105   : > { %v943_v21 = vmul.f32 %v4023_v13, %v708_v17  ;;  %v3252_v22 = vpop.f32.mrb[2].mxu0 }
 0x106   : > { %v997_v23 = vadd.f32 %v4028_v16, %v944_v19  ;;  %v723_v24 = vadd.f32 %v3252_v22, %v455_v18  ;;  %v717_v25 = vpop.f32.mrb[3].mxu0  ;;  %v464_v18 = vld [vmem:[%s4016_s18 + $0x60] sm:$0xff] }
 0x107   : > { %v996_v26 = vadd.f32 %v4028_v16, %v943_v21  ;;  %v718_v27 = vadd.f32 %v717_v25, %v454_v20 }
 0x108   : > { %v946_v29 = vmul.f32 %v4023_v13, %v723_v24  ;;  %v1043_v34 = vmax.f32 %v997_v23, 0.0 }
 0x109   : > { %v1042_v31 = vmax.f32 %v996_v26, 0.0  ;;  %v945_v32 = vmul.f32 %v4023_v13, %v718_v27  ;;  %v3255_v33 = vpop.f32.mrb[4].mxu0  ;;  %v467_v27 = vld [vmem:[%s4016_s18 + $0x78] sm:$0xff] }
 0x10a   : > { %v999_v35 = vadd.f32 %v4028_v16, %v946_v29  ;;  %v733_v36 = vadd.f32 %v3255_v33, %v457_v28  ;;  %v727_v37 = vpop.f32.mrb[5].mxu0 }
 0x10b   : > { %v998_v38 = vadd.f32 %v4028_v16, %v945_v32  ;;  %v728_v39 = vadd.f32 %v727_v37, %v456_v30  ;;  %3324 = vmatprep.mubr.msk.f32.mxu0 %vm1092_vm2, %v1042_v31  ;;  %v466_v30 = vld [vmem:[%s4016_s18 + $0x70] sm:$0xff] }
 0x10c   : > { %v948_v41 = vmul.f32 %v4023_v13, %v733_v36  ;;  %3325 = vmatmul.mubr.msk.f32.vlgmr.msra.gmra.mrb[46].mxu0 %vm1092_vm2, %v1043_v34  ;;  %v1045_v46 = vmax.f32 %v999_v35, 0.0 }
 0x10d   : > { %v1044_v43 = vmax.f32 %v998_v38, 0.0  ;;  %v947_v44 = vmul.f32 %v4023_v13, %v728_v39  ;;  %v3258_v45 = vpop.f32.mrb[6].mxu0  ;;  %v469_v39 = vld [vmem:[%s4016_s18 + $0x88] sm:$0xff] }
 0x10e   : > { %v1001_v47 = vadd.f32 %v4028_v16, %v948_v41  ;;  %v743_v48 = vadd.f32 %v3258_v45, %v459_v40  ;;  %v737_v49 = vpop.f32.mrb[7].mxu0 }
 0x10f   : > { %v1000_v50 = vadd.f32 %v4028_v16, %v947_v44  ;;  %v738_v51 = vadd.f32 %v737_v49, %v458_v42  ;;  %3327 = vmatprep.mubr.msk.f32.mxu0 %vm1092_vm2, %v1044_v43  ;;  %v468_v42 = vld [vmem:[%s4016_s18 + $0x80] sm:$0xff] }
 0x110   : > { %v1047_v53 = vmax.f32 %v1001_v47, 0.0  ;;  %v950_v54 = vmul.f32 %v4023_v13, %v743_v48  ;;  %3328 = vmatmul.mubr.msk.f32.gmra.mrb[48].mxu0 %vm1092_vm2, %v1045_v46 }
 0x111   : > { %v1046_v56 = vmax.f32 %v1000_v50, 0.0  ;;  %v949_v57 = vmul.f32 %v4023_v13, %v738_v51  ;;  %v3261_v58 = vpop.f32.mrb[8].mxu0  ;;  %v471_v51 = vld [vmem:[%s4016_s18 + $0x98] sm:$0xff] }
 0x112   : > { %v1003_v59 = vadd.f32 %v4028_v16, %v950_v54  ;;  %v753_v60 = vadd.f32 %v3261_v58, %v461_v52  ;;  %v747_v61 = vpop.f32.mrb[9].mxu0  ;;  %v470_v54 = vld [vmem:[%s4016_s18 + $0x90] sm:$0xff] }
 0x113   : > { %v1002_v62 = vadd.f32 %v4028_v16, %v949_v57  ;;  %v748_v63 = vadd.f32 %v747_v61, %v460_v55  ;;  %3330 = vmatprep.mubr.msk.f32.mxu0 %vm1092_vm2, %v1046_v56 }
 0x114   : > { %v1049_v1 = vmax.f32 %v1003_v59, 0.0  ;;  %v952_v2 = vmul.f32 %v4023_v13, %v753_v60  ;;  %3331 = vmatmul.mubr.msk.f32.gmra.mrb[50].mxu0 %vm1092_vm2, %v1047_v53 }
 0x115   : > { %v1048_v4 = vmax.f32 %v1002_v62, 0.0  ;;  %v951_v5 = vmul.f32 %v4023_v13, %v748_v63  ;;  %v3264_v6 = vpop.f32.mrb[10].mxu0  ;;  %v473_v63 = vld [vmem:[%s4016_s18 + $0xa8] sm:$0xff] }
 0x116   : > { %v1005_v7 = vadd.f32 %v4028_v16, %v952_v2  ;;  %v763_v8 = vadd.f32 %v3264_v6, %v463_v0  ;;  %v757_v10 = vpop.f32.mrb[11].mxu0  ;;  %v472_v2 = vld [vmem:[%s4016_s18 + $0xa0] sm:$0xff] }
 0x117   : > { %v1004_v11 = vadd.f32 %v4028_v16, %v951_v5  ;;  %v758_v12 = vadd.f32 %v757_v10, %v462_v3  ;;  %3333 = vmatprep.mubr.msk.f32.mxu0 %vm1092_vm2, %v1048_v4 }
 0x118   : > { %v1051_v15 = vmax.f32 %v1005_v7, 0.0  ;;  %v954_v17 = vmul.f32 %v4023_v13, %v763_v8  ;;  %3334 = vmatmul.mubr.msk.f32.gmra.mrb[52].mxu0 %vm1092_vm2, %v1049_v1 }
 0x119   : > { %v1050_v19 = vmax.f32 %v1004_v11, 0.0  ;;  %v953_v20 = vmul.f32 %v4023_v13, %v758_v12  ;;  %v3267_v21 = vpop.f32.mrb[12].mxu0  ;;  %v475_v11 = vld [vmem:[%s4016_s18 + $0xb8] sm:$0xff] }
 0x11a   : > { %v1007_v22 = vadd.f32 %v4028_v16, %v954_v17  ;;  %v773_v23 = vadd.f32 %v3267_v21, %v465_v14  ;;  %v767_v24 = vpop.f32.mrb[13].mxu0  ;;  %v1680_v14 = vld [vmem:[%s4618_s8 + $0x10] sm:$0xff] }
 0x11b   : > { %v1006_v25 = vadd.f32 %v4028_v16, %v953_v20  ;;  %v768_v26 = vadd.f32 %v767_v24, %v464_v18  ;;  %3336 = vmatprep.mubr.msk.f32.mxu0 %vm1092_vm2, %v1050_v19  ;;  %v474_v19 = vld [vmem:[%s4016_s18 + $0xb0] sm:$0xff] }
 0x11c   : > { %v1053_v28 = vmax.f32 %v1007_v22, 0.0  ;;  %v956_v29 = vmul.f32 %v4023_v13, %v773_v23  ;;  %3337 = vmatmul.mubr.msk.f32.gmra.mrb[54].mxu0 %vm1092_vm2, %v1051_v15  ;;  %v1681_v15 = vld [vmem:[%s4618_s8 + $0x18] sm:$0xff] }
 0x11d   : > { %v1052_v31 = vmax.f32 %v1006_v25, 0.0  ;;  %v955_v32 = vmul.f32 %v4023_v13, %v768_v26  ;;  %v3270_v33 = vpop.f32.mrb[14].mxu0  ;;  %v3506_v26 = vpack.c.bf16 %v1681_v15, %v1680_v14  ;;  %v485_v14 = vld [vmem:[%s4016_s18 + $0x108] sm:$0xff] }
 0x11e   : > { %v1009_v34 = vadd.f32 %v4028_v16, %v956_v29  ;;  %v783_v35 = vadd.f32 %v3270_v33, %v467_v27  ;;  %v777_v36 = vpop.f32.mrb[15].mxu0  ;;  %v477_v29 = vld [vmem:[%s4016_s18 + $0xc8] sm:$0xff] }
 0x11f   : > { %v1008_v37 = vadd.f32 %v4028_v16, %v955_v32  ;;  %v778_v38 = vadd.f32 %v777_v36, %v466_v30  ;;  %3339 = vmatprep.mubr.msk.f32.mxu0 %vm1092_vm2, %v1052_v31  ;;  %v476_v32 = vld [vmem:[%s4016_s18 + $0xc0] sm:$0xff] }
 0x120   : > { %v1055_v40 = vmax.f32 %v1009_v34, 0.0  ;;  %v958_v41 = vmul.f32 %v4023_v13, %v783_v35  ;;  %3340 = vmatmul.mubr.msk.f32.gmra.mrb[56].mxu0 %vm1092_vm2, %v1053_v28 }
 0x121   : > { %v1054_v43 = vmax.f32 %v1008_v37, 0.0  ;;  %v957_v44 = vmul.f32 %v4023_v13, %v778_v38  ;;  %v3273_v45 = vpop.f32.mrb[16].mxu0 }
 0x122   : > { %v1011_v46 = vadd.f32 %v4028_v16, %v958_v41  ;;  %v793_v47 = vadd.f32 %v3273_v45, %v469_v39  ;;  %v787_v48 = vpop.f32.mrb[17].mxu0  ;;  %v479_v41 = vld [vmem:[%s4016_s18 + $0xd8] sm:$0xff] }
 0x123   : > { %v1010_v49 = vadd.f32 %v4028_v16, %v957_v44  ;;  %v788_v50 = vadd.f32 %v787_v48, %v468_v42  ;;  %3342 = vmatprep.mubr.msk.f32.mxu0 %vm1092_vm2, %v1054_v43  ;;  %v478_v44 = vld [vmem:[%s4016_s18 + $0xd0] sm:$0xff] }
 0x124   : > { %v1057_v52 = vmax.f32 %v1011_v46, 0.0  ;;  %v960_v53 = vmul.f32 %v4023_v13, %v793_v47  ;;  %3343 = vmatmul.mubr.msk.f32.gmra.mrb[58].mxu0 %vm1092_vm2, %v1055_v40 }
 0x125   : > { %v1056_v55 = vmax.f32 %v1010_v49, 0.0  ;;  %v959_v56 = vmul.f32 %v4023_v13, %v788_v50  ;;  %v3276_v57 = vpop.f32.mrb[18].mxu0 }
 0x126   : > { %v1013_v58 = vadd.f32 %v4028_v16, %v960_v53  ;;  %v803_v59 = vadd.f32 %v3276_v57, %v471_v51  ;;  %v797_v60 = vpop.f32.mrb[19].mxu0 }
 0x127   : > { %v1012_v61 = vadd.f32 %v4028_v16, %v959_v56  ;;  %v798_v62 = vadd.f32 %v797_v60, %v470_v54  ;;  %3345 = vmatprep.mubr.msk.f32.mxu0 %vm1092_vm2, %v1056_v55  ;;  %v480_v55 = vld [vmem:[%s4016_s18 + $0xe0] sm:$0xff] }
 0x128   : > { %v1059_v0 = vmax.f32 %v1013_v58, 0.0  ;;  %v962_v1 = vmul.f32 %v4023_v13, %v803_v59  ;;  %3346 = vmatmul.mubr.msk.f32.gmra.mrb[60].mxu0 %vm1092_vm2, %v1057_v52  ;;  %v481_v52 = vld [vmem:[%s4016_s18 + $0xe8] sm:$0xff] }
 0x129   : > { %v1058_v3 = vmax.f32 %v1012_v61, 0.0  ;;  %v961_v4 = vmul.f32 %v4023_v13, %v798_v62  ;;  %v3279_v5 = vpop.f32.mrb[20].mxu0 }
 0x12a   : > { %v1015_v6 = vadd.f32 %v4028_v16, %v962_v1  ;;  %v813_v7 = vadd.f32 %v3279_v5, %v473_v63  ;;  %v807_v8 = vpop.f32.mrb[21].mxu0 }
 0x12b   : > { %v808_v10 = vadd.f32 %v807_v8, %v472_v2  ;;  %3348 = vmatprep.mubr.msk.f32.mxu0 %vm1092_vm2, %v1058_v3  ;;  %v1014_v12 = vadd.f32 %v4028_v16, %v961_v4  ;;  %v482_v3 = vld [vmem:[%s4016_s18 + $0xf0] sm:$0xff] }
 0x12c   : > { %v1061_v17 = vmax.f32 %v1015_v6, 0.0  ;;  %v964_v18 = vmul.f32 %v4023_v13, %v813_v7  ;;  %3349 = vmatmul.mubr.msk.f32.gmra.mrb[62].mxu0 %vm1092_vm2, %v1059_v0  ;;  %v483_v0 = vld [vmem:[%s4016_s18 + $0xf8] sm:$0xff] }
 0x12d   : > { %v963_v20 = vmul.f32 %v4023_v13, %v808_v10  ;;  %v3282_v21 = vpop.f32.mrb[22].mxu0  ;;  %v1060_v22 = vmax.f32 %v1014_v12, 0.0 }
 0x12e   : > { %v1017_v23 = vadd.f32 %v4028_v16, %v964_v18  ;;  %v823_v24 = vadd.f32 %v3282_v21, %v475_v11  ;;  %v817_v25 = vpop.f32.mrb[23].mxu0  ;;  %v484_v18 = vld [vmem:[%s4016_s18 + $0x100] sm:$0xff] }
 0x12f   : > { %v1016_v27 = vadd.f32 %v4028_v16, %v963_v20  ;;  %v818_v28 = vadd.f32 %v817_v25, %v474_v19  ;;  %3351 = vmatprep.mubr.msk.f32.mxu1 %vm1092_vm2, %v1060_v22 }
 0x130   : > { %v1063_v30 = vmax.f32 %v1017_v23, 0.0  ;;  %v966_v31 = vmul.f32 %v4023_v13, %v823_v24  ;;  %3352 = vmatmul.mubr.msk.f32.vlgmr.msra.gmra.mrb[0].mxu1 %vm1092_vm2, %v1061_v17 }
 0x131   : > { %v1062_v33 = vmax.f32 %v1016_v27, 0.0  ;;  %v965_v34 = vmul.f32 %v4023_v13, %v818_v28  ;;  %v3285_v35 = vpop.f32.mrb[24].mxu0  ;;  %3505 = vmatpush3.bf16.msra.mxu1 %v4006_v9  ;;  %v487_v27 = vld [vmem:[%s4016_s18 + $0x118] sm:$0xff] }
 0x132   : > { %v1019_v36 = vadd.f32 %v4028_v16, %v966_v31  ;;  %v833_v37 = vadd.f32 %v3285_v35, %v477_v29  ;;  %v827_v38 = vpop.f32.mrb[25].mxu0  ;;  %3507 = vmatprep.subr.bf16.mxu1 %v3506_v26 }
 0x133   : > { %v1018_v39 = vadd.f32 %v4028_v16, %v965_v34  ;;  %v828_v40 = vadd.f32 %v827_v38, %v476_v32  ;;  %3354 = vmatprep.mubr.msk.f32.mxu1 %vm1092_vm2, %v1062_v33 }
 0x134   : > { %v1065_v42 = vmax.f32 %v1019_v36, 0.0  ;;  %v968_v43 = vmul.f32 %v4023_v13, %v833_v37  ;;  %3355 = vmatmul.mubr.msk.f32.gmra.mrb[2].mxu1 %vm1092_vm2, %v1063_v30  ;;  %v486_v30 = vld [vmem:[%s4016_s18 + $0x110] sm:$0xff] }
 0x135   : > { %v1064_v9 = vmax.f32 %v1018_v39, 0.0  ;;  %v967_v45 = vmul.f32 %v4023_v13, %v828_v40  ;;  %v3288_v46 = vpop.f32.mrb[26].mxu0  ;;  %3509 = vmatpush3.bf16.msra.mxu1 %v3506_v26  ;;  %v489_v39 = vld [vmem:[%s4016_s18 + $0x128] sm:$0xff] }
 0x136   : > { %v1021_v47 = vadd.f32 %v4028_v16, %v968_v43  ;;  %v843_v48 = vadd.f32 %v3288_v46, %v479_v41  ;;  %v837_v49 = vpop.f32.mrb[27].mxu0 }
 0x137   : > { %v1020_v50 = vadd.f32 %v4028_v16, %v967_v45  ;;  %v838_v51 = vadd.f32 %v837_v49, %v478_v44  ;;  %3357 = vmatprep.mubr.msk.f32.mxu1 %vm1092_vm2, %v1064_v9 }
 0x138   : > { %v1067_v53 = vmax.f32 %v1021_v47, 0.0  ;;  %v970_v54 = vmul.f32 %v4023_v13, %v843_v48  ;;  %3358 = vmatmul.mubr.msk.f32.gmra.mrb[4].mxu1 %vm1092_vm2, %v1065_v42  ;;  %v488_v42 = vld [vmem:[%s4016_s18 + $0x120] sm:$0xff] }
 0x139   : > { %v1066_v56 = vmax.f32 %v1020_v50, 0.0  ;;  %v969_v57 = vmul.f32 %v4023_v13, %v838_v51  ;;  %v3291_v58 = vpop.f32.mrb[28].mxu0  ;;  %v491_v50 = vld [vmem:[%s4016_s18 + $0x138] sm:$0xff] }
 0x13a   : > { %v1023_v59 = vadd.f32 %v4028_v16, %v970_v54  ;;  %v853_v60 = vadd.f32 %v3291_v58, %v481_v52  ;;  %v847_v61 = vpop.f32.mrb[29].mxu0 }
 0x13b   : > { %v1022_v62 = vadd.f32 %v4028_v16, %v969_v57  ;;  %v848_v63 = vadd.f32 %v847_v61, %v480_v55  ;;  %3360 = vmatprep.mubr.msk.f32.mxu1 %vm1092_vm2, %v1066_v56 }
 0x13c   : > { %v1069_v1 = vmax.f32 %v1023_v59, 0.0  ;;  %v972_v2 = vmul.f32 %v4023_v13, %v853_v60  ;;  %3361 = vmatmul.mubr.msk.f32.gmra.mrb[6].mxu1 %vm1092_vm2, %v1067_v53  ;;  %v490_v53 = vld [vmem:[%s4016_s18 + $0x130] sm:$0xff] }
 0x13d   : > { %v1068_v4 = vmax.f32 %v1022_v62, 0.0  ;;  %v971_v5 = vmul.f32 %v4023_v13, %v848_v63  ;;  %v3294_v6 = vpop.f32.mrb[30].mxu0  ;;  %v493_v62 = vld [vmem:[%s4016_s18 + $0x148] sm:$0xff] }
 0x13e   : > { %v1025_v7 = vadd.f32 %v4028_v16, %v972_v2  ;;  %v863_v8 = vadd.f32 %v3294_v6, %v483_v0  ;;  %v857_v10 = vpop.f32.mrb[31].mxu0 }
 0x13f   : > { %v1024_v11 = vadd.f32 %v4028_v16, %v971_v5  ;;  %v858_v12 = vadd.f32 %v857_v10, %v482_v3  ;;  %3363 = vmatprep.mubr.msk.f32.mxu1 %vm1092_vm2, %v1068_v4 }
 0x140   : > { %v1071_v15 = vmax.f32 %v1025_v7, 0.0  ;;  %v974_v17 = vmul.f32 %v4023_v13, %v863_v8  ;;  %3364 = vmatmul.mubr.msk.f32.gmra.mrb[8].mxu1 %vm1092_vm2, %v1069_v1  ;;  %v492_v1 = vld [vmem:[%s4016_s18 + $0x140] sm:$0xff] }
 0x141   : > { %v1070_v19 = vmax.f32 %v1024_v11, 0.0  ;;  %v973_v20 = vmul.f32 %v4023_v13, %v858_v12  ;;  %v3297_v21 = vpop.f32.mrb[32].mxu0  ;;  %v495_v11 = vld [vmem:[%s4016_s18 + $0x158] sm:$0xff] }
 0x142   : > { %v1027_v22 = vadd.f32 %v4028_v16, %v974_v17  ;;  %v873_v23 = vadd.f32 %v3297_v21, %v485_v14  ;;  %v867_v24 = vpop.f32.mrb[33].mxu0 }
 0x143   : > { %v1026_v25 = vadd.f32 %v4028_v16, %v973_v20  ;;  %v868_v26 = vadd.f32 %v867_v24, %v484_v18  ;;  %3366 = vmatprep.mubr.msk.f32.mxu1 %vm1092_vm2, %v1070_v19 }
 0x144   : > { %v1073_v28 = vmax.f32 %v1027_v22, 0.0  ;;  %v976_v29 = vmul.f32 %v4023_v13, %v873_v23  ;;  %3367 = vmatmul.mubr.msk.f32.gmra.mrb[10].mxu1 %vm1092_vm2, %v1071_v15  ;;  %v494_v15 = vld [vmem:[%s4016_s18 + $0x150] sm:$0xff] }
 0x145   : > { %v1072_v31 = vmax.f32 %v1026_v25, 0.0  ;;  %v975_v32 = vmul.f32 %v4023_v13, %v868_v26  ;;  %v3300_v33 = vpop.f32.mrb[34].mxu0  ;;  %v497_v25 = vld [vmem:[%s4016_s18 + $0x168] sm:$0x1] }
 0x146   : > { %v1029_v34 = vadd.f32 %v4028_v16, %v976_v29  ;;  %v883_v35 = vadd.f32 %v3300_v33, %v487_v27  ;;  %v877_v36 = vpop.f32.mrb[35].mxu0 }
 0x147   : > { %v1028_v37 = vadd.f32 %v4028_v16, %v975_v32  ;;  %v878_v38 = vadd.f32 %v877_v36, %v486_v30  ;;  %3369 = vmatprep.mubr.msk.f32.mxu1 %vm1092_vm2, %v1072_v31 }
 0x148   : > { %v1075_v40 = vmax.f32 %v1029_v34, 0.0  ;;  %v978_v41 = vmul.f32 %v4023_v13, %v883_v35  ;;  %3370 = vmatmul.mubr.msk.f32.gmra.mrb[12].mxu1 %vm1092_vm2, %v1073_v28  ;;  %v496_v28 = vld [vmem:[%s4016_s18 + $0x160] sm:$0xff] }
 0x149   : > { %v1074_v43 = vmax.f32 %v1028_v37, 0.0  ;;  %v977_v44 = vmul.f32 %v4023_v13, %v878_v38  ;;  %v3303_v9 = vpop.f32.mrb[36].mxu0 }
 0x14a   : > { %v1031_v45 = vadd.f32 %v4028_v16, %v978_v41  ;;  %v893_v46 = vadd.f32 %v3303_v9, %v489_v39  ;;  %v887_v47 = vpop.f32.mrb[37].mxu0  ;;  %v4222_v9 = vld [vmem:[%s4616_s6] ss:$0 sm:$0xff] }
 0x14b   : > { %v1030_v48 = vadd.f32 %v4028_v16, %v977_v44  ;;  %v888_v49 = vadd.f32 %v887_v47, %v488_v42  ;;  %3372 = vmatprep.mubr.msk.f32.mxu1 %vm1092_vm2, %v1074_v43 }
 0x14c   : > { %v1077_v51 = vmax.f32 %v1031_v45, 0.0  ;;  %v980_v52 = vmul.f32 %v4023_v13, %v893_v46  ;;  %3373 = vmatmul.mubr.msk.f32.gmra.mrb[14].mxu1 %vm1092_vm2, %v1075_v40 }
 0x14d   : > { %v1076_v54 = vmax.f32 %v1030_v48, 0.0  ;;  %v979_v55 = vmul.f32 %v4023_v13, %v888_v49  ;;  %v3306_v56 = vpop.f32.mrb[38].mxu0 }
 0x14e   : > { %v1033_v57 = vadd.f32 %v4028_v16, %v980_v52  ;;  %v903_v58 = vadd.f32 %v3306_v56, %v491_v50  ;;  %v897_v59 = vpop.f32.mrb[39].mxu0 }
 0x14f   : > { %v1032_v60 = vadd.f32 %v4028_v16, %v979_v55  ;;  %v898_v61 = vadd.f32 %v897_v59, %v490_v53  ;;  %3375 = vmatprep.mubr.msk.f32.mxu1 %vm1092_vm2, %v1076_v54 }
 0x150   : > { %v1079_v63 = vmax.f32 %v1033_v57, 0.0  ;;  %v982_v0 = vmul.f32 %v4023_v13, %v903_v58  ;;  %3376 = vmatmul.mubr.msk.f32.gmra.mrb[16].mxu1 %vm1092_vm2, %v1077_v51 }
 0x151   : > { %v1078_v2 = vmax.f32 %v1032_v60, 0.0  ;;  %v981_v3 = vmul.f32 %v4023_v13, %v898_v61  ;;  %v3309_v4 = vpop.f32.mrb[40].mxu0 }
 0x152   : > { %v1035_v5 = vadd.f32 %v4028_v16, %v982_v0  ;;  %v913_v6 = vadd.f32 %v3309_v4, %v493_v62  ;;  %v907_v7 = vpop.f32.mrb[41].mxu0 }
 0x153   : > { %v1034_v8 = vadd.f32 %v4028_v16, %v981_v3  ;;  %v908_v10 = vadd.f32 %v907_v7, %v492_v1  ;;  %3378 = vmatprep.mubr.msk.f32.mxu1 %vm1092_vm2, %v1078_v2 }
 0x154   : > { %v1081_v12 = vmax.f32 %v1035_v5, 0.0  ;;  %v984_v14 = vmul.f32 %v4023_v13, %v913_v6  ;;  %3379 = vmatmul.mubr.msk.f32.gmra.mrb[18].mxu1 %vm1092_vm2, %v1079_v63 }
 0x155   : > { %v1080_v17 = vmax.f32 %v1034_v8, 0.0  ;;  %v983_v18 = vmul.f32 %v4023_v13, %v908_v10  ;;  %v3312_v19 = vpop.f32.mrb[42].mxu0 }
 0x156   : > { %v1037_v20 = vadd.f32 %v4028_v16, %v984_v14  ;;  %v923_v21 = vadd.f32 %v3312_v19, %v495_v11  ;;  %v917_v22 = vpop.f32.mrb[43].mxu0 }
 0x157   : > { %v1036_v23 = vadd.f32 %v4028_v16, %v983_v18  ;;  %v918_v24 = vadd.f32 %v917_v22, %v494_v15  ;;  %3381 = vmatprep.mubr.msk.f32.mxu1 %vm1092_vm2, %v1080_v17 }
 0x158   : > { %v1083_v26 = vmax.f32 %v1037_v20, 0.0  ;;  %v986_v27 = vmul.f32 %v4023_v13, %v923_v21  ;;  %3382 = vmatmul.mubr.msk.f32.gmra.mrb[20].mxu1 %vm1092_vm2, %v1081_v12 }
 0x159   : > { %v1082_v29 = vmax.f32 %v1036_v23, 0.0  ;;  %v985_v30 = vmul.f32 %v4023_v13, %v918_v24  ;;  %v3315_v31 = vpop.f32.mrb[44].mxu0 }
 0x15a   : > { %v1039_v32 = vadd.f32 %v4028_v16, %v986_v27  ;;  %v933_v33 = vadd.f32 %v3315_v31, %v497_v25  ;;  %v927_v34 = vpop.f32.mrb[45].mxu0 }
 0x15b   : > { %v1038_v35 = vadd.f32 %v4028_v16, %v985_v30  ;;  %v928_v36 = vadd.f32 %v927_v34, %v496_v28  ;;  %3384 = vmatprep.mubr.msk.f32.mxu1 %vm1092_vm2, %v1082_v29 }
 0x15c   : > { %v1085_v37 = vmax.f32 %v1039_v32, 0.0  ;;  %v988_v38 = vmul.f32 %v4023_v13, %v933_v33  ;;  %3385 = vmatmul.mubr.msk.f32.gmra.mrb[22].mxu1 %vm1092_vm2, %v1083_v26 }
 0x15d   : > { %v1084_v39 = vmax.f32 %v1038_v35, 0.0  ;;  %v987_v40 = vmul.f32 %v4023_v13, %v928_v36 }
 0x15e   : > { %v1041_v41 = vadd.f32 %v4028_v16, %v988_v38 }
 0x15f   : > { %v1040_v42 = vadd.f32 %v4028_v16, %v987_v40  ;;  %3387 = vmatprep.mubr.msk.f32.mxu1 %vm1092_vm2, %v1084_v39  ;;  %v4227_v16 = vld [vmem:[%s4617_s7] ss:$0 sm:$0xff] }
 0x160   : > { %v1087_v43 = vmax.f32 %v1041_v41, 0.0  ;;  %3388 = vmatmul.mubr.msk.f32.gmra.mrb[24].mxu1 %vm1092_vm2, %v1085_v37 }
 0x161   : > { %v1086_v44 = vmax.f32 %v1040_v42, 0.0 }
 0x163   : > { %3390 = vmatprep.mubr.msk.f32.mxu1 %vm1092_vm2, %v1086_v44 }
 0x164   : > { %3391 = vmatmul.mubr.msk.f32.gmra.mrb[26].mxu1 %vm1092_vm2, %v1087_v43 }
 0x1df   : > { %v3326_v13 = vpop.f32.mrb[46].mxu0 }
 0x1e0   : > { %v1534_v45 = vmul.f32 %v3326_v13, %v4222_v9  ;;  %v1297_v46 = vpop.f32.mrb[47].mxu0 }
 0x1e1   : > { %v1533_v47 = vmul.f32 %v4222_v9, %v1297_v46 }
 0x1e2   : > { %v1587_v48 = vadd.f32 %v4227_v16, %v1534_v45 }
 0x1e3   : > { %v1586_v49 = vadd.f32 %v4227_v16, %v1533_v47  ;;  %v3329_v50 = vpop.f32.mrb[48].mxu0 }
 0x1e4   : > { %v1536_v51 = vmul.f32 %v3329_v50, %v4222_v9  ;;  %v1307_v52 = vpop.f32.mrb[49].mxu0  ;;  %v1633_v55 = vmax.f32 %v1587_v48, 0.0 }
 0x1e5   : > { %v1632_v53 = vmax.f32 %v1586_v49, 0.0  ;;  %v1535_v54 = vmul.f32 %v4222_v9, %v1307_v52 }
 0x1e6   : > { %v1589_v56 = vadd.f32 %v4227_v16, %v1536_v51 }
 0x1e7   : > { %v1588_v57 = vadd.f32 %v4227_v16, %v1535_v54  ;;  %v3332_v58 = vpop.f32.mrb[50].mxu0  ;;  %3401 = vmatprep.mubr.msk.f32.mxu1 %vm1092_vm2, %v1632_v53 }
 0x1e8   : > { %v1538_v59 = vmul.f32 %v3332_v58, %v4222_v9  ;;  %v1317_v60 = vpop.f32.mrb[51].mxu0  ;;  %3402 = vmatmul.mubr.msk.f32.vlgmr.msra.gmra.mrb[28].mxu1 %vm1092_vm2, %v1633_v55  ;;  %v1635_v63 = vmax.f32 %v1589_v56, 0.0 }
 0x1e9   : > { %v1634_v61 = vmax.f32 %v1588_v57, 0.0  ;;  %v1537_v62 = vmul.f32 %v4222_v9, %v1317_v60 }
 0x1ea   : > { %v1591_v0 = vadd.f32 %v4227_v16, %v1538_v59 }
 0x1eb   : > { %v1590_v1 = vadd.f32 %v4227_v16, %v1537_v62  ;;  %v3335_v2 = vpop.f32.mrb[52].mxu0  ;;  %3404 = vmatprep.mubr.msk.f32.mxu1 %vm1092_vm2, %v1634_v61 }
 0x1ec   : > { %v1637_v3 = vmax.f32 %v1591_v0, 0.0  ;;  %v1540_v4 = vmul.f32 %v3335_v2, %v4222_v9  ;;  %v1327_v5 = vpop.f32.mrb[53].mxu0  ;;  %3405 = vmatmul.mubr.msk.f32.gmra.mrb[30].mxu1 %vm1092_vm2, %v1635_v63 }
 0x1ed   : > { %v1636_v6 = vmax.f32 %v1590_v1, 0.0  ;;  %v1539_v7 = vmul.f32 %v4222_v9, %v1327_v5 }
 0x1ee   : > { %v1593_v8 = vadd.f32 %v4227_v16, %v1540_v4 }
 0x1ef   : > { %v1592_v10 = vadd.f32 %v4227_v16, %v1539_v7  ;;  %v3338_v11 = vpop.f32.mrb[54].mxu0  ;;  %3407 = vmatprep.mubr.msk.f32.mxu1 %vm1092_vm2, %v1636_v6 }
 0x1f0   : > { %v1639_v12 = vmax.f32 %v1593_v8, 0.0  ;;  %v1542_v14 = vmul.f32 %v3338_v11, %v4222_v9  ;;  %v1337_v15 = vpop.f32.mrb[55].mxu0  ;;  %3408 = vmatmul.mubr.msk.f32.gmra.mrb[32].mxu1 %vm1092_vm2, %v1637_v3 }
 0x1f1   : > { %v1638_v17 = vmax.f32 %v1592_v10, 0.0  ;;  %v1541_v18 = vmul.f32 %v4222_v9, %v1337_v15 }
 0x1f2   : > { %v1595_v19 = vadd.f32 %v4227_v16, %v1542_v14 }
 0x1f3   : > { %v1594_v20 = vadd.f32 %v4227_v16, %v1541_v18  ;;  %v3341_v21 = vpop.f32.mrb[56].mxu0  ;;  %3410 = vmatprep.mubr.msk.f32.mxu1 %vm1092_vm2, %v1638_v17 }
 0x1f4   : > { %v1641_v22 = vmax.f32 %v1595_v19, 0.0  ;;  %v1544_v23 = vmul.f32 %v3341_v21, %v4222_v9  ;;  %v1347_v24 = vpop.f32.mrb[57].mxu0  ;;  %3411 = vmatmul.mubr.msk.f32.gmra.mrb[34].mxu1 %vm1092_vm2, %v1639_v12 }
 0x1f5   : > { %v1640_v25 = vmax.f32 %v1594_v20, 0.0  ;;  %v1543_v26 = vmul.f32 %v4222_v9, %v1347_v24 }
 0x1f6   : > { %v1597_v27 = vadd.f32 %v4227_v16, %v1544_v23 }
 0x1f7   : > { %v1596_v28 = vadd.f32 %v4227_v16, %v1543_v26  ;;  %v3344_v29 = vpop.f32.mrb[58].mxu0  ;;  %3413 = vmatprep.mubr.msk.f32.mxu1 %vm1092_vm2, %v1640_v25 }
 0x1f8   : > { %v1643_v30 = vmax.f32 %v1597_v27, 0.0  ;;  %v1546_v31 = vmul.f32 %v3344_v29, %v4222_v9  ;;  %v1357_v32 = vpop.f32.mrb[59].mxu0  ;;  %3414 = vmatmul.mubr.msk.f32.gmra.mrb[36].mxu1 %vm1092_vm2, %v1641_v22 }
 0x1f9   : > { %v1642_v33 = vmax.f32 %v1596_v28, 0.0  ;;  %v1545_v34 = vmul.f32 %v4222_v9, %v1357_v32 }
 0x1fa   : > { %v1599_v35 = vadd.f32 %v4227_v16, %v1546_v31 }
 0x1fb   : > { %v1598_v36 = vadd.f32 %v4227_v16, %v1545_v34  ;;  %v3347_v37 = vpop.f32.mrb[60].mxu0  ;;  %3416 = vmatprep.mubr.msk.f32.mxu1 %vm1092_vm2, %v1642_v33 }
 0x1fc   : > { %v1645_v38 = vmax.f32 %v1599_v35, 0.0  ;;  %v1548_v39 = vmul.f32 %v3347_v37, %v4222_v9  ;;  %v1367_v40 = vpop.f32.mrb[61].mxu0  ;;  %3417 = vmatmul.mubr.msk.f32.gmra.mrb[38].mxu1 %vm1092_vm2, %v1643_v30 }
 0x1fd   : > { %v1644_v41 = vmax.f32 %v1598_v36, 0.0  ;;  %v1547_v42 = vmul.f32 %v4222_v9, %v1367_v40 }
 0x1fe   : > { %v1601_v43 = vadd.f32 %v4227_v16, %v1548_v39 }
 0x1ff   : > { %v1600_v44 = vadd.f32 %v4227_v16, %v1547_v42  ;;  %v3350_v13 = vpop.f32.mrb[62].mxu0  ;;  %3419 = vmatprep.mubr.msk.f32.mxu1 %vm1092_vm2, %v1644_v41 }
 0x200   : > { %v1647_v45 = vmax.f32 %v1601_v43, 0.0  ;;  %v1550_v46 = vmul.f32 %v3350_v13, %v4222_v9  ;;  %v1377_v47 = vpop.f32.mrb[63].mxu0  ;;  %3420 = vmatmul.mubr.msk.f32.gmra.mrb[40].mxu1 %vm1092_vm2, %v1645_v38 }
 0x201   : > { %v1646_v48 = vmax.f32 %v1600_v44, 0.0  ;;  %v1549_v49 = vmul.f32 %v4222_v9, %v1377_v47 }
 0x202   : > { %v1603_v50 = vadd.f32 %v4227_v16, %v1550_v46 }
 0x203   : > { %v1602_v51 = vadd.f32 %v4227_v16, %v1549_v49  ;;  %v3353_v52 = vpop.f32.mrb[0].mxu1  ;;  %3422 = vmatprep.mubr.msk.f32.mxu1 %vm1092_vm2, %v1646_v48 }
 0x204   : > { %v1649_v53 = vmax.f32 %v1603_v50, 0.0  ;;  %v1552_v54 = vmul.f32 %v3353_v52, %v4222_v9  ;;  %v1387_v55 = vpop.f32.mrb[1].mxu1  ;;  %3423 = vmatmul.mubr.msk.f32.gmra.mrb[42].mxu1 %vm1092_vm2, %v1647_v45 }
 0x205   : > { %v1648_v56 = vmax.f32 %v1602_v51, 0.0  ;;  %v1551_v57 = vmul.f32 %v4222_v9, %v1387_v55 }
 0x206   : > { %v1605_v58 = vadd.f32 %v4227_v16, %v1552_v54 }
 0x207   : > { %v1604_v59 = vadd.f32 %v4227_v16, %v1551_v57  ;;  %v3356_v60 = vpop.f32.mrb[2].mxu1  ;;  %3425 = vmatprep.mubr.msk.f32.mxu1 %vm1092_vm2, %v1648_v56 }
 0x208   : > { %v1651_v61 = vmax.f32 %v1605_v58, 0.0  ;;  %v1554_v62 = vmul.f32 %v3356_v60, %v4222_v9  ;;  %v1397_v63 = vpop.f32.mrb[3].mxu1  ;;  %3426 = vmatmul.mubr.msk.f32.gmra.mrb[44].mxu1 %vm1092_vm2, %v1649_v53 }
 0x209   : > { %v1650_v0 = vmax.f32 %v1604_v59, 0.0  ;;  %v1553_v1 = vmul.f32 %v4222_v9, %v1397_v63 }
 0x20a   : > { %v1607_v2 = vadd.f32 %v4227_v16, %v1554_v62 }
 0x20b   : > { %v1606_v3 = vadd.f32 %v4227_v16, %v1553_v1  ;;  %v3359_v4 = vpop.f32.mrb[4].mxu1  ;;  %3428 = vmatprep.mubr.msk.f32.mxu1 %vm1092_vm2, %v1650_v0 }
 0x20c   : > { %v1653_v5 = vmax.f32 %v1607_v2, 0.0  ;;  %v1556_v6 = vmul.f32 %v3359_v4, %v4222_v9  ;;  %v1407_v7 = vpop.f32.mrb[5].mxu1  ;;  %3429 = vmatmul.mubr.msk.f32.gmra.mrb[46].mxu1 %vm1092_vm2, %v1651_v61 }
 0x20d   : > { %v1652_v8 = vmax.f32 %v1606_v3, 0.0  ;;  %v1555_v10 = vmul.f32 %v4222_v9, %v1407_v7 }
 0x20e   : > { %v1609_v11 = vadd.f32 %v4227_v16, %v1556_v6 }
 0x20f   : > { %v1608_v12 = vadd.f32 %v4227_v16, %v1555_v10  ;;  %v3362_v14 = vpop.f32.mrb[6].mxu1  ;;  %3431 = vmatprep.mubr.msk.f32.mxu1 %vm1092_vm2, %v1652_v8 }
 0x210   : > { %v1655_v15 = vmax.f32 %v1609_v11, 0.0  ;;  %v1558_v17 = vmul.f32 %v3362_v14, %v4222_v9  ;;  %v1417_v18 = vpop.f32.mrb[7].mxu1  ;;  %3432 = vmatmul.mubr.msk.f32.gmra.mrb[48].mxu1 %vm1092_vm2, %v1653_v5 }
 0x211   : > { %v1654_v19 = vmax.f32 %v1608_v12, 0.0  ;;  %v1557_v20 = vmul.f32 %v4222_v9, %v1417_v18 }
 0x212   : > { %v1611_v21 = vadd.f32 %v4227_v16, %v1558_v17 }
 0x213   : > { %v1610_v22 = vadd.f32 %v4227_v16, %v1557_v20  ;;  %v3365_v23 = vpop.f32.mrb[8].mxu1  ;;  %3434 = vmatprep.mubr.msk.f32.mxu1 %vm1092_vm2, %v1654_v19 }
 0x214   : > { %v1657_v24 = vmax.f32 %v1611_v21, 0.0  ;;  %v1560_v25 = vmul.f32 %v3365_v23, %v4222_v9  ;;  %v1427_v26 = vpop.f32.mrb[9].mxu1  ;;  %3435 = vmatmul.mubr.msk.f32.gmra.mrb[50].mxu1 %vm1092_vm2, %v1655_v15 }
 0x215   : > { %v1656_v27 = vmax.f32 %v1610_v22, 0.0  ;;  %v1559_v28 = vmul.f32 %v4222_v9, %v1427_v26 }
 0x216   : > { %v1613_v29 = vadd.f32 %v4227_v16, %v1560_v25 }
 0x217   : > { %v1612_v30 = vadd.f32 %v4227_v16, %v1559_v28  ;;  %v3368_v31 = vpop.f32.mrb[10].mxu1  ;;  %3437 = vmatprep.mubr.msk.f32.mxu1 %vm1092_vm2, %v1656_v27 }
 0x218   : > { %v1659_v32 = vmax.f32 %v1613_v29, 0.0  ;;  %v1562_v33 = vmul.f32 %v3368_v31, %v4222_v9  ;;  %v1437_v34 = vpop.f32.mrb[11].mxu1  ;;  %3438 = vmatmul.mubr.msk.f32.gmra.mrb[52].mxu1 %vm1092_vm2, %v1657_v24 }
 0x219   : > { %v1658_v35 = vmax.f32 %v1612_v30, 0.0  ;;  %v1561_v36 = vmul.f32 %v4222_v9, %v1437_v34 }
 0x21a   : > { %v1615_v37 = vadd.f32 %v4227_v16, %v1562_v33 }
 0x21b   : > { %v1614_v38 = vadd.f32 %v4227_v16, %v1561_v36  ;;  %v3371_v39 = vpop.f32.mrb[12].mxu1  ;;  %3440 = vmatprep.mubr.msk.f32.mxu1 %vm1092_vm2, %v1658_v35 }
 0x21c   : > { %v1661_v40 = vmax.f32 %v1615_v37, 0.0  ;;  %v1564_v41 = vmul.f32 %v3371_v39, %v4222_v9  ;;  %v1447_v42 = vpop.f32.mrb[13].mxu1  ;;  %3441 = vmatmul.mubr.msk.f32.gmra.mrb[54].mxu1 %vm1092_vm2, %v1659_v32 }
 0x21d   : > { %v1660_v43 = vmax.f32 %v1614_v38, 0.0  ;;  %v1563_v44 = vmul.f32 %v4222_v9, %v1447_v42 }
 0x21e   : > { %v1617_v13 = vadd.f32 %v4227_v16, %v1564_v41 }
 0x21f   : > { %v1616_v45 = vadd.f32 %v4227_v16, %v1563_v44  ;;  %v3374_v46 = vpop.f32.mrb[14].mxu1  ;;  %3443 = vmatprep.mubr.msk.f32.mxu1 %vm1092_vm2, %v1660_v43  ;;  %v3719_v43 = vmov 0  }
 0x220   : > { %v1663_v47 = vmax.f32 %v1617_v13, 0.0  ;;  %v1566_v48 = vmul.f32 %v3374_v46, %v4222_v9  ;;  %v1457_v49 = vpop.f32.mrb[15].mxu1  ;;  %3444 = vmatmul.mubr.msk.f32.gmra.mrb[56].mxu1 %vm1092_vm2, %v1661_v40  ;;  %3525 = vset.pattern.permute.xlu0 %v3719_v43 }
 0x221   : > { %v1662_v50 = vmax.f32 %v1616_v45, 0.0  ;;  %v1565_v51 = vmul.f32 %v4222_v9, %v1457_v49  ;;  %3526 = vset.pattern.permute.xlu1 %v3719_v43 }
 0x222   : > { %v1619_v52 = vadd.f32 %v4227_v16, %v1566_v48 }
 0x223   : > { %v1618_v53 = vadd.f32 %v4227_v16, %v1565_v51  ;;  %v3377_v54 = vpop.f32.mrb[16].mxu1  ;;  %3446 = vmatprep.mubr.msk.f32.mxu1 %vm1092_vm2, %v1662_v50 }
 0x224   : > { %v1665_v55 = vmax.f32 %v1619_v52, 0.0  ;;  %v1568_v56 = vmul.f32 %v3377_v54, %v4222_v9  ;;  %v1467_v57 = vpop.f32.mrb[17].mxu1  ;;  %3447 = vmatmul.mubr.msk.f32.gmra.mrb[58].mxu1 %vm1092_vm2, %v1663_v47 }
 0x225   : > { %v1664_v58 = vmax.f32 %v1618_v53, 0.0  ;;  %v1567_v59 = vmul.f32 %v4222_v9, %v1467_v57 }
 0x226   : > { %v1621_v60 = vadd.f32 %v4227_v16, %v1568_v56 }
 0x227   : > { %v1620_v61 = vadd.f32 %v4227_v16, %v1567_v59  ;;  %v3380_v62 = vpop.f32.mrb[18].mxu1  ;;  %3449 = vmatprep.mubr.msk.f32.mxu1 %vm1092_vm2, %v1664_v58 }
 0x228   : > { %v1667_v63 = vmax.f32 %v1621_v60, 0.0  ;;  %v1570_v0 = vmul.f32 %v3380_v62, %v4222_v9  ;;  %v1477_v1 = vpop.f32.mrb[19].mxu1  ;;  %3450 = vmatmul.mubr.msk.f32.gmra.mrb[60].mxu1 %vm1092_vm2, %v1665_v55 }
 0x229   : > { %v1666_v2 = vmax.f32 %v1620_v61, 0.0  ;;  %v1569_v3 = vmul.f32 %v4222_v9, %v1477_v1 }
 0x22a   : > { %v1623_v4 = vadd.f32 %v4227_v16, %v1570_v0 }
 0x22b   : > { %v1622_v5 = vadd.f32 %v4227_v16, %v1569_v3  ;;  %v3383_v6 = vpop.f32.mrb[20].mxu1  ;;  %3452 = vmatprep.mubr.msk.f32.mxu1 %vm1092_vm2, %v1666_v2 }
 0x22c   : > { %v1669_v7 = vmax.f32 %v1623_v4, 0.0  ;;  %v1572_v8 = vmul.f32 %v3383_v6, %v4222_v9  ;;  %v1487_v10 = vpop.f32.mrb[21].mxu1  ;;  %3453 = vmatmul.mubr.msk.f32.gmra.mrb[62].mxu1 %vm1092_vm2, %v1667_v63 }
 0x22d   : > { %v1668_v11 = vmax.f32 %v1622_v5, 0.0  ;;  %v1571_v12 = vmul.f32 %v4222_v9, %v1487_v10 }
 0x22e   : > { %v1625_v14 = vadd.f32 %v4227_v16, %v1572_v8 }
 0x22f   : > { %v1624_v15 = vadd.f32 %v4227_v16, %v1571_v12  ;;  %v3386_v17 = vpop.f32.mrb[22].mxu1  ;;  %3455 = vmatprep.mubr.msk.f32.mxu1 %vm1092_vm2, %v1668_v11 }
 0x230   : > { %v1671_v18 = vmax.f32 %v1625_v14, 0.0  ;;  %v1574_v19 = vmul.f32 %v3386_v17, %v4222_v9  ;;  %v1497_v20 = vpop.f32.mrb[23].mxu1  ;;  %3456 = vmatmul.mubr.msk.f32.gmra.mrb[64].mxu1 %vm1092_vm2, %v1669_v7 }
 0x231   : > { %v1670_v21 = vmax.f32 %v1624_v15, 0.0  ;;  %v1573_v22 = vmul.f32 %v4222_v9, %v1497_v20 }
 0x232   : > { %v1627_v23 = vadd.f32 %v4227_v16, %v1574_v19 }
 0x233   : > { %v1626_v24 = vadd.f32 %v4227_v16, %v1573_v22  ;;  %v3389_v25 = vpop.f32.mrb[24].mxu1  ;;  %3458 = vmatprep.mubr.msk.f32.mxu1 %vm1092_vm2, %v1670_v21 }
 0x234   : > { %v1673_v26 = vmax.f32 %v1627_v23, 0.0  ;;  %v1576_v27 = vmul.f32 %v3389_v25, %v4222_v9  ;;  %v1507_v28 = vpop.f32.mrb[25].mxu1  ;;  %3459 = vmatmul.mubr.msk.f32.gmra.mrb[66].mxu1 %vm1092_vm2, %v1671_v18 }
 0x235   : > { %v1672_v29 = vmax.f32 %v1626_v24, 0.0  ;;  %v1575_v30 = vmul.f32 %v4222_v9, %v1507_v28 }
 0x236   : > { %v1629_v31 = vadd.f32 %v4227_v16, %v1576_v27 }
 0x237   : > { %v1628_v32 = vadd.f32 %v4227_v16, %v1575_v30  ;;  %v3392_v33 = vpop.f32.mrb[26].mxu1  ;;  %3461 = vmatprep.mubr.msk.f32.mxu1 %vm1092_vm2, %v1672_v29 }
 0x238   : > { %v1675_v34 = vmax.f32 %v1629_v31, 0.0  ;;  %v1578_v35 = vmul.f32 %v3392_v33, %v4222_v9  ;;  %v1517_v36 = vpop.f32.mrb[27].mxu1  ;;  %3462 = vmatmul.mubr.msk.f32.gmra.mrb[68].mxu1 %vm1092_vm2, %v1673_v26 }
 0x239   : > { %v1674_v37 = vmax.f32 %v1628_v32, 0.0  ;;  %v1577_v38 = vmul.f32 %v4222_v9, %v1517_v36 }
 0x23a   : > { %v1631_v39 = vadd.f32 %v4227_v16, %v1578_v35 }
 0x23b   : > { %v1630_v40 = vadd.f32 %v4227_v16, %v1577_v38  ;;  %3464 = vmatprep.mubr.msk.f32.mxu1 %vm1092_vm2, %v1674_v37 }
 0x23c   : > { %v1677_v41 = vmax.f32 %v1631_v39, 0.0  ;;  %3465 = vmatmul.mubr.msk.f32.gmra.mrb[70].mxu1 %vm1092_vm2, %v1675_v34 }
 0x23d   : > { %v1676_v42 = vmax.f32 %v1630_v40, 0.0 }
 0x23f   : > { %3467 = vmatprep.mubr.msk.f32.mxu1 %vm1092_vm2, %v1676_v42 }
 0x240   : > { %3468 = vmatmul.mubr.msk.f32.gmra.mrb[72].mxu1 %vm1092_vm2, %v1677_v41 }
 0x2bb   : > { %v3403_v44 = vpop.f32.mrb[28].mxu1 }
 0x2bc   : > { %v2116_v13 = vsub.f32 0.0, %v3403_v44  ;;  %v1886_v9 = vpop.f32.mrb[29].mxu1 }
 0x2bd   : > { %v2115_v45 = vsub.f32 0.0, %v1886_v9 }
 0x2be   : > { %v2163_v46 = vmul.f32 1.442695, %v2116_v13 }
 0x2bf   : > { %v2161_v47 = vmul.f32 1.442695, %v2115_v45  ;;  %v3406_v16 = vpop.f32.mrb[30].mxu1 }
 0x2c0   : > { %3527 = vpow2.f32 %v2163_v46  ;;  %v2118_v48 = vsub.f32 0.0, %v3406_v16  ;;  %v1896_v49 = vpop.f32.mrb[31].mxu1 }
 0x2c1   : > { %3529 = vpow2.f32 %v2161_v47  ;;  %v2117_v50 = vsub.f32 0.0, %v1896_v49 }
 0x2c2   : > { %v2167_v51 = vmul.f32 1.442695, %v2118_v48 }
 0x2c3   : > { %v2165_v52 = vmul.f32 1.442695, %v2117_v50  ;;  %v3409_v53 = vpop.f32.mrb[32].mxu1 }
 0x2c4   : > { %3531 = vpow2.f32 %v2167_v51  ;;  %v2120_v54 = vsub.f32 0.0, %v3409_v53  ;;  %v1906_v55 = vpop.f32.mrb[33].mxu1 }
 0x2c5   : > { %3533 = vpow2.f32 %v2165_v52  ;;  %v2119_v56 = vsub.f32 0.0, %v1906_v55 }
 0x2c6   : > { %v2171_v57 = vmul.f32 1.442695, %v2120_v54 }
 0x2c7   : > { %v2169_v58 = vmul.f32 1.442695, %v2119_v56  ;;  %v3412_v59 = vpop.f32.mrb[34].mxu1 }
 0x2c8   : > { %3535 = vpow2.f32 %v2171_v57  ;;  %v2122_v60 = vsub.f32 0.0, %v3412_v59  ;;  %v1916_v61 = vpop.f32.mrb[35].mxu1 }
 0x2c9   : > { %3537 = vpow2.f32 %v2169_v58  ;;  %v2121_v62 = vsub.f32 0.0, %v1916_v61 }
 0x2ca   : > { %v3528_v63 = vpop.eup %3527  ;;  %v2175_v0 = vmul.f32 1.442695, %v2122_v60 }
 0x2cb   : > { %v3530_v1 = vpop.eup %3529  ;;  %v2254_v2 = vadd.f32 1.0, %v3528_v63  ;;  %v2173_v3 = vmul.f32 1.442695, %v2121_v62  ;;  %v3415_v4 = vpop.f32.mrb[36].mxu1 }
 0x2cc   : > { %v2253_v5 = vadd.f32 1.0, %v3530_v1  ;;  %3539 = vpow2.f32 %v2175_v0  ;;  %v2124_v6 = vsub.f32 0.0, %v3415_v4  ;;  %v1926_v7 = vpop.f32.mrb[37].mxu1 }
 0x2cd   : > { %3541 = vrcp.f32 %v2254_v2  ;;  %v2123_v8 = vsub.f32 0.0, %v1926_v7 }
 0x2ce   : > { %v3532_v10 = vpop.eup %3531  ;;  %3543 = vrcp.f32 %v2253_v5  ;;  %v2179_v11 = vmul.f32 1.442695, %v2124_v6 }
 0x2cf   : > { %v3534_v12 = vpop.eup %3533  ;;  %v2256_v14 = vadd.f32 1.0, %v3532_v10  ;;  %3545 = vpow2.f32 %v2173_v3  ;;  %v2177_v15 = vmul.f32 1.442695, %v2123_v8  ;;  %v3418_v17 = vpop.f32.mrb[38].mxu1 }
 0x2d0   : > { %v2255_v18 = vadd.f32 1.0, %v3534_v12  ;;  %3547 = vpow2.f32 %v2179_v11  ;;  %v2126_v19 = vsub.f32 0.0, %v3418_v17  ;;  %v1936_v20 = vpop.f32.mrb[39].mxu1 }
 0x2d1   : > { %3549 = vrcp.f32 %v2256_v14  ;;  %v2125_v21 = vsub.f32 0.0, %v1936_v20 }
 0x2d2   : > { %v3536_v22 = vpop.eup %3535  ;;  %3551 = vrcp.f32 %v2255_v18  ;;  %v2183_v23 = vmul.f32 1.442695, %v2126_v19 }
 0x2d3   : > { %v3538_v24 = vpop.eup %3537  ;;  %v2258_v25 = vadd.f32 1.0, %v3536_v22  ;;  %3553 = vpow2.f32 %v2177_v15  ;;  %v2181_v26 = vmul.f32 1.442695, %v2125_v21  ;;  %v3421_v27 = vpop.f32.mrb[40].mxu1 }
 0x2d4   : > { %v2257_v28 = vadd.f32 1.0, %v3538_v24  ;;  %3555 = vpow2.f32 %v2183_v23  ;;  %v2128_v29 = vsub.f32 0.0, %v3421_v27  ;;  %v1946_v30 = vpop.f32.mrb[41].mxu1 }
 0x2d5   : > { %3557 = vrcp.f32 %v2258_v25  ;;  %v2127_v31 = vsub.f32 0.0, %v1946_v30 }
 0x2d6   : > { %v3540_v32 = vpop.eup %3539  ;;  %3559 = vrcp.f32 %v2257_v28  ;;  %v2187_v33 = vmul.f32 1.442695, %v2128_v29 }
 0x2d7   : > { %v3542_v34 = vpop.eup %3541  ;;  %v2260_v35 = vadd.f32 1.0, %v3540_v32  ;;  %3561 = vpow2.f32 %v2181_v26  ;;  %v2185_v36 = vmul.f32 1.442695, %v2127_v31  ;;  %v3424_v37 = vpop.f32.mrb[42].mxu1 }
 0x2d8   : > { %v3544_v38 = vpop.eup %3543  ;;  %2347 = vst.msk [vmem:[%s4371_s12 + $0x8] sm:$0xff] %vm2345_vm3, %v3542_v34  ;;  %3563 = vpow2.f32 %v2187_v33  ;;  %v2130_v39 = vsub.f32 0.0, %v3424_v37  ;;  %v1956_v40 = vpop.f32.mrb[43].mxu1  ;;  %v2394_v41 = vadd.f32 1.0, %v3542_v34 }
 0x2d9   : > { %v3546_v42 = vpop.eup %3545  ;;  %2346 = vst.msk [vmem:[%s4371_s12] sm:$0xff] %vm2345_vm3, %v3544_v38  ;;  %3565 = vrcp.f32 %v2260_v35  ;;  %v2129_v43 = vsub.f32 0.0, %v1956_v40  ;;  %v2393_v51 = vadd.f32 1.0, %v3544_v38 }
 0x2da   : > { %v3548_v44 = vpop.eup %3547  ;;  %v2259_v13 = vadd.f32 1.0, %v3546_v42  ;;  %3567 = vpow2.f32 %v2185_v36  ;;  %v2191_v9 = vmul.f32 1.442695, %v2130_v39  ;;  %2492 = vperm.xlu0 %3525, %v2394_v41  }
 0x2db   : > { %v3550_v45 = vpop.eup %3549  ;;  %v2262_v46 = vadd.f32 1.0, %v3548_v44  ;;  %v2189_v47 = vmul.f32 1.442695, %v2129_v43  ;;  %v3427_v16 = vpop.f32.mrb[44].mxu1 }
 0x2dc   : > { %v3552_v48 = vpop.eup %3551  ;;  %2349 = vst.msk [vmem:[%s4371_s12 + $0x18] sm:$0xff] %vm2345_vm3, %v3550_v45  ;;  %3569 = vrcp.f32 %v2259_v13  ;;  %v2132_v49 = vsub.f32 0.0, %v3427_v16  ;;  %v1966_v50 = vpop.f32.mrb[45].mxu1  ;;  %v2396_v52 = vadd.f32 1.0, %v3550_v45 }
 0x2dd   : > { %v3554_v53 = vpop.eup %3553  ;;  %2348 = vst.msk [vmem:[%s4371_s12 + $0x10] sm:$0xff] %vm2345_vm3, %v3552_v48  ;;  %3571 = vrcp.f32 %v2262_v46  ;;  %v2131_v54 = vsub.f32 0.0, %v1966_v50  ;;  %v2395_v1 = vadd.f32 1.0, %v3552_v48 }
 0x2de   : > { %v3556_v55 = vpop.eup %3555  ;;  %v2261_v56 = vadd.f32 1.0, %v3554_v53  ;;  %3573 = vpow2.f32 %v2191_v9  ;;  %v2195_v57 = vmul.f32 1.442695, %v2132_v49  ;;  %2487 = vperm.xlu0 %3525, %v2393_v51   ;;  %2502 = vperm.xlu1 %3526, %v2396_v52  }
 0x2df   : > { %v3558_v58 = vpop.eup %3557  ;;  %v2264_v59 = vadd.f32 1.0, %v3556_v55  ;;  %3575 = vpow2.f32 %v2189_v47  ;;  %v2193_v60 = vmul.f32 1.442695, %v2131_v54  ;;  %v3430_v61 = vpop.f32.mrb[46].mxu1 }
 0x2e0   : > { %v3560_v62 = vpop.eup %3559  ;;  %2351 = vst.msk [vmem:[%s4371_s12 + $0x28] sm:$0xff] %vm2345_vm3, %v3558_v58  ;;  %3577 = vrcp.f32 %v2261_v56  ;;  %v2134_v63 = vsub.f32 0.0, %v3430_v61  ;;  %v1976_v0 = vpop.f32.mrb[47].mxu1  ;;  %v2398_v18 = vadd.f32 1.0, %v3558_v58 }
 0x2e1   : > { %v3562_v2 = vpop.eup %3561  ;;  %2350 = vst.msk [vmem:[%s4371_s12 + $0x20] sm:$0xff] %vm2345_vm3, %v3560_v62  ;;  %3579 = vrcp.f32 %v2264_v59  ;;  %v2133_v3 = vsub.f32 0.0, %v1976_v0  ;;  %v2397_v4 = vadd.f32 1.0, %v3560_v62 }
 0x2e2   : > { %v3564_v5 = vpop.eup %3563  ;;  %v2263_v6 = vadd.f32 1.0, %v3562_v2  ;;  %3581 = vpow2.f32 %v2195_v57  ;;  %v2199_v7 = vmul.f32 1.442695, %v2134_v63  ;;  %2497 = vperm.xlu1 %3526, %v2395_v1  }
 0x2e3   : > { %v3566_v8 = vpop.eup %3565  ;;  %v2266_v10 = vadd.f32 1.0, %v3564_v5  ;;  %3583 = vpow2.f32 %v2193_v60  ;;  %2507 = vperm.xlu0 %3525, %v2397_v4   ;;  %v3433_v11 = vpop.f32.mrb[48].mxu1  ;;  %v2197_v14 = vmul.f32 1.442695, %v2133_v3 }
 0x2e4   : > { %v3568_v12 = vpop.eup %3567  ;;  %2353 = vst.msk [vmem:[%s4371_s12 + $0x38] sm:$0xff] %vm2345_vm3, %v3566_v8  ;;  %3585 = vrcp.f32 %v2263_v6  ;;  %v2136_v15 = vsub.f32 0.0, %v3433_v11  ;;  %v1986_v17 = vpop.f32.mrb[49].mxu1  ;;  %v2400_v30 = vadd.f32 1.0, %v3566_v8 }
 0x2e5   : > { %3587 = vrcp.f32 %v2266_v10  ;;  %v2265_v19 = vadd.f32 1.0, %v3568_v12  ;;  %v2135_v20 = vsub.f32 0.0, %v1986_v17 }
 0x2e6   : > { %v3570_v21 = vpop.eup %3569  ;;  %3589 = vpow2.f32 %v2199_v7  ;;  %v2203_v22 = vmul.f32 1.442695, %v2136_v15  ;;  %2512 = vperm.xlu1 %3526, %v2398_v18  }
 0x2e7   : > { %v3572_v23 = vpop.eup %3571  ;;  %2352 = vst.msk [vmem:[%s4371_s12 + $0x30] sm:$0xff] %vm2345_vm3, %v3570_v21  ;;  %3591 = vrcp.f32 %v2265_v19  ;;  %v2201_v24 = vmul.f32 1.442695, %v2135_v20  ;;  %v2399_v25 = vadd.f32 1.0, %v3570_v21  ;;  %v3436_v26 = vpop.f32.mrb[50].mxu1 }
 0x2e8   : > { %v3574_v27 = vpop.eup %3573  ;;  %2355 = vst.msk [vmem:[%s4371_s12 + $0x48] sm:$0xff] %vm2345_vm3, %v3572_v23  ;;  %3593 = vpow2.f32 %v2197_v14  ;;  %v2138_v28 = vsub.f32 0.0, %v3436_v26  ;;  %v1996_v29 = vpop.f32.mrb[51].mxu1  ;;  %v2402_v44 = vadd.f32 1.0, %v3572_v23 }
 0x2e9   : > { %v3576_v31 = vpop.eup %3575  ;;  %v2268_v32 = vadd.f32 1.0, %v3574_v27  ;;  %3595 = vpow2.f32 %v2203_v22  ;;  %2517 = vperm.xlu0 %3525, %v2399_v25   ;;  %v2137_v33 = vsub.f32 0.0, %v1996_v29 }
 0x2ea   : > { %v3578_v34 = vpop.eup %3577  ;;  %v2267_v35 = vadd.f32 1.0, %v3576_v31  ;;  %3597 = vpow2.f32 %v2201_v24  ;;  %v2207_v36 = vmul.f32 1.442695, %v2138_v28  ;;  %2522 = vperm.xlu1 %3526, %v2400_v30  }
 0x2eb   : > { %v3580_v37 = vpop.eup %3579  ;;  %2354 = vst.msk [vmem:[%s4371_s12 + $0x40] sm:$0xff] %vm2345_vm3, %v3578_v34  ;;  %3599 = vrcp.f32 %v2268_v32  ;;  %v2205_v38 = vmul.f32 1.442695, %v2137_v33  ;;  %v2401_v39 = vadd.f32 1.0, %v3578_v34  ;;  %v3439_v40 = vpop.f32.mrb[52].mxu1 }
 0x2ec   : > { %v3582_v41 = vpop.eup %3581  ;;  %2357 = vst.msk [vmem:[%s4371_s12 + $0x58] sm:$0xff] %vm2345_vm3, %v3580_v37  ;;  %3601 = vrcp.f32 %v2267_v35  ;;  %v2140_v42 = vsub.f32 0.0, %v3439_v40  ;;  %v2006_v43 = vpop.f32.mrb[53].mxu1  ;;  %v2404_v55 = vadd.f32 1.0, %v3580_v37 }
 0x2ed   : > { %v3584_v13 = vpop.eup %3583  ;;  %v2270_v9 = vadd.f32 1.0, %v3582_v41  ;;  %3603 = vpow2.f32 %v2207_v36  ;;  %2527 = vperm.xlu0 %3525, %v2401_v39   ;;  %v2139_v45 = vsub.f32 0.0, %v2006_v43 }
 0x2ee   : > { %v3586_v46 = vpop.eup %3585  ;;  %v2269_v47 = vadd.f32 1.0, %v3584_v13  ;;  %3605 = vpow2.f32 %v2205_v38  ;;  %v2211_v16 = vmul.f32 1.442695, %v2140_v42  ;;  %2532 = vperm.xlu1 %3526, %v2402_v44  }
 0x2ef   : > { %v3588_v48 = vpop.eup %3587  ;;  %2356 = vst.msk [vmem:[%s4371_s12 + $0x50] sm:$0xff] %vm2345_vm3, %v3586_v46  ;;  %3607 = vrcp.f32 %v2270_v9  ;;  %v2209_v49 = vmul.f32 1.442695, %v2139_v45  ;;  %v2403_v50 = vadd.f32 1.0, %v3586_v46  ;;  %v3442_v51 = vpop.f32.mrb[54].mxu1 }
 0x2f0   : > { %v3590_v52 = vpop.eup %3589  ;;  %2359 = vst.msk [vmem:[%s4371_s12 + $0x68] sm:$0xff] %vm2345_vm3, %v3588_v48  ;;  %3609 = vrcp.f32 %v2269_v47  ;;  %v2142_v53 = vsub.f32 0.0, %v3442_v51  ;;  %v2016_v54 = vpop.f32.mrb[55].mxu1  ;;  %v2406_v1 = vadd.f32 1.0, %v3588_v48 }
 0x2f1   : > { %v3592_v56 = vpop.eup %3591  ;;  %v2272_v57 = vadd.f32 1.0, %v3590_v52  ;;  %3611 = vpow2.f32 %v2211_v16  ;;  %2537 = vperm.xlu0 %3525, %v2403_v50   ;;  %v2141_v58 = vsub.f32 0.0, %v2016_v54 }
 0x2f2   : > { %v3594_v59 = vpop.eup %3593  ;;  %2358 = vst.msk [vmem:[%s4371_s12 + $0x60] sm:$0xff] %vm2345_vm3, %v3592_v56  ;;  %3613 = vpow2.f32 %v2209_v49  ;;  %v2215_v60 = vmul.f32 1.442695, %v2142_v53  ;;  %2542 = vperm.xlu1 %3526, %v2404_v55   ;;  %v2405_v61 = vadd.f32 1.0, %v3592_v56 }
 0x2f3   : > { %v3596_v62 = vpop.eup %3595  ;;  %3615 = vrcp.f32 %v2272_v57  ;;  %v2271_v63 = vadd.f32 1.0, %v3594_v59  ;;  %v3445_v0 = vpop.f32.mrb[56].mxu1  ;;  %v2213_v4 = vmul.f32 1.442695, %v2141_v58 }
 0x2f4   : > { %v3598_v2 = vpop.eup %3597  ;;  %v2274_v3 = vadd.f32 1.0, %v3596_v62  ;;  %3617 = vpow2.f32 %v2215_v60  ;;  %v2144_v5 = vsub.f32 0.0, %v3445_v0  ;;  %v2026_v6 = vpop.f32.mrb[57].mxu1 }
 0x2f5   : > { %v3600_v7 = vpop.eup %3599  ;;  %3619 = vrcp.f32 %v2271_v63  ;;  %v2273_v8 = vadd.f32 1.0, %v3598_v2  ;;  %2547 = vperm.xlu0 %3525, %v2405_v61   ;;  %v2143_v10 = vsub.f32 0.0, %v2026_v6 }
 0x2f6   : > { %v3602_v11 = vpop.eup %3601  ;;  %2361 = vst.msk [vmem:[%s4371_s12 + $0x78] sm:$0xff] %vm2345_vm3, %v3600_v7  ;;  %3621 = vrcp.f32 %v2274_v3  ;;  %v2219_v12 = vmul.f32 1.442695, %v2144_v5  ;;  %2552 = vperm.xlu1 %3526, %v2406_v1   ;;  %v2408_v18 = vadd.f32 1.0, %v3600_v7 }
 0x2f7   : > { %v3604_v14 = vpop.eup %3603  ;;  %2360 = vst.msk [vmem:[%s4371_s12 + $0x70] sm:$0xff] %vm2345_vm3, %v3602_v11  ;;  %3623 = vrcp.f32 %v2273_v8  ;;  %v2407_v15 = vadd.f32 1.0, %v3602_v11  ;;  %v3448_v17 = vpop.f32.mrb[58].mxu1  ;;  %v2217_v21 = vmul.f32 1.442695, %v2143_v10 }
 0x2f8   : > { %v3606_v19 = vpop.eup %3605  ;;  %v2276_v20 = vadd.f32 1.0, %v3604_v14  ;;  %3625 = vpow2.f32 %v2213_v4  ;;  %v2146_v22 = vsub.f32 0.0, %v3448_v17  ;;  %v2036_v23 = vpop.f32.mrb[59].mxu1 }
 0x2f9   : > { %v3608_v24 = vpop.eup %3607  ;;  %v2275_v25 = vadd.f32 1.0, %v3606_v19  ;;  %3627 = vpow2.f32 %v2219_v12  ;;  %2557 = vperm.xlu0 %3525, %v2407_v15   ;;  %v2145_v26 = vsub.f32 0.0, %v2036_v23 }
 0x2fa   : > { %v3610_v27 = vpop.eup %3609  ;;  %2363 = vst.msk [vmem:[%s4371_s12 + $0x88] sm:$0xff] %vm2345_vm3, %v3608_v24  ;;  %3629 = vrcp.f32 %v2276_v20  ;;  %v2223_v28 = vmul.f32 1.442695, %v2146_v22  ;;  %2562 = vperm.xlu1 %3526, %v2408_v18   ;;  %v2410_v32 = vadd.f32 1.0, %v3608_v24 }
 0x2fb   : > { %v3612_v29 = vpop.eup %3611  ;;  %2362 = vst.msk [vmem:[%s4371_s12 + $0x80] sm:$0xff] %vm2345_vm3, %v3610_v27  ;;  %3631 = vrcp.f32 %v2275_v25  ;;  %v2409_v30 = vadd.f32 1.0, %v3610_v27  ;;  %v3451_v31 = vpop.f32.mrb[60].mxu1  ;;  %v2221_v35 = vmul.f32 1.442695, %v2145_v26 }
 0x2fc   : > { %v3614_v33 = vpop.eup %3613  ;;  %v2278_v34 = vadd.f32 1.0, %v3612_v29  ;;  %3633 = vpow2.f32 %v2217_v21  ;;  %v2148_v36 = vsub.f32 0.0, %v3451_v31  ;;  %v2046_v37 = vpop.f32.mrb[61].mxu1 }
 0x2fd   : > { %v3616_v38 = vpop.eup %3615  ;;  %v2277_v39 = vadd.f32 1.0, %v3614_v33  ;;  %3635 = vpow2.f32 %v2223_v28  ;;  %2567 = vperm.xlu0 %3525, %v2409_v30   ;;  %v2147_v40 = vsub.f32 0.0, %v2046_v37 }
 0x2fe   : > { %v3618_v41 = vpop.eup %3617  ;;  %2365 = vst.msk [vmem:[%s4371_s12 + $0x98] sm:$0xff] %vm2345_vm3, %v3616_v38  ;;  %3637 = vrcp.f32 %v2278_v34  ;;  %v2227_v42 = vmul.f32 1.442695, %v2148_v36  ;;  %2572 = vperm.xlu1 %3526, %v2410_v32   ;;  %v2412_v48 = vadd.f32 1.0, %v3616_v38 }
 0x2ff   : > { %v3620_v43 = vpop.eup %3619  ;;  %3639 = vrcp.f32 %v2277_v39  ;;  %v2280_v44 = vadd.f32 1.0, %v3618_v41  ;;  %v2225_v13 = vmul.f32 1.442695, %v2147_v40  ;;  %v3454_v9 = vpop.f32.mrb[62].mxu1 }
 0x300   : > { %v3622_v45 = vpop.eup %3621  ;;  %2364 = vst.msk [vmem:[%s4371_s12 + $0x90] sm:$0xff] %vm2345_vm3, %v3620_v43  ;;  %3641 = vpow2.f32 %v2221_v35  ;;  %v2411_v46 = vadd.f32 1.0, %v3620_v43  ;;  %v2150_v47 = vsub.f32 0.0, %v3454_v9  ;;  %v2056_v16 = vpop.f32.mrb[63].mxu1 }
 0x301   : > { %v3624_v49 = vpop.eup %3623  ;;  %2367 = vst.msk [vmem:[%s4371_s12 + $0xa8] sm:$0xff] %vm2345_vm3, %v3622_v45  ;;  %3643 = vrcp.f32 %v2280_v44  ;;  %v2149_v50 = vsub.f32 0.0, %v2056_v16  ;;  %v2414_v62 = vadd.f32 1.0, %v3622_v45 }
 0x302   : > { %v3626_v51 = vpop.eup %3625  ;;  %2366 = vst.msk [vmem:[%s4371_s12 + $0xa0] sm:$0xff] %vm2345_vm3, %v3624_v49  ;;  %3645 = vpow2.f32 %v2227_v42  ;;  %2577 = vperm.xlu0 %3525, %v2411_v46   ;;  %v2231_v52 = vmul.f32 1.442695, %v2150_v47  ;;  %2582 = vperm.xlu1 %3526, %v2412_v48   ;;  %v2413_v53 = vadd.f32 1.0, %v3624_v49 }
 0x303   : > { %v3628_v54 = vpop.eup %3627  ;;  %v2279_v55 = vadd.f32 1.0, %v3626_v51  ;;  %3647 = vpow2.f32 %v2225_v13  ;;  %v2229_v56 = vmul.f32 1.442695, %v2149_v50  ;;  %v3457_v57 = vpop.f32.mrb[64].mxu1 }
 0x304   : > { %v3630_v58 = vpop.eup %3629  ;;  %v2282_v59 = vadd.f32 1.0, %v3628_v54  ;;  %3649 = vpow2.f32 %v2231_v52  ;;  %v2152_v60 = vsub.f32 0.0, %v3457_v57  ;;  %v2066_v61 = vpop.f32.mrb[65].mxu1 }
 0x305   : > { %v3632_v63 = vpop.eup %3631  ;;  %2369 = vst.msk [vmem:[%s4371_s12 + $0xb8] sm:$0xff] %vm2345_vm3, %v3630_v58  ;;  %3651 = vrcp.f32 %v2279_v55  ;;  %v2151_v0 = vsub.f32 0.0, %v2066_v61  ;;  %v2416_v14 = vadd.f32 1.0, %v3630_v58 }
 0x306   : > { %v3634_v1 = vpop.eup %3633  ;;  %2368 = vst.msk [vmem:[%s4371_s12 + $0xb0] sm:$0xff] %vm2345_vm3, %v3632_v63  ;;  %3653 = vrcp.f32 %v2282_v59  ;;  %2587 = vperm.xlu0 %3525, %v2413_v53   ;;  %v2235_v2 = vmul.f32 1.442695, %v2152_v60  ;;  %2592 = vperm.xlu1 %3526, %v2414_v62   ;;  %v2415_v3 = vadd.f32 1.0, %v3632_v63 }
 0x307   : > { %v3636_v4 = vpop.eup %3635  ;;  %v2281_v5 = vadd.f32 1.0, %v3634_v1  ;;  %3655 = vpow2.f32 %v2229_v56  ;;  %v2233_v6 = vmul.f32 1.442695, %v2151_v0  ;;  %v3460_v7 = vpop.f32.mrb[66].mxu1 }
 0x308   : > { %v3638_v8 = vpop.eup %3637  ;;  %v2284_v10 = vadd.f32 1.0, %v3636_v4  ;;  %3657 = vpow2.f32 %v2235_v2  ;;  %v2154_v11 = vsub.f32 0.0, %v3460_v7  ;;  %v2076_v12 = vpop.f32.mrb[67].mxu1 }
 0x309   : > { %v3640_v15 = vpop.eup %3639  ;;  %2371 = vst.msk [vmem:[%s4371_s12 + $0xc8] sm:$0xff] %vm2345_vm3, %v3638_v8  ;;  %3659 = vrcp.f32 %v2281_v5  ;;  %v2153_v17 = vsub.f32 0.0, %v2076_v12  ;;  %v2418_v28 = vadd.f32 1.0, %v3638_v8 }
 0x30a   : > { %v3642_v18 = vpop.eup %3641  ;;  %2370 = vst.msk [vmem:[%s4371_s12 + $0xc0] sm:$0xff] %vm2345_vm3, %v3640_v15  ;;  %3661 = vrcp.f32 %v2284_v10  ;;  %2597 = vperm.xlu0 %3525, %v2415_v3   ;;  %v2239_v19 = vmul.f32 1.442695, %v2154_v11  ;;  %2602 = vperm.xlu1 %3526, %v2416_v14   ;;  %v2417_v20 = vadd.f32 1.0, %v3640_v15 }
 0x30b   : > { %v3644_v21 = vpop.eup %3643  ;;  %v2283_v22 = vadd.f32 1.0, %v3642_v18  ;;  %3663 = vpow2.f32 %v2233_v6  ;;  %v2237_v23 = vmul.f32 1.442695, %v2153_v17  ;;  %v3463_v24 = vpop.f32.mrb[68].mxu1 }
 0x30c   : > { %v3646_v25 = vpop.eup %3645  ;;  %2373 = vst.msk [vmem:[%s4371_s12 + $0xd8] sm:$0xff] %vm2345_vm3, %v3644_v21  ;;  %3665 = vpow2.f32 %v2239_v19  ;;  %v2156_v26 = vsub.f32 0.0, %v3463_v24  ;;  %v2086_v27 = vpop.f32.mrb[69].mxu1  ;;  %v2420_v43 = vadd.f32 1.0, %v3644_v21 }
 0x30d   : > { %v3648_v29 = vpop.eup %3647  ;;  %3667 = vrcp.f32 %v2283_v22  ;;  %v2286_v30 = vadd.f32 1.0, %v3646_v25  ;;  %v2155_v31 = vsub.f32 0.0, %v2086_v27 }
 0x30e   : > { %v3650_v32 = vpop.eup %3649  ;;  %v2285_v33 = vadd.f32 1.0, %v3648_v29  ;;  %3669 = vpow2.f32 %v2237_v23  ;;  %2607 = vperm.xlu0 %3525, %v2417_v20   ;;  %v2243_v34 = vmul.f32 1.442695, %v2156_v26  ;;  %2612 = vperm.xlu1 %3526, %v2418_v28  }
 0x30f   : > { %v3652_v35 = vpop.eup %3651  ;;  %3671 = vrcp.f32 %v2286_v30  ;;  %v2288_v36 = vadd.f32 1.0, %v3650_v32  ;;  %v2241_v37 = vmul.f32 1.442695, %v2155_v31  ;;  %v3466_v38 = vpop.f32.mrb[70].mxu1 }
 0x310   : > { %v3654_v39 = vpop.eup %3653  ;;  %2372 = vst.msk [vmem:[%s4371_s12 + $0xd0] sm:$0xff] %vm2345_vm3, %v3652_v35  ;;  %3673 = vrcp.f32 %v2285_v33  ;;  %v2419_v40 = vadd.f32 1.0, %v3652_v35  ;;  %v2158_v41 = vsub.f32 0.0, %v3466_v38  ;;  %v2096_v42 = vpop.f32.mrb[71].mxu1 }
 0x311   : > { %v3656_v44 = vpop.eup %3655  ;;  %2375 = vst.msk [vmem:[%s4371_s12 + $0xe8] sm:$0xff] %vm2345_vm3, %v3654_v39  ;;  %3675 = vrcp.f32 %v2288_v36  ;;  %v2157_v13 = vsub.f32 0.0, %v2096_v42  ;;  %v2422_v54 = vadd.f32 1.0, %v3654_v39 }
 0x312   : > { %v3658_v9 = vpop.eup %3657  ;;  %v2287_v45 = vadd.f32 1.0, %v3656_v44  ;;  %3677 = vpow2.f32 %v2243_v34  ;;  %2617 = vperm.xlu0 %3525, %v2419_v40   ;;  %v2247_v46 = vmul.f32 1.442695, %v2158_v41  ;;  %2622 = vperm.xlu1 %3526, %v2420_v43  }
 0x313   : > { %v3660_v47 = vpop.eup %3659  ;;  %v2290_v16 = vadd.f32 1.0, %v3658_v9  ;;  %3679 = vpow2.f32 %v2241_v37  ;;  %v2245_v48 = vmul.f32 1.442695, %v2157_v13  ;;  %v3469_v49 = vpop.f32.mrb[72].mxu1  ;;  %v2440_v9 = vld [vmem:[%s4016_s18 + $0x8] sm:$0xff] }
 0x314   : > { %v3662_v50 = vpop.eup %3661  ;;  %2374 = vst.msk [vmem:[%s4371_s12 + $0xe0] sm:$0xff] %vm2345_vm3, %v3660_v47  ;;  %3681 = vrcp.f32 %v2287_v45  ;;  %v2421_v51 = vadd.f32 1.0, %v3660_v47  ;;  %v2160_v52 = vsub.f32 0.0, %v3469_v49  ;;  %v2106_v53 = vpop.f32.mrb[73].mxu1  ;;  %v2439_v47 = vld [vmem:[%s4016_s18] sm:$0xff] }
 0x315   : > { %v3664_v55 = vpop.eup %3663  ;;  %2377 = vst.msk [vmem:[%s4371_s12 + $0xf8] sm:$0xff] %vm2345_vm3, %v3662_v50  ;;  %3683 = vrcp.f32 %v2290_v16  ;;  %v2159_v56 = vsub.f32 0.0, %v2106_v53  ;;  %v2424_v1 = vadd.f32 1.0, %v3662_v50  ;;  %v2442_v16 = vld [vmem:[%s4016_s18 + $0x18] sm:$0xff]  ;;  %v2443_v53 = vld [vmem:[%s4016_s18 + $0x20] sm:$0xff] }
 0x316   : > { %v3666_v57 = vpop.eup %3665  ;;  %v2289_v58 = vadd.f32 1.0, %v3664_v55  ;;  %3685 = vpow2.f32 %v2247_v46  ;;  %2627 = vperm.xlu0 %3525, %v2421_v51   ;;  %v2251_v59 = vmul.f32 1.442695, %v2160_v52  ;;  %2632 = vperm.xlu1 %3526, %v2422_v54   ;;  %v2441_v52 = vld [vmem:[%s4016_s18 + $0x10] sm:$0xff] }
 0x317   : > { %v3668_v60 = vpop.eup %3667  ;;  %v2292_v61 = vadd.f32 1.0, %v3666_v57  ;;  %3687 = vpow2.f32 %v2245_v48  ;;  %v2249_v63 = vmul.f32 1.442695, %v2159_v56 }
 0x318   : > { %v3670_v62 = vpop.eup %3669  ;;  %2376 = vst.msk [vmem:[%s4371_s12 + $0xf0] sm:$0xff] %vm2345_vm3, %v3668_v60  ;;  %3689 = vrcp.f32 %v2289_v58  ;;  %v2423_v0 = vadd.f32 1.0, %v3668_v60  ;;  %v2444_v58 = vld [vmem:[%s4016_s18 + $0x28] sm:$0xff] }
 0x319   : > { %v3672_v2 = vpop.eup %3671  ;;  %3691 = vrcp.f32 %v2292_v61  ;;  %v2291_v3 = vadd.f32 1.0, %v3670_v62  ;;  %v2445_v61 = vld [vmem:[%s4016_s18 + $0x30] sm:$0xff]  ;;  %v2446_v62 = vld [vmem:[%s4016_s18 + $0x38] sm:$0xff] }
 0x31a   : > { %v3674_v4 = vpop.eup %3673  ;;  %2379 = vst.msk [vmem:[%s4371_s12 + $0x108] sm:$0xff] %vm2345_vm3, %v3672_v2  ;;  %3693 = vpow2.f32 %v2251_v59  ;;  %2637 = vperm.xlu0 %3525, %v2423_v0   ;;  %2642 = vperm.xlu1 %3526, %v2424_v1   ;;  %v2426_v8 = vadd.f32 1.0, %v3672_v2 }
 0x31b   : > { %v3676_v5 = vpop.eup %3675  ;;  %2378 = vst.msk [vmem:[%s4371_s12 + $0x100] sm:$0xff] %vm2345_vm3, %v3674_v4  ;;  %3695 = vrcp.f32 %v2291_v3  ;;  %v2425_v6 = vadd.f32 1.0, %v3674_v4  ;;  %v2447_v3 = vld [vmem:[%s4016_s18 + $0x40] sm:$0xff]  ;;  %v2448_v4 = vld [vmem:[%s4016_s18 + $0x48] sm:$0xff] }
 0x31c   : > { %v3678_v7 = vpop.eup %3677  ;;  %2381 = vst.msk [vmem:[%s4371_s12 + $0x118] sm:$0xff] %vm2345_vm3, %v3676_v5  ;;  %3697 = vpow2.f32 %v2249_v63  ;;  %v2428_v19 = vadd.f32 1.0, %v3676_v5 }
 0x31d   : > { %v3680_v10 = vpop.eup %3679  ;;  %v2294_v11 = vadd.f32 1.0, %v3678_v7 }
 0x31e   : > { %v3682_v12 = vpop.eup %3681  ;;  %v2293_v14 = vadd.f32 1.0, %v3680_v10  ;;  %2647 = vperm.xlu0 %3525, %v2425_v6   ;;  %2652 = vperm.xlu1 %3526, %v2426_v8   ;;  %v2449_v10 = vld [vmem:[%s4016_s18 + $0x50] sm:$0xff] }
 0x31f   : > { %v3684_v15 = vpop.eup %3683  ;;  %2380 = vst.msk [vmem:[%s4371_s12 + $0x110] sm:$0xff] %vm2345_vm3, %v3682_v12  ;;  %3699 = vrcp.f32 %v2294_v11  ;;  %v2427_v17 = vadd.f32 1.0, %v3682_v12  ;;  %v2450_v11 = vld [vmem:[%s4016_s18 + $0x58] sm:$0xff] }
 0x320   : > { %v3686_v18 = vpop.eup %3685  ;;  %2383 = vst.msk [vmem:[%s4371_s12 + $0x128] sm:$0xff] %vm2345_vm3, %v3684_v15  ;;  %3701 = vrcp.f32 %v2293_v14  ;;  %v2430_v27 = vadd.f32 1.0, %v3684_v15 }
 0x321   : > { %v3688_v20 = vpop.eup %3687  ;;  %v2296_v21 = vadd.f32 1.0, %v3686_v18  ;;  %v2451_v18 = vld [vmem:[%s4016_s18 + $0x60] sm:$0xff] }
 0x322   : > { %v3690_v22 = vpop.eup %3689  ;;  %v2295_v23 = vadd.f32 1.0, %v3688_v20  ;;  %2657 = vperm.xlu0 %3525, %v2427_v17   ;;  %2662 = vperm.xlu1 %3526, %v2428_v19   ;;  %v2452_v19 = vld [vmem:[%s4016_s18 + $0x68] sm:$0xff] }
 0x323   : > { %v3692_v24 = vpop.eup %3691  ;;  %2382 = vst.msk [vmem:[%s4371_s12 + $0x120] sm:$0xff] %vm2345_vm3, %v3690_v22  ;;  %3703 = vrcp.f32 %v2296_v21  ;;  %v2429_v25 = vadd.f32 1.0, %v3690_v22 }
 0x324   : > { %v3694_v26 = vpop.eup %3693  ;;  %2385 = vst.msk [vmem:[%s4371_s12 + $0x138] sm:$0xff] %vm2345_vm3, %v3692_v24  ;;  %3705 = vrcp.f32 %v2295_v23  ;;  %v2432_v33 = vadd.f32 1.0, %v3692_v24  ;;  %v2453_v24 = vld [vmem:[%s4016_s18 + $0x70] sm:$0xff] }
 0x325   : > { %v3696_v28 = vpop.eup %3695  ;;  %v2298_v29 = vadd.f32 1.0, %v3694_v26 }
 0x326   : > { %v3698_v30 = vpop.eup %3697  ;;  %2384 = vst.msk [vmem:[%s4371_s12 + $0x130] sm:$0xff] %vm2345_vm3, %v3696_v28  ;;  %2667 = vperm.xlu0 %3525, %v2429_v25   ;;  %2672 = vperm.xlu1 %3526, %v2430_v27   ;;  %v2431_v31 = vadd.f32 1.0, %v3696_v28  ;;  %v2454_v25 = vld [vmem:[%s4016_s18 + $0x78] sm:$0xff] }
 0x327   : > { %3707 = vrcp.f32 %v2298_v29  ;;  %v2297_v32 = vadd.f32 1.0, %v3698_v30  ;;  %v2455_v30 = vld [vmem:[%s4016_s18 + $0x80] sm:$0xff] }
 0x329   : > { %v3700_v34 = vpop.eup %3699  ;;  %3709 = vrcp.f32 %v2297_v32 }
 0x32a   : > { %v3702_v35 = vpop.eup %3701  ;;  %2387 = vst.msk [vmem:[%s4371_s12 + $0x148] sm:$0xff] %vm2345_vm3, %v3700_v34  ;;  %2677 = vperm.xlu0 %3525, %v2431_v31   ;;  %2682 = vperm.xlu1 %3526, %v2432_v33   ;;  %v2434_v37 = vadd.f32 1.0, %v3700_v34  ;;  %v2456_v31 = vld [vmem:[%s4016_s18 + $0x88] sm:$0xff] }
 0x32b   : > { %2386 = vst.msk [vmem:[%s4371_s12 + $0x140] sm:$0xff] %vm2345_vm3, %v3702_v35  ;;  %v2433_v36 = vadd.f32 1.0, %v3702_v35 }
 0x32d   : > { %v3704_v38 = vpop.eup %3703 }
 0x32e   : > { %v3706_v39 = vpop.eup %3705  ;;  %2389 = vst.msk [vmem:[%s4371_s12 + $0x158] sm:$0xff] %vm2345_vm3, %v3704_v38  ;;  %2687 = vperm.xlu0 %3525, %v2433_v36   ;;  %2692 = vperm.xlu1 %3526, %v2434_v37   ;;  %v2436_v41 = vadd.f32 1.0, %v3704_v38  ;;  %v2457_v36 = vld [vmem:[%s4016_s18 + $0x90] sm:$0xff]  ;;  %v2458_v37 = vld [vmem:[%s4016_s18 + $0x98] sm:$0xff] }
 0x32f   : > { %2388 = vst.msk [vmem:[%s4371_s12 + $0x150] sm:$0xff] %vm2345_vm3, %v3706_v39  ;;  %v2435_v40 = vadd.f32 1.0, %v3706_v39 }
 0x331   : > { %v3708_v42 = vpop.eup %3707 }
 0x332   : > { %2392 = vst.msk [vmem:[%s4371_s12 + $0x168] sm:$0x1] %vm2391_vm4, %v3708_v42  ;;  %2697 = vperm.xlu0 %3525, %v2435_v40   ;;  %2702 = vperm.xlu1 %3526, %v2436_v41   ;;  %v2438_v13 = vadd.f32 1.0, %v3708_v42  ;;  %v2459_v42 = vld [vmem:[%s4016_s18 + $0xa0] sm:$0xff] }
 0x333   : > { %v3710_v43 = vpop.eup %3709 }
 0x334   : > { %2390 = vst.msk [vmem:[%s4371_s12 + $0x160] sm:$0xff] %vm2345_vm3, %v3710_v43  ;;  %v2437_v44 = vadd.f32 1.0, %v3710_v43  ;;  %v2460_v43 = vld [vmem:[%s4016_s18 + $0xa8] sm:$0xff] }
 0x336   : > { %2707 = vperm.xlu0 %3525, %v2437_v44   ;;  %2712 = vperm.xlu1 %3526, %v2438_v13  }
 0x359   : > { %v2493_v45 = vpop.permute.xlu0 %2492 }
 0x35a   : > { %v2716_v46 = vmul.f32 %v2493_v45, %v2440_v9 }
 0x35c   : > { %2762 = vst.msk [vmem:[%s4469_s19 + $0x8] sm:$0xff] %vm1092_vm2, %v2716_v46  ;;  %v2461_v46 = vld [vmem:[%s4016_s18 + $0xb0] sm:$0xff] }
 0x35d   : > { %v2488_v48 = vpop.permute.xlu0 %2487  ;;  %v2503_v49 = vpop.permute.xlu1 %2502 }
 0x35e   : > { %v2715_v50 = vmul.f32 %v2488_v48, %v2439_v47  ;;  %v2718_v51 = vmul.f32 %v2503_v49, %v2442_v16  ;;  %v2462_v47 = vld [vmem:[%s4016_s18 + $0xb8] sm:$0xff] }
 0x360   : > { %2761 = vst.msk [vmem:[%s4469_s19] sm:$0xff] %vm1092_vm2, %v2715_v50  ;;  %2764 = vst.msk [vmem:[%s4469_s19 + $0x18] sm:$0xff] %vm1092_vm2, %v2718_v51  ;;  %v2463_v51 = vld [vmem:[%s4016_s18 + $0xc0] sm:$0xff] }
 0x361   : > { %v2498_v54 = vpop.permute.xlu1 %2497 }
 0x362   : > { %v2717_v55 = vmul.f32 %v2498_v54, %v2441_v52  ;;  %v2508_v56 = vpop.permute.xlu0 %2507  ;;  %v2464_v52 = vld [vmem:[%s4016_s18 + $0xc8] sm:$0xff] }
 0x363   : > { %v2719_v57 = vmul.f32 %v2508_v56, %v2443_v53 }
 0x364   : > { %2763 = vst.msk [vmem:[%s4469_s19 + $0x10] sm:$0xff] %vm1092_vm2, %v2717_v55 }
 0x365   : > { %2765 = vst.msk [vmem:[%s4469_s19 + $0x20] sm:$0xff] %vm1092_vm2, %v2719_v57  ;;  %v2513_v59 = vpop.permute.xlu1 %2512  ;;  %v2465_v57 = vld [vmem:[%s4016_s18 + $0xd0] sm:$0xff] }
 0x366   : > { %v2720_v60 = vmul.f32 %v2513_v59, %v2444_v58  ;;  %v2466_v58 = vld [vmem:[%s4016_s18 + $0xd8] sm:$0xff] }
 0x368   : > { %2766 = vst.msk [vmem:[%s4469_s19 + $0x28] sm:$0xff] %vm1092_vm2, %v2720_v60  ;;  %v2518_v63 = vpop.permute.xlu0 %2517 }
 0x369   : > { %v2721_v0 = vmul.f32 %v2518_v63, %v2445_v61  ;;  %v2523_v1 = vpop.permute.xlu1 %2522  ;;  %v2467_v63 = vld [vmem:[%s4016_s18 + $0xe0] sm:$0xff] }
 0x36a   : > { %v2722_v2 = vmul.f32 %v2523_v1, %v2446_v62 }
 0x36b   : > { %2767 = vst.msk [vmem:[%s4469_s19 + $0x30] sm:$0xff] %vm1092_vm2, %v2721_v0  ;;  %v2468_v0 = vld [vmem:[%s4016_s18 + $0xe8] sm:$0xff] }
 0x36c   : > { %2768 = vst.msk [vmem:[%s4469_s19 + $0x38] sm:$0xff] %vm1092_vm2, %v2722_v2  ;;  %v2528_v5 = vpop.permute.xlu0 %2527 }
 0x36d   : > { %v2723_v6 = vmul.f32 %v2528_v5, %v2447_v3  ;;  %v2533_v7 = vpop.permute.xlu1 %2532  ;;  %v2469_v5 = vld [vmem:[%s4016_s18 + $0xf0] sm:$0xff] }
 0x36e   : > { %v2724_v8 = vmul.f32 %v2533_v7, %v2448_v4 }
 0x36f   : > { %2769 = vst.msk [vmem:[%s4469_s19 + $0x40] sm:$0xff] %vm1092_vm2, %v2723_v6  ;;  %v2470_v6 = vld [vmem:[%s4016_s18 + $0xf8] sm:$0xff] }
 0x370   : > { %2770 = vst.msk [vmem:[%s4469_s19 + $0x48] sm:$0xff] %vm1092_vm2, %v2724_v8  ;;  %v2538_v12 = vpop.permute.xlu0 %2537 }
 0x371   : > { %v2725_v14 = vmul.f32 %v2538_v12, %v2449_v10  ;;  %v2543_v15 = vpop.permute.xlu1 %2542  ;;  %v2471_v12 = vld [vmem:[%s4016_s18 + $0x100] sm:$0xff] }
 0x372   : > { %v2726_v17 = vmul.f32 %v2543_v15, %v2450_v11 }
 0x373   : > { %2771 = vst.msk [vmem:[%s4469_s19 + $0x50] sm:$0xff] %vm1092_vm2, %v2725_v14  ;;  %v2472_v14 = vld [vmem:[%s4016_s18 + $0x108] sm:$0xff] }
 0x374   : > { %2772 = vst.msk [vmem:[%s4469_s19 + $0x58] sm:$0xff] %vm1092_vm2, %v2726_v17  ;;  %v2548_v20 = vpop.permute.xlu0 %2547 }
 0x375   : > { %v2727_v21 = vmul.f32 %v2548_v20, %v2451_v18  ;;  %v2553_v22 = vpop.permute.xlu1 %2552  ;;  %v2473_v20 = vld [vmem:[%s4016_s18 + $0x110] sm:$0xff] }
 0x376   : > { %v2728_v23 = vmul.f32 %v2553_v22, %v2452_v19 }
 0x377   : > { %2773 = vst.msk [vmem:[%s4469_s19 + $0x60] sm:$0xff] %vm1092_vm2, %v2727_v21  ;;  %v2474_v21 = vld [vmem:[%s4016_s18 + $0x118] sm:$0xff] }
 0x378   : > { %2774 = vst.msk [vmem:[%s4469_s19 + $0x68] sm:$0xff] %vm1092_vm2, %v2728_v23  ;;  %v2558_v26 = vpop.permute.xlu0 %2557 }
 0x379   : > { %v2729_v27 = vmul.f32 %v2558_v26, %v2453_v24  ;;  %v2563_v28 = vpop.permute.xlu1 %2562  ;;  %v2475_v26 = vld [vmem:[%s4016_s18 + $0x120] sm:$0xff] }
 0x37a   : > { %v2730_v29 = vmul.f32 %v2563_v28, %v2454_v25 }
 0x37b   : > { %2775 = vst.msk [vmem:[%s4469_s19 + $0x70] sm:$0xff] %vm1092_vm2, %v2729_v27  ;;  %v2476_v27 = vld [vmem:[%s4016_s18 + $0x128] sm:$0xff] }
 0x37c   : > { %2776 = vst.msk [vmem:[%s4469_s19 + $0x78] sm:$0xff] %vm1092_vm2, %v2730_v29  ;;  %v2568_v32 = vpop.permute.xlu0 %2567 }
 0x37d   : > { %v2731_v33 = vmul.f32 %v2568_v32, %v2455_v30  ;;  %v2573_v34 = vpop.permute.xlu1 %2572  ;;  %v2477_v32 = vld [vmem:[%s4016_s18 + $0x130] sm:$0xff] }
 0x37e   : > { %v2732_v35 = vmul.f32 %v2573_v34, %v2456_v31 }
 0x37f   : > { %2777 = vst.msk [vmem:[%s4469_s19 + $0x80] sm:$0xff] %vm1092_vm2, %v2731_v33  ;;  %v2478_v33 = vld [vmem:[%s4016_s18 + $0x138] sm:$0xff] }
 0x380   : > { %2778 = vst.msk [vmem:[%s4469_s19 + $0x88] sm:$0xff] %vm1092_vm2, %v2732_v35 }
 0x381   : > { %v2578_v38 = vpop.permute.xlu0 %2577  ;;  %v2583_v39 = vpop.permute.xlu1 %2582 }
 0x382   : > { %v2733_v40 = vmul.f32 %v2578_v38, %v2457_v36  ;;  %v2734_v41 = vmul.f32 %v2583_v39, %v2458_v37  ;;  %v2479_v38 = vld [vmem:[%s4016_s18 + $0x140] sm:$0xff]  ;;  %v2480_v39 = vld [vmem:[%s4016_s18 + $0x148] sm:$0xff] }
 0x384   : > { %2779 = vst.msk [vmem:[%s4469_s19 + $0x90] sm:$0xff] %vm1092_vm2, %v2733_v40  ;;  %2780 = vst.msk [vmem:[%s4469_s19 + $0x98] sm:$0xff] %vm1092_vm2, %v2734_v41 }
 0x385   : > { %v2588_v44 = vpop.permute.xlu0 %2587  ;;  %v2593_v13 = vpop.permute.xlu1 %2592 }
 0x386   : > { %v2735_v9 = vmul.f32 %v2588_v44, %v2459_v42  ;;  %v2736_v45 = vmul.f32 %v2593_v13, %v2460_v43  ;;  %v2481_v44 = vld [vmem:[%s4016_s18 + $0x150] sm:$0xff]  ;;  %v2482_v13 = vld [vmem:[%s4016_s18 + $0x158] sm:$0xff] }
 0x388   : > { %2781 = vst.msk [vmem:[%s4469_s19 + $0xa0] sm:$0xff] %vm1092_vm2, %v2735_v9  ;;  %2782 = vst.msk [vmem:[%s4469_s19 + $0xa8] sm:$0xff] %vm1092_vm2, %v2736_v45 }
 0x389   : > { %v2598_v16 = vpop.permute.xlu0 %2597  ;;  %v2603_v48 = vpop.permute.xlu1 %2602 }
 0x38a   : > { %v2737_v49 = vmul.f32 %v2598_v16, %v2461_v46  ;;  %v2738_v50 = vmul.f32 %v2603_v48, %v2462_v47  ;;  %v2483_v16 = vld [vmem:[%s4016_s18 + $0x160] sm:$0xff]  ;;  %v2484_v48 = vld [vmem:[%s4016_s18 + $0x168] sm:$0x1] }
 0x38c   : > { %2783 = vst.msk [vmem:[%s4469_s19 + $0xb0] sm:$0xff] %vm1092_vm2, %v2737_v49  ;;  %2784 = vst.msk [vmem:[%s4469_s19 + $0xb8] sm:$0xff] %vm1092_vm2, %v2738_v50 }
 0x38d   : > { %v2608_v53 = vpop.permute.xlu0 %2607  ;;  %v2613_v54 = vpop.permute.xlu1 %2612 }
 0x38e   : > { %v2739_v55 = vmul.f32 %v2608_v53, %v2463_v51  ;;  %v2740_v56 = vmul.f32 %v2613_v54, %v2464_v52 }
 0x390   : > { %2785 = vst.msk [vmem:[%s4469_s19 + $0xc0] sm:$0xff] %vm1092_vm2, %v2739_v55  ;;  %2786 = vst.msk [vmem:[%s4469_s19 + $0xc8] sm:$0xff] %vm1092_vm2, %v2740_v56 }
 0x391   : > { %v2618_v59 = vpop.permute.xlu0 %2617  ;;  %v2623_v60 = vpop.permute.xlu1 %2622 }
 0x392   : > { %v2741_v61 = vmul.f32 %v2618_v59, %v2465_v57  ;;  %v2742_v62 = vmul.f32 %v2623_v60, %v2466_v58 }
 0x394   : > { %2787 = vst.msk [vmem:[%s4469_s19 + $0xd0] sm:$0xff] %vm1092_vm2, %v2741_v61  ;;  %2788 = vst.msk [vmem:[%s4469_s19 + $0xd8] sm:$0xff] %vm1092_vm2, %v2742_v62 }
 0x395   : > { %v2628_v1 = vpop.permute.xlu0 %2627  ;;  %v2633_v2 = vpop.permute.xlu1 %2632 }
 0x396   : > { %v2743_v3 = vmul.f32 %v2628_v1, %v2467_v63  ;;  %v2744_v4 = vmul.f32 %v2633_v2, %v2468_v0 }
 0x398   : > { %2789 = vst.msk [vmem:[%s4469_s19 + $0xe0] sm:$0xff] %vm1092_vm2, %v2743_v3  ;;  %2790 = vst.msk [vmem:[%s4469_s19 + $0xe8] sm:$0xff] %vm1092_vm2, %v2744_v4 }
 0x399   : > { %v2638_v7 = vpop.permute.xlu0 %2637  ;;  %v2643_v8 = vpop.permute.xlu1 %2642 }
 0x39a   : > { %v2745_v10 = vmul.f32 %v2638_v7, %v2469_v5  ;;  %v2746_v11 = vmul.f32 %v2643_v8, %v2470_v6 }
 0x39c   : > { %2791 = vst.msk [vmem:[%s4469_s19 + $0xf0] sm:$0xff] %vm1092_vm2, %v2745_v10  ;;  %2792 = vst.msk [vmem:[%s4469_s19 + $0xf8] sm:$0xff] %vm1092_vm2, %v2746_v11 }
 0x39d   : > { %v2648_v15 = vpop.permute.xlu0 %2647  ;;  %v2653_v17 = vpop.permute.xlu1 %2652 }
 0x39e   : > { %v2747_v18 = vmul.f32 %v2648_v15, %v2471_v12  ;;  %v2748_v19 = vmul.f32 %v2653_v17, %v2472_v14 }
 0x3a0   : > { %2793 = vst.msk [vmem:[%s4469_s19 + $0x100] sm:$0xff] %vm1092_vm2, %v2747_v18  ;;  %2794 = vst.msk [vmem:[%s4469_s19 + $0x108] sm:$0xff] %vm1092_vm2, %v2748_v19 }
 0x3a1   : > { %v2658_v22 = vpop.permute.xlu0 %2657  ;;  %v2663_v23 = vpop.permute.xlu1 %2662 }
 0x3a2   : > { %v2749_v24 = vmul.f32 %v2658_v22, %v2473_v20  ;;  %v2750_v25 = vmul.f32 %v2663_v23, %v2474_v21 }
 0x3a4   : > { %2795 = vst.msk [vmem:[%s4469_s19 + $0x110] sm:$0xff] %vm1092_vm2, %v2749_v24  ;;  %2796 = vst.msk [vmem:[%s4469_s19 + $0x118] sm:$0xff] %vm1092_vm2, %v2750_v25 }
 0x3a5   : > { %v2668_v28 = vpop.permute.xlu0 %2667  ;;  %v2673_v29 = vpop.permute.xlu1 %2672 }
 0x3a6   : > { %v2751_v30 = vmul.f32 %v2668_v28, %v2475_v26  ;;  %v2752_v31 = vmul.f32 %v2673_v29, %v2476_v27 }
 0x3a8   : > { %2797 = vst.msk [vmem:[%s4469_s19 + $0x120] sm:$0xff] %vm1092_vm2, %v2751_v30  ;;  %2798 = vst.msk [vmem:[%s4469_s19 + $0x128] sm:$0xff] %vm1092_vm2, %v2752_v31 }
 0x3a9   : > { %v2678_v34 = vpop.permute.xlu0 %2677  ;;  %v2683_v35 = vpop.permute.xlu1 %2682 }
 0x3aa   : > { %v2753_v36 = vmul.f32 %v2678_v34, %v2477_v32  ;;  %v2754_v37 = vmul.f32 %v2683_v35, %v2478_v33 }
 0x3ac   : > { %2799 = vst.msk [vmem:[%s4469_s19 + $0x130] sm:$0xff] %vm1092_vm2, %v2753_v36  ;;  %2800 = vst.msk [vmem:[%s4469_s19 + $0x138] sm:$0xff] %vm1092_vm2, %v2754_v37 }
 0x3ad   : > { %v2688_v40 = vpop.permute.xlu0 %2687  ;;  %v2693_v41 = vpop.permute.xlu1 %2692 }
 0x3ae   : > { %v2755_v42 = vmul.f32 %v2688_v40, %v2479_v38  ;;  %v2756_v43 = vmul.f32 %v2693_v41, %v2480_v39 }
 0x3b0   : > { %2801 = vst.msk [vmem:[%s4469_s19 + $0x140] sm:$0xff] %vm1092_vm2, %v2755_v42  ;;  %2802 = vst.msk [vmem:[%s4469_s19 + $0x148] sm:$0xff] %vm1092_vm2, %v2756_v43 }
 0x3b1   : > { %v2698_v9 = vpop.permute.xlu0 %2697  ;;  %v2703_v45 = vpop.permute.xlu1 %2702 }
 0x3b2   : > { %v2757_v46 = vmul.f32 %v2698_v9, %v2481_v44  ;;  %v2758_v47 = vmul.f32 %v2703_v45, %v2482_v13 }
 0x3b4   : > { %2803 = vst.msk [vmem:[%s4469_s19 + $0x150] sm:$0xff] %vm1092_vm2, %v2757_v46  ;;  %2804 = vst.msk [vmem:[%s4469_s19 + $0x158] sm:$0xff] %vm1092_vm2, %v2758_v47 }
 0x3b5   : > { %v2708_v49 = vpop.permute.xlu0 %2707  ;;  %v2713_v50 = vpop.permute.xlu1 %2712 }
 0x3b6   : > { %v2759_v51 = vmul.f32 %v2708_v49, %v2483_v16  ;;  %v2760_v52 = vmul.f32 %v2713_v50, %v2484_v48 }
 0x3b8   : > { %2805 = vst.msk [vmem:[%s4469_s19 + $0x160] sm:$0xff] %vm1092_vm2, %v2759_v51 }
 0x3b9   : > { %2807 = vst.msk [vmem:[%s4469_s19 + $0x168] sm:$0x1] %vm2806_vm5, %v2760_v52 }
 0x3ba PF: > { %s21_s13 = sadd.s32 1, %s3717_s13  }
 0x3bb   : > { %p18_p4 = scmp.ge.s32.totalorder %s21_s13, 4  }
 0x3bd   :  { %20 = sbr.rel (!%p18_p4) target bundleno = 1 (0x1), region = 101 }

// kernel: bottom_up_top_down_attention.2
= control target key start
LH: loop header
LB: loop body
LE: loop exit
PB: predicated region body
PF: predicated region fallthrough
CT: control target
= control target key end

     0   :  { %s8253_s29 = smov 0   ;;  %s10248_s0 = inlined_call_operand.vmem [shape: f32[2,11,11,32], index: 0, kind: input, shape index: {}]   ;;  %s10249_s1 = inlined_call_operand.vmem [shape: f32[2,11,10,32], index: 1, kind: input, shape index: {}]   ;;  %s10250_s2 = inlined_call_operand.vmem [shape: f32[2,10,11,32], index: 2, kind: input, shape index: {}]   ;;  %s10251_s3 = inlined_call_operand.vmem [shape: f32[2,10,10,32], index: 3, kind: input, shape index: {}]   ;;  %s10252_s4 = inlined_call_operand.vmem [shape: f32[3,100,1], index: 4, kind: input, shape index: {}]   ;;  %s10253_s5 = inlined_call_operand.vmem [shape: f32[2,32,8], index: 5, kind: input, shape index: {}]   ;;  %s10254_s6 = inlined_call_operand.vmem [shape: f32[2,1,8], index: 6, kind: input, shape index: {}]   ;;  %s10255_s7 = inlined_call_operand.vmem [shape: f32[2,1,8], index: 7, kind: input, shape index: {}]   ;;  %s10256_s8 = inlined_call_operand.vmem [shape: f32[2,9,8,8], index: 8, kind: input, shape index: {}]   ;;  %s10257_s9 = inlined_call_operand.vmem [shape: f32[2,1,8], index: 9, kind: input, shape index: {}]   ;;  %s10258_s10 = inlined_call_operand.vmem [shape: f32[2,1,8], index: 10, kind: input, shape index: {}]   ;;  %s10259_s11 = inlined_call_operand.vmem [shape: f32[2,8,32], index: 11, kind: input, shape index: {}]   ;;  %s10260_s12 = inlined_call_operand.vmem [shape: f32[2,1,32], index: 12, kind: input, shape index: {}]   ;;  %s10261_s13 = inlined_call_operand.vmem [shape: f32[2,1,32], index: 13, kind: input, shape index: {}]   ;;  %s10262_s14 = inlined_call_operand.vmem [shape: f32[2,100,32], index: 14, kind: output, shape index: {}]  }
   0x1 LB: > { %s6000_s30 = sadd.s32 4294967295, %s8172_s29   ;;  %p6004_p0 = scmp.ge.s32.totalorder %s8172_s29, 1  ;;  %s8172_s29 = sphi %s8253_s29, %s24_s29  }
   0x2   : > { %p442_p1 = scmp.lt.s32.totalorder %s8172_s29, 3 }
   0x4   : > { %p443_p2 = pnand %p6004_p0, %p442_p1 }
   0x5   : > { %v868_v0 = vld [vmem:[%s10253_s5] sm:$0xff] (!%p443_p2)  ;;  %v869_v1 = vld [vmem:[%s10253_s5 + $0x8] sm:$0xff] (!%p443_p2)  ;;  %v870_v2 = vld [vmem:[%s10253_s5 + $0x10] sm:$0xff] (!%p443_p2)  ;;  %v8174_v3 = vmov (!%p443_p2), 0.0|0.0   ;;  %vm8175_vm0 = vmmov (!%p443_p2), 0   ;;  %v8176_v6 = vmov (!%p443_p2), 0.0  }
   0x6   : > { %446 = sbr.rel (%p443_p2) target bundleno = 2243 (0x8c3), region = 76  ;;  %7706 = vmatprep.subr.bf16.mxu1 (!%p443_p2), %v8174_v3  ;;  %v7707_v4 = vpack.c.bf16 (!%p443_p2), %v869_v1, %v868_v0  ;;  %v871_v5 = vld [vmem:[%s10253_s5 + $0x18] sm:$0xff] (!%p443_p2)  ;;  %6800 = vmatprep.mubr.msk.f32.mxu1 (!%p443_p2), %vm8175_vm0, %v8176_v6  ;;  %p503_p3 = scmp.lt.s32.totalorder (!%p443_p2), %s6000_s30, 1  ;;  %v8279_v7 = vld [vmem:[%s10252_s4] sm:$0xff] (!%p443_p2)  ;;  %v8177_v8 = vmov (!%p443_p2), 0   ;;  %v8284_v9 = vld [vmem:[%s10252_s4 + $0x10] sm:$0xff] (!%p443_p2) }
   0x7   : > { %8149 = vset.pattern.permute.xlu0 (!%p443_p2), %v8177_v8  ;;  %8150 = vset.pattern.permute.xlu1 (!%p443_p2), %v8177_v8  ;;  %vm838_vm1 = vcmask (!%p443_p2), 64512   ;;  %v7710_v10 = vpack.c.bf16 (!%p443_p2), %v871_v5, %v870_v2  ;;  %v8325_v11 = vld [vmem:[%s10252_s4 + $0x8] sm:$0xff] (!%p443_p2)  ;;  %v8332_v12 = vld [vmem:[%s10252_s4 + $0x18] sm:$0xff] (!%p443_p2)  ;;  %v8352_v13 = vld [vmem:[%s10252_s4 + $0x20] sm:$0xff] (!%p443_p2)  ;;  %vm672_vm2 = vcmask (!%p443_p2), 261120   ;;  %vm674_vm3 = vcmask (!%p443_p2), 254976  }
   0x8   : > { %7708 = vmatpush3.bf16.msra.mxu1 (!%p443_p2), %v7707_v4  ;;  %1136 = vperm.xlu0 (!%p443_p2), %8149, %v8279_v7   ;;  %839 = vst.msk [vmem:[#allocation3] sm:$0xff] (!%p443_p2), %vm838_vm1, %v8176_v6  ;;  %840 = vst.msk [vmem:[#allocation3 + $0x8] sm:$0xff] (!%p443_p2), %vm838_vm1, %v8176_v6  ;;  %v8357_v14 = vld [vmem:[%s10252_s4 + $0x28] sm:$0xff] (!%p443_p2)  ;;  %v8383_v26 = vld [vmem:[%s10252_s4 + $0x30] sm:$0xff] (!%p443_p2)  ;;  %vm1106_vm4 = vcmask (!%p443_p2), 60416   ;;  %vm5907_vm5 = vcmask (!%p443_p2), 257024  }
   0x9   : > { %841 = vst.msk [vmem:[#allocation3 + $0x10] sm:$0xff] (!%p443_p2), %vm838_vm1, %v8176_v6  ;;  %842 = vst.msk [vmem:[#allocation3 + $0x18] sm:$0xff] (!%p443_p2), %vm838_vm1, %v8176_v6  ;;  %7709 = vmatprep.subr.bf16.mxu1 (!%p443_p2), %v8174_v3  ;;  %1146 = vperm.xlu1 (!%p443_p2), %8150, %v8284_v9   ;;  %v8392_v32 = vld [vmem:[%s10252_s4 + $0x38] sm:$0xff] (!%p443_p2)  ;;  %v8407_v47 = vld [vmem:[%s10252_s4 + $0x40] sm:$0xff] (!%p443_p2) }
   0xa   : > { %843 = vst.msk [vmem:[#allocation3 + $0x20] sm:$0xff] (!%p443_p2), %vm838_vm1, %v8176_v6  ;;  %844 = vst.msk [vmem:[#allocation3 + $0x28] sm:$0xff] (!%p443_p2), %vm838_vm1, %v8176_v6  ;;  %7208 = vmatprep.subr.mxu0 (!%p443_p2), %v8176_v6  ;;  %7210 = vmatprep.mubr.msk.f32.mxu0 (!%p443_p2), %vm8175_vm0, %v8176_v6  ;;  %v8416_v54 = vld [vmem:[%s10252_s4 + $0x48] sm:$0xff] (!%p443_p2) }
   0xb   : > { %845 = vst.msk [vmem:[#allocation3 + $0x30] sm:$0xff] (!%p443_p2), %vm838_vm1, %v8176_v6  ;;  %846 = vst.msk [vmem:[#allocation3 + $0x38] sm:$0xff] (!%p443_p2), %vm838_vm1, %v8176_v6 }
   0xc   : > { %847 = vst.msk [vmem:[#allocation3 + $0x40] sm:$0xff] (!%p443_p2), %vm838_vm1, %v8176_v6  ;;  %848 = vst.msk [vmem:[#allocation3 + $0x48] sm:$0xff] (!%p443_p2), %vm838_vm1, %v8176_v6  ;;  %7711 = vmatpush3.bf16.msra.mxu1 (!%p443_p2), %v7710_v10  ;;  %1141 = vperm.xlu0 (!%p443_p2), %8149, %v8325_v11  }
   0xd   : > { %s10274_s30 = smov (!%p503_p3, %s6000_s30), 1  ;;  %849 = vst.msk [vmem:[#allocation3 + $0x50] sm:$0xff] %vm838_vm1, %v8176_v6  ;;  %850 = vst.msk [vmem:[#allocation3 + $0x58] sm:$0xff] %vm838_vm1, %v8176_v6  ;;  %1151 = vperm.xlu1 %8150, %v8332_v12   ;;  %6839 = vmatprep.subr.mxu1 %v8176_v6 }
   0xe   : > { %851 = vst.msk [vmem:[#allocation3 + $0x60] sm:$0xff] %vm838_vm1, %v8176_v6  ;;  %852 = vst.msk [vmem:[#allocation3 + $0x68] sm:$0xff] %vm838_vm1, %v8176_v6  ;;  %s8134_s15 = smul.u32 176, %s10274_s30 }
   0xf   : > { %853 = vst.msk [vmem:[#allocation3 + $0x70] sm:$0xff] %vm838_vm1, %v8176_v6  ;;  %854 = vst.msk [vmem:[#allocation3 + $0x78] sm:$0xff] %vm838_vm1, %v8176_v6  ;;  %s8135_s18 = smul.u32 160, %s10274_s30 }
  0x10   : > { %s8341_s21 = scalar_lea.vmem %s10248_s0, %s8134_s15  ;;  %s8346_s24 = scalar_lea.vmem %s10249_s1, %s8134_s15  ;;  %1156 = vperm.xlu0 %8149, %v8352_v13  }
  0x11   : > { %s8362_s19 = scalar_lea.vmem %s10250_s2, %s8135_s18  ;;  %s8367_s22 = scalar_lea.vmem %s10251_s3, %s8135_s18  ;;  %v528_v15 = vld [vmem:[%s8341_s21] sm:$0xff]  ;;  %v6010_v19 = vld [vmem:[%s8341_s21 + $0x10] sm:$0xff]  ;;  %v529_v29 = vld [vmem:[%s8341_s21 + $0x8] sm:$0x3]  ;;  %1161 = vperm.xlu1 %8150, %v8357_v14  }
  0x12   : > { %v530_v16 = vld [vmem:[%s8346_s24] sm:$0xff]  ;;  %v6012_v20 = vld [vmem:[%s8346_s24 + $0x10] sm:$0xff]  ;;  %v531_v30 = vld [vmem:[%s8346_s24 + $0x8] sm:$0x3]  ;;  %s8136_s15 = smul.u32 104, %s10274_s30 }
  0x13   : > { %v532_v17 = vld [vmem:[%s8341_s21 + $0x1] sm:$0xff]  ;;  %v534_v18 = vmax.f32 %v528_v15, %v530_v16  ;;  %v6014_v21 = vld [vmem:[%s8341_s21 + $0x11] sm:$0xff]  ;;  %v546_v22 = vmax.f32 %v6010_v19, %v6012_v20  ;;  %v533_v31 = vld [vmem:[%s8341_s21 + $0x9] sm:$0x3]  ;;  %v535_v33 = vmax.f32 %v529_v29, %v531_v30 }
  0x14   : > { %v658_v23 = vld [vmem:[%s8362_s19] sm:$0xff]  ;;  %v6011_v34 = vld [vmem:[%s8341_s21 + $0x18] sm:$0x3]  ;;  %v659_v44 = vld [vmem:[%s8362_s19 + $0x8] sm:$0x3]  ;;  %1166 = vperm.xlu0 %8149, %v8383_v26   ;;  %s10171_s23 = scalar_lea.vmem %s10262_s14, %s8136_s15 }
  0x15   : > { %v660_v24 = vld [vmem:[%s8367_s22] sm:$0xff]  ;;  %v536_v27 = vmax.f32 %v534_v18, %v532_v17  ;;  %v6013_v35 = vld [vmem:[%s8346_s24 + $0x18] sm:$0x3]  ;;  %v548_v37 = vmax.f32 %v546_v22, %v6014_v21  ;;  %v661_v45 = vld [vmem:[%s8367_s22 + $0x8] sm:$0x3]  ;;  %v537_v49 = vmax.f32 %v535_v33, %v533_v31  ;;  %1171 = vperm.xlu1 %8150, %v8392_v32  }
  0x16   : > { %v662_v25 = vld [vmem:[%s8362_s19 + $0x1] sm:$0xff]  ;;  %v664_v28 = vmax.f32 %v658_v23, %v660_v24  ;;  %v6015_v36 = vld [vmem:[%s8341_s21 + $0x19] sm:$0x3]  ;;  %v547_v39 = vmax.f32 %v6011_v34, %v6013_v35  ;;  %v663_v46 = vld [vmem:[%s8362_s19 + $0x9] sm:$0x3]  ;;  %v665_v50 = vmax.f32 %v659_v44, %v661_v45 }
  0x17   : > { %v6016_v40 = vld [vmem:[%s8341_s21 + $0x20] sm:$0xff]  ;;  %v6070_v51 = vld [vmem:[%s8362_s19 + $0x10] sm:$0xff]  ;;  %v6017_v56 = vld [vmem:[%s8341_s21 + $0x28] sm:$0x3] }
  0x18   : > { %v666_v38 = vmax.f32 %v664_v28, %v662_v25  ;;  %v6018_v41 = vld [vmem:[%s8346_s24 + $0x20] sm:$0xff]  ;;  %v6072_v52 = vld [vmem:[%s8367_s22 + $0x10] sm:$0xff]  ;;  %v6019_v57 = vld [vmem:[%s8346_s24 + $0x28] sm:$0x3]  ;;  %v549_v60 = vmax.f32 %v547_v39, %v6015_v36  ;;  %v667_v61 = vmax.f32 %v665_v50, %v663_v46  ;;  %1176 = vperm.xlu0 %8149, %v8407_v47  }
  0x19   : > { %v6020_v42 = vld [vmem:[%s8341_s21 + $0x21] sm:$0xff]  ;;  %v558_v43 = vmax.f32 %v6016_v40, %v6018_v41  ;;  %v6074_v53 = vld [vmem:[%s8362_s19 + $0x11] sm:$0xff]  ;;  %v684_v55 = vmax.f32 %v6070_v51, %v6072_v52  ;;  %v6021_v58 = vld [vmem:[%s8341_s21 + $0x29] sm:$0x3]  ;;  %v559_v62 = vmax.f32 %v6017_v56, %v6019_v57  ;;  %1181 = vperm.xlu1 %8150, %v8416_v54  }
  0x1a   : > { %v668_v48 = vmax.f32 %v536_v27, %v666_v38  ;;  %v6022_v63 = vld [vmem:[%s8341_s21 + $0x30] sm:$0xff]  ;;  %v6071_v8 = vld [vmem:[%s8362_s19 + $0x18] sm:$0x3]  ;;  %v669_v17 = vmax.f32 %v537_v49, %v667_v61  ;;  %v6076_v19 = vld [vmem:[%s8362_s19 + $0x20] sm:$0xff] }
  0x1b   : > { %v6024_v0 = vld [vmem:[%s8346_s24 + $0x30] sm:$0xff]  ;;  %v560_v2 = vmax.f32 %v558_v43, %v6020_v42  ;;  %v686_v4 = vmax.f32 %v684_v55, %v6074_v53  ;;  %v6073_v10 = vld [vmem:[%s8367_s22 + $0x18] sm:$0x3]  ;;  %v6078_v20 = vld [vmem:[%s8367_s22 + $0x20] sm:$0xff]  ;;  %v8447_v30 = vmax.f32 %v559_v62, %v6021_v58 }
  0x1c   : > { %v670_v59 = vmax.f32 %v668_v48, %v548_v37  ;;  %v6026_v1 = vld [vmem:[%s8341_s21 + $0x31] sm:$0xff]  ;;  %v570_v5 = vmax.f32 %v6022_v63, %v6024_v0  ;;  %v6075_v15 = vld [vmem:[%s8362_s19 + $0x19] sm:$0x3]  ;;  %v685_v18 = vmax.f32 %v6071_v8, %v6073_v10  ;;  %v6080_v21 = vld [vmem:[%s8362_s19 + $0x21] sm:$0xff]  ;;  %v702_v24 = vmax.f32 %v6076_v19, %v6078_v20 }
  0x1d   : > { %v8431_v16 = vld [vmem:[%s10252_s4 + $0x50] sm:$0xff]  ;;  %v8441_v22 = vld [vmem:[%s10252_s4 + $0x58] sm:$0xff]  ;;  %v688_v23 = vmax.f32 %v548_v37, %v686_v4  ;;  %v671_v29 = vmax.f32 %v669_v17, %v549_v60  ;;  %v6028_v34 = vld [vmem:[%s8341_s21 + $0x40] sm:$0xff] }
  0x1e   : > { %673 = vst.msk [vmem:[#allocation2] sm:$0xff] %vm672_vm2, %v670_v59  ;;  %v6023_v25 = vld [vmem:[%s8341_s21 + $0x38] sm:$0x3]  ;;  %v687_v31 = vmax.f32 %v685_v18, %v6075_v15  ;;  %v6030_v35 = vld [vmem:[%s8346_s24 + $0x40] sm:$0xff]  ;;  %v572_v38 = vmax.f32 %v570_v5, %v6026_v1  ;;  %v704_v39 = vmax.f32 %v702_v24, %v6080_v21  ;;  %v6077_v41 = vld [vmem:[%s8362_s19 + $0x28] sm:$0x3]  ;;  %1186 = vperm.xlu0 %8149, %v8431_v16  }
  0x1f   : > { %v6025_v27 = vld [vmem:[%s8346_s24 + $0x38] sm:$0x3]  ;;  %v6032_v36 = vld [vmem:[%s8341_s21 + $0x41] sm:$0xff]  ;;  %v690_v37 = vmax.f32 %v688_v23, %v560_v2  ;;  %v582_v40 = vmax.f32 %v6028_v34, %v6030_v35  ;;  %v6081_v43 = vld [vmem:[%s8362_s19 + $0x29] sm:$0x3]  ;;  %1191 = vperm.xlu1 %8150, %v8441_v22  }
  0x20   : > { %v6027_v28 = vld [vmem:[%s8341_s21 + $0x39] sm:$0x3]  ;;  %v571_v33 = vmax.f32 %v6023_v25, %v6025_v27  ;;  %v6079_v42 = vld [vmem:[%s8367_s22 + $0x28] sm:$0x3]  ;;  %v1133_v44 = vld [vmem:[%s10252_s4 + $0x60] sm:$0xf]  ;;  %v689_v45 = vmax.f32 %v549_v60, %v687_v31  ;;  %v706_v52 = vmax.f32 %v560_v2, %v704_v39 }
  0x21   : > { %675 = vst.msk [vmem:[#allocation2 + $0x8] sm:$0x3] %vm674_vm3, %v671_v29  ;;  %v703_v46 = vmax.f32 %v6077_v41, %v6079_v42  ;;  %v6082_v48 = vld [vmem:[%s8362_s19 + $0x30] sm:$0xff]  ;;  %v6029_v55 = vld [vmem:[%s8341_s21 + $0x48] sm:$0x3]  ;;  %v8477_v4 = vmax.f32 %v582_v40, %v6032_v36  ;;  %v8484_v17 = vld [vmem:[%s10252_s4 + $0xd8] sm:$0xff] }
  0x22   : > { %v6084_v49 = vld [vmem:[%s8367_s22 + $0x30] sm:$0xff]  ;;  %692 = vst.msk [vmem:[#allocation2 + $0xa] sm:$0xff] %vm672_vm2, %v690_v37  ;;  %v6031_v56 = vld [vmem:[%s8346_s24 + $0x48] sm:$0x3]  ;;  %v691_v58 = vmax.f32 %v689_v45, %v8447_v30  ;;  %v573_v59 = vmax.f32 %v571_v33, %v6027_v28  ;;  %v6083_v62 = vld [vmem:[%s8362_s19 + $0x38] sm:$0x3]  ;;  %v708_v2 = vmax.f32 %v706_v52, %v572_v38  ;;  %1196 = vperm.xlu0 %8149, %v1133_v44  }
  0x23   : > { %v6086_v50 = vld [vmem:[%s8362_s19 + $0x31] sm:$0xff]  ;;  %v720_v53 = vmax.f32 %v6082_v48, %v6084_v49  ;;  %v6033_v57 = vld [vmem:[%s8341_s21 + $0x49] sm:$0x3]  ;;  %v705_v60 = vmax.f32 %v703_v46, %v6081_v43  ;;  %v583_v61 = vmax.f32 %v6029_v55, %v6031_v56  ;;  %v6087_v0 = vld [vmem:[%s8362_s19 + $0x39] sm:$0x3] }
  0x24   : > { %v8466_v51 = vld [vmem:[%s10252_s4 + $0xd0] sm:$0xff]  ;;  %v6085_v63 = vld [vmem:[%s8367_s22 + $0x38] sm:$0x3]  ;;  %693 = vst.msk [vmem:[#allocation2 + $0x12] sm:$0x3] %vm674_vm3, %v691_v58  ;;  %v6088_v23 = vld [vmem:[%s8362_s19 + $0x40] sm:$0xff] }
  0x25   : > { %v855_v1 = vld [vmem:[#allocation2] sm:$0xff]  ;;  %v722_v5 = vmax.f32 %v720_v53, %v6086_v50  ;;  %v721_v8 = vmax.f32 %v6083_v62, %v6085_v63  ;;  %v6034_v10 = vld [vmem:[%s8341_s21 + $0x50] sm:$0xff]  ;;  %v707_v18 = vmax.f32 %v8447_v30, %v705_v60  ;;  %v8489_v19 = vmax.f32 %v583_v61, %v6033_v57  ;;  %710 = vst.msk [vmem:[#allocation2 + $0x14] sm:$0xff] %vm672_vm2, %v708_v2  ;;  %v6035_v31 = vld [vmem:[%s8341_s21 + $0x58] sm:$0x3] }
  0x26   : > { %v6036_v15 = vld [vmem:[%s8346_s24 + $0x50] sm:$0xff]  ;;  %6801 = vmatmul.mubr.msk.f32.vlgmr.msra.gmra.mrb[0].mxu1 %vm672_vm2, %v855_v1  ;;  %v6090_v24 = vld [vmem:[%s8367_s22 + $0x40] sm:$0xff]  ;;  %v6037_v33 = vld [vmem:[%s8346_s24 + $0x58] sm:$0x3]  ;;  %1595 = vperm.xlu1 %8150, %v8466_v51  }
  0x27   : > { %v6038_v20 = vld [vmem:[%s8341_s21 + $0x51] sm:$0xff]  ;;  %v594_v21 = vmax.f32 %v6034_v10, %v6036_v15  ;;  %v8497_v25 = vld [vmem:[%s10252_s4 + $0xe0] sm:$0xff]  ;;  %6803 = vmatprep.mubr.msk.f32.mxu1 %vm8175_vm0, %v8176_v6  ;;  %v724_v27 = vmax.f32 %v572_v38, %v722_v5  ;;  %v723_v28 = vmax.f32 %v721_v8, %v6087_v0  ;;  %v738_v30 = vmax.f32 %v6088_v23, %v6090_v24  ;;  %v6039_v35 = vld [vmem:[%s8341_s21 + $0x59] sm:$0x3] }
  0x28   : > { %v6092_v29 = vld [vmem:[%s8362_s19 + $0x41] sm:$0xff]  ;;  %v709_v34 = vmax.f32 %v707_v18, %v573_v59  ;;  %v595_v36 = vmax.f32 %v6035_v31, %v6037_v33  ;;  %v6093_v50 = vld [vmem:[%s8362_s19 + $0x49] sm:$0x3]  ;;  %v6094_v53 = vld [vmem:[%s8362_s19 + $0x50] sm:$0xff]  ;;  %1600 = vperm.xlu0 %8149, %v8484_v17  }
  0x29   : > { %v6040_v37 = vld [vmem:[%s8341_s21 + $0x60] sm:$0xff]  ;;  %v726_v40 = vmax.f32 %v724_v27, %v8477_v4  ;;  %v725_v38 = vmax.f32 %v573_v59, %v723_v28  ;;  %v8510_v41 = vmax.f32 %v594_v21, %v6038_v20  ;;  %v740_v42 = vmax.f32 %v738_v30, %v6092_v29  ;;  %v6089_v44 = vld [vmem:[%s8362_s19 + $0x48] sm:$0x3]  ;;  %v8527_v55 = vld [vmem:[%s10252_s4 + $0xf0] sm:$0xff] }
  0x2a   : > { %v6042_v39 = vld [vmem:[%s8346_s24 + $0x60] sm:$0xff]  ;;  %v6091_v45 = vld [vmem:[%s8367_s22 + $0x48] sm:$0x3]  ;;  %711 = vst.msk [vmem:[#allocation2 + $0x1c] sm:$0x3] %vm674_vm3, %v709_v34  ;;  %v6096_v58 = vld [vmem:[%s8367_s22 + $0x50] sm:$0xff]  ;;  %1605 = vperm.xlu1 %8150, %v8497_v25   ;;  %v8539_v61 = vmax.f32 %v595_v36, %v6039_v35 }
  0x2b   : > { %v6044_v43 = vld [vmem:[%s8341_s21 + $0x61] sm:$0xff]  ;;  %v606_v49 = vmax.f32 %v6040_v37, %v6042_v39  ;;  %v739_v52 = vmax.f32 %v6089_v44, %v6091_v45  ;;  %728 = vst.msk [vmem:[#allocation2 + $0x1e] sm:$0xff] %vm672_vm2, %v726_v40  ;;  %v727_v56 = vmax.f32 %v725_v38, %v8489_v19  ;;  %v742_v57 = vmax.f32 %v8477_v4, %v740_v42  ;;  %v6098_v59 = vld [vmem:[%s8362_s19 + $0x51] sm:$0xff]  ;;  %v6045_v1 = vld [vmem:[%s8341_s21 + $0x69] sm:$0x3] }
  0x2c   : > { %v8518_v46 = vld [vmem:[%s10252_s4 + $0xe8] sm:$0xff]  ;;  %v756_v63 = vmax.f32 %v6094_v53, %v6096_v58  ;;  %v6046_v2 = vld [vmem:[%s8341_s21 + $0x70] sm:$0xff]  ;;  %v6095_v15 = vld [vmem:[%s8362_s19 + $0x58] sm:$0x3] }
  0x2d   : > { %v856_v48 = vld [vmem:[#allocation2 + $0x8] sm:$0xff]  ;;  %v741_v62 = vmax.f32 %v739_v52, %v6093_v50  ;;  %729 = vst.msk [vmem:[#allocation2 + $0x26] sm:$0x3] %vm674_vm3, %v727_v56  ;;  %v744_v4 = vmax.f32 %v742_v57, %v8510_v41  ;;  %v6048_v8 = vld [vmem:[%s8346_s24 + $0x70] sm:$0xff]  ;;  %v8552_v18 = vld [vmem:[%s10252_s4 + $0xf8] sm:$0xff]  ;;  %v608_v21 = vmax.f32 %v606_v49, %v6044_v43  ;;  %1610 = vperm.xlu0 %8149, %v8518_v46  }
  0x2e   : > { %6804 = vmatmul.mubr.msk.f32.gmra.mrb[2].mxu1 %vm672_vm2, %v856_v48  ;;  %v6041_v60 = vld [vmem:[%s8341_s21 + $0x68] sm:$0x3]  ;;  %v6050_v10 = vld [vmem:[%s8341_s21 + $0x71] sm:$0xff]  ;;  %v758_v24 = vmax.f32 %v756_v63, %v6098_v59  ;;  %v618_v27 = vmax.f32 %v6046_v2, %v6048_v8  ;;  %v6099_v29 = vld [vmem:[%s8362_s19 + $0x59] sm:$0x3]  ;;  %1615 = vperm.xlu1 %8150, %v8527_v55  }
  0x2f   : > { %6806 = vmatprep.mubr.msk.f32.mxu1 %vm8175_vm0, %v8176_v6  ;;  %v6043_v0 = vld [vmem:[%s8346_s24 + $0x68] sm:$0x3]  ;;  %v857_v20 = vld [vmem:[#allocation2 + $0x10] sm:$0xff]  ;;  %v743_v23 = vmax.f32 %v8489_v19, %v741_v62  ;;  %v6097_v28 = vld [vmem:[%s8367_s22 + $0x58] sm:$0x3]  ;;  %746 = vst.msk [vmem:[#allocation2 + $0x28] sm:$0xff] %vm672_vm2, %v744_v4 }
  0x30   : > { %v607_v5 = vmax.f32 %v6041_v60, %v6043_v0  ;;  %v757_v30 = vmax.f32 %v6095_v15, %v6097_v28  ;;  %v6100_v31 = vld [vmem:[%s8362_s19 + $0x60] sm:$0xff]  ;;  %v760_v35 = vmax.f32 %v8510_v41, %v758_v24  ;;  %v6047_v37 = vld [vmem:[%s8341_s21 + $0x78] sm:$0x3]  ;;  %v620_v41 = vmax.f32 %v618_v27, %v6050_v10  ;;  %v6101_v56 = vld [vmem:[%s8362_s19 + $0x68] sm:$0x3] }
  0x31   : > { %v6102_v33 = vld [vmem:[%s8367_s22 + $0x60] sm:$0xff]  ;;  %v745_v34 = vmax.f32 %v743_v23, %v8539_v61  ;;  %v6049_v39 = vld [vmem:[%s8346_s24 + $0x78] sm:$0x3]  ;;  %v6103_v57 = vld [vmem:[%s8367_s22 + $0x68] sm:$0x3]  ;;  %1620 = vperm.xlu0 %8149, %v8552_v18  }
  0x32   : > { %6807 = vmatmul.mubr.msk.f32.gmra.mrb[4].mxu1 %vm672_vm2, %v857_v20  ;;  %v6104_v19 = vld [vmem:[%s8362_s19 + $0x61] sm:$0xff]  ;;  %v774_v36 = vmax.f32 %v6100_v31, %v6102_v33  ;;  %v6051_v40 = vld [vmem:[%s8341_s21 + $0x79] sm:$0x3]  ;;  %v609_v38 = vmax.f32 %v607_v5, %v6045_v1  ;;  %v759_v42 = vmax.f32 %v757_v30, %v6099_v29  ;;  %v619_v43 = vmax.f32 %v6047_v37, %v6049_v39  ;;  %v6105_v59 = vld [vmem:[%s8362_s19 + $0x69] sm:$0x3] }
  0x33   : > { %6809 = vmatprep.mubr.msk.f32.mxu1 %vm8175_vm0, %v8176_v6  ;;  %v6052_v44 = vld [vmem:[%s8341_s21 + $0x80] sm:$0xff]  ;;  %v858_v49 = vld [vmem:[#allocation2 + $0x18] sm:$0xff]  ;;  %747 = vst.msk [vmem:[#allocation2 + $0x30] sm:$0x3] %vm674_vm3, %v745_v34  ;;  %v762_v50 = vmax.f32 %v760_v35, %v608_v21  ;;  %v775_v60 = vmax.f32 %v6101_v56, %v6103_v57  ;;  %v6106_v62 = vld [vmem:[%s8362_s19 + $0x70] sm:$0xff] }
  0x34   : > { %v6054_v45 = vld [vmem:[%s8346_s24 + $0x80] sm:$0xff]  ;;  %v776_v52 = vmax.f32 %v774_v36, %v6104_v19  ;;  %v761_v58 = vmax.f32 %v8539_v61, %v759_v42  ;;  %v6108_v63 = vld [vmem:[%s8367_s22 + $0x70] sm:$0xff]  ;;  %v6053_v5 = vld [vmem:[%s8341_s21 + $0x88] sm:$0x3]  ;;  %v621_v61 = vmax.f32 %v619_v43, %v6051_v40 }
  0x35   : > { %v6056_v48 = vld [vmem:[%s8341_s21 + $0x81] sm:$0xff]  ;;  %v630_v53 = vmax.f32 %v6052_v44, %v6054_v45  ;;  %764 = vst.msk [vmem:[#allocation2 + $0x32] sm:$0xff] %vm672_vm2, %v762_v50  ;;  %v6110_v2 = vld [vmem:[%s8362_s19 + $0x71] sm:$0xff]  ;;  %v792_v4 = vmax.f32 %v6106_v62, %v6108_v63  ;;  %v777_v10 = vmax.f32 %v775_v60, %v6105_v59  ;;  %v6057_v20 = vld [vmem:[%s8341_s21 + $0x89] sm:$0x3] }
  0x36   : > { %6810 = vmatmul.mubr.msk.f32.gmra.mrb[6].mxu1 %vm672_vm2, %v858_v49  ;;  %v859_v0 = vld [vmem:[#allocation2 + $0x20] sm:$0xff]  ;;  %v778_v1 = vmax.f32 %v608_v21, %v776_v52  ;;  %v763_v8 = vmax.f32 %v761_v58, %v609_v38  ;;  %v6055_v15 = vld [vmem:[%s8346_s24 + $0x88] sm:$0x3]  ;;  %v6107_v23 = vld [vmem:[%s8362_s19 + $0x78] sm:$0x3] }
  0x37   : > { %6812 = vmatprep.mubr.msk.f32.mxu1 %vm8175_vm0, %v8176_v6  ;;  %v860_v24 = vld [vmem:[#allocation2 + $0x28] sm:$0xff]  ;;  %v632_v28 = vmax.f32 %v630_v53, %v6056_v48  ;;  %v794_v29 = vmax.f32 %v792_v4, %v6110_v2  ;;  %v631_v21 = vmax.f32 %v6053_v5, %v6055_v15  ;;  %v6109_v30 = vld [vmem:[%s8367_s22 + $0x78] sm:$0x3]  ;;  %v779_v33 = vmax.f32 %v609_v38, %v777_v10  ;;  %v6058_v34 = vld [vmem:[%s8341_s21 + $0x90] sm:$0xff] }
  0x38   : > { %v780_v27 = vmax.f32 %v778_v1, %v620_v41  ;;  %v6111_v31 = vld [vmem:[%s8362_s19 + $0x79] sm:$0x3]  ;;  %765 = vst.msk [vmem:[#allocation2 + $0x3a] sm:$0x3] %vm674_vm3, %v763_v8  ;;  %v793_v19 = vmax.f32 %v6107_v23, %v6109_v30  ;;  %v6060_v35 = vld [vmem:[%s8346_s24 + $0x90] sm:$0xff]  ;;  %v6112_v40 = vld [vmem:[%s8362_s19 + $0x80] sm:$0xff] }
  0x39   : > { %v6062_v36 = vld [vmem:[%s8341_s21 + $0x91] sm:$0xff]  ;;  %v796_v37 = vmax.f32 %v620_v41, %v794_v29  ;;  %v642_v39 = vmax.f32 %v6058_v34, %v6060_v35  ;;  %v6114_v42 = vld [vmem:[%s8367_s22 + $0x80] sm:$0xff]  ;;  %v781_v43 = vmax.f32 %v779_v33, %v621_v61  ;;  %v633_v44 = vmax.f32 %v631_v21, %v6057_v20  ;;  %v6063_v52 = vld [vmem:[%s8341_s21 + $0x99] sm:$0x3] }
  0x3a   : > { %6813 = vmatmul.mubr.msk.f32.gmra.mrb[8].mxu1 %vm672_vm2, %v859_v0  ;;  %782 = vst.msk [vmem:[#allocation2 + $0x3c] sm:$0xff] %vm672_vm2, %v780_v27  ;;  %v6116_v38 = vld [vmem:[%s8362_s19 + $0x81] sm:$0xff]  ;;  %v795_v45 = vmax.f32 %v793_v19, %v6111_v31  ;;  %v810_v48 = vmax.f32 %v6112_v40, %v6114_v42  ;;  %v6059_v49 = vld [vmem:[%s8341_s21 + $0x98] sm:$0x3]  ;;  %v6117_v4 = vld [vmem:[%s8362_s19 + $0x89] sm:$0x3] }
  0x3b   : > { %6815 = vmatprep.mubr.msk.f32.mxu1 %vm8175_vm0, %v8176_v6  ;;  %v6061_v50 = vld [vmem:[%s8346_s24 + $0x98] sm:$0x3]  ;;  %v798_v53 = vmax.f32 %v796_v37, %v632_v28  ;;  %v6064_v57 = vld [vmem:[%s8341_s21 + $0xa0] sm:$0xff]  ;;  %783 = vst.msk [vmem:[#allocation2 + $0x44] sm:$0x3] %vm674_vm3, %v781_v43  ;;  %v644_v62 = vmax.f32 %v642_v39, %v6062_v36  ;;  %v6118_v8 = vld [vmem:[%s8362_s19 + $0x90] sm:$0xff] }
  0x3c   : > { %v643_v56 = vmax.f32 %v6059_v49, %v6061_v50  ;;  %v6066_v41 = vld [vmem:[%s8346_s24 + $0xa0] sm:$0xff]  ;;  %v861_v59 = vld [vmem:[#allocation2 + $0x30] sm:$0xff]  ;;  %v797_v60 = vmax.f32 %v621_v61, %v795_v45  ;;  %v812_v63 = vmax.f32 %v810_v48, %v6116_v38  ;;  %v6113_v1 = vld [vmem:[%s8362_s19 + $0x88] sm:$0x3] }
  0x3d   : > { %v6068_v58 = vld [vmem:[%s8341_s21 + $0xa1] sm:$0xff]  ;;  %v654_v0 = vmax.f32 %v6064_v57, %v6066_v41  ;;  %800 = vst.msk [vmem:[#allocation2 + $0x46] sm:$0xff] %vm672_vm2, %v798_v53  ;;  %v6120_v10 = vld [vmem:[%s8367_s22 + $0x90] sm:$0xff]  ;;  %v6069_v30 = vld [vmem:[%s8341_s21 + $0xa9] sm:$0x3] }
  0x3e   : > { %6816 = vmatmul.mubr.msk.f32.gmra.mrb[10].mxu1 %vm672_vm2, %v860_v24  ;;  %v6115_v2 = vld [vmem:[%s8367_s22 + $0x88] sm:$0x3]  ;;  %v799_v61 = vmax.f32 %v797_v60, %v633_v44  ;;  %v814_v15 = vmax.f32 %v632_v28, %v812_v63  ;;  %v6122_v20 = vld [vmem:[%s8362_s19 + $0x91] sm:$0xff]  ;;  %v828_v23 = vmax.f32 %v6118_v8, %v6120_v10  ;;  %v645_v29 = vmax.f32 %v643_v56, %v6063_v52  ;;  %v6123_v37 = vld [vmem:[%s8362_s19 + $0x99] sm:$0x3] }
  0x3f   : > { %6818 = vmatprep.mubr.msk.f32.mxu1 %vm8175_vm0, %v8176_v6  ;;  %v811_v5 = vmax.f32 %v6113_v1, %v6115_v2  ;;  %v6065_v24 = vld [vmem:[%s8341_s21 + $0xa8] sm:$0x3]  ;;  %v6119_v33 = vld [vmem:[%s8362_s19 + $0x98] sm:$0x3]  ;;  %v656_v35 = vmax.f32 %v654_v0, %v6068_v58  ;;  %v8640_v38 = vld [vmem:[%s10252_s4 + $0x100] sm:$0xff] }
  0x40   : > { %v6067_v27 = vld [vmem:[%s8346_s24 + $0xa8] sm:$0x3]  ;;  %v6121_v19 = vld [vmem:[%s8367_s22 + $0x98] sm:$0x3]  ;;  %801 = vst.msk [vmem:[#allocation2 + $0x4e] sm:$0x3] %vm674_vm3, %v799_v61  ;;  %v816_v34 = vmax.f32 %v814_v15, %v644_v62  ;;  %v830_v36 = vmax.f32 %v828_v23, %v6122_v20  ;;  %1625 = vperm.xlu1 %8150, %v8640_v38  }
  0x41   : > { %v813_v21 = vmax.f32 %v811_v5, %v6117_v4  ;;  %v655_v31 = vmax.f32 %v6065_v24, %v6067_v27  ;;  %v829_v28 = vmax.f32 %v6119_v33, %v6121_v19  ;;  %v8632_v39 = vld [vmem:[%s10252_s4 + $0x108] sm:$0xff]  ;;  %v862_v40 = vld [vmem:[#allocation2 + $0x38] sm:$0xff] }
  0x42   : > { %6819 = vmatmul.mubr.msk.f32.gmra.mrb[12].mxu1 %vm672_vm2, %v861_v59  ;;  %1630 = vperm.xlu0 %8149, %v8632_v39   ;;  %818 = vst.msk [vmem:[#allocation2 + $0x50] sm:$0xff] %vm672_vm2, %v816_v34  ;;  %v832_v43 = vmax.f32 %v644_v62, %v830_v36  ;;  %v6175_v49 = vld [vmem:[%s10252_s4 + $0x118] sm:$0xff]  ;;  %v6139_v52 = vld [vmem:[%s10256_s8 + $0x8] sm:$0xff]  ;;  %v6176_v59 = vld [vmem:[%s10252_s4 + $0x120] sm:$0xff] }
  0x43   : > { %6821 = vmatprep.mubr.msk.f32.mxu1 %vm8175_vm0, %v8176_v6  ;;  %v815_v42 = vmax.f32 %v633_v44, %v813_v21  ;;  %v657_v45 = vmax.f32 %v655_v31, %v6069_v30  ;;  %v831_v48 = vmax.f32 %v829_v28, %v6123_v37  ;;  %v6174_v44 = vld [vmem:[%s10252_s4 + $0x110] sm:$0xff]  ;;  %v6177_v58 = vld [vmem:[%s10252_s4 + $0x128] sm:$0xff]  ;;  %6840 = vmatpush3.msra.mxu1 %v6139_v52 }
  0x44   : > { %v834_v53 = vmax.f32 %v832_v43, %v656_v35  ;;  %v863_v57 = vld [vmem:[#allocation2 + $0x40] sm:$0xff]  ;;  %1635 = vperm.xlu1 %8150, %v6174_v44   ;;  %6880 = vmatprep.subr.mxu1 %v8176_v6  ;;  %v6178_v62 = vld [vmem:[%s10252_s4 + $0x130] sm:$0xf] }
  0x45   : > { %v817_v50 = vmax.f32 %v815_v42, %v645_v29  ;;  %v833_v56 = vmax.f32 %v645_v29, %v831_v48 }
  0x46   : > { %6822 = vmatmul.mubr.msk.f32.gmra.mrb[14].mxu1 %vm672_vm2, %v862_v40  ;;  %1640 = vperm.xlu0 %8149, %v6175_v49   ;;  %836 = vst.msk [vmem:[#allocation2 + $0x5a] sm:$0xff] %vm672_vm2, %v834_v53 }
  0x47   : > { %6824 = vmatprep.mubr.msk.f32.mxu1 %vm8175_vm0, %v8176_v6  ;;  %819 = vst.msk [vmem:[#allocation2 + $0x58] sm:$0x3] %vm674_vm3, %v817_v50  ;;  %v835_v41 = vmax.f32 %v833_v56, %v657_v45  ;;  %v864_v60 = vld [vmem:[#allocation2 + $0x48] sm:$0xff] }
  0x48   : > { %1645 = vperm.xlu1 %8150, %v6176_v59  }
  0x49   : > { %837 = vst.msk [vmem:[#allocation2 + $0x62] sm:$0x3] %vm674_vm3, %v835_v41  ;;  %v865_v63 = vld [vmem:[#allocation2 + $0x50] sm:$0xff] }
  0x4a   : > { %6825 = vmatmul.mubr.msk.f32.gmra.mrb[16].mxu1 %vm672_vm2, %v863_v57  ;;  %1650 = vperm.xlu0 %8149, %v6177_v58  }
  0x4b   : > { %6827 = vmatprep.mubr.msk.f32.mxu1 %vm8175_vm0, %v8176_v6 }
  0x4c   : > { %1655 = vperm.xlu1 %8150, %v6178_v62  }
  0x4e   : > { %6828 = vmatmul.mubr.msk.f32.gmra.mrb[18].mxu1 %vm672_vm2, %v864_v60  ;;  %3648 = vperm.xlu0 %8149, %v8279_v7   ;;  %v866_v0 = vld [vmem:[#allocation2 + $0x58] sm:$0xff]  ;;  %v3645_v7 = vld [vmem:[%s10252_s4 + $0x60] sm:$0xf] }
  0x4f   : > { %6830 = vmatprep.mubr.msk.f32.mxu1 %vm8175_vm0, %v8176_v6 }
  0x50   : > { %3653 = vperm.xlu1 %8150, %v8325_v11   ;;  %v867_v1 = vld [vmem:[#allocation2 + $0x60] sm:$0xf]  ;;  %v1213_v11 = vld [vmem:[#allocation3 + $0x1] sm:$0xff] }
  0x52   : > { %6831 = vmatmul.mubr.msk.f32.gmra.mrb[20].mxu1 %vm672_vm2, %v865_v63  ;;  %3658 = vperm.xlu0 %8149, %v8284_v9   ;;  %v6355_v9 = vld [vmem:[%s10252_s4 + $0x130] sm:$0xf] }
  0x53   : > { %6833 = vmatprep.mubr.msk.f32.mxu1 %vm8175_vm0, %v8176_v6 }
  0x54   : > { %3663 = vperm.xlu1 %8150, %v8332_v12   ;;  %v1212_v12 = vld [vmem:[%s10256_s8] sm:$0xff] }
  0x56   : > { %6834 = vmatmul.mubr.msk.f32.gmra.mrb[22].mxu1 %vm672_vm2, %v866_v0  ;;  %3668 = vperm.xlu0 %8149, %v8352_v13   ;;  %v8720_v13 = vld [vmem:[%s10254_s6] ss:$0 sm:$0xff] }
  0x57   : > { %6836 = vmatprep.mubr.msk.f32.mxu1 %vm8175_vm0, %v8176_v6 }
  0x58   : > { %3673 = vperm.xlu1 %8150, %v8357_v14  }
  0x5a   : > { %6837 = vmatmul.mubr.msk.f32.gmra.mrb[24].mxu1 %vm672_vm2, %v867_v1  ;;  %3678 = vperm.xlu0 %8149, %v8383_v26   ;;  %v8725_v26 = vld [vmem:[%s10255_s7] ss:$0 sm:$0xff] }
  0x5b   : > { %6841 = vmatprep.mubr.msk.f32.mxu1 %vm8175_vm0, %v8176_v6 }
  0x5c   : > { %3683 = vperm.xlu1 %8150, %v8392_v32  }
  0x5e   : > { %3688 = vperm.xlu0 %8149, %v8407_v47   ;;  %6842 = vmatmul.mubr.msk.f32.vlgmr.msra.gmra.mrb[26].mxu1 %vm838_vm1, %v1213_v11 }
  0x5f   : > { %6844 = vmatprep.mubr.msk.f32.mxu1 %vm8175_vm0, %v8176_v6  ;;  %6881 = vmatpush3.msra.mxu1 %v1212_v12 }
  0x60   : > { %3693 = vperm.xlu1 %8150, %v8416_v54   ;;  %6921 = vmatprep.subr.mxu1 %v8176_v6 }
  0x62   : > { %3698 = vperm.xlu0 %8149, %v8431_v16  }
  0x64   : > { %3703 = vperm.xlu1 %8150, %v8441_v22  }
  0x66   : > { %3708 = vperm.xlu0 %8149, %v3645_v7  }
  0x68   : > { %4107 = vperm.xlu1 %8150, %v8466_v51  }
  0x6a   : > { %4112 = vperm.xlu0 %8149, %v8484_v17  }
  0x6c   : > { %4117 = vperm.xlu1 %8150, %v8497_v25  }
  0x6e   : > { %4122 = vperm.xlu0 %8149, %v8518_v46  }
  0x70   : > { %4127 = vperm.xlu1 %8150, %v8527_v55  }
  0x72   : > { %4132 = vperm.xlu0 %8149, %v8552_v18  }
  0x74   : > { %4137 = vperm.xlu1 %8150, %v8640_v38  }
  0x76   : > { %4142 = vperm.xlu0 %8149, %v8632_v39  }
  0x78   : > { %4147 = vperm.xlu1 %8150, %v6174_v44  }
  0x7a   : > { %4152 = vperm.xlu0 %8149, %v6175_v49  }
  0x7c   : > { %4157 = vperm.xlu1 %8150, %v6176_v59  }
  0x7e   : > { %4162 = vperm.xlu0 %8149, %v6177_v58  }
  0x80   : > { %4167 = vperm.xlu1 %8150, %v6355_v9  }
  0xf9   : > { %v977_v14 = vpop.f32.mrb[0].mxu1 }
  0xfa   : > { %v1048_v32 = vmul.f32 %v8720_v13, %v977_v14  ;;  %v6802_v47 = vpop.f32.mrb[1].mxu1 }
  0xfc   : > { %v1068_v54 = vadd.f32 %v8725_v26, %v1048_v32 }
  0xfe   : > { %v1081_v16 = vmax.f32 %v1068_v54, 0.0 }
 0x100   : > { %1094 = vst.msk [vmem:[#allocation3 + $0xb] sm:$0xff] %vm838_vm1, %v1081_v16 }
 0x101   : > { %v982_v22 = vpop.f32.mrb[2].mxu1 }
 0x102   : > { %v1049_v51 = vmul.f32 %v8720_v13, %v982_v22  ;;  %v6805_v17 = vpop.f32.mrb[3].mxu1 }
 0x104   : > { %v1069_v25 = vadd.f32 %v8725_v26, %v1049_v51 }
 0x105   : > { %v987_v46 = vpop.f32.mrb[4].mxu1 }
 0x106   : > { %v1082_v55 = vmax.f32 %v1069_v25, 0.0  ;;  %v1050_v18 = vmul.f32 %v8720_v13, %v987_v46  ;;  %v6808_v2 = vpop.f32.mrb[5].mxu1 }
 0x107   : > { %v1214_v15 = vld [vmem:[#allocation3 + $0x9] sm:$0xff] }
 0x108   : > { %1095 = vst.msk [vmem:[#allocation3 + $0x13] sm:$0xff] %vm838_vm1, %v1082_v55  ;;  %v1070_v4 = vadd.f32 %v8725_v26, %v1050_v18  ;;  %6845 = vmatmul.mubr.msk.f32.gmra.mrb[28].mxu1 %vm838_vm1, %v1214_v15  ;;  %v6179_v15 = vld [vmem:[%s10256_s8 + $0x10] sm:$0xff] }
 0x109   : > { %v992_v5 = vpop.f32.mrb[6].mxu1  ;;  %6847 = vmatprep.mubr.msk.f32.mxu1 %vm8175_vm0, %v8176_v6 }
 0x10a   : > { %v1083_v8 = vmax.f32 %v1070_v4, 0.0  ;;  %v1051_v10 = vmul.f32 %v8720_v13, %v992_v5  ;;  %v6811_v61 = vpop.f32.mrb[7].mxu1 }
 0x10c   : > { %1096 = vst.msk [vmem:[#allocation3 + $0x1b] sm:$0xff] %vm838_vm1, %v1083_v8  ;;  %v1071_v20 = vadd.f32 %v8725_v26, %v1051_v10  ;;  %v1108_v10 = vld [vmem:[#allocation3] sm:$0xff] }
 0x10d   : > { %v997_v23 = vpop.f32.mrb[8].mxu1 }
 0x10e   : > { %v1084_v24 = vmax.f32 %v1071_v20, 0.0  ;;  %v1052_v27 = vmul.f32 %v8720_v13, %v997_v23  ;;  %v6814_v29 = vpop.f32.mrb[9].mxu1  ;;  %v1109_v20 = vld [vmem:[#allocation3 + $0x8] sm:$0xff] }
 0x10f   : > { %v1215_v21 = vld [vmem:[#allocation3 + $0x11] sm:$0xff] }
 0x110   : > { %1097 = vst.msk [vmem:[#allocation3 + $0x23] sm:$0xff] %vm838_vm1, %v1084_v24  ;;  %v1072_v30 = vadd.f32 %v8725_v26, %v1052_v27  ;;  %6848 = vmatmul.mubr.msk.f32.gmra.mrb[30].mxu1 %vm838_vm1, %v1215_v21  ;;  %v8815_v27 = vpop.permute.xlu1 %1146  ;;  %v1110_v29 = vld [vmem:[#allocation3 + $0x10] sm:$0xff] }
 0x111   : > { %v1002_v31 = vpop.f32.mrb[10].mxu1  ;;  %6850 = vmatprep.mubr.msk.f32.mxu1 %vm8175_vm0, %v8176_v6  ;;  %v1201_v21 = vmul.f32 %v8815_v27, %v1110_v29 }
 0x112   : > { %v1085_v33 = vmax.f32 %v1072_v30, 0.0  ;;  %v1053_v19 = vmul.f32 %v8720_v13, %v1002_v31  ;;  %v6817_v34 = vpop.f32.mrb[11].mxu1 }
 0x113   : > { %v1216_v35 = vld [vmem:[#allocation3 + $0x19] sm:$0xff] }
 0x114   : > { %1098 = vst.msk [vmem:[#allocation3 + $0x2b] sm:$0xff] %vm838_vm1, %v1085_v33  ;;  %v1073_v36 = vadd.f32 %v8725_v26, %v1053_v19  ;;  %6851 = vmatmul.mubr.msk.f32.gmra.mrb[32].mxu1 %vm838_vm1, %v1216_v35  ;;  %v1111_v30 = vld [vmem:[#allocation3 + $0x18] sm:$0xff]  ;;  %v8822_v31 = vpop.permute.xlu1 %1151 }
 0x115   : > { %v1007_v37 = vpop.f32.mrb[12].mxu1  ;;  %6853 = vmatprep.mubr.msk.f32.mxu1 %vm8175_vm0, %v8176_v6  ;;  %v1202_v33 = vmul.f32 %v8822_v31, %v1111_v30 }
 0x116   : > { %v1086_v28 = vmax.f32 %v1073_v36, 0.0  ;;  %v1054_v39 = vmul.f32 %v8720_v13, %v1007_v37  ;;  %v6820_v40 = vpop.f32.mrb[13].mxu1 }
 0x117   : > { %v1217_v42 = vld [vmem:[#allocation3 + $0x21] sm:$0xff] }
 0x118   : > { %1099 = vst.msk [vmem:[#allocation3 + $0x33] sm:$0xff] %vm838_vm1, %v1086_v28  ;;  %v1074_v38 = vadd.f32 %v8725_v26, %v1054_v39  ;;  %6854 = vmatmul.mubr.msk.f32.gmra.mrb[34].mxu1 %vm838_vm1, %v1217_v42  ;;  %v1112_v19 = vld [vmem:[#allocation3 + $0x20] sm:$0xff]  ;;  %v8834_v37 = vpop.permute.xlu1 %1161 }
 0x119   : > { %v1012_v43 = vpop.f32.mrb[14].mxu1  ;;  %6856 = vmatprep.mubr.msk.f32.mxu1 %vm8175_vm0, %v8176_v6 }
 0x11a   : > { %v1087_v45 = vmax.f32 %v1074_v38, 0.0  ;;  %v1055_v48 = vmul.f32 %v8720_v13, %v1012_v43  ;;  %v6823_v49 = vpop.f32.mrb[15].mxu1 }
 0x11b   : > { %v1218_v50 = vld [vmem:[#allocation3 + $0x29] sm:$0xff] }
 0x11c   : > { %1100 = vst.msk [vmem:[#allocation3 + $0x3b] sm:$0xff] %vm838_vm1, %v1087_v45  ;;  %v1075_v44 = vadd.f32 %v8725_v26, %v1055_v48  ;;  %6857 = vmatmul.mubr.msk.f32.gmra.mrb[36].mxu1 %vm838_vm1, %v1218_v50  ;;  %v1113_v36 = vld [vmem:[#allocation3 + $0x28] sm:$0xff]  ;;  %v8846_v43 = vpop.permute.xlu1 %1171 }
 0x11d   : > { %v1017_v52 = vpop.f32.mrb[16].mxu1  ;;  %6859 = vmatprep.mubr.msk.f32.mxu1 %vm8175_vm0, %v8176_v6  ;;  %v1204_v28 = vmul.f32 %v8834_v37, %v1113_v36 }
 0x11e   : > { %v1088_v53 = vmax.f32 %v1075_v44, 0.0  ;;  %v1056_v56 = vmul.f32 %v8720_v13, %v1017_v52  ;;  %v6826_v57 = vpop.f32.mrb[17].mxu1 }
 0x11f   : > { %v1219_v41 = vld [vmem:[#allocation3 + $0x31] sm:$0xff] }
 0x120   : > { %1101 = vst.msk [vmem:[#allocation3 + $0x43] sm:$0xff] %vm838_vm1, %v1088_v53  ;;  %v1076_v58 = vadd.f32 %v8725_v26, %v1056_v56  ;;  %6860 = vmatmul.mubr.msk.f32.gmra.mrb[38].mxu1 %vm838_vm1, %v1219_v41  ;;  %v1114_v39 = vld [vmem:[#allocation3 + $0x30] sm:$0xff]  ;;  %v8858_v52 = vpop.permute.xlu1 %1181 }
 0x121   : > { %v1022_v59 = vpop.f32.mrb[18].mxu1  ;;  %6862 = vmatprep.mubr.msk.f32.mxu1 %vm8175_vm0, %v8176_v6 }
 0x122   : > { %v1089_v60 = vmax.f32 %v1076_v58, 0.0  ;;  %v1057_v62 = vmul.f32 %v8720_v13, %v1022_v59  ;;  %v6829_v63 = vpop.f32.mrb[19].mxu1 }
 0x123   : > { %v1220_v0 = vld [vmem:[#allocation3 + $0x39] sm:$0xff] }
 0x124   : > { %1102 = vst.msk [vmem:[#allocation3 + $0x4b] sm:$0xff] %vm838_vm1, %v1089_v60  ;;  %v1077_v1 = vadd.f32 %v8725_v26, %v1057_v62  ;;  %6863 = vmatmul.mubr.msk.f32.gmra.mrb[40].mxu1 %vm838_vm1, %v1220_v0  ;;  %v1115_v38 = vld [vmem:[#allocation3 + $0x38] sm:$0xff]  ;;  %v8870_v59 = vpop.permute.xlu1 %1191 }
 0x125   : > { %v1027_v7 = vpop.f32.mrb[20].mxu1  ;;  %6865 = vmatprep.mubr.msk.f32.mxu1 %vm8175_vm0, %v8176_v6  ;;  %v1206_v45 = vmul.f32 %v8846_v43, %v1115_v38 }
 0x126   : > { %v1090_v9 = vmax.f32 %v1077_v1, 0.0  ;;  %v1058_v11 = vmul.f32 %v8720_v13, %v1027_v7  ;;  %v6832_v12 = vpop.f32.mrb[21].mxu1  ;;  %v1566_v1 = vld [vmem:[#allocation3 + $0x2] sm:$0xff] }
 0x127   : > { %v1221_v14 = vld [vmem:[#allocation3 + $0x41] sm:$0xff]  ;;  %v8890_v12 = vld [vmem:[#allocation3 + $0xa] sm:$0xff] }
 0x128   : > { %1103 = vst.msk [vmem:[#allocation3 + $0x53] sm:$0xff] %vm838_vm1, %v1090_v9  ;;  %v1078_v32 = vadd.f32 %v8725_v26, %v1058_v11  ;;  %6866 = vmatmul.mubr.msk.f32.gmra.mrb[42].mxu1 %vm838_vm1, %v1221_v14  ;;  %v1116_v48 = vld [vmem:[#allocation3 + $0x40] sm:$0xff]  ;;  %v8882_v7 = vpop.permute.xlu1 %1595  ;;  %v6193_v11 = vld [vmem:[%s10256_s8 + $0x18] sm:$0xff] }
 0x129   : > { %v1032_v47 = vpop.f32.mrb[22].mxu1  ;;  %6868 = vmatprep.mubr.msk.f32.mxu1 %vm8175_vm0, %v8176_v6  ;;  %v1658_v9 = vmul.f32 %v8882_v7, %v1566_v1 }
 0x12a   : > { %v1091_v54 = vmax.f32 %v1078_v32, 0.0  ;;  %v1059_v16 = vmul.f32 %v8720_v13, %v1032_v47  ;;  %v6835_v22 = vpop.f32.mrb[23].mxu1  ;;  %v1568_v47 = vld [vmem:[#allocation3 + $0x12] sm:$0xff] }
 0x12b   : > { %v1222_v51 = vld [vmem:[#allocation3 + $0x49] sm:$0xff]  ;;  %v1569_v22 = vld [vmem:[#allocation3 + $0x1a] sm:$0xff] }
 0x12c   : > { %1104 = vst.msk [vmem:[#allocation3 + $0x5b] sm:$0xff] %vm838_vm1, %v1091_v54  ;;  %v1079_v17 = vadd.f32 %v8725_v26, %v1059_v16  ;;  %6869 = vmatmul.mubr.msk.f32.gmra.mrb[44].mxu1 %vm838_vm1, %v1222_v51  ;;  %v1117_v44 = vld [vmem:[#allocation3 + $0x48] sm:$0xff]  ;;  %v8901_v54 = vpop.permute.xlu1 %1605 }
 0x12d   : > { %v1037_v25 = vpop.f32.mrb[24].mxu1  ;;  %6871 = vmatprep.mubr.msk.f32.mxu1 %vm8175_vm0, %v8176_v6  ;;  %v1208_v53 = vmul.f32 %v8858_v52, %v1117_v44  ;;  %v1660_v16 = vmul.f32 %v8901_v54, %v1568_v47  ;;  %v6207_v44 = vld [vmem:[%s10256_s8 + $0x20] sm:$0xff] }
 0x12e   : > { %v1092_v46 = vmax.f32 %v1079_v17, 0.0  ;;  %v1060_v55 = vmul.f32 %v8720_v13, %v1037_v25  ;;  %v6838_v18 = vpop.f32.mrb[25].mxu1  ;;  %v8799_v13 = vpop.permute.xlu0 %1136  ;;  %v1570_v25 = vld [vmem:[#allocation3 + $0x22] sm:$0xff] }
 0x12f   : > { %v1223_v2 = vld [vmem:[#allocation3 + $0x51] sm:$0xff] }
 0x130   : > { %1105 = vst.msk [vmem:[#allocation3 + $0x63] sm:$0xff] %vm838_vm1, %v1092_v46  ;;  %v1080_v4 = vadd.f32 %v8725_v26, %v1060_v55  ;;  %6872 = vmatmul.mubr.msk.f32.gmra.mrb[46].mxu1 %vm838_vm1, %v1223_v2  ;;  %v1199_v26 = vmul.f32 %v8799_v13, %v1108_v10  ;;  %v1118_v56 = vld [vmem:[#allocation3 + $0x50] sm:$0xff]  ;;  %v8913_v46 = vpop.permute.xlu1 %1615 }
 0x131   : > { %6874 = vmatprep.mubr.msk.f32.mxu1 %vm8175_vm0, %v8176_v6  ;;  %v1662_v55 = vmul.f32 %v8913_v46, %v1570_v25  ;;  %v1571_v18 = vld [vmem:[#allocation3 + $0x2a] sm:$0xff] }
 0x132   : > { %v1093_v5 = vmax.f32 %v1080_v4, 0.0  ;;  %v8809_v23 = vpop.permute.xlu0 %1141 }
 0x133   : > { %v1224_v8 = vld [vmem:[#allocation3 + $0x59] sm:$0xff]  ;;  %v1200_v24 = vmul.f32 %v8809_v23, %v1109_v20  ;;  %v1574_v20 = vld [vmem:[#allocation3 + $0x42] sm:$0xff] }
 0x134   : > { %1107 = vst.msk [vmem:[#allocation3 + $0x6b] sm:$0xf] %vm1106_vm4, %v1093_v5  ;;  %6875 = vmatmul.mubr.msk.f32.gmra.mrb[48].mxu1 %vm838_vm1, %v1224_v8  ;;  %v1119_v58 = vld [vmem:[#allocation3 + $0x58] sm:$0xff]  ;;  %v8925_v8 = vpop.permute.xlu1 %1625 }
 0x135   : > { %6877 = vmatprep.mubr.msk.f32.mxu1 %vm8175_vm0, %v8176_v6  ;;  %v1210_v60 = vmul.f32 %v8870_v59, %v1119_v58  ;;  %v1572_v5 = vld [vmem:[#allocation3 + $0x32] sm:$0xff] }
 0x136   : > { %v8828_v34 = vpop.permute.xlu0 %1156  ;;  %v1664_v10 = vmul.f32 %v8925_v8, %v1572_v5 }
 0x137   : > { %v1225_v61 = vld [vmem:[#allocation3 + $0x61] sm:$0xf]  ;;  %v1203_v35 = vmul.f32 %v8828_v34, %v1112_v19  ;;  %v1576_v19 = vld [vmem:[#allocation3 + $0x52] sm:$0xff]  ;;  %v1872_v58 = vmul.f32 %v1571_v18, %v8828_v34 }
 0x138   : > { %6878 = vmatmul.mubr.msk.f32.gmra.mrb[50].mxu1 %vm838_vm1, %v1225_v61  ;;  %v1120_v62 = vld [vmem:[#allocation3 + $0x60] sm:$0xf] }
 0x139   : > { %6882 = vmatprep.mubr.msk.f32.mxu1 %vm8175_vm0, %v8176_v6  ;;  %v1573_v61 = vld [vmem:[#allocation3 + $0x3a] sm:$0xff]  ;;  %v1578_v38 = vld [vmem:[#allocation3 + $0x62] sm:$0xf] }
 0x13a   : > { %v8840_v40 = vpop.permute.xlu0 %1166 }
 0x13b   : > { %v1205_v42 = vmul.f32 %v8840_v40, %v1114_v39 }
 0x13c   : > { %6883 = vmatmul.mubr.msk.f32.vlgmr.msra.gmra.mrb[26].mxu1 %vm838_vm1, %v1199_v26 }
 0x13d   : > { %6922 = vmatpush3.msra.mxu1 %v6179_v15  ;;  %6885 = vmatprep.mubr.msk.f32.mxu1 %vm8175_vm0, %v8176_v6 }
 0x13e   : > { %6962 = vmatprep.subr.mxu1 %v8176_v6  ;;  %v8852_v49 = vpop.permute.xlu0 %1176 }
 0x13f   : > { %v1207_v50 = vmul.f32 %v8852_v49, %v1116_v48 }
 0x140   : > { %6886 = vmatmul.mubr.msk.f32.gmra.mrb[28].mxu1 %vm838_vm1, %v1200_v24  ;;  %v8937_v24 = vpop.permute.xlu1 %1635 }
 0x141   : > { %6888 = vmatprep.mubr.msk.f32.mxu1 %vm8175_vm0, %v8176_v6  ;;  %v1666_v29 = vmul.f32 %v8937_v24, %v1574_v20 }
 0x142   : > { %v8864_v57 = vpop.permute.xlu0 %1186 }
 0x143   : > { %v1209_v41 = vmul.f32 %v8864_v57, %v1118_v56  ;;  %v1870_v56 = vmul.f32 %v1569_v22, %v8815_v27 }
 0x144   : > { %6889 = vmatmul.mubr.msk.f32.gmra.mrb[30].mxu1 %vm838_vm1, %v1201_v21  ;;  %v1575_v21 = vld [vmem:[#allocation3 + $0x4a] sm:$0xff] }
 0x145   : > { %6891 = vmatprep.mubr.msk.f32.mxu1 %vm8175_vm0, %v8176_v6  ;;  %v1876_v1 = vmul.f32 %v1575_v21, %v8852_v49 }
 0x146   : > { %v8876_v63 = vpop.permute.xlu0 %1196 }
 0x147   : > { %v1211_v0 = vmul.f32 %v8876_v63, %v1120_v62  ;;  %v1874_v62 = vmul.f32 %v1573_v61, %v8840_v40 }
 0x148   : > { %6892 = vmatmul.mubr.msk.f32.gmra.mrb[32].mxu1 %vm838_vm1, %v1202_v33 }
 0x149   : > { %6894 = vmatprep.mubr.msk.f32.mxu1 %vm8175_vm0, %v8176_v6 }
 0x14a   : > { %v8893_v14 = vpop.permute.xlu0 %1600 }
 0x14b   : > { %v1659_v32 = vmul.f32 %v8893_v14, %v8890_v12 }
 0x14c   : > { %6895 = vmatmul.mubr.msk.f32.gmra.mrb[34].mxu1 %vm838_vm1, %v1203_v35  ;;  %v8949_v35 = vpop.permute.xlu1 %1645 }
 0x14d   : > { %6897 = vmatprep.mubr.msk.f32.mxu1 %vm8175_vm0, %v8176_v6  ;;  %v1668_v36 = vmul.f32 %v8949_v35, %v1576_v19 }
 0x14e   : > { %v8907_v51 = vpop.permute.xlu0 %1610 }
 0x14f   : > { %v1661_v17 = vmul.f32 %v8907_v51, %v1569_v22  ;;  %v6221_v22 = vld [vmem:[%s10256_s8 + $0x28] sm:$0xff] }
 0x150   : > { %6898 = vmatmul.mubr.msk.f32.gmra.mrb[36].mxu1 %vm838_vm1, %v1204_v28  ;;  %v1577_v28 = vld [vmem:[#allocation3 + $0x5a] sm:$0xff] }
 0x151   : > { %6900 = vmatprep.mubr.msk.f32.mxu1 %vm8175_vm0, %v8176_v6 }
 0x152   : > { %v8919_v2 = vpop.permute.xlu0 %1620 }
 0x153   : > { %v1663_v4 = vmul.f32 %v8919_v2, %v1571_v18  ;;  %v2068_v18 = vld [vmem:[#allocation3 + $0x23] sm:$0xff] }
 0x154   : > { %6901 = vmatmul.mubr.msk.f32.gmra.mrb[38].mxu1 %vm838_vm1, %v1205_v42 }
 0x155   : > { %6903 = vmatprep.mubr.msk.f32.mxu1 %vm8175_vm0, %v8176_v6 }
 0x156   : > { %v8931_v26 = vpop.permute.xlu0 %1630 }
 0x157   : > { %v1665_v15 = vmul.f32 %v8931_v26, %v1573_v61  ;;  %v2072_v61 = vld [vmem:[#allocation3 + $0x43] sm:$0xff] }
 0x158   : > { %6904 = vmatmul.mubr.msk.f32.gmra.mrb[40].mxu1 %vm838_vm1, %v1206_v45  ;;  %v8961_v45 = vpop.permute.xlu1 %1655 }
 0x159   : > { %6906 = vmatprep.mubr.msk.f32.mxu1 %vm8175_vm0, %v8176_v6  ;;  %v1670_v48 = vmul.f32 %v8961_v45, %v1578_v38 }
 0x15a   : > { %v8943_v30 = vpop.permute.xlu0 %1640 }
 0x15b   : > { %v1667_v33 = vmul.f32 %v8943_v30, %v1575_v21  ;;  %v2076_v21 = vld [vmem:[#allocation3 + $0x63] sm:$0xff] }
 0x15c   : > { %6907 = vmatmul.mubr.msk.f32.gmra.mrb[42].mxu1 %vm838_vm1, %v1207_v50  ;;  %v1868_v50 = vmul.f32 %v8890_v12, %v8799_v13  ;;  %v1866_v12 = vld [vmem:[#allocation3 + $0x62] sm:$0xff] }
 0x15d   : > { %6909 = vmatprep.mubr.msk.f32.mxu1 %vm8175_vm0, %v8176_v6 }
 0x15e   : > { %v8955_v39 = vpop.permute.xlu0 %1650 }
 0x15f   : > { %v1669_v42 = vmul.f32 %v8955_v39, %v1577_v28 }
 0x160   : > { %6910 = vmatmul.mubr.msk.f32.gmra.mrb[44].mxu1 %vm838_vm1, %v1208_v53  ;;  %v1869_v53 = vmul.f32 %v1568_v47, %v8809_v23  ;;  %v1867_v47 = vld [vmem:[#allocation3 + $0x6a] sm:$0xf] }
 0x161   : > { %6912 = vmatprep.mubr.msk.f32.mxu1 %vm8175_vm0, %v8176_v6 }
 0x164   : > { %6913 = vmatmul.mubr.msk.f32.gmra.mrb[46].mxu1 %vm838_vm1, %v1209_v41  ;;  %v1871_v41 = vmul.f32 %v1570_v25, %v8822_v31  ;;  %v2066_v25 = vld [vmem:[#allocation3 + $0x13] sm:$0xff] }
 0x165   : > { %6915 = vmatprep.mubr.msk.f32.mxu1 %vm8175_vm0, %v8176_v6 }
 0x168   : > { %6916 = vmatmul.mubr.msk.f32.gmra.mrb[48].mxu1 %vm838_vm1, %v1210_v60  ;;  %v1873_v60 = vmul.f32 %v1572_v5, %v8834_v37  ;;  %v2070_v5 = vld [vmem:[#allocation3 + $0x33] sm:$0xff] }
 0x169   : > { %6918 = vmatprep.mubr.msk.f32.mxu1 %vm8175_vm0, %v8176_v6 }
 0x16c   : > { %6919 = vmatmul.mubr.msk.f32.gmra.mrb[50].mxu1 %vm838_vm1, %v1211_v0  ;;  %v1875_v0 = vmul.f32 %v1574_v20, %v8846_v43  ;;  %v2074_v20 = vld [vmem:[#allocation3 + $0x53] sm:$0xff] }
 0x16d   : > { %6923 = vmatprep.mubr.msk.f32.mxu1 %vm8175_vm0, %v8176_v6 }
 0x170   : > { %6924 = vmatmul.mubr.msk.f32.vlgmr.msra.gmra.mrb[26].mxu1 %vm838_vm1, %v1658_v9  ;;  %v1877_v9 = vmul.f32 %v1576_v19, %v8858_v52  ;;  %v2262_v19 = vld [vmem:[#allocation3 + $0xc] sm:$0xff] }
 0x171   : > { %6963 = vmatpush3.msra.mxu1 %v6193_v11  ;;  %6926 = vmatprep.mubr.msk.f32.mxu1 %vm8175_vm0, %v8176_v6  ;;  %v1878_v11 = vmul.f32 %v1577_v28, %v8864_v57  ;;  %v6235_v28 = vld [vmem:[%s10256_s8 + $0x30] sm:$0xff] }
 0x172   : > { %7003 = vmatprep.subr.mxu1 %v8176_v6 }
 0x174   : > { %6927 = vmatmul.mubr.msk.f32.gmra.mrb[28].mxu1 %vm838_vm1, %v1659_v32  ;;  %v1879_v32 = vmul.f32 %v1866_v12, %v8870_v59 }
 0x175   : > { %6929 = vmatprep.mubr.msk.f32.mxu1 %vm8175_vm0, %v8176_v6 }
 0x178   : > { %6930 = vmatmul.mubr.msk.f32.gmra.mrb[30].mxu1 %vm838_vm1, %v1660_v16  ;;  %v1880_v16 = vmul.f32 %v1867_v47, %v8876_v63 }
 0x179   : > { %6932 = vmatprep.mubr.msk.f32.mxu1 %vm8175_vm0, %v8176_v6 }
 0x17c   : > { %6933 = vmatmul.mubr.msk.f32.gmra.mrb[32].mxu1 %vm838_vm1, %v1661_v17  ;;  %v2065_v17 = vld [vmem:[#allocation3 + $0xb] sm:$0xff] }
 0x17d   : > { %6935 = vmatprep.mubr.msk.f32.mxu1 %vm8175_vm0, %v8176_v6 }
 0x180   : > { %6936 = vmatmul.mubr.msk.f32.gmra.mrb[34].mxu1 %vm838_vm1, %v1662_v55  ;;  %v2067_v55 = vld [vmem:[#allocation3 + $0x1b] sm:$0xff] }
 0x181   : > { %6938 = vmatprep.mubr.msk.f32.mxu1 %vm8175_vm0, %v8176_v6 }
 0x184   : > { %6939 = vmatmul.mubr.msk.f32.gmra.mrb[36].mxu1 %vm838_vm1, %v1663_v4  ;;  %v2069_v4 = vld [vmem:[#allocation3 + $0x2b] sm:$0xff] }
 0x185   : > { %6941 = vmatprep.mubr.msk.f32.mxu1 %vm8175_vm0, %v8176_v6 }
 0x188   : > { %6942 = vmatmul.mubr.msk.f32.gmra.mrb[38].mxu1 %vm838_vm1, %v1664_v10  ;;  %v2071_v10 = vld [vmem:[#allocation3 + $0x3b] sm:$0xff] }
 0x189   : > { %6944 = vmatprep.mubr.msk.f32.mxu1 %vm8175_vm0, %v8176_v6 }
 0x18c   : > { %6945 = vmatmul.mubr.msk.f32.gmra.mrb[40].mxu1 %vm838_vm1, %v1665_v15  ;;  %v2073_v15 = vld [vmem:[#allocation3 + $0x4b] sm:$0xff] }
 0x18d   : > { %6947 = vmatprep.mubr.msk.f32.mxu1 %vm8175_vm0, %v8176_v6 }
 0x190   : > { %6948 = vmatmul.mubr.msk.f32.gmra.mrb[42].mxu1 %vm838_vm1, %v1666_v29  ;;  %v2075_v29 = vld [vmem:[#allocation3 + $0x5b] sm:$0xff] }
 0x191   : > { %6950 = vmatprep.mubr.msk.f32.mxu1 %vm8175_vm0, %v8176_v6 }
 0x194   : > { %6951 = vmatmul.mubr.msk.f32.gmra.mrb[44].mxu1 %vm838_vm1, %v1667_v33  ;;  %v2077_v33 = vld [vmem:[#allocation3 + $0x6b] sm:$0xf] }
 0x195   : > { %6953 = vmatprep.mubr.msk.f32.mxu1 %vm8175_vm0, %v8176_v6 }
 0x198   : > { %6954 = vmatmul.mubr.msk.f32.gmra.mrb[46].mxu1 %vm838_vm1, %v1668_v36  ;;  %v2275_v36 = vmul.f32 %v2262_v19, %v8882_v7  ;;  %v2687_v19 = vld [vmem:[#allocation3 + $0x3d] sm:$0xff] }
 0x199   : > { %6956 = vmatprep.mubr.msk.f32.mxu1 %vm8175_vm0, %v8176_v6 }
 0x19c   : > { %6957 = vmatmul.mubr.msk.f32.gmra.mrb[48].mxu1 %vm838_vm1, %v1669_v42  ;;  %v2263_v42 = vld [vmem:[#allocation3 + $0x14] sm:$0xff] }
 0x19d   : > { %6959 = vmatprep.mubr.msk.f32.mxu1 %vm8175_vm0, %v8176_v6  ;;  %v2276_v38 = vmul.f32 %v2263_v42, %v8893_v14 }
 0x1a0   : > { %6960 = vmatmul.mubr.msk.f32.gmra.mrb[50].mxu1 %vm838_vm1, %v1670_v48  ;;  %v2264_v48 = vld [vmem:[#allocation3 + $0x1c] sm:$0xff] }
 0x1a1   : > { %6964 = vmatprep.mubr.msk.f32.mxu1 %vm8175_vm0, %v8176_v6 }
 0x1a4   : > { %6965 = vmatmul.mubr.msk.f32.vlgmr.msra.gmra.mrb[26].mxu1 %vm838_vm1, %v1868_v50  ;;  %v2277_v50 = vmul.f32 %v2264_v48, %v8901_v54 }
 0x1a5   : > { %7004 = vmatpush3.msra.mxu1 %v6207_v44  ;;  %6967 = vmatprep.mubr.msk.f32.mxu1 %vm8175_vm0, %v8176_v6  ;;  %v2265_v44 = vld [vmem:[#allocation3 + $0x24] sm:$0xff] }
 0x1a6   : > { %7044 = vmatprep.subr.mxu1 %v8176_v6 }
 0x1a8   : > { %6968 = vmatmul.mubr.msk.f32.gmra.mrb[28].mxu1 %vm838_vm1, %v1869_v53  ;;  %v2278_v53 = vmul.f32 %v2265_v44, %v8907_v51 }
 0x1a9   : > { %6970 = vmatprep.mubr.msk.f32.mxu1 %vm8175_vm0, %v8176_v6 }
 0x1ac   : > { %6971 = vmatmul.mubr.msk.f32.gmra.mrb[30].mxu1 %vm838_vm1, %v1870_v56  ;;  %v2266_v56 = vld [vmem:[#allocation3 + $0x2c] sm:$0xff] }
 0x1ad   : > { %6973 = vmatprep.mubr.msk.f32.mxu1 %vm8175_vm0, %v8176_v6 }
 0x1b0   : > { %6974 = vmatmul.mubr.msk.f32.gmra.mrb[32].mxu1 %vm838_vm1, %v1871_v41  ;;  %v2279_v41 = vmul.f32 %v2266_v56, %v8913_v46 }
 0x1b1   : > { %6976 = vmatprep.mubr.msk.f32.mxu1 %vm8175_vm0, %v8176_v6 }
 0x1b4   : > { %6977 = vmatmul.mubr.msk.f32.gmra.mrb[34].mxu1 %vm838_vm1, %v1872_v58  ;;  %v2267_v58 = vld [vmem:[#allocation3 + $0x34] sm:$0xff] }
 0x1b5   : > { %6979 = vmatprep.mubr.msk.f32.mxu1 %vm8175_vm0, %v8176_v6 }
 0x1b8   : > { %6980 = vmatmul.mubr.msk.f32.gmra.mrb[36].mxu1 %vm838_vm1, %v1873_v60  ;;  %v2280_v60 = vmul.f32 %v2267_v58, %v8919_v2 }
 0x1b9   : > { %6982 = vmatprep.mubr.msk.f32.mxu1 %vm8175_vm0, %v8176_v6 }
 0x1bc   : > { %6983 = vmatmul.mubr.msk.f32.gmra.mrb[38].mxu1 %vm838_vm1, %v1874_v62  ;;  %v2268_v62 = vld [vmem:[#allocation3 + $0x3c] sm:$0xff] }
 0x1bd   : > { %6985 = vmatprep.mubr.msk.f32.mxu1 %vm8175_vm0, %v8176_v6 }
 0x1c0   : > { %6986 = vmatmul.mubr.msk.f32.gmra.mrb[40].mxu1 %vm838_vm1, %v1875_v0  ;;  %v2281_v0 = vmul.f32 %v2268_v62, %v8925_v8 }
 0x1c1   : > { %6988 = vmatprep.mubr.msk.f32.mxu1 %vm8175_vm0, %v8176_v6 }
 0x1c4   : > { %6989 = vmatmul.mubr.msk.f32.gmra.mrb[42].mxu1 %vm838_vm1, %v1876_v1  ;;  %v2269_v1 = vld [vmem:[#allocation3 + $0x44] sm:$0xff] }
 0x1c5   : > { %6991 = vmatprep.mubr.msk.f32.mxu1 %vm8175_vm0, %v8176_v6 }
 0x1c8   : > { %6992 = vmatmul.mubr.msk.f32.gmra.mrb[44].mxu1 %vm838_vm1, %v1877_v9  ;;  %v2282_v9 = vmul.f32 %v2269_v1, %v8931_v26 }
 0x1c9   : > { %6994 = vmatprep.mubr.msk.f32.mxu1 %vm8175_vm0, %v8176_v6 }
 0x1cc   : > { %6995 = vmatmul.mubr.msk.f32.gmra.mrb[46].mxu1 %vm838_vm1, %v1878_v11  ;;  %v2270_v11 = vld [vmem:[#allocation3 + $0x4c] sm:$0xff] }
 0x1cd   : > { %6997 = vmatprep.mubr.msk.f32.mxu1 %vm8175_vm0, %v8176_v6  ;;  %v2283_v12 = vmul.f32 %v2270_v11, %v8937_v24 }
 0x1d0   : > { %6998 = vmatmul.mubr.msk.f32.gmra.mrb[48].mxu1 %vm838_vm1, %v1879_v32  ;;  %v2271_v32 = vld [vmem:[#allocation3 + $0x54] sm:$0xff] }
 0x1d1   : > { %7000 = vmatprep.mubr.msk.f32.mxu1 %vm8175_vm0, %v8176_v6  ;;  %v2284_v47 = vmul.f32 %v2271_v32, %v8943_v30 }
 0x1d4   : > { %7001 = vmatmul.mubr.msk.f32.gmra.mrb[50].mxu1 %vm838_vm1, %v1880_v16  ;;  %v2272_v16 = vld [vmem:[#allocation3 + $0x5c] sm:$0xff] }
 0x1d5   : > { %7005 = vmatprep.mubr.msk.f32.mxu1 %vm8175_vm0, %v8176_v6 }
 0x1d8   : > { %7006 = vmatmul.mubr.msk.f32.vlgmr.msra.gmra.mrb[26].mxu1 %vm838_vm1, %v2065_v17  ;;  %v2273_v17 = vld [vmem:[#allocation3 + $0x64] sm:$0xff] }
 0x1d9   : > { %7045 = vmatpush3.msra.mxu1 %v6221_v22  ;;  %7008 = vmatprep.mubr.msk.f32.mxu1 %vm8175_vm0, %v8176_v6  ;;  %v2285_v22 = vmul.f32 %v2272_v16, %v8949_v35 }
 0x1da   : > { %7085 = vmatprep.subr.mxu1 %v8176_v6 }
 0x1dc   : > { %7009 = vmatmul.mubr.msk.f32.gmra.mrb[28].mxu1 %vm838_vm1, %v2066_v25  ;;  %v2286_v25 = vmul.f32 %v2273_v17, %v8955_v39 }
 0x1dd   : > { %7011 = vmatprep.mubr.msk.f32.mxu1 %vm8175_vm0, %v8176_v6 }
 0x1e0   : > { %7012 = vmatmul.mubr.msk.f32.gmra.mrb[30].mxu1 %vm838_vm1, %v2067_v55  ;;  %v2274_v55 = vld [vmem:[#allocation3 + $0x6c] sm:$0xf] }
 0x1e1   : > { %7014 = vmatprep.mubr.msk.f32.mxu1 %vm8175_vm0, %v8176_v6 }
 0x1e4   : > { %7015 = vmatmul.mubr.msk.f32.gmra.mrb[32].mxu1 %vm838_vm1, %v2068_v18  ;;  %v2287_v18 = vmul.f32 %v2274_v55, %v8961_v45 }
 0x1e5   : > { %7017 = vmatprep.mubr.msk.f32.mxu1 %vm8175_vm0, %v8176_v6 }
 0x1e8   : > { %7018 = vmatmul.mubr.msk.f32.gmra.mrb[34].mxu1 %vm838_vm1, %v2069_v4  ;;  %v2485_v4 = vmul.f32 %v2263_v42, %v8799_v13  ;;  %v2487_v13 = vmul.f32 %v2265_v44, %v8815_v27  ;;  %v2490_v27 = vmul.f32 %v2268_v62, %v8834_v37  ;;  %v2493_v37 = vmul.f32 %v2271_v32, %v8852_v49  ;;  %v2690_v42 = vld [vmem:[#allocation3 + $0x55] sm:$0xff] }
 0x1e9   : > { %7020 = vmatprep.mubr.msk.f32.mxu1 %vm8175_vm0, %v8176_v6  ;;  %v2694_v44 = vld [vmem:[#allocation3 + $0x75] sm:$0xf] }
 0x1ea   : > { %v2887_v32 = vld [vmem:[#allocation3 + $0x56] sm:$0xff] }
 0x1ec   : > { %7021 = vmatmul.mubr.msk.f32.gmra.mrb[36].mxu1 %vm838_vm1, %v2070_v5  ;;  %v6249_v5 = vld [vmem:[%s10256_s8 + $0x38] sm:$0xff] }
 0x1ed   : > { %7023 = vmatprep.mubr.msk.f32.mxu1 %vm8175_vm0, %v8176_v6 }
 0x1f0   : > { %7024 = vmatmul.mubr.msk.f32.gmra.mrb[38].mxu1 %vm838_vm1, %v2071_v10  ;;  %v2486_v10 = vmul.f32 %v2264_v48, %v8809_v23  ;;  %v2489_v23 = vmul.f32 %v2267_v58, %v8828_v34  ;;  %v2492_v34 = vmul.f32 %v2270_v11, %v8846_v43  ;;  %v2495_v43 = vmul.f32 %v2273_v17, %v8864_v57  ;;  %v6263_v57 = vld [vmem:[%s10256_s8 + $0x40] sm:$0xff]  ;;  %v2692_v48 = vld [vmem:[#allocation3 + $0x65] sm:$0xff] }
 0x1f1   : > { %7026 = vmatprep.mubr.msk.f32.mxu1 %vm8175_vm0, %v8176_v6  ;;  %v2885_v11 = vld [vmem:[#allocation3 + $0x46] sm:$0xff]  ;;  %v2891_v17 = vld [vmem:[#allocation3 + $0x76] sm:$0xf] }
 0x1f4   : > { %7027 = vmatmul.mubr.msk.f32.gmra.mrb[40].mxu1 %vm838_vm1, %v2072_v61  ;;  %v2488_v61 = vmul.f32 %v2266_v56, %v8822_v31  ;;  %v2491_v31 = vmul.f32 %v2269_v1, %v8840_v40  ;;  %v2494_v40 = vmul.f32 %v2272_v16, %v8858_v52  ;;  %v2883_v1 = vld [vmem:[#allocation3 + $0x36] sm:$0xff]  ;;  %v2889_v16 = vld [vmem:[#allocation3 + $0x66] sm:$0xff] }
 0x1f5   : > { %7029 = vmatprep.mubr.msk.f32.mxu1 %vm8175_vm0, %v8176_v6 }
 0x1f8   : > { %7030 = vmatmul.mubr.msk.f32.gmra.mrb[42].mxu1 %vm838_vm1, %v2073_v15  ;;  %v2483_v15 = vld [vmem:[#allocation3 + $0x6c] sm:$0xff] }
 0x1f9   : > { %7032 = vmatprep.mubr.msk.f32.mxu1 %vm8175_vm0, %v8176_v6  ;;  %v2496_v49 = vmul.f32 %v2483_v15, %v8870_v59  ;;  %v2683_v59 = vld [vmem:[#allocation3 + $0x1d] sm:$0xff] }
 0x1fc   : > { %7033 = vmatmul.mubr.msk.f32.gmra.mrb[44].mxu1 %vm838_vm1, %v2074_v20  ;;  %v2484_v20 = vld [vmem:[#allocation3 + $0x74] sm:$0xf] }
 0x1fd   : > { %7035 = vmatprep.mubr.msk.f32.mxu1 %vm8175_vm0, %v8176_v6  ;;  %v2497_v52 = vmul.f32 %v2484_v20, %v8876_v63  ;;  %v2684_v63 = vld [vmem:[#allocation3 + $0x25] sm:$0xff] }
 0x200   : > { %7036 = vmatmul.mubr.msk.f32.gmra.mrb[46].mxu1 %vm838_vm1, %v2075_v29  ;;  %v2682_v29 = vld [vmem:[#allocation3 + $0x15] sm:$0xff] }
 0x201   : > { %7038 = vmatprep.mubr.msk.f32.mxu1 %vm8175_vm0, %v8176_v6 }
 0x204   : > { %7039 = vmatmul.mubr.msk.f32.gmra.mrb[48].mxu1 %vm838_vm1, %v2076_v21  ;;  %v2685_v21 = vld [vmem:[#allocation3 + $0x2d] sm:$0xff] }
 0x205   : > { %7041 = vmatprep.mubr.msk.f32.mxu1 %vm8175_vm0, %v8176_v6 }
 0x208   : > { %7042 = vmatmul.mubr.msk.f32.gmra.mrb[50].mxu1 %vm838_vm1, %v2077_v33  ;;  %v2686_v33 = vld [vmem:[#allocation3 + $0x35] sm:$0xff] }
 0x209   : > { %7046 = vmatprep.mubr.msk.f32.mxu1 %vm8175_vm0, %v8176_v6 }
 0x20c   : > { %7047 = vmatmul.mubr.msk.f32.vlgmr.msra.gmra.mrb[26].mxu1 %vm838_vm1, %v2275_v36  ;;  %v2688_v36 = vld [vmem:[#allocation3 + $0x45] sm:$0xff] }
 0x20d   : > { %7086 = vmatpush3.msra.mxu1 %v6235_v28  ;;  %7049 = vmatprep.mubr.msk.f32.mxu1 %vm8175_vm0, %v8176_v6  ;;  %v2689_v28 = vld [vmem:[#allocation3 + $0x4d] sm:$0xff] }
 0x20e   : > { %7126 = vmatprep.subr.mxu1 %v8176_v6 }
 0x210   : > { %7050 = vmatmul.mubr.msk.f32.gmra.mrb[28].mxu1 %vm838_vm1, %v2276_v38  ;;  %v2691_v38 = vld [vmem:[#allocation3 + $0x5d] sm:$0xff] }
 0x211   : > { %7052 = vmatprep.mubr.msk.f32.mxu1 %vm8175_vm0, %v8176_v6 }
 0x214   : > { %7053 = vmatmul.mubr.msk.f32.gmra.mrb[30].mxu1 %vm838_vm1, %v2277_v50  ;;  %v2693_v50 = vld [vmem:[#allocation3 + $0x6d] sm:$0xff] }
 0x215   : > { %7055 = vmatprep.mubr.msk.f32.mxu1 %vm8175_vm0, %v8176_v6 }
 0x218   : > { %7056 = vmatmul.mubr.msk.f32.gmra.mrb[32].mxu1 %vm838_vm1, %v2278_v53  ;;  %v2879_v53 = vld [vmem:[#allocation3 + $0x16] sm:$0xff] }
 0x219   : > { %7058 = vmatprep.mubr.msk.f32.mxu1 %vm8175_vm0, %v8176_v6  ;;  %v2892_v56 = vmul.f32 %v2879_v53, %v8882_v7 }
 0x21c   : > { %7059 = vmatmul.mubr.msk.f32.gmra.mrb[34].mxu1 %vm838_vm1, %v2279_v41  ;;  %v2880_v41 = vld [vmem:[#allocation3 + $0x1e] sm:$0xff] }
 0x21d   : > { %7061 = vmatprep.mubr.msk.f32.mxu1 %vm8175_vm0, %v8176_v6  ;;  %v2893_v58 = vmul.f32 %v2880_v41, %v8893_v14  ;;  %v2896_v14 = vmul.f32 %v2883_v1, %v8913_v46 }
 0x220   : > { %7062 = vmatmul.mubr.msk.f32.gmra.mrb[36].mxu1 %vm838_vm1, %v2280_v60  ;;  %v2881_v60 = vld [vmem:[#allocation3 + $0x26] sm:$0xff] }
 0x221   : > { %7064 = vmatprep.mubr.msk.f32.mxu1 %vm8175_vm0, %v8176_v6  ;;  %v2894_v62 = vmul.f32 %v2881_v60, %v8901_v54 }
 0x224   : > { %7065 = vmatmul.mubr.msk.f32.gmra.mrb[38].mxu1 %vm838_vm1, %v2281_v0  ;;  %v2882_v0 = vld [vmem:[#allocation3 + $0x2e] sm:$0xff] }
 0x225   : > { %7067 = vmatprep.mubr.msk.f32.mxu1 %vm8175_vm0, %v8176_v6  ;;  %v2895_v7 = vmul.f32 %v2882_v0, %v8907_v51  ;;  %v2898_v51 = vmul.f32 %v2885_v11, %v8925_v8 }
 0x228   : > { %7068 = vmatmul.mubr.msk.f32.gmra.mrb[40].mxu1 %vm838_vm1, %v2282_v9  ;;  %v2884_v9 = vld [vmem:[#allocation3 + $0x3e] sm:$0xff] }
 0x229   : > { %7070 = vmatprep.mubr.msk.f32.mxu1 %vm8175_vm0, %v8176_v6  ;;  %v2897_v54 = vmul.f32 %v2884_v9, %v8919_v2  ;;  %v2900_v2 = vmul.f32 %v2887_v32, %v8937_v24 }
 0x22c   : > { %7071 = vmatmul.mubr.msk.f32.gmra.mrb[42].mxu1 %vm838_vm1, %v2283_v12  ;;  %v2886_v12 = vld [vmem:[#allocation3 + $0x4e] sm:$0xff] }
 0x22d   : > { %7073 = vmatprep.mubr.msk.f32.mxu1 %vm8175_vm0, %v8176_v6  ;;  %v2899_v46 = vmul.f32 %v2886_v12, %v8931_v26  ;;  %v2902_v26 = vmul.f32 %v2889_v16, %v8949_v35  ;;  %v3142_v35 = vld [vmem:[%s10259_s11] sm:$0xff] }
 0x22e   : > { %7209 = vmatpush3.msra.mxu0 %v3142_v35 }
 0x22f   : > { %7712 = vmatprep.subr.bf16.mxu0 %v8174_v3 }
 0x230   : > { %7074 = vmatmul.mubr.msk.f32.gmra.mrb[44].mxu1 %vm838_vm1, %v2284_v47  ;;  %v2888_v47 = vld [vmem:[#allocation3 + $0x5e] sm:$0xff] }
 0x231   : > { %7076 = vmatprep.mubr.msk.f32.mxu1 %vm8175_vm0, %v8176_v6  ;;  %v2901_v8 = vmul.f32 %v2888_v47, %v8943_v30  ;;  %v2904_v30 = vmul.f32 %v2891_v17, %v8961_v45  ;;  %v9288_v45 = vld [vmem:[%s10258_s10] ss:$0 sm:$0xff] }
 0x234   : > { %7077 = vmatmul.mubr.msk.f32.gmra.mrb[46].mxu1 %vm838_vm1, %v2285_v22  ;;  %v2890_v22 = vld [vmem:[#allocation3 + $0x6e] sm:$0xff] }
 0x235   : > { %7079 = vmatprep.mubr.msk.f32.mxu1 %vm8175_vm0, %v8176_v6  ;;  %v2903_v24 = vmul.f32 %v2890_v22, %v8955_v39  ;;  %v9283_v39 = vld [vmem:[%s10257_s9] ss:$0 sm:$0xff] }
 0x238   : > { %7080 = vmatmul.mubr.msk.f32.gmra.mrb[48].mxu1 %vm838_vm1, %v2286_v25 }
 0x239   : > { %7082 = vmatprep.mubr.msk.f32.mxu1 %vm8175_vm0, %v8176_v6 }
 0x23c   : > { %7083 = vmatmul.mubr.msk.f32.gmra.mrb[50].mxu1 %vm838_vm1, %v2287_v18 }
 0x23d   : > { %7087 = vmatprep.mubr.msk.f32.mxu1 %vm8175_vm0, %v8176_v6 }
 0x240   : > { %7088 = vmatmul.mubr.msk.f32.vlgmr.msra.gmra.mrb[26].mxu1 %vm838_vm1, %v2485_v4  ;;  %v6294_v4 = vld [vmem:[%s10253_s5 + $0x20] sm:$0xff] }
 0x241   : > { %7127 = vmatpush3.msra.mxu1 %v6249_v5  ;;  %7090 = vmatprep.mubr.msk.f32.mxu1 %vm8175_vm0, %v8176_v6  ;;  %v6295_v5 = vld [vmem:[%s10253_s5 + $0x28] sm:$0xff] }
 0x242   : > { %7167 = vmatprep.subr.mxu1 %v8176_v6 }
 0x244   : > { %7091 = vmatmul.mubr.msk.f32.gmra.mrb[28].mxu1 %vm838_vm1, %v2486_v10 }
 0x245   : > { %7093 = vmatprep.mubr.msk.f32.mxu1 %vm8175_vm0, %v8176_v6 }
 0x248   : > { %7094 = vmatmul.mubr.msk.f32.gmra.mrb[30].mxu1 %vm838_vm1, %v2487_v13 }
 0x249   : > { %7096 = vmatprep.mubr.msk.f32.mxu1 %vm8175_vm0, %v8176_v6 }
 0x24c   : > { %7097 = vmatmul.mubr.msk.f32.gmra.mrb[32].mxu1 %vm838_vm1, %v2488_v61  ;;  %v7713_v61 = vpack.c.bf16 %v6295_v5, %v6294_v4 }
 0x24d   : > { %7099 = vmatprep.mubr.msk.f32.mxu1 %vm8175_vm0, %v8176_v6 }
 0x250   : > { %7100 = vmatmul.mubr.msk.f32.gmra.mrb[34].mxu1 %vm838_vm1, %v2489_v23 }
 0x251   : > { %7102 = vmatprep.mubr.msk.f32.mxu1 %vm8175_vm0, %v8176_v6 }
 0x254   : > { %7103 = vmatmul.mubr.msk.f32.gmra.mrb[36].mxu1 %vm838_vm1, %v2490_v27 }
 0x255   : > { %7105 = vmatprep.mubr.msk.f32.mxu1 %vm8175_vm0, %v8176_v6 }
 0x258   : > { %7106 = vmatmul.mubr.msk.f32.gmra.mrb[38].mxu1 %vm838_vm1, %v2491_v31 }
 0x259   : > { %7108 = vmatprep.mubr.msk.f32.mxu1 %vm8175_vm0, %v8176_v6 }
 0x25c   : > { %7109 = vmatmul.mubr.msk.f32.gmra.mrb[40].mxu1 %vm838_vm1, %v2492_v34  ;;  %v6296_v34 = vld [vmem:[%s10253_s5 + $0x30] sm:$0xff] }
 0x25d   : > { %7111 = vmatprep.mubr.msk.f32.mxu1 %vm8175_vm0, %v8176_v6 }
 0x260   : > { %7112 = vmatmul.mubr.msk.f32.gmra.mrb[42].mxu1 %vm838_vm1, %v2493_v37  ;;  %v6297_v37 = vld [vmem:[%s10253_s5 + $0x38] sm:$0xff] }
 0x261   : > { %7114 = vmatprep.mubr.msk.f32.mxu1 %vm8175_vm0, %v8176_v6  ;;  %v7716_v15 = vpack.c.bf16 %v6297_v37, %v6296_v34 }
 0x264   : > { %7115 = vmatmul.mubr.msk.f32.gmra.mrb[44].mxu1 %vm838_vm1, %v2494_v40 }
 0x265   : > { %7117 = vmatprep.mubr.msk.f32.mxu1 %vm8175_vm0, %v8176_v6 }
 0x268   : > { %7118 = vmatmul.mubr.msk.f32.gmra.mrb[46].mxu1 %vm838_vm1, %v2495_v43 }
 0x269   : > { %7120 = vmatprep.mubr.msk.f32.mxu1 %vm8175_vm0, %v8176_v6 }
 0x26c   : > { %7121 = vmatmul.mubr.msk.f32.gmra.mrb[48].mxu1 %vm838_vm1, %v2496_v49 }
 0x26d   : > { %7123 = vmatprep.mubr.msk.f32.mxu1 %vm8175_vm0, %v8176_v6 }
 0x270   : > { %7124 = vmatmul.mubr.msk.f32.gmra.mrb[50].mxu1 %vm838_vm1, %v2497_v52 }
 0x271   : > { %7128 = vmatprep.mubr.msk.f32.mxu1 %vm8175_vm0, %v8176_v6 }
 0x274   : > { %7129 = vmatmul.mubr.msk.f32.vlgmr.msra.gmra.mrb[26].mxu1 %vm838_vm1, %v2682_v29 }
 0x275   : > { %7168 = vmatpush3.msra.mxu1 %v6263_v57  ;;  %7131 = vmatprep.mubr.msk.f32.mxu1 %vm8175_vm0, %v8176_v6 }
 0x276   : > { %7665 = vmatprep.subr.mxu1 %v8176_v6 }
 0x278   : > { %7132 = vmatmul.mubr.msk.f32.gmra.mrb[28].mxu1 %vm838_vm1, %v2683_v59 }
 0x279   : > { %7134 = vmatprep.mubr.msk.f32.mxu1 %vm8175_vm0, %v8176_v6 }
 0x27c   : > { %7135 = vmatmul.mubr.msk.f32.gmra.mrb[30].mxu1 %vm838_vm1, %v2684_v63 }
 0x27d   : > { %7137 = vmatprep.mubr.msk.f32.mxu1 %vm8175_vm0, %v8176_v6 }
 0x280   : > { %7138 = vmatmul.mubr.msk.f32.gmra.mrb[32].mxu1 %vm838_vm1, %v2685_v21 }
 0x281   : > { %7140 = vmatprep.mubr.msk.f32.mxu1 %vm8175_vm0, %v8176_v6 }
 0x284   : > { %7141 = vmatmul.mubr.msk.f32.gmra.mrb[34].mxu1 %vm838_vm1, %v2686_v33 }
 0x285   : > { %7143 = vmatprep.mubr.msk.f32.mxu1 %vm8175_vm0, %v8176_v6 }
 0x288   : > { %7144 = vmatmul.mubr.msk.f32.gmra.mrb[36].mxu1 %vm838_vm1, %v2687_v19 }
 0x289   : > { %7146 = vmatprep.mubr.msk.f32.mxu1 %vm8175_vm0, %v8176_v6 }
 0x28c   : > { %7147 = vmatmul.mubr.msk.f32.gmra.mrb[38].mxu1 %vm838_vm1, %v2688_v36 }
 0x28d   : > { %7149 = vmatprep.mubr.msk.f32.mxu1 %vm8175_vm0, %v8176_v6 }
 0x290   : > { %7150 = vmatmul.mubr.msk.f32.gmra.mrb[40].mxu1 %vm838_vm1, %v2689_v28 }
 0x291   : > { %7152 = vmatprep.mubr.msk.f32.mxu1 %vm8175_vm0, %v8176_v6 }
 0x294   : > { %7153 = vmatmul.mubr.msk.f32.gmra.mrb[42].mxu1 %vm838_vm1, %v2690_v42 }
 0x295   : > { %7155 = vmatprep.mubr.msk.f32.mxu1 %vm8175_vm0, %v8176_v6 }
 0x298   : > { %7156 = vmatmul.mubr.msk.f32.gmra.mrb[44].mxu1 %vm838_vm1, %v2691_v38 }
 0x299   : > { %7158 = vmatprep.mubr.msk.f32.mxu1 %vm8175_vm0, %v8176_v6 }
 0x29c   : > { %7159 = vmatmul.mubr.msk.f32.gmra.mrb[46].mxu1 %vm838_vm1, %v2692_v48 }
 0x29d   : > { %7161 = vmatprep.mubr.msk.f32.mxu1 %vm8175_vm0, %v8176_v6 }
 0x2a0   : > { %7162 = vmatmul.mubr.msk.f32.gmra.mrb[48].mxu1 %vm838_vm1, %v2693_v50 }
 0x2a1   : > { %7164 = vmatprep.mubr.msk.f32.mxu1 %vm8175_vm0, %v8176_v6 }
 0x2a4   : > { %7165 = vmatmul.mubr.msk.f32.gmra.mrb[50].mxu1 %vm838_vm1, %v2694_v44 }
 0x2a5   : > { %7169 = vmatprep.mubr.msk.f32.mxu1 %vm8175_vm0, %v8176_v6 }
 0x2a8   : > { %7170 = vmatmul.mubr.msk.f32.vlgmr.msra.gmra.mrb[26].mxu1 %vm838_vm1, %v2892_v56 }
 0x2a9   : > { %7172 = vmatprep.mubr.msk.f32.mxu1 %vm8175_vm0, %v8176_v6 }
 0x2ac   : > { %7173 = vmatmul.mubr.msk.f32.gmra.mrb[28].mxu1 %vm838_vm1, %v2893_v58 }
 0x2ad   : > { %7175 = vmatprep.mubr.msk.f32.mxu1 %vm8175_vm0, %v8176_v6 }
 0x2b0   : > { %7176 = vmatmul.mubr.msk.f32.gmra.mrb[30].mxu1 %vm838_vm1, %v2894_v62 }
 0x2b1   : > { %7178 = vmatprep.mubr.msk.f32.mxu1 %vm8175_vm0, %v8176_v6 }
 0x2b4   : > { %7179 = vmatmul.mubr.msk.f32.gmra.mrb[32].mxu1 %vm838_vm1, %v2895_v7 }
 0x2b5   : > { %7181 = vmatprep.mubr.msk.f32.mxu1 %vm8175_vm0, %v8176_v6 }
 0x2b8   : > { %7182 = vmatmul.mubr.msk.f32.gmra.mrb[34].mxu1 %vm838_vm1, %v2896_v14 }
 0x2b9   : > { %7184 = vmatprep.mubr.msk.f32.mxu1 %vm8175_vm0, %v8176_v6 }
 0x2bc   : > { %7185 = vmatmul.mubr.msk.f32.gmra.mrb[36].mxu1 %vm838_vm1, %v2897_v54 }
 0x2bd   : > { %7187 = vmatprep.mubr.msk.f32.mxu1 %vm8175_vm0, %v8176_v6 }
 0x2c0   : > { %7188 = vmatmul.mubr.msk.f32.gmra.mrb[38].mxu1 %vm838_vm1, %v2898_v51 }
 0x2c1   : > { %7190 = vmatprep.mubr.msk.f32.mxu1 %vm8175_vm0, %v8176_v6 }
 0x2c4   : > { %7191 = vmatmul.mubr.msk.f32.gmra.mrb[40].mxu1 %vm838_vm1, %v2899_v46 }
 0x2c5   : > { %7193 = vmatprep.mubr.msk.f32.mxu1 %vm8175_vm0, %v8176_v6 }
 0x2c8   : > { %7194 = vmatmul.mubr.msk.f32.gmra.mrb[42].mxu1 %vm838_vm1, %v2900_v2 }
 0x2c9   : > { %7196 = vmatprep.mubr.msk.f32.mxu1 %vm8175_vm0, %v8176_v6 }
 0x2cc   : > { %7197 = vmatmul.mubr.msk.f32.gmra.mrb[44].mxu1 %vm838_vm1, %v2901_v8 }
 0x2cd   : > { %7199 = vmatprep.mubr.msk.f32.mxu1 %vm8175_vm0, %v8176_v6 }
 0x2d0   : > { %7200 = vmatmul.mubr.msk.f32.gmra.mrb[46].mxu1 %vm838_vm1, %v2902_v26 }
 0x2d1   : > { %7202 = vmatprep.mubr.msk.f32.mxu1 %vm8175_vm0, %v8176_v6 }
 0x2d4   : > { %7203 = vmatmul.mubr.msk.f32.gmra.mrb[48].mxu1 %vm838_vm1, %v2903_v24 }
 0x2d5   : > { %7205 = vmatprep.mubr.msk.f32.mxu1 %vm8175_vm0, %v8176_v6 }
 0x2d8   : > { %7206 = vmatmul.mubr.msk.f32.gmra.mrb[50].mxu1 %vm838_vm1, %v2904_v30 }
 0x2d9   : > { %7667 = vmatprep.mubr.msk.f32.mxu1 %vm8175_vm0, %v8176_v6 }
 0x37b   : > { %v3012_v25 = vpop.f32.mrb[26].mxu1 }
 0x37c   : > { %v3096_v55 = vmul.f32 %v9283_v39, %v3012_v25  ;;  %v7171_v18 = vpop.f32.mrb[27].mxu1 }
 0x37e   : > { %v3116_v10 = vadd.f32 %v9288_v45, %v3096_v55 }
 0x37f   : > { %v3017_v13 = vpop.f32.mrb[28].mxu1 }
 0x380   : > { %v3129_v23 = vmax.f32 %v3116_v10, 0.0  ;;  %v3097_v27 = vmul.f32 %v9283_v39, %v3017_v13  ;;  %v7174_v31 = vpop.f32.mrb[29].mxu1 }
 0x381   : > { %v9372_v31 = vld [vmem:[%s10260_s12] ss:$0 sm:$0xff] }
 0x382   : > { %v3117_v40 = vadd.f32 %v9288_v45, %v3097_v27  ;;  %7211 = vmatmul.mubr.msk.f32.vlgmr.msra.gmra.mrb[0].mxu0 %vm838_vm1, %v3129_v23 }
 0x383   : > { %v3022_v43 = vpop.f32.mrb[30].mxu1  ;;  %7213 = vmatprep.mubr.msk.f32.mxu0 %vm8175_vm0, %v8176_v6  ;;  %7714 = vmatpush3.bf16.msra.mxu0 %v7713_v61 }
 0x384   : > { %v3130_v49 = vmax.f32 %v3117_v40, 0.0  ;;  %v3098_v20 = vmul.f32 %v9283_v39, %v3022_v43  ;;  %v7177_v52 = vpop.f32.mrb[31].mxu1  ;;  %7715 = vmatprep.subr.bf16.mxu0 %v8174_v3 }
 0x386   : > { %v3118_v57 = vadd.f32 %v9288_v45, %v3098_v20  ;;  %7214 = vmatmul.mubr.msk.f32.gmra.mrb[2].mxu0 %vm838_vm1, %v3130_v49 }
 0x387   : > { %v3027_v29 = vpop.f32.mrb[32].mxu1  ;;  %7216 = vmatprep.mubr.msk.f32.mxu0 %vm8175_vm0, %v8176_v6  ;;  %7717 = vmatpush3.bf16.msra.mxu0 %v7716_v15  ;;  %v8151_v15 = vld [vmem:[#allocation2] sm:$0xff] }
 0x388   : > { %v3131_v59 = vmax.f32 %v3118_v57, 0.0  ;;  %v3099_v63 = vmul.f32 %v9283_v39, %v3027_v29  ;;  %v7180_v21 = vpop.f32.mrb[33].mxu1  ;;  %7296 = vmatprep.subr.mxu0 %v8176_v6 }
 0x389   : > { %v8152_v21 = vld [vmem:[#allocation2 + $0x8] sm:$0xff] }
 0x38a   : > { %v3119_v33 = vadd.f32 %v9288_v45, %v3099_v63  ;;  %7217 = vmatmul.mubr.msk.f32.gmra.mrb[4].mxu0 %vm838_vm1, %v3131_v59  ;;  %v6316_v59 = vld [vmem:[%s10256_s8 + $0x50] sm:$0xff] }
 0x38b   : > { %v3032_v3 = vpop.f32.mrb[34].mxu1  ;;  %7219 = vmatprep.mubr.msk.f32.mxu0 %vm8175_vm0, %v8176_v6 }
 0x38c   : > { %v3132_v19 = vmax.f32 %v3119_v33, 0.0  ;;  %v3100_v36 = vmul.f32 %v9283_v39, %v3032_v3  ;;  %v7183_v28 = vpop.f32.mrb[35].mxu1 }
 0x38e   : > { %v3120_v42 = vadd.f32 %v9288_v45, %v3100_v36  ;;  %7220 = vmatmul.mubr.msk.f32.gmra.mrb[6].mxu0 %vm838_vm1, %v3132_v19 }
 0x38f   : > { %v3037_v38 = vpop.f32.mrb[36].mxu1  ;;  %7222 = vmatprep.mubr.msk.f32.mxu0 %vm8175_vm0, %v8176_v6 }
 0x390   : > { %v3133_v48 = vmax.f32 %v3120_v42, 0.0  ;;  %v3101_v50 = vmul.f32 %v9283_v39, %v3037_v38  ;;  %v7186_v44 = vpop.f32.mrb[37].mxu1  ;;  %v8153_v38 = vld [vmem:[#allocation2 + $0x10] sm:$0xff] }
 0x392   : > { %v3121_v53 = vadd.f32 %v9288_v45, %v3101_v50  ;;  %7223 = vmatmul.mubr.msk.f32.gmra.mrb[8].mxu0 %vm838_vm1, %v3133_v48 }
 0x393   : > { %v3042_v56 = vpop.f32.mrb[38].mxu1  ;;  %7225 = vmatprep.mubr.msk.f32.mxu0 %vm8175_vm0, %v8176_v6 }
 0x394   : > { %v3134_v41 = vmax.f32 %v3121_v53, 0.0  ;;  %v3102_v58 = vmul.f32 %v9283_v39, %v3042_v56  ;;  %v7189_v60 = vpop.f32.mrb[39].mxu1 }
 0x396   : > { %v3122_v62 = vadd.f32 %v9288_v45, %v3102_v58  ;;  %7226 = vmatmul.mubr.msk.f32.gmra.mrb[10].mxu0 %vm838_vm1, %v3134_v41  ;;  %v8154_v58 = vld [vmem:[#allocation2 + $0x18] sm:$0xff] }
 0x397   : > { %v3047_v0 = vpop.f32.mrb[40].mxu1  ;;  %7228 = vmatprep.mubr.msk.f32.mxu0 %vm8175_vm0, %v8176_v6 }
 0x398   : > { %v3135_v7 = vmax.f32 %v3122_v62, 0.0  ;;  %v3103_v1 = vmul.f32 %v9283_v39, %v3047_v0  ;;  %v7192_v14 = vpop.f32.mrb[41].mxu1 }
 0x39a   : > { %v3123_v9 = vadd.f32 %v9288_v45, %v3103_v1  ;;  %7229 = vmatmul.mubr.msk.f32.gmra.mrb[12].mxu0 %vm838_vm1, %v3135_v7 }
 0x39b   : > { %v3052_v54 = vpop.f32.mrb[42].mxu1  ;;  %7231 = vmatprep.mubr.msk.f32.mxu0 %vm8175_vm0, %v8176_v6 }
 0x39c   : > { %v3136_v11 = vmax.f32 %v3123_v9, 0.0  ;;  %v3104_v51 = vmul.f32 %v9283_v39, %v3052_v54  ;;  %v7195_v12 = vpop.f32.mrb[43].mxu1  ;;  %v8155_v9 = vld [vmem:[#allocation2 + $0x20] sm:$0xff] }
 0x39e   : > { %v3124_v46 = vadd.f32 %v9288_v45, %v3104_v51  ;;  %7232 = vmatmul.mubr.msk.f32.gmra.mrb[14].mxu0 %vm838_vm1, %v3136_v11 }
 0x39f   : > { %v3057_v32 = vpop.f32.mrb[44].mxu1  ;;  %7234 = vmatprep.mubr.msk.f32.mxu0 %vm8175_vm0, %v8176_v6 }
 0x3a0   : > { %v3137_v2 = vmax.f32 %v3124_v46, 0.0  ;;  %v3105_v47 = vmul.f32 %v9283_v39, %v3057_v32  ;;  %v7198_v8 = vpop.f32.mrb[45].mxu1 }
 0x3a2   : > { %v3125_v16 = vadd.f32 %v9288_v45, %v3105_v47  ;;  %7235 = vmatmul.mubr.msk.f32.gmra.mrb[16].mxu0 %vm838_vm1, %v3137_v2  ;;  %v8156_v2 = vld [vmem:[#allocation2 + $0x28] sm:$0xff] }
 0x3a3   : > { %v3062_v26 = vpop.f32.mrb[46].mxu1  ;;  %7237 = vmatprep.mubr.msk.f32.mxu0 %vm8175_vm0, %v8176_v6 }
 0x3a4   : > { %v3138_v22 = vmax.f32 %v3125_v16, 0.0  ;;  %v3106_v24 = vmul.f32 %v9283_v39, %v3062_v26  ;;  %v7201_v17 = vpop.f32.mrb[47].mxu1 }
 0x3a5   : > { %v8157_v17 = vld [vmem:[#allocation2 + $0x30] sm:$0xff] }
 0x3a6   : > { %v3126_v30 = vadd.f32 %v9288_v45, %v3106_v24  ;;  %7238 = vmatmul.mubr.msk.f32.gmra.mrb[18].mxu0 %vm838_vm1, %v3138_v22 }
 0x3a7   : > { %v3067_v35 = vpop.f32.mrb[48].mxu1  ;;  %7240 = vmatprep.mubr.msk.f32.mxu0 %vm8175_vm0, %v8176_v6 }
 0x3a8   : > { %v3139_v25 = vmax.f32 %v3126_v30, 0.0  ;;  %v3107_v55 = vmul.f32 %v9283_v39, %v3067_v35  ;;  %v7204_v18 = vpop.f32.mrb[49].mxu1 }
 0x3aa   : > { %v3127_v4 = vadd.f32 %v9288_v45, %v3107_v55  ;;  %7241 = vmatmul.mubr.msk.f32.gmra.mrb[20].mxu0 %vm838_vm1, %v3139_v25 }
 0x3ab   : > { %v3072_v5 = vpop.f32.mrb[50].mxu1  ;;  %7243 = vmatprep.mubr.msk.f32.mxu0 %vm8175_vm0, %v8176_v6 }
 0x3ac   : > { %v3140_v10 = vmax.f32 %v3127_v4, 0.0  ;;  %v3108_v13 = vmul.f32 %v9283_v39, %v3072_v5  ;;  %v7207_v61 = vpop.f32.mrb[51].mxu1  ;;  %v8158_v5 = vld [vmem:[#allocation2 + $0x38] sm:$0xff] }
 0x3ae   : > { %v3128_v23 = vadd.f32 %v9288_v45, %v3108_v13  ;;  %7244 = vmatmul.mubr.msk.f32.gmra.mrb[22].mxu0 %vm838_vm1, %v3140_v10  ;;  %v9377_v45 = vld [vmem:[%s10261_s13] ss:$0 sm:$0xff] }
 0x3af   : > { %7246 = vmatprep.mubr.msk.f32.mxu0 %vm8175_vm0, %v8176_v6 }
 0x3b0   : > { %v3141_v27 = vmax.f32 %v3128_v23, 0.0 }
 0x3b2   : > { %7247 = vmatmul.mubr.msk.f32.gmra.mrb[24].mxu0 %vm838_vm1, %v3141_v27 }
 0x3b3   : > { %7257 = vmatprep.mubr.msk.f32.mxu0 %vm8175_vm0, %v8176_v6 }
 0x455   : > { %v3248_v39 = vpop.f32.mrb[0].mxu0 }
 0x456   : > { %v3319_v34 = vmul.f32 %v9372_v31, %v3248_v39  ;;  %v7212_v37 = vpop.f32.mrb[1].mxu0 }
 0x458   : > { %v3339_v40 = vadd.f32 %v9377_v45, %v3319_v34  ;;  %v8159_v34 = vld [vmem:[#allocation2 + $0x40] sm:$0xff] }
 0x459   : > { %v3253_v43 = vpop.f32.mrb[2].mxu0 }
 0x45a   : > { %v9381_v49 = vadd.f32 %v8151_v15, %v3339_v40  ;;  %v3320_v20 = vmul.f32 %v9372_v31, %v3253_v43  ;;  %v7215_v52 = vpop.f32.mrb[3].mxu0 }
 0x45c   : > { %v3365_v57 = vmax.f32 %v9381_v49, 0.0  ;;  %v3340_v29 = vadd.f32 %v9377_v45, %v3320_v20 }
 0x45d   : > { %v3258_v63 = vpop.f32.mrb[4].mxu0 }
 0x45e   : > { %v9389_v33 = vadd.f32 %v8152_v21, %v3340_v29  ;;  %v3321_v3 = vmul.f32 %v9372_v31, %v3258_v63  ;;  %v7218_v19 = vpop.f32.mrb[5].mxu0  ;;  %7258 = vmatmul.mubr.msk.f32.vlgmr.msra.gmra.mrb[26].mxu0 %vm672_vm2, %v3365_v57  ;;  %v8160_v29 = vld [vmem:[#allocation2 + $0x48] sm:$0xff] }
 0x45f   : > { %7260 = vmatprep.mubr.msk.f32.mxu0 %vm8175_vm0, %v8176_v6  ;;  %7297 = vmatpush3.msra.mxu0 %v6316_v59 }
 0x460   : > { %v3366_v36 = vmax.f32 %v9389_v33, 0.0  ;;  %v3341_v28 = vadd.f32 %v9377_v45, %v3321_v3  ;;  %7337 = vmatprep.subr.mxu0 %v8176_v6 }
 0x461   : > { %v3263_v42 = vpop.f32.mrb[6].mxu0 }
 0x462   : > { %v9400_v48 = vadd.f32 %v8153_v38, %v3341_v28  ;;  %v3322_v50 = vmul.f32 %v9372_v31, %v3263_v42  ;;  %v7221_v44 = vpop.f32.mrb[7].mxu0  ;;  %7261 = vmatmul.mubr.msk.f32.gmra.mrb[28].mxu0 %vm672_vm2, %v3366_v36  ;;  %v8161_v42 = vld [vmem:[#allocation2 + $0x50] sm:$0xff] }
 0x463   : > { %7263 = vmatprep.mubr.msk.f32.mxu0 %vm8175_vm0, %v8176_v6 }
 0x464   : > { %v3367_v53 = vmax.f32 %v9400_v48, 0.0  ;;  %v3342_v56 = vadd.f32 %v9377_v45, %v3322_v50 }
 0x465   : > { %v3268_v41 = vpop.f32.mrb[8].mxu0 }
 0x466   : > { %v9410_v60 = vadd.f32 %v8154_v58, %v3342_v56  ;;  %v3323_v62 = vmul.f32 %v9372_v31, %v3268_v41  ;;  %v7224_v0 = vpop.f32.mrb[9].mxu0  ;;  %7264 = vmatmul.mubr.msk.f32.gmra.mrb[30].mxu0 %vm672_vm2, %v3367_v53 }
 0x467   : > { %7266 = vmatprep.mubr.msk.f32.mxu0 %vm8175_vm0, %v8176_v6 }
 0x468   : > { %v3368_v7 = vmax.f32 %v9410_v60, 0.0  ;;  %v3343_v1 = vadd.f32 %v9377_v45, %v3323_v62  ;;  %v8162_v62 = vld [vmem:[#allocation2 + $0x58] sm:$0xff] }
 0x469   : > { %v3273_v14 = vpop.f32.mrb[10].mxu0 }
 0x46a   : > { %v9420_v54 = vadd.f32 %v8155_v9, %v3343_v1  ;;  %v3324_v11 = vmul.f32 %v9372_v31, %v3273_v14  ;;  %v7227_v51 = vpop.f32.mrb[11].mxu0  ;;  %7267 = vmatmul.mubr.msk.f32.gmra.mrb[32].mxu0 %vm672_vm2, %v3368_v7 }
 0x46b   : > { %7269 = vmatprep.mubr.msk.f32.mxu0 %vm8175_vm0, %v8176_v6  ;;  %v8163_v51 = vld [vmem:[#allocation2 + $0x60] sm:$0xf] }
 0x46c   : > { %v3369_v12 = vmax.f32 %v9420_v54, 0.0  ;;  %v3344_v46 = vadd.f32 %v9377_v45, %v3324_v11 }
 0x46d   : > { %v3278_v32 = vpop.f32.mrb[12].mxu0 }
 0x46e   : > { %v9430_v47 = vadd.f32 %v8156_v2, %v3344_v46  ;;  %v3325_v8 = vmul.f32 %v9372_v31, %v3278_v32  ;;  %v7230_v16 = vpop.f32.mrb[13].mxu0  ;;  %7270 = vmatmul.mubr.msk.f32.gmra.mrb[34].mxu0 %vm672_vm2, %v3369_v12  ;;  %v6315_v32 = vld [vmem:[%s10256_s8 + $0x48] sm:$0xff]  ;;  %v9523_v2 = vld [vmem:[%s10254_s6 + $0x1] ss:$0 sm:$0xff] }
 0x46f   : > { %7272 = vmatprep.mubr.msk.f32.mxu0 %vm8175_vm0, %v8176_v6  ;;  %v9528_v16 = vld [vmem:[%s10255_s7 + $0x1] ss:$0 sm:$0xff] }
 0x470   : > { %v3370_v26 = vmax.f32 %v9430_v47, 0.0  ;;  %v3345_v22 = vadd.f32 %v9377_v45, %v3325_v8 }
 0x471   : > { %v3283_v24 = vpop.f32.mrb[14].mxu0 }
 0x472   : > { %v9440_v30 = vadd.f32 %v8157_v17, %v3345_v22  ;;  %v3326_v35 = vmul.f32 %v9372_v31, %v3283_v24  ;;  %v7233_v25 = vpop.f32.mrb[15].mxu0  ;;  %7273 = vmatmul.mubr.msk.f32.gmra.mrb[36].mxu0 %vm672_vm2, %v3370_v26 }
 0x473   : > { %7275 = vmatprep.mubr.msk.f32.mxu0 %vm8175_vm0, %v8176_v6 }
 0x474   : > { %v3371_v55 = vmax.f32 %v9440_v30, 0.0  ;;  %v3346_v18 = vadd.f32 %v9377_v45, %v3326_v35 }
 0x475   : > { %v3288_v4 = vpop.f32.mrb[16].mxu0 }
 0x476   : > { %v9450_v10 = vadd.f32 %v8158_v5, %v3346_v18  ;;  %v3327_v13 = vmul.f32 %v9372_v31, %v3288_v4  ;;  %v7236_v61 = vpop.f32.mrb[17].mxu0  ;;  %7276 = vmatmul.mubr.msk.f32.gmra.mrb[38].mxu0 %vm672_vm2, %v3371_v55 }
 0x477   : > { %7278 = vmatprep.mubr.msk.f32.mxu0 %vm8175_vm0, %v8176_v6 }
 0x478   : > { %v3372_v23 = vmax.f32 %v9450_v10, 0.0  ;;  %v3347_v27 = vadd.f32 %v9377_v45, %v3327_v13 }
 0x479   : > { %v3293_v39 = vpop.f32.mrb[18].mxu0 }
 0x47a   : > { %v9460_v37 = vadd.f32 %v8159_v34, %v3347_v27  ;;  %v3328_v40 = vmul.f32 %v9372_v31, %v3293_v39  ;;  %v7239_v43 = vpop.f32.mrb[19].mxu0  ;;  %7279 = vmatmul.mubr.msk.f32.gmra.mrb[40].mxu0 %vm672_vm2, %v3372_v23 }
 0x47b   : > { %7281 = vmatprep.mubr.msk.f32.mxu0 %vm8175_vm0, %v8176_v6 }
 0x47c   : > { %v10267_v15 = vmax.f32 %v9460_v37, 0.0  ;;  %v3348_v20 = vadd.f32 %v9377_v45, %v3328_v40 }
 0x47d   : > { %v3298_v52 = vpop.f32.mrb[20].mxu0 }
 0x47e   : > { %v9470_v59 = vadd.f32 %v8160_v29, %v3348_v20  ;;  %v3329_v63 = vmul.f32 %v9372_v31, %v3298_v52  ;;  %v7242_v21 = vpop.f32.mrb[21].mxu0  ;;  %7282 = vmatmul.mubr.msk.f32.gmra.mrb[42].mxu0 %vm672_vm2, %v10267_v15  ;;  %v6384_v15 = vld [vmem:[%s10256_s8 + $0x68] sm:$0xff] }
 0x47f   : > { %7284 = vmatprep.mubr.msk.f32.mxu0 %vm8175_vm0, %v8176_v6 }
 0x480   : > { %v10266_v3 = vmax.f32 %v9470_v59, 0.0  ;;  %v3349_v19 = vadd.f32 %v9377_v45, %v3329_v63 }
 0x481   : > { %v3303_v28 = vpop.f32.mrb[22].mxu0 }
 0x482   : > { %v9480_v38 = vadd.f32 %v8161_v42, %v3349_v19  ;;  %v3330_v50 = vmul.f32 %v9372_v31, %v3303_v28  ;;  %v7245_v44 = vpop.f32.mrb[23].mxu0  ;;  %7285 = vmatmul.mubr.msk.f32.gmra.mrb[44].mxu0 %vm672_vm2, %v10266_v3 }
 0x483   : > { %7287 = vmatprep.mubr.msk.f32.mxu0 %vm8175_vm0, %v8176_v6 }
 0x484   : > { %v10265_v56 = vmax.f32 %v9480_v38, 0.0  ;;  %v3350_v41 = vadd.f32 %v9377_v45, %v3330_v50 }
 0x485   : > { %v3308_v58 = vpop.f32.mrb[24].mxu0 }
 0x486   : > { %v9490_v0 = vadd.f32 %v8162_v62, %v3350_v41  ;;  %v3331_v1 = vmul.f32 %v9372_v31, %v3308_v58  ;;  %v7248_v14 = vpop.f32.mrb[25].mxu0  ;;  %7288 = vmatmul.mubr.msk.f32.gmra.mrb[46].mxu0 %vm672_vm2, %v10265_v56 }
 0x487   : > { %7290 = vmatprep.mubr.msk.f32.mxu0 %vm8175_vm0, %v8176_v6 }
 0x488   : > { %v10264_v9 = vmax.f32 %v9490_v0, 0.0  ;;  %v3351_v11 = vadd.f32 %v9377_v45, %v3331_v1  ;;  %v3726_v45 = vld [vmem:[#allocation3 + $0x1] sm:$0xff] }
 0x48a   : > { %v9500_v46 = vadd.f32 %v8163_v51, %v3351_v11  ;;  %7291 = vmatmul.mubr.msk.f32.gmra.mrb[48].mxu0 %vm672_vm2, %v10264_v9 }
 0x48b   : > { %7293 = vmatprep.mubr.msk.f32.mxu0 %vm8175_vm0, %v8176_v6 }
 0x48c   : > { %v10263_v31 = vmax.f32 %v9500_v46, 0.0 }
 0x48e   : > { %7294 = vmatmul.mubr.msk.f32.gmra.mrb[50].mxu0 %vm672_vm2, %v10263_v31 }
 0x48f   : > { %7298 = vmatprep.mubr.msk.f32.mxu0 %vm8175_vm0, %v8176_v6 }
 0x492   : > { %7299 = vmatmul.mubr.msk.f32.vlgmr.msra.gmra.mrb[52].mxu0 %vm838_vm1, %v3726_v45 }
 0x493   : > { %7301 = vmatprep.mubr.msk.f32.mxu0 %vm8175_vm0, %v8176_v6  ;;  %7338 = vmatpush3.msra.mxu0 %v6315_v32 }
 0x494   : > { %7378 = vmatprep.subr.mxu0 %v8176_v6 }
 0x531   : > { %v3488_v8 = vpop.f32.mrb[26].mxu0 }
 0x532   : > { %v3560_v22 = vmul.f32 %v9523_v2, %v3488_v8  ;;  %v7259_v24 = vpop.f32.mrb[27].mxu0 }
 0x534   : > { %v3581_v17 = vadd.f32 %v9528_v16, %v3560_v22 }
 0x535   : > { %v3493_v35 = vpop.f32.mrb[28].mxu0 }
 0x536   : > { %v3594_v25 = vmax.f32 %v3581_v17, 0.0  ;;  %v3561_v18 = vmul.f32 %v9523_v2, %v3493_v35  ;;  %v7262_v4 = vpop.f32.mrb[29].mxu0 }
 0x538   : > { %3607 = vst.msk [vmem:[#allocation3 + $0xb] sm:$0xff] %vm838_vm1, %v3594_v25  ;;  %v3582_v5 = vadd.f32 %v9528_v16, %v3561_v18 }
 0x539   : > { %v3498_v13 = vpop.f32.mrb[30].mxu0 }
 0x53a   : > { %v3595_v61 = vmax.f32 %v3582_v5, 0.0  ;;  %v3562_v27 = vmul.f32 %v9523_v2, %v3498_v13  ;;  %v7265_v39 = vpop.f32.mrb[31].mxu0 }
 0x53c   : > { %3608 = vst.msk [vmem:[#allocation3 + $0x13] sm:$0xff] %vm838_vm1, %v3595_v61  ;;  %v3583_v34 = vadd.f32 %v9528_v16, %v3562_v27 }
 0x53d   : > { %v3503_v40 = vpop.f32.mrb[32].mxu0 }
 0x53e   : > { %v3596_v43 = vmax.f32 %v3583_v34, 0.0  ;;  %v3563_v20 = vmul.f32 %v9523_v2, %v3503_v40  ;;  %v7268_v52 = vpop.f32.mrb[33].mxu0 }
 0x53f   : > { %v3727_v29 = vld [vmem:[#allocation3 + $0x9] sm:$0xff] }
 0x540   : > { %3609 = vst.msk [vmem:[#allocation3 + $0x1b] sm:$0xff] %vm838_vm1, %v3596_v43  ;;  %v3584_v63 = vadd.f32 %v9528_v16, %v3563_v20  ;;  %7302 = vmatmul.mubr.msk.f32.gmra.mrb[54].mxu0 %vm838_vm1, %v3727_v29 }
 0x541   : > { %v3508_v21 = vpop.f32.mrb[34].mxu0  ;;  %7304 = vmatprep.mubr.msk.f32.mxu0 %vm8175_vm0, %v8176_v6 }
 0x542   : > { %v3597_v19 = vmax.f32 %v3584_v63, 0.0  ;;  %v3564_v28 = vmul.f32 %v9523_v2, %v3508_v21  ;;  %v7271_v42 = vpop.f32.mrb[35].mxu0 }
 0x543   : > { %v3728_v50 = vld [vmem:[#allocation3 + $0x11] sm:$0xff] }
 0x544   : > { %3610 = vst.msk [vmem:[#allocation3 + $0x23] sm:$0xff] %vm838_vm1, %v3597_v19  ;;  %v3585_v44 = vadd.f32 %v9528_v16, %v3564_v28  ;;  %7305 = vmatmul.mubr.msk.f32.gmra.mrb[56].mxu0 %vm838_vm1, %v3728_v50 }
 0x545   : > { %v3513_v41 = vpop.f32.mrb[36].mxu0  ;;  %7307 = vmatprep.mubr.msk.f32.mxu0 %vm8175_vm0, %v8176_v6 }
 0x546   : > { %v3598_v58 = vmax.f32 %v3585_v44, 0.0  ;;  %v3565_v62 = vmul.f32 %v9523_v2, %v3513_v41  ;;  %v7274_v1 = vpop.f32.mrb[37].mxu0 }
 0x547   : > { %v3729_v14 = vld [vmem:[#allocation3 + $0x19] sm:$0xff] }
 0x548   : > { %3611 = vst.msk [vmem:[#allocation3 + $0x2b] sm:$0xff] %vm838_vm1, %v3598_v58  ;;  %v3586_v11 = vadd.f32 %v9528_v16, %v3565_v62  ;;  %7308 = vmatmul.mubr.msk.f32.gmra.mrb[58].mxu0 %vm838_vm1, %v3729_v14 }
 0x549   : > { %v3518_v51 = vpop.f32.mrb[38].mxu0  ;;  %7310 = vmatprep.mubr.msk.f32.mxu0 %vm8175_vm0, %v8176_v6 }
 0x54a   : > { %v3599_v45 = vmax.f32 %v3586_v11, 0.0  ;;  %v3566_v32 = vmul.f32 %v9523_v2, %v3518_v51  ;;  %v7277_v8 = vpop.f32.mrb[39].mxu0 }
 0x54b   : > { %v3730_v22 = vld [vmem:[#allocation3 + $0x21] sm:$0xff] }
 0x54c   : > { %3612 = vst.msk [vmem:[#allocation3 + $0x33] sm:$0xff] %vm838_vm1, %v3599_v45  ;;  %v3587_v24 = vadd.f32 %v9528_v16, %v3566_v32  ;;  %7311 = vmatmul.mubr.msk.f32.gmra.mrb[60].mxu0 %vm838_vm1, %v3730_v22 }
 0x54d   : > { %v3523_v17 = vpop.f32.mrb[40].mxu0  ;;  %7313 = vmatprep.mubr.msk.f32.mxu0 %vm8175_vm0, %v8176_v6 }
 0x54e   : > { %v3600_v35 = vmax.f32 %v3587_v24, 0.0  ;;  %v3567_v25 = vmul.f32 %v9523_v2, %v3523_v17  ;;  %v7280_v18 = vpop.f32.mrb[41].mxu0 }
 0x54f   : > { %v3731_v4 = vld [vmem:[#allocation3 + $0x29] sm:$0xff]  ;;  %v9603_v18 = vpop.permute.xlu0 %3648 }
 0x550   : > { %3613 = vst.msk [vmem:[#allocation3 + $0x3b] sm:$0xff] %vm838_vm1, %v3600_v35  ;;  %v3588_v5 = vadd.f32 %v9528_v16, %v3567_v25  ;;  %7314 = vmatmul.mubr.msk.f32.gmra.mrb[62].mxu0 %vm838_vm1, %v3731_v4 }
 0x551   : > { %v3528_v13 = vpop.f32.mrb[42].mxu0  ;;  %7316 = vmatprep.mubr.msk.f32.mxu0 %vm8175_vm0, %v8176_v6 }
 0x552   : > { %v3601_v61 = vmax.f32 %v3588_v5, 0.0  ;;  %v3568_v27 = vmul.f32 %v9523_v2, %v3528_v13  ;;  %v7283_v39 = vpop.f32.mrb[43].mxu0  ;;  %v6356_v5 = vld [vmem:[%s10256_s8 + $0x58] sm:$0xff]  ;;  %v3621_v13 = vld [vmem:[#allocation3 + $0x8] sm:$0xff] }
 0x553   : > { %v3732_v34 = vld [vmem:[#allocation3 + $0x31] sm:$0xff] }
 0x554   : > { %3614 = vst.msk [vmem:[#allocation3 + $0x43] sm:$0xff] %vm838_vm1, %v3601_v61  ;;  %v3589_v40 = vadd.f32 %v9528_v16, %v3568_v27  ;;  %7317 = vmatmul.mubr.msk.f32.gmra.mrb[64].mxu0 %vm838_vm1, %v3732_v34  ;;  %v9612_v61 = vpop.permute.xlu1 %3653  ;;  %v3622_v39 = vld [vmem:[#allocation3 + $0x10] sm:$0xff]  ;;  %v9619_v34 = vpop.permute.xlu0 %3658 }
 0x555   : > { %v3533_v43 = vpop.f32.mrb[44].mxu0  ;;  %7319 = vmatprep.mubr.msk.f32.mxu0 %vm8175_vm0, %v8176_v6  ;;  %v3712_v27 = vmul.f32 %v9612_v61, %v3621_v13 }
 0x556   : > { %v3602_v20 = vmax.f32 %v3589_v40, 0.0  ;;  %v3569_v52 = vmul.f32 %v9523_v2, %v3533_v43  ;;  %v7286_v29 = vpop.f32.mrb[45].mxu0  ;;  %v3713_v40 = vmul.f32 %v9619_v34, %v3622_v39  ;;  %v3623_v43 = vld [vmem:[#allocation3 + $0x18] sm:$0xff] }
 0x557   : > { %v3733_v63 = vld [vmem:[#allocation3 + $0x39] sm:$0xff] }
 0x558   : > { %3615 = vst.msk [vmem:[#allocation3 + $0x4b] sm:$0xff] %vm838_vm1, %v3602_v20  ;;  %v3590_v21 = vadd.f32 %v9528_v16, %v3569_v52  ;;  %7320 = vmatmul.mubr.msk.f32.gmra.mrb[66].mxu0 %vm838_vm1, %v3733_v63  ;;  %v9625_v20 = vpop.permute.xlu1 %3663  ;;  %v3624_v29 = vld [vmem:[#allocation3 + $0x20] sm:$0xff]  ;;  %v9631_v63 = vpop.permute.xlu0 %3668 }
 0x559   : > { %v3538_v19 = vpop.f32.mrb[46].mxu0  ;;  %7322 = vmatprep.mubr.msk.f32.mxu0 %vm8175_vm0, %v8176_v6  ;;  %v3714_v52 = vmul.f32 %v9625_v20, %v3623_v43  ;;  %v9693_v43 = vld [vmem:[#allocation3 + $0xa] sm:$0xff] }
 0x55a   : > { %v3603_v28 = vmax.f32 %v3590_v21, 0.0  ;;  %v3570_v42 = vmul.f32 %v9523_v2, %v3538_v19  ;;  %v7289_v50 = vpop.f32.mrb[47].mxu0  ;;  %v3715_v21 = vmul.f32 %v9631_v63, %v3624_v29  ;;  %v3625_v19 = vld [vmem:[#allocation3 + $0x28] sm:$0xff] }
 0x55b   : > { %v3734_v44 = vld [vmem:[#allocation3 + $0x41] sm:$0xff]  ;;  %v3626_v50 = vld [vmem:[#allocation3 + $0x30] sm:$0xff] }
 0x55c   : > { %3616 = vst.msk [vmem:[#allocation3 + $0x53] sm:$0xff] %vm838_vm1, %v3603_v28  ;;  %v3591_v41 = vadd.f32 %v9528_v16, %v3570_v42  ;;  %7323 = vmatmul.mubr.msk.f32.gmra.mrb[68].mxu0 %vm838_vm1, %v3734_v44  ;;  %v9637_v28 = vpop.permute.xlu1 %3673  ;;  %v9643_v44 = vpop.permute.xlu0 %3678 }
 0x55d   : > { %v3543_v58 = vpop.f32.mrb[48].mxu0  ;;  %7325 = vmatprep.mubr.msk.f32.mxu0 %vm8175_vm0, %v8176_v6  ;;  %v3716_v42 = vmul.f32 %v9637_v28, %v3625_v19 }
 0x55e   : > { %v3604_v62 = vmax.f32 %v3591_v41, 0.0  ;;  %v3571_v1 = vmul.f32 %v9523_v2, %v3543_v58  ;;  %v7292_v14 = vpop.f32.mrb[49].mxu0  ;;  %v3717_v41 = vmul.f32 %v9643_v44, %v3626_v50  ;;  %v3627_v58 = vld [vmem:[#allocation3 + $0x38] sm:$0xff] }
 0x55f   : > { %v3735_v11 = vld [vmem:[#allocation3 + $0x49] sm:$0xff]  ;;  %v3628_v14 = vld [vmem:[#allocation3 + $0x40] sm:$0xff] }
 0x560   : > { %3617 = vst.msk [vmem:[#allocation3 + $0x5b] sm:$0xff] %vm838_vm1, %v3604_v62  ;;  %v3592_v51 = vadd.f32 %v9528_v16, %v3571_v1  ;;  %7326 = vmatmul.mubr.msk.f32.gmra.mrb[70].mxu0 %vm838_vm1, %v3735_v11  ;;  %v9649_v62 = vpop.permute.xlu1 %3683  ;;  %v9655_v11 = vpop.permute.xlu0 %3688  ;;  %v4082_v50 = vld [vmem:[#allocation3 + $0x1a] sm:$0xff] }
 0x561   : > { %v3548_v45 = vpop.f32.mrb[50].mxu0  ;;  %7328 = vmatprep.mubr.msk.f32.mxu0 %vm8175_vm0, %v8176_v6  ;;  %v3718_v1 = vmul.f32 %v9649_v62, %v3627_v58 }
 0x562   : > { %v3605_v32 = vmax.f32 %v3592_v51, 0.0  ;;  %v3572_v8 = vmul.f32 %v9523_v2, %v3548_v45  ;;  %v7295_v22 = vpop.f32.mrb[51].mxu0  ;;  %v3719_v51 = vmul.f32 %v9655_v11, %v3628_v14  ;;  %v3629_v45 = vld [vmem:[#allocation3 + $0x48] sm:$0xff] }
 0x563   : > { %v3736_v24 = vld [vmem:[#allocation3 + $0x51] sm:$0xff] }
 0x564   : > { %3618 = vst.msk [vmem:[#allocation3 + $0x63] sm:$0xff] %vm838_vm1, %v3605_v32  ;;  %v3593_v17 = vadd.f32 %v9528_v16, %v3572_v8  ;;  %7329 = vmatmul.mubr.msk.f32.gmra.mrb[72].mxu0 %vm838_vm1, %v3736_v24  ;;  %v8164_v16 = vld [vmem:[#allocation3] sm:$0xff]  ;;  %v9661_v32 = vpop.permute.xlu1 %3693  ;;  %v3630_v22 = vld [vmem:[#allocation3 + $0x50] sm:$0xff]  ;;  %v9667_v24 = vpop.permute.xlu0 %3698 }
 0x565   : > { %7331 = vmatprep.mubr.msk.f32.mxu0 %vm8175_vm0, %v8176_v6  ;;  %v3711_v4 = vmul.f32 %v8164_v16, %v9603_v18  ;;  %v3720_v8 = vmul.f32 %v9661_v32, %v3629_v45  ;;  %v4084_v45 = vld [vmem:[#allocation3 + $0x2a] sm:$0xff] }
 0x566   : > { %v3606_v35 = vmax.f32 %v3593_v17, 0.0  ;;  %v3721_v17 = vmul.f32 %v9667_v24, %v3630_v22 }
 0x567   : > { %v3737_v25 = vld [vmem:[#allocation3 + $0x59] sm:$0xff] }
 0x568   : > { %3619 = vst.msk [vmem:[#allocation3 + $0x6b] sm:$0xf] %vm1106_vm4, %v3606_v35  ;;  %7332 = vmatmul.mubr.msk.f32.gmra.mrb[74].mxu0 %vm838_vm1, %v3737_v25  ;;  %v3631_v35 = vld [vmem:[#allocation3 + $0x58] sm:$0xff]  ;;  %v9673_v25 = vpop.permute.xlu1 %3703 }
 0x569   : > { %7334 = vmatprep.mubr.msk.f32.mxu0 %vm8175_vm0, %v8176_v6  ;;  %v4090_v31 = vld [vmem:[#allocation3 + $0x5a] sm:$0xff] }
 0x56b   : > { %v3738_v2 = vld [vmem:[#allocation3 + $0x61] sm:$0xf] }
 0x56c   : > { %7335 = vmatmul.mubr.msk.f32.gmra.mrb[76].mxu0 %vm838_vm1, %v3738_v2  ;;  %v3722_v2 = vmul.f32 %v9673_v25, %v3631_v35  ;;  %v3632_v16 = vld [vmem:[#allocation3 + $0x60] sm:$0xf]  ;;  %v9685_v13 = vpop.permute.xlu1 %4107 }
 0x56d   : > { %7339 = vmatprep.mubr.msk.f32.mxu0 %vm8175_vm0, %v8176_v6  ;;  %v4091_v56 = vld [vmem:[#allocation3 + $0x62] sm:$0xf] }
 0x570   : > { %7340 = vmatmul.mubr.msk.f32.vlgmr.msra.gmra.mrb[52].mxu0 %vm838_vm1, %v3711_v4  ;;  %v9679_v4 = vpop.permute.xlu0 %3708  ;;  %v9704_v19 = vpop.permute.xlu1 %4117 }
 0x571   : > { %7379 = vmatpush3.msra.mxu0 %v6356_v5  ;;  %7342 = vmatprep.mubr.msk.f32.mxu0 %vm8175_vm0, %v8176_v6  ;;  %v3723_v5 = vmul.f32 %v9679_v4, %v3632_v16  ;;  %v4086_v16 = vld [vmem:[#allocation3 + $0x3a] sm:$0xff] }
 0x572   : > { %7419 = vmatprep.subr.mxu0 %v8176_v6 }
 0x574   : > { %7343 = vmatmul.mubr.msk.f32.gmra.mrb[54].mxu0 %vm838_vm1, %v3712_v27  ;;  %v8165_v27 = vld [vmem:[#allocation3 + $0x2] sm:$0xff]  ;;  %v9716_v14 = vpop.permute.xlu1 %4127 }
 0x575   : > { %7345 = vmatprep.mubr.msk.f32.mxu0 %vm8175_vm0, %v8176_v6  ;;  %v4170_v39 = vmul.f32 %v8165_v27, %v9685_v13 }
 0x578   : > { %7346 = vmatmul.mubr.msk.f32.gmra.mrb[56].mxu0 %vm838_vm1, %v3713_v40  ;;  %v6370_v40 = vld [vmem:[%s10256_s8 + $0x60] sm:$0xff]  ;;  %v9728_v35 = vpop.permute.xlu1 %4137 }
 0x579   : > { %7348 = vmatprep.mubr.msk.f32.mxu0 %vm8175_vm0, %v8176_v6 }
 0x57c   : > { %7349 = vmatmul.mubr.msk.f32.gmra.mrb[58].mxu0 %vm838_vm1, %v3714_v52  ;;  %v9696_v52 = vpop.permute.xlu0 %4112 }
 0x57d   : > { %7351 = vmatprep.mubr.msk.f32.mxu0 %vm8175_vm0, %v8176_v6  ;;  %v4171_v29 = vmul.f32 %v9696_v52, %v9693_v43 }
 0x580   : > { %7352 = vmatmul.mubr.msk.f32.gmra.mrb[60].mxu0 %vm838_vm1, %v3715_v21  ;;  %v4081_v21 = vld [vmem:[#allocation3 + $0x12] sm:$0xff] }
 0x581   : > { %7354 = vmatprep.mubr.msk.f32.mxu0 %vm8175_vm0, %v8176_v6 }
 0x584   : > { %7355 = vmatmul.mubr.msk.f32.gmra.mrb[62].mxu0 %vm838_vm1, %v3716_v42  ;;  %v4172_v42 = vmul.f32 %v9704_v19, %v4081_v21 }
 0x585   : > { %7357 = vmatprep.mubr.msk.f32.mxu0 %vm8175_vm0, %v8176_v6 }
 0x588   : > { %7358 = vmatmul.mubr.msk.f32.gmra.mrb[64].mxu0 %vm838_vm1, %v3717_v41  ;;  %v9710_v41 = vpop.permute.xlu0 %4122 }
 0x589   : > { %7360 = vmatprep.mubr.msk.f32.mxu0 %vm8175_vm0, %v8176_v6  ;;  %v4173_v58 = vmul.f32 %v9710_v41, %v4082_v50 }
 0x58c   : > { %7361 = vmatmul.mubr.msk.f32.gmra.mrb[66].mxu0 %vm838_vm1, %v3718_v1  ;;  %v4083_v1 = vld [vmem:[#allocation3 + $0x22] sm:$0xff] }
 0x58d   : > { %7363 = vmatprep.mubr.msk.f32.mxu0 %vm8175_vm0, %v8176_v6 }
 0x590   : > { %7364 = vmatmul.mubr.msk.f32.gmra.mrb[68].mxu0 %vm838_vm1, %v3719_v51  ;;  %v4174_v51 = vmul.f32 %v9716_v14, %v4083_v1 }
 0x591   : > { %7366 = vmatprep.mubr.msk.f32.mxu0 %vm8175_vm0, %v8176_v6 }
 0x594   : > { %7367 = vmatmul.mubr.msk.f32.gmra.mrb[70].mxu0 %vm838_vm1, %v3720_v8  ;;  %v9722_v8 = vpop.permute.xlu0 %4132 }
 0x595   : > { %7369 = vmatprep.mubr.msk.f32.mxu0 %vm8175_vm0, %v8176_v6  ;;  %v4175_v22 = vmul.f32 %v9722_v8, %v4084_v45 }
 0x598   : > { %7370 = vmatmul.mubr.msk.f32.gmra.mrb[72].mxu0 %vm838_vm1, %v3721_v17  ;;  %v4085_v17 = vld [vmem:[#allocation3 + $0x32] sm:$0xff] }
 0x599   : > { %7372 = vmatprep.mubr.msk.f32.mxu0 %vm8175_vm0, %v8176_v6 }
 0x59c   : > { %7373 = vmatmul.mubr.msk.f32.gmra.mrb[74].mxu0 %vm838_vm1, %v3722_v2  ;;  %v4176_v2 = vmul.f32 %v9728_v35, %v4085_v17 }
 0x59d   : > { %7375 = vmatprep.mubr.msk.f32.mxu0 %vm8175_vm0, %v8176_v6 }
 0x5a0   : > { %7376 = vmatmul.mubr.msk.f32.gmra.mrb[76].mxu0 %vm838_vm1, %v3723_v5  ;;  %v9734_v5 = vpop.permute.xlu0 %4142 }
 0x5a1   : > { %7380 = vmatprep.mubr.msk.f32.mxu0 %vm8175_vm0, %v8176_v6  ;;  %v4177_v27 = vmul.f32 %v9734_v5, %v4086_v16 }
 0x5a4   : > { %7381 = vmatmul.mubr.msk.f32.vlgmr.msra.gmra.mrb[52].mxu0 %vm838_vm1, %v4170_v39  ;;  %v4087_v39 = vld [vmem:[#allocation3 + $0x42] sm:$0xff] }
 0x5a5   : > { %7420 = vmatpush3.msra.mxu0 %v6370_v40  ;;  %7383 = vmatprep.mubr.msk.f32.mxu0 %vm8175_vm0, %v8176_v6  ;;  %v9740_v40 = vpop.permute.xlu1 %4147 }
 0x5a6   : > { %7460 = vmatprep.subr.mxu0 %v8176_v6 }
 0x5a8   : > { %7384 = vmatmul.mubr.msk.f32.gmra.mrb[54].mxu0 %vm838_vm1, %v4171_v29  ;;  %v4178_v29 = vmul.f32 %v9740_v40, %v4087_v39 }
 0x5a9   : > { %7386 = vmatprep.mubr.msk.f32.mxu0 %vm8175_vm0, %v8176_v6 }
 0x5ac   : > { %7387 = vmatmul.mubr.msk.f32.gmra.mrb[56].mxu0 %vm838_vm1, %v4172_v42  ;;  %v4088_v42 = vld [vmem:[#allocation3 + $0x4a] sm:$0xff] }
 0x5ad   : > { %7389 = vmatprep.mubr.msk.f32.mxu0 %vm8175_vm0, %v8176_v6 }
 0x5b0   : > { %7390 = vmatmul.mubr.msk.f32.gmra.mrb[58].mxu0 %vm838_vm1, %v4173_v58  ;;  %v9746_v58 = vpop.permute.xlu0 %4152 }
 0x5b1   : > { %7392 = vmatprep.mubr.msk.f32.mxu0 %vm8175_vm0, %v8176_v6 }
 0x5b4   : > { %7393 = vmatmul.mubr.msk.f32.gmra.mrb[60].mxu0 %vm838_vm1, %v4174_v51  ;;  %v4179_v51 = vmul.f32 %v9746_v58, %v4088_v42 }
 0x5b5   : > { %7395 = vmatprep.mubr.msk.f32.mxu0 %vm8175_vm0, %v8176_v6 }
 0x5b8   : > { %7396 = vmatmul.mubr.msk.f32.gmra.mrb[62].mxu0 %vm838_vm1, %v4175_v22  ;;  %v4089_v22 = vld [vmem:[#allocation3 + $0x52] sm:$0xff] }
 0x5b9   : > { %7398 = vmatprep.mubr.msk.f32.mxu0 %vm8175_vm0, %v8176_v6 }
 0x5bc   : > { %7399 = vmatmul.mubr.msk.f32.gmra.mrb[64].mxu0 %vm838_vm1, %v4176_v2  ;;  %v9752_v2 = vpop.permute.xlu1 %4157 }
 0x5bd   : > { %7401 = vmatprep.mubr.msk.f32.mxu0 %vm8175_vm0, %v8176_v6 }
 0x5c0   : > { %7402 = vmatmul.mubr.msk.f32.gmra.mrb[66].mxu0 %vm838_vm1, %v4177_v27  ;;  %v4180_v27 = vmul.f32 %v9752_v2, %v4089_v22 }
 0x5c1   : > { %7404 = vmatprep.mubr.msk.f32.mxu0 %vm8175_vm0, %v8176_v6 }
 0x5c4   : > { %7405 = vmatmul.mubr.msk.f32.gmra.mrb[68].mxu0 %vm838_vm1, %v4178_v29  ;;  %v9758_v29 = vpop.permute.xlu0 %4162 }
 0x5c5   : > { %7407 = vmatprep.mubr.msk.f32.mxu0 %vm8175_vm0, %v8176_v6  ;;  %v4181_v9 = vmul.f32 %v9758_v29, %v4090_v31 }
 0x5c8   : > { %7408 = vmatmul.mubr.msk.f32.gmra.mrb[70].mxu0 %vm838_vm1, %v4179_v51  ;;  %v9764_v51 = vpop.permute.xlu1 %4167 }
 0x5c9   : > { %7410 = vmatprep.mubr.msk.f32.mxu0 %vm8175_vm0, %v8176_v6  ;;  %v4182_v3 = vmul.f32 %v9764_v51, %v4091_v56  ;;  %v4381_v56 = vmul.f32 %v4081_v21, %v9612_v61  ;;  %v4386_v21 = vmul.f32 %v4086_v16, %v9643_v44  ;;  %v4378_v16 = vld [vmem:[#allocation3 + $0x62] sm:$0xff] }
 0x5cc   : > { %7411 = vmatmul.mubr.msk.f32.gmra.mrb[72].mxu0 %vm838_vm1, %v4180_v27  ;;  %v4380_v27 = vmul.f32 %v9693_v43, %v9603_v18  ;;  %v4385_v43 = vmul.f32 %v4085_v17, %v9637_v28  ;;  %v4390_v17 = vmul.f32 %v4090_v31, %v9667_v24  ;;  %v6398_v31 = vld [vmem:[%s10256_s8 + $0x70] sm:$0xff] }
 0x5cd   : > { %7413 = vmatprep.mubr.msk.f32.mxu0 %vm8175_vm0, %v8176_v6 }
 0x5d0   : > { %7414 = vmatmul.mubr.msk.f32.gmra.mrb[74].mxu0 %vm838_vm1, %v4181_v9  ;;  %v4384_v9 = vmul.f32 %v4084_v45, %v9631_v63  ;;  %v4389_v45 = vmul.f32 %v4089_v22, %v9661_v32 }
 0x5d1   : > { %7416 = vmatprep.mubr.msk.f32.mxu0 %vm8175_vm0, %v8176_v6 }
 0x5d4   : > { %7417 = vmatmul.mubr.msk.f32.gmra.mrb[76].mxu0 %vm838_vm1, %v4182_v3  ;;  %v4382_v3 = vmul.f32 %v4082_v50, %v9619_v34  ;;  %v4387_v50 = vmul.f32 %v4087_v39, %v9649_v62  ;;  %v4391_v39 = vmul.f32 %v4378_v16, %v9673_v25  ;;  %v4588_v16 = vld [vmem:[#allocation3 + $0x63] sm:$0xff] }
 0x5d5   : > { %7421 = vmatprep.mubr.msk.f32.mxu0 %vm8175_vm0, %v8176_v6 }
 0x5d8   : > { %7422 = vmatmul.mubr.msk.f32.vlgmr.msra.gmra.mrb[52].mxu0 %vm838_vm1, %v4380_v27  ;;  %v4577_v27 = vld [vmem:[#allocation3 + $0xb] sm:$0xff] }
 0x5d9   : > { %7461 = vmatpush3.msra.mxu0 %v6384_v15  ;;  %7424 = vmatprep.mubr.msk.f32.mxu0 %vm8175_vm0, %v8176_v6  ;;  %v4383_v15 = vmul.f32 %v4083_v1, %v9625_v20  ;;  %v4388_v1 = vmul.f32 %v4088_v42, %v9655_v11  ;;  %v4379_v42 = vld [vmem:[#allocation3 + $0x6a] sm:$0xf] }
 0x5da   : > { %7501 = vmatprep.subr.mxu0 %v8176_v6  ;;  %v4392_v22 = vmul.f32 %v4379_v42, %v9679_v4  ;;  %v4774_v42 = vld [vmem:[#allocation3 + $0xc] sm:$0xff] }
 0x5dc   : > { %7425 = vmatmul.mubr.msk.f32.gmra.mrb[54].mxu0 %vm838_vm1, %v4381_v56  ;;  %v4578_v56 = vld [vmem:[#allocation3 + $0x13] sm:$0xff] }
 0x5dd   : > { %7427 = vmatprep.mubr.msk.f32.mxu0 %vm8175_vm0, %v8176_v6 }
 0x5e0   : > { %7428 = vmatmul.mubr.msk.f32.gmra.mrb[56].mxu0 %vm838_vm1, %v4382_v3  ;;  %v4579_v3 = vld [vmem:[#allocation3 + $0x1b] sm:$0xff] }
 0x5e1   : > { %7430 = vmatprep.mubr.msk.f32.mxu0 %vm8175_vm0, %v8176_v6 }
 0x5e4   : > { %7431 = vmatmul.mubr.msk.f32.gmra.mrb[58].mxu0 %vm838_vm1, %v4383_v15  ;;  %v4580_v15 = vld [vmem:[#allocation3 + $0x23] sm:$0xff] }
 0x5e5   : > { %7433 = vmatprep.mubr.msk.f32.mxu0 %vm8175_vm0, %v8176_v6 }
 0x5e8   : > { %7434 = vmatmul.mubr.msk.f32.gmra.mrb[60].mxu0 %vm838_vm1, %v4384_v9  ;;  %v4581_v9 = vld [vmem:[#allocation3 + $0x2b] sm:$0xff] }
 0x5e9   : > { %7436 = vmatprep.mubr.msk.f32.mxu0 %vm8175_vm0, %v8176_v6 }
 0x5ec   : > { %7437 = vmatmul.mubr.msk.f32.gmra.mrb[62].mxu0 %vm838_vm1, %v4385_v43  ;;  %v4582_v43 = vld [vmem:[#allocation3 + $0x33] sm:$0xff] }
 0x5ed   : > { %7439 = vmatprep.mubr.msk.f32.mxu0 %vm8175_vm0, %v8176_v6 }
 0x5f0   : > { %7440 = vmatmul.mubr.msk.f32.gmra.mrb[64].mxu0 %vm838_vm1, %v4386_v21  ;;  %v4583_v21 = vld [vmem:[#allocation3 + $0x3b] sm:$0xff] }
 0x5f1   : > { %7442 = vmatprep.mubr.msk.f32.mxu0 %vm8175_vm0, %v8176_v6 }
 0x5f4   : > { %7443 = vmatmul.mubr.msk.f32.gmra.mrb[66].mxu0 %vm838_vm1, %v4387_v50  ;;  %v4584_v50 = vld [vmem:[#allocation3 + $0x43] sm:$0xff] }
 0x5f5   : > { %7445 = vmatprep.mubr.msk.f32.mxu0 %vm8175_vm0, %v8176_v6 }
 0x5f8   : > { %7446 = vmatmul.mubr.msk.f32.gmra.mrb[68].mxu0 %vm838_vm1, %v4388_v1  ;;  %v4585_v1 = vld [vmem:[#allocation3 + $0x4b] sm:$0xff] }
 0x5f9   : > { %7448 = vmatprep.mubr.msk.f32.mxu0 %vm8175_vm0, %v8176_v6 }
 0x5fc   : > { %7449 = vmatmul.mubr.msk.f32.gmra.mrb[70].mxu0 %vm838_vm1, %v4389_v45  ;;  %v4586_v45 = vld [vmem:[#allocation3 + $0x53] sm:$0xff] }
 0x5fd   : > { %7451 = vmatprep.mubr.msk.f32.mxu0 %vm8175_vm0, %v8176_v6 }
 0x600   : > { %7452 = vmatmul.mubr.msk.f32.gmra.mrb[72].mxu0 %vm838_vm1, %v4390_v17  ;;  %v4587_v17 = vld [vmem:[#allocation3 + $0x5b] sm:$0xff] }
 0x601   : > { %7454 = vmatprep.mubr.msk.f32.mxu0 %vm8175_vm0, %v8176_v6 }
 0x604   : > { %7455 = vmatmul.mubr.msk.f32.gmra.mrb[74].mxu0 %vm838_vm1, %v4391_v39  ;;  %v4589_v39 = vld [vmem:[#allocation3 + $0x6b] sm:$0xf] }
 0x605   : > { %7457 = vmatprep.mubr.msk.f32.mxu0 %vm8175_vm0, %v8176_v6 }
 0x608   : > { %7458 = vmatmul.mubr.msk.f32.gmra.mrb[76].mxu0 %vm838_vm1, %v4392_v22  ;;  %v4787_v22 = vmul.f32 %v4774_v42, %v9685_v13 }
 0x609   : > { %7462 = vmatprep.mubr.msk.f32.mxu0 %vm8175_vm0, %v8176_v6 }
 0x60c   : > { %7463 = vmatmul.mubr.msk.f32.vlgmr.msra.gmra.mrb[52].mxu0 %vm838_vm1, %v4577_v27  ;;  %v4775_v27 = vld [vmem:[#allocation3 + $0x14] sm:$0xff] }
 0x60d   : > { %7502 = vmatpush3.msra.mxu0 %v6398_v31  ;;  %7465 = vmatprep.mubr.msk.f32.mxu0 %vm8175_vm0, %v8176_v6  ;;  %v6412_v31 = vld [vmem:[%s10256_s8 + $0x78] sm:$0xff] }
 0x60e   : > { %7542 = vmatprep.subr.mxu0 %v8176_v6 }
 0x610   : > { %7466 = vmatmul.mubr.msk.f32.gmra.mrb[54].mxu0 %vm838_vm1, %v4578_v56  ;;  %v4788_v56 = vmul.f32 %v4775_v27, %v9696_v52 }
 0x611   : > { %7468 = vmatprep.mubr.msk.f32.mxu0 %vm8175_vm0, %v8176_v6 }
 0x614   : > { %7469 = vmatmul.mubr.msk.f32.gmra.mrb[56].mxu0 %vm838_vm1, %v4579_v3  ;;  %v4776_v3 = vld [vmem:[#allocation3 + $0x1c] sm:$0xff] }
 0x615   : > { %7471 = vmatprep.mubr.msk.f32.mxu0 %vm8175_vm0, %v8176_v6 }
 0x618   : > { %7472 = vmatmul.mubr.msk.f32.gmra.mrb[58].mxu0 %vm838_vm1, %v4580_v15  ;;  %v4789_v15 = vmul.f32 %v4776_v3, %v9704_v19 }
 0x619   : > { %7474 = vmatprep.mubr.msk.f32.mxu0 %vm8175_vm0, %v8176_v6 }
 0x61c   : > { %7475 = vmatmul.mubr.msk.f32.gmra.mrb[60].mxu0 %vm838_vm1, %v4581_v9  ;;  %v4777_v9 = vld [vmem:[#allocation3 + $0x24] sm:$0xff] }
 0x61d   : > { %7477 = vmatprep.mubr.msk.f32.mxu0 %vm8175_vm0, %v8176_v6 }
 0x620   : > { %7478 = vmatmul.mubr.msk.f32.gmra.mrb[62].mxu0 %vm838_vm1, %v4582_v43  ;;  %v4790_v43 = vmul.f32 %v4777_v9, %v9710_v41 }
 0x621   : > { %7480 = vmatprep.mubr.msk.f32.mxu0 %vm8175_vm0, %v8176_v6 }
 0x624   : > { %7481 = vmatmul.mubr.msk.f32.gmra.mrb[64].mxu0 %vm838_vm1, %v4583_v21  ;;  %v4778_v21 = vld [vmem:[#allocation3 + $0x2c] sm:$0xff] }
 0x625   : > { %7483 = vmatprep.mubr.msk.f32.mxu0 %vm8175_vm0, %v8176_v6 }
 0x628   : > { %7484 = vmatmul.mubr.msk.f32.gmra.mrb[66].mxu0 %vm838_vm1, %v4584_v50  ;;  %v4791_v50 = vmul.f32 %v4778_v21, %v9716_v14 }
 0x629   : > { %7486 = vmatprep.mubr.msk.f32.mxu0 %vm8175_vm0, %v8176_v6 }
 0x62c   : > { %7487 = vmatmul.mubr.msk.f32.gmra.mrb[68].mxu0 %vm838_vm1, %v4585_v1  ;;  %v4779_v1 = vld [vmem:[#allocation3 + $0x34] sm:$0xff] }
 0x62d   : > { %7489 = vmatprep.mubr.msk.f32.mxu0 %vm8175_vm0, %v8176_v6 }
 0x630   : > { %7490 = vmatmul.mubr.msk.f32.gmra.mrb[70].mxu0 %vm838_vm1, %v4586_v45  ;;  %v4792_v45 = vmul.f32 %v4779_v1, %v9722_v8 }
 0x631   : > { %7492 = vmatprep.mubr.msk.f32.mxu0 %vm8175_vm0, %v8176_v6 }
 0x634   : > { %7493 = vmatmul.mubr.msk.f32.gmra.mrb[72].mxu0 %vm838_vm1, %v4587_v17  ;;  %v4780_v17 = vld [vmem:[#allocation3 + $0x3c] sm:$0xff] }
 0x635   : > { %7495 = vmatprep.mubr.msk.f32.mxu0 %vm8175_vm0, %v8176_v6 }
 0x638   : > { %7496 = vmatmul.mubr.msk.f32.gmra.mrb[74].mxu0 %vm838_vm1, %v4588_v16  ;;  %v4793_v16 = vmul.f32 %v4780_v17, %v9728_v35 }
 0x639   : > { %7498 = vmatprep.mubr.msk.f32.mxu0 %vm8175_vm0, %v8176_v6 }
 0x63c   : > { %7499 = vmatmul.mubr.msk.f32.gmra.mrb[76].mxu0 %vm838_vm1, %v4589_v39  ;;  %v4781_v39 = vld [vmem:[#allocation3 + $0x44] sm:$0xff] }
 0x63d   : > { %7503 = vmatprep.mubr.msk.f32.mxu0 %vm8175_vm0, %v8176_v6  ;;  %v4794_v42 = vmul.f32 %v4781_v39, %v9734_v5 }
 0x640   : > { %7504 = vmatmul.mubr.msk.f32.vlgmr.msra.gmra.mrb[52].mxu0 %vm838_vm1, %v4787_v22  ;;  %v4782_v22 = vld [vmem:[#allocation3 + $0x4c] sm:$0xff] }
 0x641   : > { %7543 = vmatpush3.msra.mxu0 %v6412_v31  ;;  %7506 = vmatprep.mubr.msk.f32.mxu0 %vm8175_vm0, %v8176_v6  ;;  %v4795_v31 = vmul.f32 %v4782_v22, %v9740_v40 }
 0x642   : > { %7583 = vmatprep.subr.mxu0 %v8176_v6 }
 0x644   : > { %7507 = vmatmul.mubr.msk.f32.gmra.mrb[54].mxu0 %vm838_vm1, %v4788_v56  ;;  %v4783_v56 = vld [vmem:[#allocation3 + $0x54] sm:$0xff] }
 0x645   : > { %7509 = vmatprep.mubr.msk.f32.mxu0 %vm8175_vm0, %v8176_v6 }
 0x648   : > { %7510 = vmatmul.mubr.msk.f32.gmra.mrb[56].mxu0 %vm838_vm1, %v4789_v15  ;;  %v4796_v15 = vmul.f32 %v4783_v56, %v9746_v58 }
 0x649   : > { %7512 = vmatprep.mubr.msk.f32.mxu0 %vm8175_vm0, %v8176_v6 }
 0x64c   : > { %7513 = vmatmul.mubr.msk.f32.gmra.mrb[58].mxu0 %vm838_vm1, %v4790_v43  ;;  %v4784_v43 = vld [vmem:[#allocation3 + $0x5c] sm:$0xff] }
 0x64d   : > { %7515 = vmatprep.mubr.msk.f32.mxu0 %vm8175_vm0, %v8176_v6 }
 0x650   : > { %7516 = vmatmul.mubr.msk.f32.gmra.mrb[60].mxu0 %vm838_vm1, %v4791_v50  ;;  %v4797_v50 = vmul.f32 %v4784_v43, %v9752_v2 }
 0x651   : > { %7518 = vmatprep.mubr.msk.f32.mxu0 %vm8175_vm0, %v8176_v6 }
 0x654   : > { %7519 = vmatmul.mubr.msk.f32.gmra.mrb[62].mxu0 %vm838_vm1, %v4792_v45  ;;  %v4785_v45 = vld [vmem:[#allocation3 + $0x64] sm:$0xff] }
 0x655   : > { %7521 = vmatprep.mubr.msk.f32.mxu0 %vm8175_vm0, %v8176_v6 }
 0x658   : > { %7522 = vmatmul.mubr.msk.f32.gmra.mrb[64].mxu0 %vm838_vm1, %v4793_v16  ;;  %v4798_v16 = vmul.f32 %v4785_v45, %v9758_v29 }
 0x659   : > { %7524 = vmatprep.mubr.msk.f32.mxu0 %vm8175_vm0, %v8176_v6 }
 0x65c   : > { %7525 = vmatmul.mubr.msk.f32.gmra.mrb[66].mxu0 %vm838_vm1, %v4794_v42  ;;  %v4786_v42 = vld [vmem:[#allocation3 + $0x6c] sm:$0xf] }
 0x65d   : > { %7527 = vmatprep.mubr.msk.f32.mxu0 %vm8175_vm0, %v8176_v6 }
 0x660   : > { %7528 = vmatmul.mubr.msk.f32.gmra.mrb[68].mxu0 %vm838_vm1, %v4795_v31  ;;  %v4799_v31 = vmul.f32 %v4786_v42, %v9764_v51  ;;  %v5203_v42 = vld [vmem:[#allocation3 + $0x5d] sm:$0xff] }
 0x661   : > { %7530 = vmatprep.mubr.msk.f32.mxu0 %vm8175_vm0, %v8176_v6 }
 0x664   : > { %7531 = vmatmul.mubr.msk.f32.gmra.mrb[70].mxu0 %vm838_vm1, %v4796_v15  ;;  %v4997_v15 = vmul.f32 %v4775_v27, %v9603_v18  ;;  %v4999_v18 = vmul.f32 %v4777_v9, %v9619_v34  ;;  %v5000_v27 = vmul.f32 %v4778_v21, %v9625_v20  ;;  %v5002_v34 = vmul.f32 %v4780_v17, %v9637_v28  ;;  %v4995_v9 = vld [vmem:[#allocation3 + $0x6c] sm:$0xff]  ;;  %v4996_v21 = vld [vmem:[#allocation3 + $0x74] sm:$0xf] }
 0x665   : > { %7533 = vmatprep.mubr.msk.f32.mxu0 %vm8175_vm0, %v8176_v6  ;;  %v5003_v20 = vmul.f32 %v4781_v39, %v9643_v44  ;;  %v5005_v28 = vmul.f32 %v4783_v56, %v9655_v11  ;;  %v5006_v44 = vmul.f32 %v4784_v43, %v9661_v32  ;;  %v5008_v11 = vmul.f32 %v4995_v9, %v9673_v25  ;;  %v5195_v25 = vld [vmem:[#allocation3 + $0x1d] sm:$0xff]  ;;  %v5197_v17 = vld [vmem:[#allocation3 + $0x2d] sm:$0xff]  ;;  %v5198_v39 = vld [vmem:[#allocation3 + $0x35] sm:$0xff] }
 0x666   : > { %v5009_v32 = vmul.f32 %v4996_v21, %v9679_v4  ;;  %v5196_v4 = vld [vmem:[#allocation3 + $0x25] sm:$0xff]  ;;  %v5201_v43 = vld [vmem:[#allocation3 + $0x4d] sm:$0xff]  ;;  %v5399_v9 = vld [vmem:[#allocation3 + $0x56] sm:$0xff] }
 0x667   : > { %v5200_v56 = vld [vmem:[#allocation3 + $0x45] sm:$0xff] }
 0x668   : > { %7534 = vmatmul.mubr.msk.f32.gmra.mrb[72].mxu0 %vm838_vm1, %v4797_v50  ;;  %v6426_v50 = vld [vmem:[%s10256_s8 + $0x80] sm:$0xff]  ;;  %v5401_v21 = vld [vmem:[#allocation3 + $0x66] sm:$0xff] }
 0x669   : > { %7536 = vmatprep.mubr.msk.f32.mxu0 %vm8175_vm0, %v8176_v6 }
 0x66c   : > { %7537 = vmatmul.mubr.msk.f32.gmra.mrb[74].mxu0 %vm838_vm1, %v4798_v16  ;;  %v4998_v16 = vmul.f32 %v4776_v3, %v9612_v61  ;;  %v5001_v61 = vmul.f32 %v4779_v1, %v9631_v63  ;;  %v6458_v63 = vld [vmem:[%s10259_s11 + $0x8] sm:$0xff]  ;;  %v5004_v3 = vmul.f32 %v4782_v22, %v9649_v62  ;;  %v5007_v62 = vmul.f32 %v4785_v45, %v9667_v24  ;;  %v5194_v1 = vld [vmem:[#allocation3 + $0x15] sm:$0xff] }
 0x66d   : > { %7539 = vmatprep.mubr.msk.f32.mxu0 %vm8175_vm0, %v8176_v6  ;;  %7666 = vmatpush3.msra.mxu1 %v6458_v63  ;;  %v6440_v24 = vld [vmem:[%s10256_s8 + $0x88] sm:$0xff]  ;;  %v5202_v45 = vld [vmem:[#allocation3 + $0x55] sm:$0xff] }
 0x66e   : > { %v5199_v22 = vld [vmem:[#allocation3 + $0x3d] sm:$0xff]  ;;  %v5394_v63 = vld [vmem:[#allocation3 + $0x2e] sm:$0xff] }
 0x670   : > { %7540 = vmatmul.mubr.msk.f32.gmra.mrb[76].mxu0 %vm838_vm1, %v4799_v31  ;;  %v5204_v31 = vld [vmem:[#allocation3 + $0x65] sm:$0xff] }
 0x671   : > { %7544 = vmatprep.mubr.msk.f32.mxu0 %vm8175_vm0, %v8176_v6 }
 0x674   : > { %7545 = vmatmul.mubr.msk.f32.vlgmr.msra.gmra.mrb[52].mxu0 %vm838_vm1, %v4997_v15  ;;  %v5205_v15 = vld [vmem:[#allocation3 + $0x6d] sm:$0xff] }
 0x675   : > { %7584 = vmatpush3.msra.mxu0 %v6426_v50  ;;  %7547 = vmatprep.mubr.msk.f32.mxu0 %vm8175_vm0, %v8176_v6  ;;  %v5206_v50 = vld [vmem:[#allocation3 + $0x75] sm:$0xf] }
 0x676   : > { %7624 = vmatprep.subr.mxu0 %v8176_v6 }
 0x678   : > { %7548 = vmatmul.mubr.msk.f32.gmra.mrb[54].mxu0 %vm838_vm1, %v4998_v16  ;;  %v5391_v16 = vld [vmem:[#allocation3 + $0x16] sm:$0xff] }
 0x679   : > { %7550 = vmatprep.mubr.msk.f32.mxu0 %vm8175_vm0, %v8176_v6 }
 0x67c   : > { %7551 = vmatmul.mubr.msk.f32.gmra.mrb[56].mxu0 %vm838_vm1, %v4999_v18  ;;  %v5404_v18 = vmul.f32 %v5391_v16, %v9685_v13  ;;  %v5407_v13 = vmul.f32 %v5394_v63, %v9710_v41 }
 0x67d   : > { %7553 = vmatprep.mubr.msk.f32.mxu0 %vm8175_vm0, %v8176_v6 }
 0x680   : > { %7554 = vmatmul.mubr.msk.f32.gmra.mrb[58].mxu0 %vm838_vm1, %v5000_v27  ;;  %v5392_v27 = vld [vmem:[#allocation3 + $0x1e] sm:$0xff] }
 0x681   : > { %7556 = vmatprep.mubr.msk.f32.mxu0 %vm8175_vm0, %v8176_v6 }
 0x684   : > { %7557 = vmatmul.mubr.msk.f32.gmra.mrb[60].mxu0 %vm838_vm1, %v5001_v61  ;;  %v5405_v61 = vmul.f32 %v5392_v27, %v9696_v52 }
 0x685   : > { %7559 = vmatprep.mubr.msk.f32.mxu0 %vm8175_vm0, %v8176_v6 }
 0x688   : > { %7560 = vmatmul.mubr.msk.f32.gmra.mrb[62].mxu0 %vm838_vm1, %v5002_v34  ;;  %v5393_v34 = vld [vmem:[#allocation3 + $0x26] sm:$0xff] }
 0x689   : > { %7562 = vmatprep.mubr.msk.f32.mxu0 %vm8175_vm0, %v8176_v6 }
 0x68c   : > { %7563 = vmatmul.mubr.msk.f32.gmra.mrb[64].mxu0 %vm838_vm1, %v5003_v20  ;;  %v5406_v20 = vmul.f32 %v5393_v34, %v9704_v19 }
 0x68d   : > { %7565 = vmatprep.mubr.msk.f32.mxu0 %vm8175_vm0, %v8176_v6 }
 0x690   : > { %7566 = vmatmul.mubr.msk.f32.gmra.mrb[66].mxu0 %vm838_vm1, %v5004_v3  ;;  %v5395_v3 = vld [vmem:[#allocation3 + $0x36] sm:$0xff] }
 0x691   : > { %7568 = vmatprep.mubr.msk.f32.mxu0 %vm8175_vm0, %v8176_v6  ;;  %v5408_v52 = vmul.f32 %v5395_v3, %v9716_v14 }
 0x694   : > { %7569 = vmatmul.mubr.msk.f32.gmra.mrb[68].mxu0 %vm838_vm1, %v5005_v28  ;;  %v5396_v28 = vld [vmem:[#allocation3 + $0x3e] sm:$0xff] }
 0x695   : > { %7571 = vmatprep.mubr.msk.f32.mxu0 %vm8175_vm0, %v8176_v6  ;;  %v5409_v19 = vmul.f32 %v5396_v28, %v9722_v8  ;;  %v5412_v8 = vmul.f32 %v5399_v9, %v9740_v40 }
 0x698   : > { %7572 = vmatmul.mubr.msk.f32.gmra.mrb[70].mxu0 %vm838_vm1, %v5006_v44  ;;  %v5397_v44 = vld [vmem:[#allocation3 + $0x46] sm:$0xff] }
 0x699   : > { %7574 = vmatprep.mubr.msk.f32.mxu0 %vm8175_vm0, %v8176_v6  ;;  %v5410_v41 = vmul.f32 %v5397_v44, %v9728_v35 }
 0x69c   : > { %7575 = vmatmul.mubr.msk.f32.gmra.mrb[72].mxu0 %vm838_vm1, %v5007_v62  ;;  %v5398_v62 = vld [vmem:[#allocation3 + $0x4e] sm:$0xff] }
 0x69d   : > { %7577 = vmatprep.mubr.msk.f32.mxu0 %vm8175_vm0, %v8176_v6  ;;  %v5411_v14 = vmul.f32 %v5398_v62, %v9734_v5  ;;  %v5414_v5 = vmul.f32 %v5401_v21, %v9752_v2  ;;  %v10082_v2 = vld [vmem:[%s10257_s9 + $0x1] ss:$0 sm:$0xff] }
 0x6a0   : > { %7578 = vmatmul.mubr.msk.f32.gmra.mrb[74].mxu0 %vm838_vm1, %v5008_v11  ;;  %v5400_v11 = vld [vmem:[#allocation3 + $0x5e] sm:$0xff] }
 0x6a1   : > { %7580 = vmatprep.mubr.msk.f32.mxu0 %vm8175_vm0, %v8176_v6  ;;  %v5413_v35 = vmul.f32 %v5400_v11, %v9746_v58 }
 0x6a4   : > { %7581 = vmatmul.mubr.msk.f32.gmra.mrb[76].mxu0 %vm838_vm1, %v5009_v32  ;;  %v5402_v32 = vld [vmem:[#allocation3 + $0x6e] sm:$0xff] }
 0x6a5   : > { %7585 = vmatprep.mubr.msk.f32.mxu0 %vm8175_vm0, %v8176_v6  ;;  %v5415_v40 = vmul.f32 %v5402_v32, %v9758_v29  ;;  %v10087_v29 = vld [vmem:[%s10258_s10 + $0x1] ss:$0 sm:$0xff] }
 0x6a8   : > { %7586 = vmatmul.mubr.msk.f32.vlgmr.msra.gmra.mrb[52].mxu0 %vm838_vm1, %v5194_v1 }
 0x6a9   : > { %7625 = vmatpush3.msra.mxu0 %v6440_v24  ;;  %7588 = vmatprep.mubr.msk.f32.mxu0 %vm8175_vm0, %v8176_v6  ;;  %v5403_v24 = vld [vmem:[#allocation3 + $0x76] sm:$0xf] }
 0x6aa   : > { %v5416_v58 = vmul.f32 %v5403_v24, %v9764_v51 }
 0x6ac   : > { %7589 = vmatmul.mubr.msk.f32.gmra.mrb[54].mxu0 %vm838_vm1, %v5195_v25 }
 0x6ad   : > { %7591 = vmatprep.mubr.msk.f32.mxu0 %vm8175_vm0, %v8176_v6 }
 0x6b0   : > { %7592 = vmatmul.mubr.msk.f32.gmra.mrb[56].mxu0 %vm838_vm1, %v5196_v4 }
 0x6b1   : > { %7594 = vmatprep.mubr.msk.f32.mxu0 %vm8175_vm0, %v8176_v6 }
 0x6b4   : > { %7595 = vmatmul.mubr.msk.f32.gmra.mrb[58].mxu0 %vm838_vm1, %v5197_v17 }
 0x6b5   : > { %7597 = vmatprep.mubr.msk.f32.mxu0 %vm8175_vm0, %v8176_v6 }
 0x6b8   : > { %7598 = vmatmul.mubr.msk.f32.gmra.mrb[60].mxu0 %vm838_vm1, %v5198_v39 }
 0x6b9   : > { %7600 = vmatprep.mubr.msk.f32.mxu0 %vm8175_vm0, %v8176_v6 }
 0x6bc   : > { %7601 = vmatmul.mubr.msk.f32.gmra.mrb[62].mxu0 %vm838_vm1, %v5199_v22 }
 0x6bd   : > { %7603 = vmatprep.mubr.msk.f32.mxu0 %vm8175_vm0, %v8176_v6 }
 0x6c0   : > { %7604 = vmatmul.mubr.msk.f32.gmra.mrb[64].mxu0 %vm838_vm1, %v5200_v56 }
 0x6c1   : > { %7606 = vmatprep.mubr.msk.f32.mxu0 %vm8175_vm0, %v8176_v6 }
 0x6c4   : > { %7607 = vmatmul.mubr.msk.f32.gmra.mrb[66].mxu0 %vm838_vm1, %v5201_v43 }
 0x6c5   : > { %7609 = vmatprep.mubr.msk.f32.mxu0 %vm8175_vm0, %v8176_v6 }
 0x6c8   : > { %7610 = vmatmul.mubr.msk.f32.gmra.mrb[68].mxu0 %vm838_vm1, %v5202_v45 }
 0x6c9   : > { %7612 = vmatprep.mubr.msk.f32.mxu0 %vm8175_vm0, %v8176_v6 }
 0x6cc   : > { %7613 = vmatmul.mubr.msk.f32.gmra.mrb[70].mxu0 %vm838_vm1, %v5203_v42 }
 0x6cd   : > { %7615 = vmatprep.mubr.msk.f32.mxu0 %vm8175_vm0, %v8176_v6 }
 0x6d0   : > { %7616 = vmatmul.mubr.msk.f32.gmra.mrb[72].mxu0 %vm838_vm1, %v5204_v31 }
 0x6d1   : > { %7618 = vmatprep.mubr.msk.f32.mxu0 %vm8175_vm0, %v8176_v6 }
 0x6d4   : > { %7619 = vmatmul.mubr.msk.f32.gmra.mrb[74].mxu0 %vm838_vm1, %v5205_v15 }
 0x6d5   : > { %7621 = vmatprep.mubr.msk.f32.mxu0 %vm8175_vm0, %v8176_v6 }
 0x6d8   : > { %7622 = vmatmul.mubr.msk.f32.gmra.mrb[76].mxu0 %vm838_vm1, %v5206_v50 }
 0x6d9   : > { %7626 = vmatprep.mubr.msk.f32.mxu0 %vm8175_vm0, %v8176_v6 }
 0x6dc   : > { %7627 = vmatmul.mubr.msk.f32.vlgmr.msra.gmra.mrb[52].mxu0 %vm838_vm1, %v5404_v18 }
 0x6dd   : > { %7629 = vmatprep.mubr.msk.f32.mxu0 %vm8175_vm0, %v8176_v6 }
 0x6e0   : > { %7630 = vmatmul.mubr.msk.f32.gmra.mrb[54].mxu0 %vm838_vm1, %v5405_v61 }
 0x6e1   : > { %7632 = vmatprep.mubr.msk.f32.mxu0 %vm8175_vm0, %v8176_v6 }
 0x6e4   : > { %7633 = vmatmul.mubr.msk.f32.gmra.mrb[56].mxu0 %vm838_vm1, %v5406_v20 }
 0x6e5   : > { %7635 = vmatprep.mubr.msk.f32.mxu0 %vm8175_vm0, %v8176_v6 }
 0x6e8   : > { %7636 = vmatmul.mubr.msk.f32.gmra.mrb[58].mxu0 %vm838_vm1, %v5407_v13 }
 0x6e9   : > { %7638 = vmatprep.mubr.msk.f32.mxu0 %vm8175_vm0, %v8176_v6 }
 0x6ec   : > { %7639 = vmatmul.mubr.msk.f32.gmra.mrb[60].mxu0 %vm838_vm1, %v5408_v52 }
 0x6ed   : > { %7641 = vmatprep.mubr.msk.f32.mxu0 %vm8175_vm0, %v8176_v6 }
 0x6f0   : > { %7642 = vmatmul.mubr.msk.f32.gmra.mrb[62].mxu0 %vm838_vm1, %v5409_v19 }
 0x6f1   : > { %7644 = vmatprep.mubr.msk.f32.mxu0 %vm8175_vm0, %v8176_v6 }
 0x6f4   : > { %7645 = vmatmul.mubr.msk.f32.gmra.mrb[64].mxu0 %vm838_vm1, %v5410_v41 }
 0x6f5   : > { %7647 = vmatprep.mubr.msk.f32.mxu0 %vm8175_vm0, %v8176_v6 }
 0x6f8   : > { %7648 = vmatmul.mubr.msk.f32.gmra.mrb[66].mxu0 %vm838_vm1, %v5411_v14 }
 0x6f9   : > { %7650 = vmatprep.mubr.msk.f32.mxu0 %vm8175_vm0, %v8176_v6 }
 0x6fc   : > { %7651 = vmatmul.mubr.msk.f32.gmra.mrb[68].mxu0 %vm838_vm1, %v5412_v8 }
 0x6fd   : > { %7653 = vmatprep.mubr.msk.f32.mxu0 %vm8175_vm0, %v8176_v6 }
 0x700   : > { %7654 = vmatmul.mubr.msk.f32.gmra.mrb[70].mxu0 %vm838_vm1, %v5413_v35 }
 0x701   : > { %7656 = vmatprep.mubr.msk.f32.mxu0 %vm8175_vm0, %v8176_v6 }
 0x704   : > { %7657 = vmatmul.mubr.msk.f32.gmra.mrb[72].mxu0 %vm838_vm1, %v5414_v5 }
 0x705   : > { %7659 = vmatprep.mubr.msk.f32.mxu0 %vm8175_vm0, %v8176_v6 }
 0x708   : > { %7660 = vmatmul.mubr.msk.f32.gmra.mrb[74].mxu0 %vm838_vm1, %v5415_v40 }
 0x709   : > { %7662 = vmatprep.mubr.msk.f32.mxu0 %vm8175_vm0, %v8176_v6 }
 0x70c   : > { %7663 = vmatmul.mubr.msk.f32.gmra.mrb[76].mxu0 %vm838_vm1, %v5416_v58 }
 0x7af   : > { %v5524_v1 = vpop.f32.mrb[52].mxu0 }
 0x7b0   : > { %v5609_v25 = vmul.f32 %v10082_v2, %v5524_v1  ;;  %v7628_v4 = vpop.f32.mrb[53].mxu0 }
 0x7b2   : > { %v5630_v17 = vadd.f32 %v10087_v29, %v5609_v25 }
 0x7b3   : > { %v5529_v39 = vpop.f32.mrb[54].mxu0 }
 0x7b4   : > { %v5643_v51 = vmax.f32 %v5630_v17, 0.0  ;;  %v5610_v22 = vmul.f32 %v10082_v2, %v5529_v39  ;;  %v7631_v56 = vpop.f32.mrb[55].mxu0 }
 0x7b6   : > { %v5631_v43 = vadd.f32 %v10087_v29, %v5610_v22  ;;  %7668 = vmatmul.mubr.msk.f32.vlgmr.msra.gmra.mrb[52].mxu1 %vm838_vm1, %v5643_v51 }
 0x7b7   : > { %v5534_v45 = vpop.f32.mrb[56].mxu0  ;;  %7670 = vmatprep.mubr.msk.f32.mxu1 %vm8175_vm0, %v8176_v6 }
 0x7b8   : > { %v5644_v42 = vmax.f32 %v5631_v43, 0.0  ;;  %v5611_v31 = vmul.f32 %v10082_v2, %v5534_v45  ;;  %v7634_v15 = vpop.f32.mrb[57].mxu0 }
 0x7ba   : > { %v5632_v50 = vadd.f32 %v10087_v29, %v5611_v31  ;;  %7671 = vmatmul.mubr.msk.f32.gmra.mrb[54].mxu1 %vm838_vm1, %v5644_v42 }
 0x7bb   : > { %v5539_v16 = vpop.f32.mrb[58].mxu0  ;;  %7673 = vmatprep.mubr.msk.f32.mxu1 %vm8175_vm0, %v8176_v6 }
 0x7bc   : > { %v5645_v18 = vmax.f32 %v5632_v50, 0.0  ;;  %v5612_v27 = vmul.f32 %v10082_v2, %v5539_v16  ;;  %v7637_v61 = vpop.f32.mrb[59].mxu0 }
 0x7be   : > { %v5633_v34 = vadd.f32 %v10087_v29, %v5612_v27  ;;  %7674 = vmatmul.mubr.msk.f32.gmra.mrb[56].mxu1 %vm838_vm1, %v5645_v18 }
 0x7bf   : > { %v5544_v20 = vpop.f32.mrb[60].mxu0  ;;  %7676 = vmatprep.mubr.msk.f32.mxu1 %vm8175_vm0, %v8176_v6 }
 0x7c0   : > { %v5646_v63 = vmax.f32 %v5633_v34, 0.0  ;;  %v5613_v13 = vmul.f32 %v10082_v2, %v5544_v20  ;;  %v7640_v3 = vpop.f32.mrb[61].mxu0 }
 0x7c2   : > { %v5634_v52 = vadd.f32 %v10087_v29, %v5613_v13  ;;  %7677 = vmatmul.mubr.msk.f32.gmra.mrb[58].mxu1 %vm838_vm1, %v5646_v63 }
 0x7c3   : > { %v5549_v28 = vpop.f32.mrb[62].mxu0  ;;  %7679 = vmatprep.mubr.msk.f32.mxu1 %vm8175_vm0, %v8176_v6 }
 0x7c4   : > { %v5647_v19 = vmax.f32 %v5634_v52, 0.0  ;;  %v5614_v44 = vmul.f32 %v10082_v2, %v5549_v28  ;;  %v7643_v41 = vpop.f32.mrb[63].mxu0 }
 0x7c6   : > { %v5635_v62 = vadd.f32 %v10087_v29, %v5614_v44  ;;  %7680 = vmatmul.mubr.msk.f32.gmra.mrb[60].mxu1 %vm838_vm1, %v5647_v19  ;;  %v10155_v19 = vld [vmem:[%s10260_s12 + $0x1] ss:$0 sm:$0xff] }
 0x7c7   : > { %v5554_v14 = vpop.f32.mrb[64].mxu0  ;;  %7682 = vmatprep.mubr.msk.f32.mxu1 %vm8175_vm0, %v8176_v6 }
 0x7c8   : > { %v5648_v9 = vmax.f32 %v5635_v62, 0.0  ;;  %v5615_v8 = vmul.f32 %v10082_v2, %v5554_v14  ;;  %v7646_v11 = vpop.f32.mrb[65].mxu0 }
 0x7ca   : > { %v5636_v35 = vadd.f32 %v10087_v29, %v5615_v8  ;;  %7683 = vmatmul.mubr.msk.f32.gmra.mrb[62].mxu1 %vm838_vm1, %v5648_v9 }
 0x7cb   : > { %v5559_v21 = vpop.f32.mrb[66].mxu0  ;;  %7685 = vmatprep.mubr.msk.f32.mxu1 %vm8175_vm0, %v8176_v6 }
 0x7cc   : > { %v5649_v5 = vmax.f32 %v5636_v35, 0.0  ;;  %v5616_v32 = vmul.f32 %v10082_v2, %v5559_v21  ;;  %v7649_v40 = vpop.f32.mrb[67].mxu0 }
 0x7ce   : > { %v5637_v24 = vadd.f32 %v10087_v29, %v5616_v32  ;;  %7686 = vmatmul.mubr.msk.f32.gmra.mrb[64].mxu1 %vm838_vm1, %v5649_v5 }
 0x7cf   : > { %v5564_v58 = vpop.f32.mrb[68].mxu0  ;;  %7688 = vmatprep.mubr.msk.f32.mxu1 %vm8175_vm0, %v8176_v6 }
 0x7d0   : > { %v5650_v1 = vmax.f32 %v5637_v24, 0.0  ;;  %v5617_v25 = vmul.f32 %v10082_v2, %v5564_v58  ;;  %v7652_v4 = vpop.f32.mrb[69].mxu0 }
 0x7d2   : > { %v5638_v17 = vadd.f32 %v10087_v29, %v5617_v25  ;;  %7689 = vmatmul.mubr.msk.f32.gmra.mrb[66].mxu1 %vm838_vm1, %v5650_v1 }
 0x7d3   : > { %v5569_v39 = vpop.f32.mrb[70].mxu0  ;;  %7691 = vmatprep.mubr.msk.f32.mxu1 %vm8175_vm0, %v8176_v6 }
 0x7d4   : > { %v5651_v51 = vmax.f32 %v5638_v17, 0.0  ;;  %v5618_v22 = vmul.f32 %v10082_v2, %v5569_v39  ;;  %v7655_v56 = vpop.f32.mrb[71].mxu0 }
 0x7d6   : > { %v5639_v43 = vadd.f32 %v10087_v29, %v5618_v22  ;;  %7692 = vmatmul.mubr.msk.f32.gmra.mrb[68].mxu1 %vm838_vm1, %v5651_v51 }
 0x7d7   : > { %v5574_v45 = vpop.f32.mrb[72].mxu0  ;;  %7694 = vmatprep.mubr.msk.f32.mxu1 %vm8175_vm0, %v8176_v6 }
 0x7d8   : > { %v5652_v42 = vmax.f32 %v5639_v43, 0.0  ;;  %v5619_v31 = vmul.f32 %v10082_v2, %v5574_v45  ;;  %v7658_v15 = vpop.f32.mrb[73].mxu0 }
 0x7da   : > { %v5640_v50 = vadd.f32 %v10087_v29, %v5619_v31  ;;  %7695 = vmatmul.mubr.msk.f32.gmra.mrb[70].mxu1 %vm838_vm1, %v5652_v42 }
 0x7db   : > { %v5579_v16 = vpop.f32.mrb[74].mxu0  ;;  %7697 = vmatprep.mubr.msk.f32.mxu1 %vm8175_vm0, %v8176_v6 }
 0x7dc   : > { %v5653_v18 = vmax.f32 %v5640_v50, 0.0  ;;  %v5620_v27 = vmul.f32 %v10082_v2, %v5579_v16  ;;  %v7661_v61 = vpop.f32.mrb[75].mxu0 }
 0x7de   : > { %v5641_v34 = vadd.f32 %v10087_v29, %v5620_v27  ;;  %7698 = vmatmul.mubr.msk.f32.gmra.mrb[72].mxu1 %vm838_vm1, %v5653_v18 }
 0x7df   : > { %v5584_v20 = vpop.f32.mrb[76].mxu0  ;;  %7700 = vmatprep.mubr.msk.f32.mxu1 %vm8175_vm0, %v8176_v6 }
 0x7e0   : > { %v5654_v63 = vmax.f32 %v5641_v34, 0.0  ;;  %v5621_v13 = vmul.f32 %v10082_v2, %v5584_v20  ;;  %v7664_v3 = vpop.f32.mrb[77].mxu0  ;;  %v10160_v2 = vld [vmem:[%s10261_s13 + $0x1] ss:$0 sm:$0xff] }
 0x7e2   : > { %v5642_v52 = vadd.f32 %v10087_v29, %v5621_v13  ;;  %7701 = vmatmul.mubr.msk.f32.gmra.mrb[74].mxu1 %vm838_vm1, %v5654_v63 }
 0x7e3   : > { %7703 = vmatprep.mubr.msk.f32.mxu1 %vm8175_vm0, %v8176_v6 }
 0x7e4   : > { %v5655_v28 = vmax.f32 %v5642_v52, 0.0  ;;  %v10268_v52 = vmax.f32 %v9460_v37, 0.0 }
 0x7e6   : > { %7704 = vmatmul.mubr.msk.f32.gmra.mrb[76].mxu1 %vm838_vm1, %v5655_v28 }
 0x889   : > { %v5763_v44 = vpop.f32.mrb[52].mxu1 }
 0x88a   : > { %v5835_v29 = vmul.f32 %v10155_v19, %v5763_v44  ;;  %v7669_v41 = vpop.f32.mrb[53].mxu1 }
 0x88c   : > { %v5856_v6 = vadd.f32 %v10160_v2, %v5835_v29 }
 0x88d   : > { %v5768_v62 = vpop.f32.mrb[54].mxu1 }
 0x88e   : > { %v5869_v14 = vadd.f32 %v5856_v6, %v3365_v57  ;;  %v5836_v9 = vmul.f32 %v10155_v19, %v5768_v62  ;;  %v7672_v8 = vpop.f32.mrb[55].mxu1  ;;  %v10269_v6 = vmax.f32 %v9470_v59, 0.0 }
 0x890   : > { %v5882_v11 = vmax.f32 %v5869_v14, 0.0  ;;  %v5857_v35 = vadd.f32 %v10160_v2, %v5836_v9 }
 0x891   : > { %v5773_v21 = vpop.f32.mrb[56].mxu1 }
 0x892   : > { %5895 = vst.msk [vmem:[%s10171_s23] sm:$0xff] %vm672_vm2, %v5882_v11  ;;  %v5870_v49 = vadd.f32 %v5857_v35, %v3366_v36  ;;  %v5837_v57 = vmul.f32 %v10155_v19, %v5773_v21  ;;  %v7675_v5 = vpop.f32.mrb[57].mxu1  ;;  %v10270_v35 = vmax.f32 %v9480_v38, 0.0 }
 0x894   : > { %v5883_v32 = vmax.f32 %v5870_v49, 0.0  ;;  %v5858_v40 = vadd.f32 %v10160_v2, %v5837_v57 }
 0x895   : > { %v5778_v24 = vpop.f32.mrb[58].mxu1 }
 0x896   : > { %5896 = vst.msk [vmem:[%s10171_s23 + $0x8] sm:$0xff] %vm672_vm2, %v5883_v32  ;;  %v5871_v58 = vadd.f32 %v5858_v40, %v3367_v53  ;;  %v5838_v1 = vmul.f32 %v10155_v19, %v5778_v24  ;;  %v7678_v25 = vpop.f32.mrb[59].mxu1  ;;  %v10271_v40 = vmax.f32 %v9490_v0, 0.0 }
 0x898   : > { %v5884_v4 = vmax.f32 %v5871_v58, 0.0  ;;  %v5859_v33 = vadd.f32 %v10160_v2, %v5838_v1 }
 0x899   : > { %v5783_v36 = vpop.f32.mrb[60].mxu1 }
 0x89a   : > { %5897 = vst.msk [vmem:[%s10171_s23 + $0x10] sm:$0xff] %vm672_vm2, %v5884_v4  ;;  %v5872_v17 = vadd.f32 %v5859_v33, %v3368_v7  ;;  %v5839_v39 = vmul.f32 %v10155_v19, %v5783_v36  ;;  %v7681_v51 = vpop.f32.mrb[61].mxu1  ;;  %v10272_v4 = vmax.f32 %v9500_v46, 0.0 }
 0x89c   : > { %v5885_v22 = vmax.f32 %v5872_v17, 0.0  ;;  %v5860_v48 = vadd.f32 %v10160_v2, %v5839_v39 }
 0x89d   : > { %v5788_v53 = vpop.f32.mrb[62].mxu1 }
 0x89e   : > { %5898 = vst.msk [vmem:[%s10171_s23 + $0x18] sm:$0xff] %vm672_vm2, %v5885_v22  ;;  %v5873_v56 = vadd.f32 %v5860_v48, %v3369_v12  ;;  %v5840_v43 = vmul.f32 %v10155_v19, %v5788_v53  ;;  %v7684_v45 = vpop.f32.mrb[63].mxu1 }
 0x8a0   : > { %v5886_v42 = vmax.f32 %v5873_v56, 0.0  ;;  %v5861_v60 = vadd.f32 %v10160_v2, %v5840_v43 }
 0x8a1   : > { %v5793_v7 = vpop.f32.mrb[64].mxu1 }
 0x8a2   : > { %5899 = vst.msk [vmem:[%s10171_s23 + $0x20] sm:$0xff] %vm672_vm2, %v5886_v42  ;;  %v5874_v31 = vadd.f32 %v5861_v60, %v3370_v26  ;;  %v5841_v15 = vmul.f32 %v10155_v19, %v5793_v7  ;;  %v7687_v50 = vpop.f32.mrb[65].mxu1 }
 0x8a4   : > { %v5887_v16 = vmax.f32 %v5874_v31, 0.0  ;;  %v5862_v54 = vadd.f32 %v10160_v2, %v5841_v15 }
 0x8a5   : > { %v5798_v12 = vpop.f32.mrb[66].mxu1 }
 0x8a6   : > { %5900 = vst.msk [vmem:[%s10171_s23 + $0x28] sm:$0xff] %vm672_vm2, %v5887_v16  ;;  %v5875_v18 = vadd.f32 %v5862_v54, %v3371_v55  ;;  %v5842_v27 = vmul.f32 %v10155_v19, %v5798_v12  ;;  %v7690_v61 = vpop.f32.mrb[67].mxu1 }
 0x8a8   : > { %v5888_v34 = vmax.f32 %v5875_v18, 0.0  ;;  %v5863_v47 = vadd.f32 %v10160_v2, %v5842_v27 }
 0x8a9   : > { %v5803_v26 = vpop.f32.mrb[68].mxu1 }
 0x8aa   : > { %5901 = vst.msk [vmem:[%s10171_s23 + $0x30] sm:$0xff] %vm672_vm2, %v5888_v34  ;;  %v5876_v20 = vadd.f32 %v5863_v47, %v3372_v23  ;;  %v5843_v63 = vmul.f32 %v10155_v19, %v5803_v26  ;;  %v7693_v13 = vpop.f32.mrb[69].mxu1 }
 0x8ac   : > { %v5889_v3 = vmax.f32 %v5876_v20, 0.0  ;;  %v5864_v30 = vadd.f32 %v10160_v2, %v5843_v63 }
 0x8ad   : > { %v5808_v55 = vpop.f32.mrb[70].mxu1 }
 0x8ae   : > { %5902 = vst.msk [vmem:[%s10171_s23 + $0x38] sm:$0xff] %vm672_vm2, %v5889_v3  ;;  %v5877_v28 = vadd.f32 %v5864_v30, %v10268_v52  ;;  %v5844_v44 = vmul.f32 %v10155_v19, %v5808_v55  ;;  %v7696_v29 = vpop.f32.mrb[71].mxu1 }
 0x8b0   : > { %v5890_v41 = vmax.f32 %v5877_v28, 0.0  ;;  %v5865_v10 = vadd.f32 %v10160_v2, %v5844_v44 }
 0x8b1   : > { %v5813_v23 = vpop.f32.mrb[72].mxu1 }
 0x8b2   : > { %5903 = vst.msk [vmem:[%s10171_s23 + $0x40] sm:$0xff] %vm672_vm2, %v5890_v41  ;;  %v5878_v62 = vadd.f32 %v5865_v10, %v10269_v6  ;;  %v5845_v14 = vmul.f32 %v10155_v19, %v5813_v23  ;;  %v7699_v9 = vpop.f32.mrb[73].mxu1 }
 0x8b4   : > { %v5891_v8 = vmax.f32 %v5878_v62, 0.0  ;;  %v5866_v37 = vadd.f32 %v10160_v2, %v5845_v14 }
 0x8b5   : > { %v5818_v11 = vpop.f32.mrb[74].mxu1 }
 0x8b6   : > { %5904 = vst.msk [vmem:[%s10171_s23 + $0x48] sm:$0xff] %vm672_vm2, %v5891_v8  ;;  %v5879_v21 = vadd.f32 %v5866_v37, %v10270_v35  ;;  %v5846_v49 = vmul.f32 %v10155_v19, %v5818_v11  ;;  %v7702_v57 = vpop.f32.mrb[75].mxu1 }
 0x8b8   : > { %v5892_v5 = vmax.f32 %v5879_v21, 0.0  ;;  %v5867_v59 = vadd.f32 %v10160_v2, %v5846_v49 }
 0x8b9   : > { %v5823_v32 = vpop.f32.mrb[76].mxu1 }
 0x8ba   : > { %5905 = vst.msk [vmem:[%s10171_s23 + $0x50] sm:$0xff] %vm672_vm2, %v5892_v5  ;;  %v5880_v24 = vadd.f32 %v5867_v59, %v10271_v40  ;;  %v5847_v58 = vmul.f32 %v10155_v19, %v5823_v32  ;;  %v7705_v1 = vpop.f32.mrb[77].mxu1 }
 0x8bc   : > { %v5893_v25 = vmax.f32 %v5880_v24, 0.0  ;;  %v5868_v38 = vadd.f32 %v10160_v2, %v5847_v58 }
 0x8be   : > { %5906 = vst.msk [vmem:[%s10171_s23 + $0x58] sm:$0xff] %vm672_vm2, %v5893_v25  ;;  %v5881_v33 = vadd.f32 %v5868_v38, %v10272_v4 }
 0x8c0   : > { %v5894_v36 = vmax.f32 %v5881_v33, 0.0 }
 0x8c2   : > { %5908 = vst.msk [vmem:[%s10171_s23 + $0x60] sm:$0xf] %vm5907_vm5, %v5894_v36 }
 0x8c3 PF: > { %s24_s29 = sadd.s32 1, %s8172_s29  }
 0x8c4   : > { %p21_p4 = scmp.ge.s32.totalorder %s24_s29, 4  }
 0x8c6   :  { %23 = sbr.rel (!%p21_p4) target bundleno = 1 (0x1), region = 179 }

</bundles_post_ra>
